<compile_context>
chip_gen: v7x
topology: tpu7x:2x2x1
jax: 0.10.0
libtpu: 0.0.40
codegen_flags: <defaults>
</compile_context>

<pallas_src>
import numpy as np
import jax
import jax.numpy as jnp
from jax.experimental import pallas as pl
from jax.experimental.pallas import tpu as pltpu

EPS = 1e-6


# ---------------------------------------------------------------------------
# Fused kernel: one grid step == one (layer, batch) pair, support + query branch
# ---------------------------------------------------------------------------
def _fused_layer_kernel(sfeat_ref, qfeat_ref, smask_ref, qmask_ref, rrefT_ref,
                        w1m_ref, w2m_ref, fuse_ref, s_out_ref, q_out_ref):
    """Refs (blocks seen by one grid step):

    sfeat/qfeat : (1, 1, C, HW)   raw backbone features of this (layer, batch)
    smask/qmask : (1, 1, HW)      mask bilinearly resized to this layer's (H, W)
    rrefT       : (2, C, 1)       row-normalized reference-layer weight (rows as columns)
    w1m         : (2, 2, HW, HW)  att1 7x7 conv as dense matrices [ic, oc, in_pix, out_pix]
    w2m         : (2, HW, HW)     att2 7x7 conv as dense matrices [ic, in_pix, out_pix]
    fuse        : (1,) in SMEM    fuse_weight scalar
    s_out/q_out : (1, 1, C, HW)   transformed features
    """
    f_s = sfeat_ref[0, 0]                                   # (C, HW)
    f_q = qfeat_ref[0, 0]
    m_s = smask_ref[0]                                      # (1, HW)
    m_q = qmask_ref[0]

    mf_s = f_s * m_s                                        # masked support feature
    mf_q = f_q * m_q                                        # masked query feature

    # --- spatial attention: channel mean/max -> 7x7 conv -> relu -> 7x7 conv -> sigmoid
    #     (convs as dense (HW,HW) MXU matmuls; weights resident across grid steps)
    w1_00 = w1m_ref[0, 0]
    w1_01 = w1m_ref[0, 1]
    w1_10 = w1m_ref[1, 0]
    w1_11 = w1m_ref[1, 1]
    w2_0 = w2m_ref[0]
    w2_1 = w2m_ref[1]

    def attention(mf):                                      # (C, HW) -> (1, HW)
        avg = jnp.mean(mf, axis=0, keepdims=True)           # (1, HW)
        mx = jnp.max(mf, axis=0, keepdims=True)
        h0 = jnp.maximum(
            jnp.dot(avg, w1_00, preferred_element_type=jnp.float32)
            + jnp.dot(mx, w1_10, preferred_element_type=jnp.float32), 0.0)
        h1 = jnp.maximum(
            jnp.dot(avg, w1_01, preferred_element_type=jnp.float32)
            + jnp.dot(mx, w1_11, preferred_element_type=jnp.float32), 0.0)
        return jax.nn.sigmoid(
            jnp.dot(h0, w2_0, preferred_element_type=jnp.float32)
            + jnp.dot(h1, w2_1, preferred_element_type=jnp.float32))

    att_s = attention(mf_s)                                 # (1, HW)
    att_q = attention(mf_q)

    # --- prototypes: mean(feat*mask)/ (mean(mask)+eps); background uses (f - f*m)
    ms_mean = jnp.mean(m_s, axis=1, keepdims=True)          # (1, 1)
    mq_mean = jnp.mean(m_q, axis=1, keepdims=True)
    p_sf = jnp.mean(mf_s, axis=1, keepdims=True) / (ms_mean + EPS)             # (C, 1)
    p_sb = jnp.mean(f_s - mf_s, axis=1, keepdims=True) / (1.0 - ms_mean + EPS)
    p_qf = jnp.mean(mf_q, axis=1, keepdims=True) / (mq_mean + EPS)
    p_qb = jnp.mean(f_q - mf_q, axis=1, keepdims=True) / (1.0 - mq_mean + EPS)

    # fused prototype matrix C (row 0 = background, row 1 = foreground), L2-normalized
    fw = fuse_ref[0]
    c_bg = fw * p_sb + (1.0 - fw) * p_qb                    # (C, 1)
    c_fg = fw * p_sf + (1.0 - fw) * p_qf
    c_bg = c_bg / (jnp.sqrt(jnp.sum(c_bg * c_bg, axis=0, keepdims=True)) + EPS)
    c_fg = c_fg / (jnp.sqrt(jnp.sum(c_fg * c_fg, axis=0, keepdims=True)) + EPS)

    # inverse of the 2x2 Gram matrix G = Cn Cn^T (symmetric)
    g00 = jnp.sum(c_bg * c_bg, axis=0, keepdims=True)       # (1, 1)
    g01 = jnp.sum(c_bg * c_fg, axis=0, keepdims=True)
    g11 = jnp.sum(c_fg * c_fg, axis=0, keepdims=True)
    inv_det = 1.0 / (g00 * g11 - g01 * g01)
    i00 = g11 * inv_det
    i01 = -g01 * inv_det
    i11 = g00 * inv_det

    rT0 = rrefT_ref[0]                                      # (C, 1)
    rT1 = rrefT_ref[1]

    def project(x):
        # P @ x with P = Rn^T G^-1 Cn  == torch's (pinverse(Cn) @ Rn).permute(0, 2, 1)
        y0 = jnp.sum(c_bg * x, axis=0, keepdims=True)       # (1, HW)
        y1 = jnp.sum(c_fg * x, axis=0, keepdims=True)
        z0 = i00 * y0 + i01 * y1
        z1 = i01 * y0 + i11 * y1
        return rT0 * z0 + rT1 * z1                          # (C, HW)

    s_out_ref[0, 0] = project(mf_s * att_s) + mf_s
    q_out_ref[0, 0] = project(mf_q * att_q) + mf_q


def transform_group(s_stack, q_stack, s_mask, q_mask, rn, w1m, w2m, fuse):
    """Run the fused kernel over all layers of one shape group.

    s_stack/q_stack: (L, B, C, HW); s_mask/q_mask: (B, 1, HW); rn: (2, C) normalized
    reference weight; w1m: (2,2,HW,HW); w2m: (2,HW,HW); fuse: (1,).
    """
    L, B, C, HW = s_stack.shape
    rrefT = rn[:, :, None].astype(jnp.float32)              # (2, C, 1)

    feat_spec = pl.BlockSpec((1, 1, C, HW), lambda l, b: (l, b, 0, 0))
    mask_spec = pl.BlockSpec((1, 1, HW), lambda l, b: (b, 0, 0))
    out_shape = (jax.ShapeDtypeStruct((L, B, C, HW), jnp.float32),
                 jax.ShapeDtypeStruct((L, B, C, HW), jnp.float32))

    s_new, q_new = pl.pallas_call(
        _fused_layer_kernel,
        out_shape=out_shape,
        grid=(L, B),
        in_specs=[
            feat_spec,                                          # support features
            feat_spec,                                          # query features
            mask_spec,                                          # support mask
            mask_spec,                                          # query mask
            pl.BlockSpec((2, C, 1), lambda l, b: (0, 0, 0)),    # reference weight (resident)
            pl.BlockSpec((2, 2, HW, HW), lambda l, b: (0, 0, 0, 0)),  # att1 (resident)
            pl.BlockSpec((2, HW, HW), lambda l, b: (0, 0, 0)),  # att2 (resident)
            pl.BlockSpec(memory_space=pltpu.MemorySpace.SMEM),  # fuse_weight scalar
        ],
        out_specs=(feat_spec, feat_spec),
        compiler_params=pltpu.CompilerParams(
            dimension_semantics=("parallel", "parallel")),
    )(s_stack.astype(jnp.float32), q_stack.astype(jnp.float32),
      s_mask.astype(jnp.float32), q_mask.astype(jnp.float32),
      rrefT, w1m.astype(jnp.float32), w2m.astype(jnp.float32),
      fuse.astype(jnp.float32))
    return s_new, q_new


# ---------------------------------------------------------------------------
# Plain-JAX glue (weight preprocessing + mask resize + grouping)
# ---------------------------------------------------------------------------
def conv7x7_as_matmul(w, H, W):
    """Dense-matrix form of Conv2d(kernel=7, stride=1, pad=3, bias=False) on an HxW grid.

    w: (OC, IC, 7, 7). Returns (IC, OC, H*W, H*W) such that
    out_plane[oc] (row over out pixels) = sum_ic in_plane[ic] (row over in pixels) @ M[ic, oc].
    Traceable in the conv weights (only static index/mask arrays are numpy).
    """
    w = jnp.asarray(w, jnp.float32)
    OC, IC, KH, KW = w.shape
    ky = np.arange(H)[None, :] - np.arange(H)[:, None] + KH // 2   # [out_y, in_y]
    kx = np.arange(W)[None, :] - np.arange(W)[:, None] + KW // 2   # [out_x, in_x]
    vy = ((ky >= 0) & (ky < KH)).astype(np.float32)
    vx = ((kx >= 0) & (kx < KW)).astype(np.float32)
    g = w[:, :, np.clip(ky, 0, KH - 1), :][:, :, :, :, np.clip(kx, 0, KW - 1)]
    # g: (OC, IC, out_y, in_y, out_x, in_x)
    g = g * vy[None, None, :, :, None, None] * vx[None, None, None, None, :, :]
    m = jnp.transpose(g, (1, 0, 3, 5, 2, 4)).reshape(IC, OC, H * W, H * W)
    return m


def bilinear_align_corners(x, out_h, out_w):
    """x: (B, H, W) -> (B, out_h, out_w), matching F.interpolate(align_corners=True)."""
    B, H, W = x.shape
    ys = jnp.linspace(0.0, H - 1.0, out_h) if H > 1 else jnp.zeros((out_h,))
    xs = jnp.linspace(0.0, W - 1.0, out_w) if W > 1 else jnp.zeros((out_w,))
    y0 = jnp.floor(ys).astype(jnp.int32)
    x0 = jnp.floor(xs).astype(jnp.int32)
    y1 = jnp.minimum(y0 + 1, H - 1)
    x1 = jnp.minimum(x0 + 1, W - 1)
    wy = (ys - y0.astype(ys.dtype))[None, :, None]
    wx = (xs - x0.astype(xs.dtype))[None, None, :]
    g = lambda yi, xi: x[:, yi][:, :, xi]
    top = g(y0, x0) * (1.0 - wx) + g(y0, x1) * wx
    bot = g(y1, x0) * (1.0 - wx) + g(y1, x1) * wx
    return top * (1.0 - wy) + bot * wy


def restnet_forward(query_feats, support_feats, support_mask, query_mask, params):
    """RestNetwork.forward minus the external backbone / correlation / HPNLearner.

    Returns (transformed_query_feats, transformed_support_feats), one (B,C,H,W) array
    per backbone layer, matching mask_feature + Transformation_Feature semantics.
    """
    n_layers = len(support_feats)
    ref_ws = [params['ref1_w'], params['ref2_w'], params['ref3_w']]

    def ref_id(idx):  # idx <= 3 -> ref1, idx <= 9 -> ref2, else ref3
        return 0 if idx <= 3 else (1 if idx <= 9 else 2)

    # consecutive layers with identical shape + reference weight share one pallas_call
    groups, start = [], 0
    for i in range(1, n_layers + 1):
        if (i == n_layers or support_feats[i].shape != support_feats[start].shape
                or ref_id(i) != ref_id(start)):
            groups.append((start, i))
            start = i

    fuse = jnp.asarray(params['fuse_weight'], jnp.float32).reshape(1)
    conv_cache = {}
    q_out = [None] * n_layers
    s_out = [None] * n_layers
    for lo, hi in groups:
        L = hi - lo
        B, C, H, W = support_feats[lo].shape
        HW = H * W
        s_stack = jnp.stack([support_feats[i].reshape(B, C, HW) for i in range(lo, hi)])
        q_stack = jnp.stack([query_feats[i].reshape(B, C, HW) for i in range(lo, hi)])
        s_mask = bilinear_align_corners(support_mask, H, W).reshape(B, 1, HW)
        q_mask = bilinear_align_corners(query_mask, H, W).reshape(B, 1, HW)
        rw = jnp.asarray(ref_ws[ref_id(lo)], jnp.float32)
        rn = rw / (jnp.sqrt(jnp.sum(rw * rw, axis=1, keepdims=True)) + EPS)
        if (H, W) not in conv_cache:
            conv_cache[(H, W)] = (conv7x7_as_matmul(params['att1_w'], H, W),      # (2,2,HW,HW)
                                  conv7x7_as_matmul(params['att2_w'], H, W)[:, 0])  # (2,HW,HW)
        w1m, w2m = conv_cache[(H, W)]
        s_new, q_new = transform_group(s_stack, q_stack, s_mask, q_mask, rn, w1m, w2m, fuse)
        for j in range(L):
            s_out[lo + j] = s_new[j].reshape(B, C, H, W)
            q_out[lo + j] = q_new[j].reshape(B, C, H, W)
    # TODO(synk): corr = Correlation.multilayer_correlation(...); logit = hpn_learner(corr)
    return q_out, s_out


# ---------------------------------------------------------------------------
# Deterministic parameter init (mirrors the shapes in __init__, scaled down)
# ---------------------------------------------------------------------------
def init_params(key, d1, d2, d3):
    ks = jax.random.split(key, 5)
    # kaiming_normal_(mode='fan_in', nonlinearity='linear'): std = 1/sqrt(fan_in)
    ref1 = jax.random.normal(ks[0], (2, d1), jnp.float32) / np.sqrt(d1)
    ref2 = jax.random.normal(ks[1], (2, d2), jnp.float32) / np.sqrt(d2)
    ref3 = jax.random.normal(ks[2], (2, d3), jnp.float32) / np.sqrt(d3)
    bound = 1.0 / np.sqrt(2 * 7 * 7)   # Conv2d default kaiming_uniform bound
    att1 = jax.random.uniform(ks[3], (2, 2, 7, 7), jnp.float32, -bound, bound)
    att2 = jax.random.uniform(ks[4], (1, 2, 7, 7), jnp.float32, -bound, bound)
    return dict(ref1_w=ref1, ref2_w=ref2, ref3_w=ref3,
                att1_w=att1, att2_w=att2, fuse_weight=jnp.float32(0.5))


if __name__ == "__main__":
    root = jax.random.PRNGKey(0)
    k_params, k_feat, k_mask = jax.random.split(root, 3)

    B = 2
    # resnet50-style layer structure (13 layers), scaled-down channels/spatial
    layer_cfg = [(32, 16)] * 4 + [(64, 8)] * 6 + [(128, 4)] * 3
    D1, D2, D3 = 32, 64, 128

    params = init_params(k_params, D1, D2, D3)

    # synthetic backbone features (stand-in for extract_feats on query/support imgs)
    feat_keys = jax.random.split(k_feat, 2 * len(layer_cfg))
    query_feats, support_feats = [], []
    for i, (C, S) in enumerate(layer_cfg):
        query_feats.append(jax.random.normal(feat_keys[2 * i], (B, C, S, S), jnp.float32))
        support_feats.append(jax.random.normal(feat_keys[2 * i + 1], (B, C, S, S), jnp.float32))

    km1, km2 = jax.random.split(k_mask)
    support_mask = jax.random.uniform(km1, (B, 16, 16), jnp.float32)
    query_mask = jax.random.uniform(km2, (B, 16, 16), jnp.float32)

    fwd = jax.jit(restnet_forward)
    q_out, s_out = fwd(query_feats, support_feats, support_mask, query_mask, params)
    jax.block_until_ready(q_out)
    jax.block_until_ready(s_out)
    print("KERNEL_OK")
</pallas_src>

<mosaic_0001>
module attributes {stable_mosaic.version = 11 : i64} {
  func.func @_fused_layer_kernel(%arg0: i32, %arg1: i32, %arg2: memref<1x1x32x256xf32, #tpu.memory_space<vmem>>, %arg3: memref<1x1x32x256xf32, #tpu.memory_space<vmem>>, %arg4: memref<1x1x256xf32, #tpu.memory_space<vmem>>, %arg5: memref<1x1x256xf32, #tpu.memory_space<vmem>>, %arg6: memref<2x32x1xf32, #tpu.memory_space<vmem>>, %arg7: memref<2x2x256x256xf32, #tpu.memory_space<vmem>>, %arg8: memref<2x256x256xf32, #tpu.memory_space<vmem>>, %arg9: memref<1xf32, #tpu.memory_space<smem>>, %arg10: memref<1x1x32x256xf32, #tpu.memory_space<vmem>>, %arg11: memref<1x1x32x256xf32, #tpu.memory_space<vmem>>) attributes {dimension_semantics = [#tpu.dimension_semantics<parallel>, #tpu.dimension_semantics<parallel>], iteration_bounds = array<i64: 4, 2>, scalar_prefetch = 0 : i64, scratch_operands = 0 : i64, tpu.core_type = #tpu.core_type<tc>, window_params = [{transform_indices = @transform_0, window_bounds = array<i64: 1, 1, 32, 256>}, {transform_indices = @transform_1, window_bounds = array<i64: 1, 1, 32, 256>}, {transform_indices = @transform_2, window_bounds = array<i64: 1, 1, 256>}, {transform_indices = @transform_3, window_bounds = array<i64: 1, 1, 256>}, {pipeline_mode = #tpu.pipeline_mode<synchronous>, transform_indices = @transform_4, window_bounds = array<i64: 2, 32, 1>}, {pipeline_mode = #tpu.pipeline_mode<synchronous>, transform_indices = @transform_5, window_bounds = array<i64: 2, 2, 256, 256>}, {pipeline_mode = #tpu.pipeline_mode<synchronous>, transform_indices = @transform_6, window_bounds = array<i64: 2, 256, 256>}, {transform_indices = @transform_7, window_bounds = array<i64: 1>}, {transform_indices = @transform_8, window_bounds = array<i64: 1, 1, 32, 256>}, {transform_indices = @transform_9, window_bounds = array<i64: 1, 1, 32, 256>}]} {
    %c0 = arith.constant 0 : index
    %c0_0 = arith.constant 0 : index
    %c0_1 = arith.constant 0 : index
    %c0_2 = arith.constant 0 : index
    %0 = vector.load %arg2[%c0, %c0_0, %c0_1, %c0_2] : memref<1x1x32x256xf32, #tpu.memory_space<vmem>>, vector<1x1x32x256xf32>
    %1 = vector.shape_cast %0 : vector<1x1x32x256xf32> to vector<32x256xf32>
    %c0_3 = arith.constant 0 : index
    %c0_4 = arith.constant 0 : index
    %c0_5 = arith.constant 0 : index
    %c0_6 = arith.constant 0 : index
    %2 = vector.load %arg3[%c0_3, %c0_4, %c0_5, %c0_6] : memref<1x1x32x256xf32, #tpu.memory_space<vmem>>, vector<1x1x32x256xf32>
    %3 = vector.shape_cast %2 : vector<1x1x32x256xf32> to vector<32x256xf32>
    %c0_7 = arith.constant 0 : index
    %c0_8 = arith.constant 0 : index
    %c0_9 = arith.constant 0 : index
    %4 = vector.load %arg4[%c0_7, %c0_8, %c0_9] : memref<1x1x256xf32, #tpu.memory_space<vmem>>, vector<1x1x256xf32>
    %5 = vector.shape_cast %4 : vector<1x1x256xf32> to vector<1x256xf32>
    %c0_10 = arith.constant 0 : index
    %c0_11 = arith.constant 0 : index
    %c0_12 = arith.constant 0 : index
    %6 = vector.load %arg5[%c0_10, %c0_11, %c0_12] : memref<1x1x256xf32, #tpu.memory_space<vmem>>, vector<1x1x256xf32>
    %7 = vector.shape_cast %6 : vector<1x1x256xf32> to vector<1x256xf32>
    %8 = vector.broadcast %5 : vector<1x256xf32> to vector<32x256xf32>
    %9 = arith.mulf %1, %8 : vector<32x256xf32>
    %10 = vector.broadcast %7 : vector<1x256xf32> to vector<32x256xf32>
    %11 = arith.mulf %3, %10 : vector<32x256xf32>
    %c0_13 = arith.constant 0 : index
    %c0_14 = arith.constant 0 : index
    %c0_15 = arith.constant 0 : index
    %c0_16 = arith.constant 0 : index
    %12 = vector.load %arg7[%c0_13, %c0_14, %c0_15, %c0_16] : memref<2x2x256x256xf32, #tpu.memory_space<vmem>>, vector<1x1x256x256xf32>
    %13 = vector.shape_cast %12 : vector<1x1x256x256xf32> to vector<256x256xf32>
    %c0_17 = arith.constant 0 : index
    %c1 = arith.constant 1 : index
    %c0_18 = arith.constant 0 : index
    %c0_19 = arith.constant 0 : index
    %14 = vector.load %arg7[%c0_17, %c1, %c0_18, %c0_19] : memref<2x2x256x256xf32, #tpu.memory_space<vmem>>, vector<1x1x256x256xf32>
    %15 = vector.shape_cast %14 : vector<1x1x256x256xf32> to vector<256x256xf32>
    %c1_20 = arith.constant 1 : index
    %c0_21 = arith.constant 0 : index
    %c0_22 = arith.constant 0 : index
    %c0_23 = arith.constant 0 : index
    %16 = vector.load %arg7[%c1_20, %c0_21, %c0_22, %c0_23] : memref<2x2x256x256xf32, #tpu.memory_space<vmem>>, vector<1x1x256x256xf32>
    %17 = vector.shape_cast %16 : vector<1x1x256x256xf32> to vector<256x256xf32>
    %c1_24 = arith.constant 1 : index
    %c1_25 = arith.constant 1 : index
    %c0_26 = arith.constant 0 : index
    %c0_27 = arith.constant 0 : index
    %18 = vector.load %arg7[%c1_24, %c1_25, %c0_26, %c0_27] : memref<2x2x256x256xf32, #tpu.memory_space<vmem>>, vector<1x1x256x256xf32>
    %19 = vector.shape_cast %18 : vector<1x1x256x256xf32> to vector<256x256xf32>
    %c0_28 = arith.constant 0 : index
    %c0_29 = arith.constant 0 : index
    %c0_30 = arith.constant 0 : index
    %20 = vector.load %arg8[%c0_28, %c0_29, %c0_30] : memref<2x256x256xf32, #tpu.memory_space<vmem>>, vector<1x256x256xf32>
    %21 = vector.shape_cast %20 : vector<1x256x256xf32> to vector<256x256xf32>
    %c1_31 = arith.constant 1 : index
    %c0_32 = arith.constant 0 : index
    %c0_33 = arith.constant 0 : index
    %22 = vector.load %arg8[%c1_31, %c0_32, %c0_33] : memref<2x256x256xf32, #tpu.memory_space<vmem>>, vector<1x256x256xf32>
    %23 = vector.shape_cast %22 : vector<1x256x256xf32> to vector<256x256xf32>
    %cst = arith.constant dense<0.000000e+00> : vector<256xf32>
    %24 = vector.multi_reduction <add>, %9, %cst [0] : vector<32x256xf32> to vector<256xf32>
    %25 = vector.shape_cast %24 : vector<256xf32> to vector<1x256xf32>
    %cst_34 = arith.constant 3.200000e+01 : f32
    %26 = vector.broadcast %cst_34 : f32 to vector<1x256xf32>
    %27 = arith.divf %25, %26 : vector<1x256xf32>
    %cst_35 = arith.constant dense<0xFF800000> : vector<256xf32>
    %28 = vector.multi_reduction <maximumf>, %9, %cst_35 [0] : vector<32x256xf32> to vector<256xf32>
    %29 = vector.shape_cast %28 : vector<256xf32> to vector<1x256xf32>
    %cst_36 = arith.constant dense<0.000000e+00> : vector<1x256xf32>
    %30 = tpu.matmul %27, %13, %cst_36 {dimension_numbers = #tpu.dot_dimension_numbers<[1], [0], [0], [1], [0, 0, 1, 1], [], []>} : vector<1x256xf32>, vector<256x256xf32>, vector<1x256xf32> -> vector<1x256xf32>
    %cst_37 = arith.constant dense<0.000000e+00> : vector<1x256xf32>
    %31 = tpu.matmul %29, %17, %cst_37 {dimension_numbers = #tpu.dot_dimension_numbers<[1], [0], [0], [1], [0, 0, 1, 1], [], []>} : vector<1x256xf32>, vector<256x256xf32>, vector<1x256xf32> -> vector<1x256xf32>
    %32 = arith.addf %30, %31 : vector<1x256xf32>
    %cst_38 = arith.constant 0.000000e+00 : f32
    %33 = vector.broadcast %cst_38 : f32 to vector<1x256xf32>
    %34 = arith.maximumf %32, %33 : vector<1x256xf32>
    %cst_39 = arith.constant dense<0.000000e+00> : vector<1x256xf32>
    %35 = tpu.matmul %27, %15, %cst_39 {dimension_numbers = #tpu.dot_dimension_numbers<[1], [0], [0], [1], [0, 0, 1, 1], [], []>} : vector<1x256xf32>, vector<256x256xf32>, vector<1x256xf32> -> vector<1x256xf32>
    %cst_40 = arith.constant dense<0.000000e+00> : vector<1x256xf32>
    %36 = tpu.matmul %29, %19, %cst_40 {dimension_numbers = #tpu.dot_dimension_numbers<[1], [0], [0], [1], [0, 0, 1, 1], [], []>} : vector<1x256xf32>, vector<256x256xf32>, vector<1x256xf32> -> vector<1x256xf32>
    %37 = arith.addf %35, %36 : vector<1x256xf32>
    %cst_41 = arith.constant 0.000000e+00 : f32
    %38 = vector.broadcast %cst_41 : f32 to vector<1x256xf32>
    %39 = arith.maximumf %37, %38 : vector<1x256xf32>
    %cst_42 = arith.constant dense<0.000000e+00> : vector<1x256xf32>
    %40 = tpu.matmul %34, %21, %cst_42 {dimension_numbers = #tpu.dot_dimension_numbers<[1], [0], [0], [1], [0, 0, 1, 1], [], []>} : vector<1x256xf32>, vector<256x256xf32>, vector<1x256xf32> -> vector<1x256xf32>
    %cst_43 = arith.constant dense<0.000000e+00> : vector<1x256xf32>
    %41 = tpu.matmul %39, %23, %cst_43 {dimension_numbers = #tpu.dot_dimension_numbers<[1], [0], [0], [1], [0, 0, 1, 1], [], []>} : vector<1x256xf32>, vector<256x256xf32>, vector<1x256xf32> -> vector<1x256xf32>
    %42 = arith.addf %40, %41 : vector<1x256xf32>
    %43 = arith.negf %42 : vector<1x256xf32>
    %44 = math.exp %43 : vector<1x256xf32>
    %cst_44 = arith.constant 1.000000e+00 : f32
    %45 = vector.broadcast %cst_44 : f32 to vector<1x256xf32>
    %46 = arith.addf %45, %44 : vector<1x256xf32>
    %47 = arith.divf %45, %46 : vector<1x256xf32>
    %cst_45 = arith.constant dense<0.000000e+00> : vector<256xf32>
    %48 = vector.multi_reduction <add>, %11, %cst_45 [0] : vector<32x256xf32> to vector<256xf32>
    %49 = vector.shape_cast %48 : vector<256xf32> to vector<1x256xf32>
    %cst_46 = arith.constant 3.200000e+01 : f32
    %50 = vector.broadcast %cst_46 : f32 to vector<1x256xf32>
    %51 = arith.divf %49, %50 : vector<1x256xf32>
    %cst_47 = arith.constant dense<0xFF800000> : vector<256xf32>
    %52 = vector.multi_reduction <maximumf>, %11, %cst_47 [0] : vector<32x256xf32> to vector<256xf32>
    %53 = vector.shape_cast %52 : vector<256xf32> to vector<1x256xf32>
    %cst_48 = arith.constant dense<0.000000e+00> : vector<1x256xf32>
    %54 = tpu.matmul %51, %13, %cst_48 {dimension_numbers = #tpu.dot_dimension_numbers<[1], [0], [0], [1], [0, 0, 1, 1], [], []>} : vector<1x256xf32>, vector<256x256xf32>, vector<1x256xf32> -> vector<1x256xf32>
    %cst_49 = arith.constant dense<0.000000e+00> : vector<1x256xf32>
    %55 = tpu.matmul %53, %17, %cst_49 {dimension_numbers = #tpu.dot_dimension_numbers<[1], [0], [0], [1], [0, 0, 1, 1], [], []>} : vector<1x256xf32>, vector<256x256xf32>, vector<1x256xf32> -> vector<1x256xf32>
    %56 = arith.addf %54, %55 : vector<1x256xf32>
    %cst_50 = arith.constant 0.000000e+00 : f32
    %57 = vector.broadcast %cst_50 : f32 to vector<1x256xf32>
    %58 = arith.maximumf %56, %57 : vector<1x256xf32>
    %cst_51 = arith.constant dense<0.000000e+00> : vector<1x256xf32>
    %59 = tpu.matmul %51, %15, %cst_51 {dimension_numbers = #tpu.dot_dimension_numbers<[1], [0], [0], [1], [0, 0, 1, 1], [], []>} : vector<1x256xf32>, vector<256x256xf32>, vector<1x256xf32> -> vector<1x256xf32>
    %cst_52 = arith.constant dense<0.000000e+00> : vector<1x256xf32>
    %60 = tpu.matmul %53, %19, %cst_52 {dimension_numbers = #tpu.dot_dimension_numbers<[1], [0], [0], [1], [0, 0, 1, 1], [], []>} : vector<1x256xf32>, vector<256x256xf32>, vector<1x256xf32> -> vector<1x256xf32>
    %61 = arith.addf %59, %60 : vector<1x256xf32>
    %cst_53 = arith.constant 0.000000e+00 : f32
    %62 = vector.broadcast %cst_53 : f32 to vector<1x256xf32>
    %63 = arith.maximumf %61, %62 : vector<1x256xf32>
    %cst_54 = arith.constant dense<0.000000e+00> : vector<1x256xf32>
    %64 = tpu.matmul %58, %21, %cst_54 {dimension_numbers = #tpu.dot_dimension_numbers<[1], [0], [0], [1], [0, 0, 1, 1], [], []>} : vector<1x256xf32>, vector<256x256xf32>, vector<1x256xf32> -> vector<1x256xf32>
    %cst_55 = arith.constant dense<0.000000e+00> : vector<1x256xf32>
    %65 = tpu.matmul %63, %23, %cst_55 {dimension_numbers = #tpu.dot_dimension_numbers<[1], [0], [0], [1], [0, 0, 1, 1], [], []>} : vector<1x256xf32>, vector<256x256xf32>, vector<1x256xf32> -> vector<1x256xf32>
    %66 = arith.addf %64, %65 : vector<1x256xf32>
    %67 = arith.negf %66 : vector<1x256xf32>
    %68 = math.exp %67 : vector<1x256xf32>
    %cst_56 = arith.constant 1.000000e+00 : f32
    %69 = vector.broadcast %cst_56 : f32 to vector<1x256xf32>
    %70 = arith.addf %69, %68 : vector<1x256xf32>
    %71 = arith.divf %69, %70 : vector<1x256xf32>
    %cst_57 = arith.constant dense<0.000000e+00> : vector<1xf32>
    %72 = vector.multi_reduction <add>, %5, %cst_57 [1] : vector<1x256xf32> to vector<1xf32>
    %73 = vector.shape_cast %72 : vector<1xf32> to vector<1x1xf32>
    %cst_58 = arith.constant 2.560000e+02 : f32
    %74 = vector.broadcast %cst_58 : f32 to vector<1x1xf32>
    %75 = arith.divf %73, %74 : vector<1x1xf32>
    %cst_59 = arith.constant dense<0.000000e+00> : vector<1xf32>
    %76 = vector.multi_reduction <add>, %7, %cst_59 [1] : vector<1x256xf32> to vector<1xf32>
    %77 = vector.shape_cast %76 : vector<1xf32> to vector<1x1xf32>
    %cst_60 = arith.constant 2.560000e+02 : f32
    %78 = vector.broadcast %cst_60 : f32 to vector<1x1xf32>
    %79 = arith.divf %77, %78 : vector<1x1xf32>
    %cst_61 = arith.constant dense<0.000000e+00> : vector<32xf32>
    %80 = vector.multi_reduction <add>, %9, %cst_61 [1] : vector<32x256xf32> to vector<32xf32>
    %81 = vector.shape_cast %80 : vector<32xf32> to vector<32x1xf32>
    %cst_62 = arith.constant 2.560000e+02 : f32
    %82 = vector.broadcast %cst_62 : f32 to vector<32x1xf32>
    %83 = arith.divf %81, %82 : vector<32x1xf32>
    %cst_63 = arith.constant 9.99999997E-7 : f32
    %84 = vector.broadcast %cst_63 : f32 to vector<1x1xf32>
    %85 = arith.addf %75, %84 : vector<1x1xf32>
    %86 = vector.broadcast %85 : vector<1x1xf32> to vector<32x1xf32>
    %87 = arith.divf %83, %86 : vector<32x1xf32>
    %88 = arith.subf %1, %9 : vector<32x256xf32>
    %cst_64 = arith.constant dense<0.000000e+00> : vector<32xf32>
    %89 = vector.multi_reduction <add>, %88, %cst_64 [1] : vector<32x256xf32> to vector<32xf32>
    %90 = vector.shape_cast %89 : vector<32xf32> to vector<32x1xf32>
    %cst_65 = arith.constant 2.560000e+02 : f32
    %91 = vector.broadcast %cst_65 : f32 to vector<32x1xf32>
    %92 = arith.divf %90, %91 : vector<32x1xf32>
    %cst_66 = arith.constant 1.000000e+00 : f32
    %93 = vector.broadcast %cst_66 : f32 to vector<1x1xf32>
    %94 = arith.subf %93, %75 : vector<1x1xf32>
    %cst_67 = arith.constant 9.99999997E-7 : f32
    %95 = vector.broadcast %cst_67 : f32 to vector<1x1xf32>
    %96 = arith.addf %94, %95 : vector<1x1xf32>
    %97 = vector.broadcast %96 : vector<1x1xf32> to vector<32x1xf32>
    %98 = arith.divf %92, %97 : vector<32x1xf32>
    %cst_68 = arith.constant dense<0.000000e+00> : vector<32xf32>
    %99 = vector.multi_reduction <add>, %11, %cst_68 [1] : vector<32x256xf32> to vector<32xf32>
    %100 = vector.shape_cast %99 : vector<32xf32> to vector<32x1xf32>
    %cst_69 = arith.constant 2.560000e+02 : f32
    %101 = vector.broadcast %cst_69 : f32 to vector<32x1xf32>
    %102 = arith.divf %100, %101 : vector<32x1xf32>
    %cst_70 = arith.constant 9.99999997E-7 : f32
    %103 = vector.broadcast %cst_70 : f32 to vector<1x1xf32>
    %104 = arith.addf %79, %103 : vector<1x1xf32>
    %105 = vector.broadcast %104 : vector<1x1xf32> to vector<32x1xf32>
    %106 = arith.divf %102, %105 : vector<32x1xf32>
    %107 = arith.subf %3, %11 : vector<32x256xf32>
    %cst_71 = arith.constant dense<0.000000e+00> : vector<32xf32>
    %108 = vector.multi_reduction <add>, %107, %cst_71 [1] : vector<32x256xf32> to vector<32xf32>
    %109 = vector.shape_cast %108 : vector<32xf32> to vector<32x1xf32>
    %cst_72 = arith.constant 2.560000e+02 : f32
    %110 = vector.broadcast %cst_72 : f32 to vector<32x1xf32>
    %111 = arith.divf %109, %110 : vector<32x1xf32>
    %cst_73 = arith.constant 1.000000e+00 : f32
    %112 = vector.broadcast %cst_73 : f32 to vector<1x1xf32>
    %113 = arith.subf %112, %79 : vector<1x1xf32>
    %cst_74 = arith.constant 9.99999997E-7 : f32
    %114 = vector.broadcast %cst_74 : f32 to vector<1x1xf32>
    %115 = arith.addf %113, %114 : vector<1x1xf32>
    %116 = vector.broadcast %115 : vector<1x1xf32> to vector<32x1xf32>
    %117 = arith.divf %111, %116 : vector<32x1xf32>
    %c0_75 = arith.constant 0 : index
    %118 = memref.load %arg9[%c0_75] : memref<1xf32, #tpu.memory_space<smem>>
    %119 = vector.broadcast %118 : f32 to vector<32x1xf32>
    %120 = arith.mulf %119, %98 : vector<32x1xf32>
    %cst_76 = arith.constant 1.000000e+00 : f32
    %121 = arith.subf %cst_76, %118 : f32
    %122 = vector.broadcast %121 : f32 to vector<32x1xf32>
    %123 = arith.mulf %122, %117 : vector<32x1xf32>
    %124 = arith.addf %120, %123 : vector<32x1xf32>
    %125 = vector.broadcast %118 : f32 to vector<32x1xf32>
    %126 = arith.mulf %125, %87 : vector<32x1xf32>
    %cst_77 = arith.constant 1.000000e+00 : f32
    %127 = arith.subf %cst_77, %118 : f32
    %128 = vector.broadcast %127 : f32 to vector<32x1xf32>
    %129 = arith.mulf %128, %106 : vector<32x1xf32>
    %130 = arith.addf %126, %129 : vector<32x1xf32>
    %131 = arith.mulf %124, %124 : vector<32x1xf32>
    %cst_78 = arith.constant dense<0.000000e+00> : vector<1xf32>
    %132 = vector.multi_reduction <add>, %131, %cst_78 [0] : vector<32x1xf32> to vector<1xf32>
    %133 = vector.shape_cast %132 : vector<1xf32> to vector<1x1xf32>
    %134 = math.sqrt %133 : vector<1x1xf32>
    %cst_79 = arith.constant 9.99999997E-7 : f32
    %135 = vector.broadcast %cst_79 : f32 to vector<1x1xf32>
    %136 = arith.addf %134, %135 : vector<1x1xf32>
    %137 = vector.broadcast %136 : vector<1x1xf32> to vector<32x1xf32>
    %138 = arith.divf %124, %137 : vector<32x1xf32>
    %139 = arith.mulf %130, %130 : vector<32x1xf32>
    %cst_80 = arith.constant dense<0.000000e+00> : vector<1xf32>
    %140 = vector.multi_reduction <add>, %139, %cst_80 [0] : vector<32x1xf32> to vector<1xf32>
    %141 = vector.shape_cast %140 : vector<1xf32> to vector<1x1xf32>
    %142 = math.sqrt %141 : vector<1x1xf32>
    %cst_81 = arith.constant 9.99999997E-7 : f32
    %143 = vector.broadcast %cst_81 : f32 to vector<1x1xf32>
    %144 = arith.addf %142, %143 : vector<1x1xf32>
    %145 = vector.broadcast %144 : vector<1x1xf32> to vector<32x1xf32>
    %146 = arith.divf %130, %145 : vector<32x1xf32>
    %147 = arith.mulf %138, %138 : vector<32x1xf32>
    %cst_82 = arith.constant dense<0.000000e+00> : vector<1xf32>
    %148 = vector.multi_reduction <add>, %147, %cst_82 [0] : vector<32x1xf32> to vector<1xf32>
    %149 = vector.shape_cast %148 : vector<1xf32> to vector<1x1xf32>
    %150 = arith.mulf %138, %146 : vector<32x1xf32>
    %cst_83 = arith.constant dense<0.000000e+00> : vector<1xf32>
    %151 = vector.multi_reduction <add>, %150, %cst_83 [0] : vector<32x1xf32> to vector<1xf32>
    %152 = vector.shape_cast %151 : vector<1xf32> to vector<1x1xf32>
    %153 = arith.mulf %146, %146 : vector<32x1xf32>
    %cst_84 = arith.constant dense<0.000000e+00> : vector<1xf32>
    %154 = vector.multi_reduction <add>, %153, %cst_84 [0] : vector<32x1xf32> to vector<1xf32>
    %155 = vector.shape_cast %154 : vector<1xf32> to vector<1x1xf32>
    %156 = arith.mulf %149, %155 : vector<1x1xf32>
    %157 = arith.mulf %152, %152 : vector<1x1xf32>
    %158 = arith.subf %156, %157 : vector<1x1xf32>
    %cst_85 = arith.constant 1.000000e+00 : f32
    %159 = vector.broadcast %cst_85 : f32 to vector<1x1xf32>
    %160 = arith.divf %159, %158 : vector<1x1xf32>
    %161 = arith.mulf %155, %160 : vector<1x1xf32>
    %cst_86 = arith.constant 0.000000e+00 : f32
    %162 = vector.broadcast %cst_86 : f32 to vector<1x1xf32>
    %163 = arith.subf %162, %152 : vector<1x1xf32>
    %164 = arith.mulf %163, %160 : vector<1x1xf32>
    %165 = arith.mulf %149, %160 : vector<1x1xf32>
    %c0_87 = arith.constant 0 : index
    %c0_88 = arith.constant 0 : index
    %c0_89 = arith.constant 0 : index
    %166 = vector.load %arg6[%c0_87, %c0_88, %c0_89] : memref<2x32x1xf32, #tpu.memory_space<vmem>>, vector<1x32x1xf32>
    %167 = vector.shape_cast %166 : vector<1x32x1xf32> to vector<32x1xf32>
    %c1_90 = arith.constant 1 : index
    %c0_91 = arith.constant 0 : index
    %c0_92 = arith.constant 0 : index
    %168 = vector.load %arg6[%c1_90, %c0_91, %c0_92] : memref<2x32x1xf32, #tpu.memory_space<vmem>>, vector<1x32x1xf32>
    %169 = vector.shape_cast %168 : vector<1x32x1xf32> to vector<32x1xf32>
    %170 = vector.broadcast %47 : vector<1x256xf32> to vector<32x256xf32>
    %171 = arith.mulf %9, %170 : vector<32x256xf32>
    %172 = vector.broadcast %138 : vector<32x1xf32> to vector<32x256xf32>
    %173 = arith.mulf %172, %171 : vector<32x256xf32>
    %cst_93 = arith.constant dense<0.000000e+00> : vector<256xf32>
    %174 = vector.multi_reduction <add>, %173, %cst_93 [0] : vector<32x256xf32> to vector<256xf32>
    %175 = vector.shape_cast %174 : vector<256xf32> to vector<1x256xf32>
    %176 = vector.broadcast %146 : vector<32x1xf32> to vector<32x256xf32>
    %177 = arith.mulf %176, %171 : vector<32x256xf32>
    %cst_94 = arith.constant dense<0.000000e+00> : vector<256xf32>
    %178 = vector.multi_reduction <add>, %177, %cst_94 [0] : vector<32x256xf32> to vector<256xf32>
    %179 = vector.shape_cast %178 : vector<256xf32> to vector<1x256xf32>
    %180 = vector.broadcast %161 : vector<1x1xf32> to vector<1x256xf32>
    %181 = arith.mulf %180, %175 : vector<1x256xf32>
    %182 = vector.broadcast %164 : vector<1x1xf32> to vector<1x256xf32>
    %183 = arith.mulf %182, %179 : vector<1x256xf32>
    %184 = arith.addf %181, %183 : vector<1x256xf32>
    %185 = vector.broadcast %164 : vector<1x1xf32> to vector<1x256xf32>
    %186 = arith.mulf %185, %175 : vector<1x256xf32>
    %187 = vector.broadcast %165 : vector<1x1xf32> to vector<1x256xf32>
    %188 = arith.mulf %187, %179 : vector<1x256xf32>
    %189 = arith.addf %186, %188 : vector<1x256xf32>
    %190 = vector.broadcast %167 : vector<32x1xf32> to vector<32x256xf32>
    %191 = vector.broadcast %184 : vector<1x256xf32> to vector<32x256xf32>
    %192 = arith.mulf %190, %191 : vector<32x256xf32>
    %193 = vector.broadcast %169 : vector<32x1xf32> to vector<32x256xf32>
    %194 = vector.broadcast %189 : vector<1x256xf32> to vector<32x256xf32>
    %195 = arith.mulf %193, %194 : vector<32x256xf32>
    %196 = arith.addf %192, %195 : vector<32x256xf32>
    %197 = arith.addf %196, %9 : vector<32x256xf32>
    %c0_95 = arith.constant 0 : index
    %c0_96 = arith.constant 0 : index
    %c0_97 = arith.constant 0 : index
    %c0_98 = arith.constant 0 : index
    %198 = vector.load %arg10[%c0_95, %c0_96, %c0_97, %c0_98] : memref<1x1x32x256xf32, #tpu.memory_space<vmem>>, vector<1x1x32x256xf32>
    %199 = vector.shape_cast %198 : vector<1x1x32x256xf32> to vector<32x256xf32>
    %200 = vector.shape_cast %197 : vector<32x256xf32> to vector<1x1x32x256xf32>
    tpu.vector_store %arg10[%c0_95, %c0_96, %c0_97, %c0_98], %200 {strides = array<i32>} : memref<1x1x32x256xf32, #tpu.memory_space<vmem>>, vector<1x1x32x256xf32>,
    %201 = vector.broadcast %71 : vector<1x256xf32> to vector<32x256xf32>
    %202 = arith.mulf %11, %201 : vector<32x256xf32>
    %203 = vector.broadcast %138 : vector<32x1xf32> to vector<32x256xf32>
    %204 = arith.mulf %203, %202 : vector<32x256xf32>
    %cst_99 = arith.constant dense<0.000000e+00> : vector<256xf32>
    %205 = vector.multi_reduction <add>, %204, %cst_99 [0] : vector<32x256xf32> to vector<256xf32>
    %206 = vector.shape_cast %205 : vector<256xf32> to vector<1x256xf32>
    %207 = vector.broadcast %146 : vector<32x1xf32> to vector<32x256xf32>
    %208 = arith.mulf %207, %202 : vector<32x256xf32>
    %cst_100 = arith.constant dense<0.000000e+00> : vector<256xf32>
    %209 = vector.multi_reduction <add>, %208, %cst_100 [0] : vector<32x256xf32> to vector<256xf32>
    %210 = vector.shape_cast %209 : vector<256xf32> to vector<1x256xf32>
    %211 = vector.broadcast %161 : vector<1x1xf32> to vector<1x256xf32>
    %212 = arith.mulf %211, %206 : vector<1x256xf32>
    %213 = vector.broadcast %164 : vector<1x1xf32> to vector<1x256xf32>
    %214 = arith.mulf %213, %210 : vector<1x256xf32>
    %215 = arith.addf %212, %214 : vector<1x256xf32>
    %216 = vector.broadcast %164 : vector<1x1xf32> to vector<1x256xf32>
    %217 = arith.mulf %216, %206 : vector<1x256xf32>
    %218 = vector.broadcast %165 : vector<1x1xf32> to vector<1x256xf32>
    %219 = arith.mulf %218, %210 : vector<1x256xf32>
    %220 = arith.addf %217, %219 : vector<1x256xf32>
    %221 = vector.broadcast %167 : vector<32x1xf32> to vector<32x256xf32>
    %222 = vector.broadcast %215 : vector<1x256xf32> to vector<32x256xf32>
    %223 = arith.mulf %221, %222 : vector<32x256xf32>
    %224 = vector.broadcast %169 : vector<32x1xf32> to vector<32x256xf32>
    %225 = vector.broadcast %220 : vector<1x256xf32> to vector<32x256xf32>
    %226 = arith.mulf %224, %225 : vector<32x256xf32>
    %227 = arith.addf %223, %226 : vector<32x256xf32>
    %228 = arith.addf %227, %11 : vector<32x256xf32>
    %c0_101 = arith.constant 0 : index
    %c0_102 = arith.constant 0 : index
    %c0_103 = arith.constant 0 : index
    %c0_104 = arith.constant 0 : index
    %229 = vector.load %arg11[%c0_101, %c0_102, %c0_103, %c0_104] : memref<1x1x32x256xf32, #tpu.memory_space<vmem>>, vector<1x1x32x256xf32>
    %230 = vector.shape_cast %229 : vector<1x1x32x256xf32> to vector<32x256xf32>
    %231 = vector.shape_cast %228 : vector<32x256xf32> to vector<1x1x32x256xf32>
    tpu.vector_store %arg11[%c0_101, %c0_102, %c0_103, %c0_104], %231 {strides = array<i32>} : memref<1x1x32x256xf32, #tpu.memory_space<vmem>>, vector<1x1x32x256xf32>,
    return
  }
  func.func @transform_0(%arg0: i32, %arg1: i32) -> (i32, i32, i32, i32) {
    %c0_i32 = arith.constant 0 : i32
    %c0_i32_0 = arith.constant 0 : i32
    %c0_i32_1 = arith.constant 0 : i32
    return %arg0, %arg1, %c0_i32, %c0_i32_0 : i32, i32, i32, i32
  }
  func.func @transform_1(%arg0: i32, %arg1: i32) -> (i32, i32, i32, i32) {
    %c0_i32 = arith.constant 0 : i32
    %c0_i32_0 = arith.constant 0 : i32
    %c0_i32_1 = arith.constant 0 : i32
    return %arg0, %arg1, %c0_i32, %c0_i32_0 : i32, i32, i32, i32
  }
  func.func @transform_2(%arg0: i32, %arg1: i32) -> (i32, i32, i32) {
    %c0_i32 = arith.constant 0 : i32
    %c0_i32_0 = arith.constant 0 : i32
    %c0_i32_1 = arith.constant 0 : i32
    return %arg1, %c0_i32, %c0_i32_0 : i32, i32, i32
  }
  func.func @transform_3(%arg0: i32, %arg1: i32) -> (i32, i32, i32) {
    %c0_i32 = arith.constant 0 : i32
    %c0_i32_0 = arith.constant 0 : i32
    %c0_i32_1 = arith.constant 0 : i32
    return %arg1, %c0_i32, %c0_i32_0 : i32, i32, i32
  }
  func.func @transform_4(%arg0: i32, %arg1: i32) -> (i32, i32, i32) {
    %c0_i32 = arith.constant 0 : i32
    %c0_i32_0 = arith.constant 0 : i32
    %c0_i32_1 = arith.constant 0 : i32
    %c0_i32_2 = arith.constant 0 : i32
    return %c0_i32, %c0_i32_0, %c0_i32_1 : i32, i32, i32
  }
  func.func @transform_5(%arg0: i32, %arg1: i32) -> (i32, i32, i32, i32) {
    %c0_i32 = arith.constant 0 : i32
    %c0_i32_0 = arith.constant 0 : i32
    %c0_i32_1 = arith.constant 0 : i32
    %c0_i32_2 = arith.constant 0 : i32
    %c0_i32_3 = arith.constant 0 : i32
    return %c0_i32, %c0_i32_0, %c0_i32_1, %c0_i32_2 : i32, i32, i32, i32
  }
  func.func @transform_6(%arg0: i32, %arg1: i32) -> (i32, i32, i32) {
    %c0_i32 = arith.constant 0 : i32
    %c0_i32_0 = arith.constant 0 : i32
    %c0_i32_1 = arith.constant 0 : i32
    %c0_i32_2 = arith.constant 0 : i32
    return %c0_i32, %c0_i32_0, %c0_i32_1 : i32, i32, i32
  }
  func.func @transform_7(%arg0: i32, %arg1: i32) -> i32 {
    %c0_i32 = arith.constant 0 : i32
    %c0_i32_0 = arith.constant 0 : i32
    return %c0_i32 : i32
  }
  func.func @transform_8(%arg0: i32, %arg1: i32) -> (i32, i32, i32, i32) {
    %c0_i32 = arith.constant 0 : i32
    %c0_i32_0 = arith.constant 0 : i32
    %c0_i32_1 = arith.constant 0 : i32
    return %arg0, %arg1, %c0_i32, %c0_i32_0 : i32, i32, i32, i32
  }
  func.func @transform_9(%arg0: i32, %arg1: i32) -> (i32, i32, i32, i32) {
    %c0_i32 = arith.constant 0 : i32
    %c0_i32_0 = arith.constant 0 : i32
    %c0_i32_1 = arith.constant 0 : i32
    return %arg0, %arg1, %c0_i32, %c0_i32_0 : i32, i32, i32, i32
  }
}

module attributes {stable_mosaic.version = 11 : i64} {
  func.func @_fused_layer_kernel(%arg0: i32, %arg1: i32, %arg2: memref<1x1x64x64xf32, #tpu.memory_space<vmem>>, %arg3: memref<1x1x64x64xf32, #tpu.memory_space<vmem>>, %arg4: memref<1x1x64xf32, #tpu.memory_space<vmem>>, %arg5: memref<1x1x64xf32, #tpu.memory_space<vmem>>, %arg6: memref<2x64x1xf32, #tpu.memory_space<vmem>>, %arg7: memref<2x2x64x64xf32, #tpu.memory_space<vmem>>, %arg8: memref<2x64x64xf32, #tpu.memory_space<vmem>>, %arg9: memref<1xf32, #tpu.memory_space<smem>>, %arg10: memref<1x1x64x64xf32, #tpu.memory_space<vmem>>, %arg11: memref<1x1x64x64xf32, #tpu.memory_space<vmem>>) attributes {dimension_semantics = [#tpu.dimension_semantics<parallel>, #tpu.dimension_semantics<parallel>], iteration_bounds = array<i64: 6, 2>, scalar_prefetch = 0 : i64, scratch_operands = 0 : i64, tpu.core_type = #tpu.core_type<tc>, window_params = [{transform_indices = @transform_0, window_bounds = array<i64: 1, 1, 64, 64>}, {transform_indices = @transform_1, window_bounds = array<i64: 1, 1, 64, 64>}, {transform_indices = @transform_2, window_bounds = array<i64: 1, 1, 64>}, {transform_indices = @transform_3, window_bounds = array<i64: 1, 1, 64>}, {pipeline_mode = #tpu.pipeline_mode<synchronous>, transform_indices = @transform_4, window_bounds = array<i64: 2, 64, 1>}, {pipeline_mode = #tpu.pipeline_mode<synchronous>, transform_indices = @transform_5, window_bounds = array<i64: 2, 2, 64, 64>}, {pipeline_mode = #tpu.pipeline_mode<synchronous>, transform_indices = @transform_6, window_bounds = array<i64: 2, 64, 64>}, {transform_indices = @transform_7, window_bounds = array<i64: 1>}, {transform_indices = @transform_8, window_bounds = array<i64: 1, 1, 64, 64>}, {transform_indices = @transform_9, window_bounds = array<i64: 1, 1, 64, 64>}]} {
    %c0 = arith.constant 0 : index
    %c0_0 = arith.constant 0 : index
    %c0_1 = arith.constant 0 : index
    %c0_2 = arith.constant 0 : index
    %0 = vector.load %arg2[%c0, %c0_0, %c0_1, %c0_2] : memref<1x1x64x64xf32, #tpu.memory_space<vmem>>, vector<1x1x64x64xf32>
    %1 = vector.shape_cast %0 : vector<1x1x64x64xf32> to vector<64x64xf32>
    %c0_3 = arith.constant 0 : index
    %c0_4 = arith.constant 0 : index
    %c0_5 = arith.constant 0 : index
    %c0_6 = arith.constant 0 : index
    %2 = vector.load %arg3[%c0_3, %c0_4, %c0_5, %c0_6] : memref<1x1x64x64xf32, #tpu.memory_space<vmem>>, vector<1x1x64x64xf32>
    %3 = vector.shape_cast %2 : vector<1x1x64x64xf32> to vector<64x64xf32>
    %c0_7 = arith.constant 0 : index
    %c0_8 = arith.constant 0 : index
    %c0_9 = arith.constant 0 : index
    %4 = vector.load %arg4[%c0_7, %c0_8, %c0_9] : memref<1x1x64xf32, #tpu.memory_space<vmem>>, vector<1x1x64xf32>
    %5 = vector.shape_cast %4 : vector<1x1x64xf32> to vector<1x64xf32>
    %c0_10 = arith.constant 0 : index
    %c0_11 = arith.constant 0 : index
    %c0_12 = arith.constant 0 : index
    %6 = vector.load %arg5[%c0_10, %c0_11, %c0_12] : memref<1x1x64xf32, #tpu.memory_space<vmem>>, vector<1x1x64xf32>
    %7 = vector.shape_cast %6 : vector<1x1x64xf32> to vector<1x64xf32>
    %8 = vector.broadcast %5 : vector<1x64xf32> to vector<64x64xf32>
    %9 = arith.mulf %1, %8 : vector<64x64xf32>
    %10 = vector.broadcast %7 : vector<1x64xf32> to vector<64x64xf32>
    %11 = arith.mulf %3, %10 : vector<64x64xf32>
    %c0_13 = arith.constant 0 : index
    %c0_14 = arith.constant 0 : index
    %c0_15 = arith.constant 0 : index
    %c0_16 = arith.constant 0 : index
    %12 = vector.load %arg7[%c0_13, %c0_14, %c0_15, %c0_16] : memref<2x2x64x64xf32, #tpu.memory_space<vmem>>, vector<1x1x64x64xf32>
    %13 = vector.shape_cast %12 : vector<1x1x64x64xf32> to vector<64x64xf32>
    %c0_17 = arith.constant 0 : index
    %c1 = arith.constant 1 : index
    %c0_18 = arith.constant 0 : index
    %c0_19 = arith.constant 0 : index
    %14 = vector.load %arg7[%c0_17, %c1, %c0_18, %c0_19] : memref<2x2x64x64xf32, #tpu.memory_space<vmem>>, vector<1x1x64x64xf32>
    %15 = vector.shape_cast %14 : vector<1x1x64x64xf32> to vector<64x64xf32>
    %c1_20 = arith.constant 1 : index
    %c0_21 = arith.constant 0 : index
    %c0_22 = arith.constant 0 : index
    %c0_23 = arith.constant 0 : index
    %16 = vector.load %arg7[%c1_20, %c0_21, %c0_22, %c0_23] : memref<2x2x64x64xf32, #tpu.memory_space<vmem>>, vector<1x1x64x64xf32>
    %17 = vector.shape_cast %16 : vector<1x1x64x64xf32> to vector<64x64xf32>
    %c1_24 = arith.constant 1 : index
    %c1_25 = arith.constant 1 : index
    %c0_26 = arith.constant 0 : index
    %c0_27 = arith.constant 0 : index
    %18 = vector.load %arg7[%c1_24, %c1_25, %c0_26, %c0_27] : memref<2x2x64x64xf32, #tpu.memory_space<vmem>>, vector<1x1x64x64xf32>
    %19 = vector.shape_cast %18 : vector<1x1x64x64xf32> to vector<64x64xf32>
    %c0_28 = arith.constant 0 : index
    %c0_29 = arith.constant 0 : index
    %c0_30 = arith.constant 0 : index
    %20 = vector.load %arg8[%c0_28, %c0_29, %c0_30] : memref<2x64x64xf32, #tpu.memory_space<vmem>>, vector<1x64x64xf32>
    %21 = vector.shape_cast %20 : vector<1x64x64xf32> to vector<64x64xf32>
    %c1_31 = arith.constant 1 : index
    %c0_32 = arith.constant 0 : index
    %c0_33 = arith.constant 0 : index
    %22 = vector.load %arg8[%c1_31, %c0_32, %c0_33] : memref<2x64x64xf32, #tpu.memory_space<vmem>>, vector<1x64x64xf32>
    %23 = vector.shape_cast %22 : vector<1x64x64xf32> to vector<64x64xf32>
    %cst = arith.constant dense<0.000000e+00> : vector<64xf32>
    %24 = vector.multi_reduction <add>, %9, %cst [0] : vector<64x64xf32> to vector<64xf32>
    %25 = vector.shape_cast %24 : vector<64xf32> to vector<1x64xf32>
    %cst_34 = arith.constant 6.400000e+01 : f32
    %26 = vector.broadcast %cst_34 : f32 to vector<1x64xf32>
    %27 = arith.divf %25, %26 : vector<1x64xf32>
    %cst_35 = arith.constant dense<0xFF800000> : vector<64xf32>
    %28 = vector.multi_reduction <maximumf>, %9, %cst_35 [0] : vector<64x64xf32> to vector<64xf32>
    %29 = vector.shape_cast %28 : vector<64xf32> to vector<1x64xf32>
    %cst_36 = arith.constant dense<0.000000e+00> : vector<1x64xf32>
    %30 = tpu.matmul %27, %13, %cst_36 {dimension_numbers = #tpu.dot_dimension_numbers<[1], [0], [0], [1], [0, 0, 1, 1], [], []>} : vector<1x64xf32>, vector<64x64xf32>, vector<1x64xf32> -> vector<1x64xf32>
    %cst_37 = arith.constant dense<0.000000e+00> : vector<1x64xf32>
    %31 = tpu.matmul %29, %17, %cst_37 {dimension_numbers = #tpu.dot_dimension_numbers<[1], [0], [0], [1], [0, 0, 1, 1], [], []>} : vector<1x64xf32>, vector<64x64xf32>, vector<1x64xf32> -> vector<1x64xf32>
    %32 = arith.addf %30, %31 : vector<1x64xf32>
    %cst_38 = arith.constant 0.000000e+00 : f32
    %33 = vector.broadcast %cst_38 : f32 to vector<1x64xf32>
    %34 = arith.maximumf %32, %33 : vector<1x64xf32>
    %cst_39 = arith.constant dense<0.000000e+00> : vector<1x64xf32>
    %35 = tpu.matmul %27, %15, %cst_39 {dimension_numbers = #tpu.dot_dimension_numbers<[1], [0], [0], [1], [0, 0, 1, 1], [], []>} : vector<1x64xf32>, vector<64x64xf32>, vector<1x64xf32> -> vector<1x64xf32>
    %cst_40 = arith.constant dense<0.000000e+00> : vector<1x64xf32>
    %36 = tpu.matmul %29, %19, %cst_40 {dimension_numbers = #tpu.dot_dimension_numbers<[1], [0], [0], [1], [0, 0, 1, 1], [], []>} : vector<1x64xf32>, vector<64x64xf32>, vector<1x64xf32> -> vector<1x64xf32>
    %37 = arith.addf %35, %36 : vector<1x64xf32>
    %cst_41 = arith.constant 0.000000e+00 : f32
    %38 = vector.broadcast %cst_41 : f32 to vector<1x64xf32>
    %39 = arith.maximumf %37, %38 : vector<1x64xf32>
    %cst_42 = arith.constant dense<0.000000e+00> : vector<1x64xf32>
    %40 = tpu.matmul %34, %21, %cst_42 {dimension_numbers = #tpu.dot_dimension_numbers<[1], [0], [0], [1], [0, 0, 1, 1], [], []>} : vector<1x64xf32>, vector<64x64xf32>, vector<1x64xf32> -> vector<1x64xf32>
    %cst_43 = arith.constant dense<0.000000e+00> : vector<1x64xf32>
    %41 = tpu.matmul %39, %23, %cst_43 {dimension_numbers = #tpu.dot_dimension_numbers<[1], [0], [0], [1], [0, 0, 1, 1], [], []>} : vector<1x64xf32>, vector<64x64xf32>, vector<1x64xf32> -> vector<1x64xf32>
    %42 = arith.addf %40, %41 : vector<1x64xf32>
    %43 = arith.negf %42 : vector<1x64xf32>
    %44 = math.exp %43 : vector<1x64xf32>
    %cst_44 = arith.constant 1.000000e+00 : f32
    %45 = vector.broadcast %cst_44 : f32 to vector<1x64xf32>
    %46 = arith.addf %45, %44 : vector<1x64xf32>
    %47 = arith.divf %45, %46 : vector<1x64xf32>
    %cst_45 = arith.constant dense<0.000000e+00> : vector<64xf32>
    %48 = vector.multi_reduction <add>, %11, %cst_45 [0] : vector<64x64xf32> to vector<64xf32>
    %49 = vector.shape_cast %48 : vector<64xf32> to vector<1x64xf32>
    %cst_46 = arith.constant 6.400000e+01 : f32
    %50 = vector.broadcast %cst_46 : f32 to vector<1x64xf32>
    %51 = arith.divf %49, %50 : vector<1x64xf32>
    %cst_47 = arith.constant dense<0xFF800000> : vector<64xf32>
    %52 = vector.multi_reduction <maximumf>, %11, %cst_47 [0] : vector<64x64xf32> to vector<64xf32>
    %53 = vector.shape_cast %52 : vector<64xf32> to vector<1x64xf32>
    %cst_48 = arith.constant dense<0.000000e+00> : vector<1x64xf32>
    %54 = tpu.matmul %51, %13, %cst_48 {dimension_numbers = #tpu.dot_dimension_numbers<[1], [0], [0], [1], [0, 0, 1, 1], [], []>} : vector<1x64xf32>, vector<64x64xf32>, vector<1x64xf32> -> vector<1x64xf32>
    %cst_49 = arith.constant dense<0.000000e+00> : vector<1x64xf32>
    %55 = tpu.matmul %53, %17, %cst_49 {dimension_numbers = #tpu.dot_dimension_numbers<[1], [0], [0], [1], [0, 0, 1, 1], [], []>} : vector<1x64xf32>, vector<64x64xf32>, vector<1x64xf32> -> vector<1x64xf32>
    %56 = arith.addf %54, %55 : vector<1x64xf32>
    %cst_50 = arith.constant 0.000000e+00 : f32
    %57 = vector.broadcast %cst_50 : f32 to vector<1x64xf32>
    %58 = arith.maximumf %56, %57 : vector<1x64xf32>
    %cst_51 = arith.constant dense<0.000000e+00> : vector<1x64xf32>
    %59 = tpu.matmul %51, %15, %cst_51 {dimension_numbers = #tpu.dot_dimension_numbers<[1], [0], [0], [1], [0, 0, 1, 1], [], []>} : vector<1x64xf32>, vector<64x64xf32>, vector<1x64xf32> -> vector<1x64xf32>
    %cst_52 = arith.constant dense<0.000000e+00> : vector<1x64xf32>
    %60 = tpu.matmul %53, %19, %cst_52 {dimension_numbers = #tpu.dot_dimension_numbers<[1], [0], [0], [1], [0, 0, 1, 1], [], []>} : vector<1x64xf32>, vector<64x64xf32>, vector<1x64xf32> -> vector<1x64xf32>
    %61 = arith.addf %59, %60 : vector<1x64xf32>
    %cst_53 = arith.constant 0.000000e+00 : f32
    %62 = vector.broadcast %cst_53 : f32 to vector<1x64xf32>
    %63 = arith.maximumf %61, %62 : vector<1x64xf32>
    %cst_54 = arith.constant dense<0.000000e+00> : vector<1x64xf32>
    %64 = tpu.matmul %58, %21, %cst_54 {dimension_numbers = #tpu.dot_dimension_numbers<[1], [0], [0], [1], [0, 0, 1, 1], [], []>} : vector<1x64xf32>, vector<64x64xf32>, vector<1x64xf32> -> vector<1x64xf32>
    %cst_55 = arith.constant dense<0.000000e+00> : vector<1x64xf32>
    %65 = tpu.matmul %63, %23, %cst_55 {dimension_numbers = #tpu.dot_dimension_numbers<[1], [0], [0], [1], [0, 0, 1, 1], [], []>} : vector<1x64xf32>, vector<64x64xf32>, vector<1x64xf32> -> vector<1x64xf32>
    %66 = arith.addf %64, %65 : vector<1x64xf32>
    %67 = arith.negf %66 : vector<1x64xf32>
    %68 = math.exp %67 : vector<1x64xf32>
    %cst_56 = arith.constant 1.000000e+00 : f32
    %69 = vector.broadcast %cst_56 : f32 to vector<1x64xf32>
    %70 = arith.addf %69, %68 : vector<1x64xf32>
    %71 = arith.divf %69, %70 : vector<1x64xf32>
    %cst_57 = arith.constant dense<0.000000e+00> : vector<1xf32>
    %72 = vector.multi_reduction <add>, %5, %cst_57 [1] : vector<1x64xf32> to vector<1xf32>
    %73 = vector.shape_cast %72 : vector<1xf32> to vector<1x1xf32>
    %cst_58 = arith.constant 6.400000e+01 : f32
    %74 = vector.broadcast %cst_58 : f32 to vector<1x1xf32>
    %75 = arith.divf %73, %74 : vector<1x1xf32>
    %cst_59 = arith.constant dense<0.000000e+00> : vector<1xf32>
    %76 = vector.multi_reduction <add>, %7, %cst_59 [1] : vector<1x64xf32> to vector<1xf32>
    %77 = vector.shape_cast %76 : vector<1xf32> to vector<1x1xf32>
    %cst_60 = arith.constant 6.400000e+01 : f32
    %78 = vector.broadcast %cst_60 : f32 to vector<1x1xf32>
    %79 = arith.divf %77, %78 : vector<1x1xf32>
    %cst_61 = arith.constant dense<0.000000e+00> : vector<64xf32>
    %80 = vector.multi_reduction <add>, %9, %cst_61 [1] : vector<64x64xf32> to vector<64xf32>
    %81 = vector.shape_cast %80 : vector<64xf32> to vector<64x1xf32>
    %cst_62 = arith.constant 6.400000e+01 : f32
    %82 = vector.broadcast %cst_62 : f32 to vector<64x1xf32>
    %83 = arith.divf %81, %82 : vector<64x1xf32>
    %cst_63 = arith.constant 9.99999997E-7 : f32
    %84 = vector.broadcast %cst_63 : f32 to vector<1x1xf32>
    %85 = arith.addf %75, %84 : vector<1x1xf32>
    %86 = vector.broadcast %85 : vector<1x1xf32> to vector<64x1xf32>
    %87 = arith.divf %83, %86 : vector<64x1xf32>
    %88 = arith.subf %1, %9 : vector<64x64xf32>
    %cst_64 = arith.constant dense<0.000000e+00> : vector<64xf32>
    %89 = vector.multi_reduction <add>, %88, %cst_64 [1] : vector<64x64xf32> to vector<64xf32>
    %90 = vector.shape_cast %89 : vector<64xf32> to vector<64x1xf32>
    %cst_65 = arith.constant 6.400000e+01 : f32
    %91 = vector.broadcast %cst_65 : f32 to vector<64x1xf32>
    %92 = arith.divf %90, %91 : vector<64x1xf32>
    %cst_66 = arith.constant 1.000000e+00 : f32
    %93 = vector.broadcast %cst_66 : f32 to vector<1x1xf32>
    %94 = arith.subf %93, %75 : vector<1x1xf32>
    %cst_67 = arith.constant 9.99999997E-7 : f32
    %95 = vector.broadcast %cst_67 : f32 to vector<1x1xf32>
    %96 = arith.addf %94, %95 : vector<1x1xf32>
    %97 = vector.broadcast %96 : vector<1x1xf32> to vector<64x1xf32>
    %98 = arith.divf %92, %97 : vector<64x1xf32>
    %cst_68 = arith.constant dense<0.000000e+00> : vector<64xf32>
    %99 = vector.multi_reduction <add>, %11, %cst_68 [1] : vector<64x64xf32> to vector<64xf32>
    %100 = vector.shape_cast %99 : vector<64xf32> to vector<64x1xf32>
    %cst_69 = arith.constant 6.400000e+01 : f32
    %101 = vector.broadcast %cst_69 : f32 to vector<64x1xf32>
    %102 = arith.divf %100, %101 : vector<64x1xf32>
    %cst_70 = arith.constant 9.99999997E-7 : f32
    %103 = vector.broadcast %cst_70 : f32 to vector<1x1xf32>
    %104 = arith.addf %79, %103 : vector<1x1xf32>
    %105 = vector.broadcast %104 : vector<1x1xf32> to vector<64x1xf32>
    %106 = arith.divf %102, %105 : vector<64x1xf32>
    %107 = arith.subf %3, %11 : vector<64x64xf32>
    %cst_71 = arith.constant dense<0.000000e+00> : vector<64xf32>
    %108 = vector.multi_reduction <add>, %107, %cst_71 [1] : vector<64x64xf32> to vector<64xf32>
    %109 = vector.shape_cast %108 : vector<64xf32> to vector<64x1xf32>
    %cst_72 = arith.constant 6.400000e+01 : f32
    %110 = vector.broadcast %cst_72 : f32 to vector<64x1xf32>
    %111 = arith.divf %109, %110 : vector<64x1xf32>
    %cst_73 = arith.constant 1.000000e+00 : f32
    %112 = vector.broadcast %cst_73 : f32 to vector<1x1xf32>
    %113 = arith.subf %112, %79 : vector<1x1xf32>
    %cst_74 = arith.constant 9.99999997E-7 : f32
    %114 = vector.broadcast %cst_74 : f32 to vector<1x1xf32>
    %115 = arith.addf %113, %114 : vector<1x1xf32>
    %116 = vector.broadcast %115 : vector<1x1xf32> to vector<64x1xf32>
    %117 = arith.divf %111, %116 : vector<64x1xf32>
    %c0_75 = arith.constant 0 : index
    %118 = memref.load %arg9[%c0_75] : memref<1xf32, #tpu.memory_space<smem>>
    %119 = vector.broadcast %118 : f32 to vector<64x1xf32>
    %120 = arith.mulf %119, %98 : vector<64x1xf32>
    %cst_76 = arith.constant 1.000000e+00 : f32
    %121 = arith.subf %cst_76, %118 : f32
    %122 = vector.broadcast %121 : f32 to vector<64x1xf32>
    %123 = arith.mulf %122, %117 : vector<64x1xf32>
    %124 = arith.addf %120, %123 : vector<64x1xf32>
    %125 = vector.broadcast %118 : f32 to vector<64x1xf32>
    %126 = arith.mulf %125, %87 : vector<64x1xf32>
    %cst_77 = arith.constant 1.000000e+00 : f32
    %127 = arith.subf %cst_77, %118 : f32
    %128 = vector.broadcast %127 : f32 to vector<64x1xf32>
    %129 = arith.mulf %128, %106 : vector<64x1xf32>
    %130 = arith.addf %126, %129 : vector<64x1xf32>
    %131 = arith.mulf %124, %124 : vector<64x1xf32>
    %cst_78 = arith.constant dense<0.000000e+00> : vector<1xf32>
    %132 = vector.multi_reduction <add>, %131, %cst_78 [0] : vector<64x1xf32> to vector<1xf32>
    %133 = vector.shape_cast %132 : vector<1xf32> to vector<1x1xf32>
    %134 = math.sqrt %133 : vector<1x1xf32>
    %cst_79 = arith.constant 9.99999997E-7 : f32
    %135 = vector.broadcast %cst_79 : f32 to vector<1x1xf32>
    %136 = arith.addf %134, %135 : vector<1x1xf32>
    %137 = vector.broadcast %136 : vector<1x1xf32> to vector<64x1xf32>
    %138 = arith.divf %124, %137 : vector<64x1xf32>
    %139 = arith.mulf %130, %130 : vector<64x1xf32>
    %cst_80 = arith.constant dense<0.000000e+00> : vector<1xf32>
    %140 = vector.multi_reduction <add>, %139, %cst_80 [0] : vector<64x1xf32> to vector<1xf32>
    %141 = vector.shape_cast %140 : vector<1xf32> to vector<1x1xf32>
    %142 = math.sqrt %141 : vector<1x1xf32>
    %cst_81 = arith.constant 9.99999997E-7 : f32
    %143 = vector.broadcast %cst_81 : f32 to vector<1x1xf32>
    %144 = arith.addf %142, %143 : vector<1x1xf32>
    %145 = vector.broadcast %144 : vector<1x1xf32> to vector<64x1xf32>
    %146 = arith.divf %130, %145 : vector<64x1xf32>
    %147 = arith.mulf %138, %138 : vector<64x1xf32>
    %cst_82 = arith.constant dense<0.000000e+00> : vector<1xf32>
    %148 = vector.multi_reduction <add>, %147, %cst_82 [0] : vector<64x1xf32> to vector<1xf32>
    %149 = vector.shape_cast %148 : vector<1xf32> to vector<1x1xf32>
    %150 = arith.mulf %138, %146 : vector<64x1xf32>
    %cst_83 = arith.constant dense<0.000000e+00> : vector<1xf32>
    %151 = vector.multi_reduction <add>, %150, %cst_83 [0] : vector<64x1xf32> to vector<1xf32>
    %152 = vector.shape_cast %151 : vector<1xf32> to vector<1x1xf32>
    %153 = arith.mulf %146, %146 : vector<64x1xf32>
    %cst_84 = arith.constant dense<0.000000e+00> : vector<1xf32>
    %154 = vector.multi_reduction <add>, %153, %cst_84 [0] : vector<64x1xf32> to vector<1xf32>
    %155 = vector.shape_cast %154 : vector<1xf32> to vector<1x1xf32>
    %156 = arith.mulf %149, %155 : vector<1x1xf32>
    %157 = arith.mulf %152, %152 : vector<1x1xf32>
    %158 = arith.subf %156, %157 : vector<1x1xf32>
    %cst_85 = arith.constant 1.000000e+00 : f32
    %159 = vector.broadcast %cst_85 : f32 to vector<1x1xf32>
    %160 = arith.divf %159, %158 : vector<1x1xf32>
    %161 = arith.mulf %155, %160 : vector<1x1xf32>
    %cst_86 = arith.constant 0.000000e+00 : f32
    %162 = vector.broadcast %cst_86 : f32 to vector<1x1xf32>
    %163 = arith.subf %162, %152 : vector<1x1xf32>
    %164 = arith.mulf %163, %160 : vector<1x1xf32>
    %165 = arith.mulf %149, %160 : vector<1x1xf32>
    %c0_87 = arith.constant 0 : index
    %c0_88 = arith.constant 0 : index
    %c0_89 = arith.constant 0 : index
    %166 = vector.load %arg6[%c0_87, %c0_88, %c0_89] : memref<2x64x1xf32, #tpu.memory_space<vmem>>, vector<1x64x1xf32>
    %167 = vector.shape_cast %166 : vector<1x64x1xf32> to vector<64x1xf32>
    %c1_90 = arith.constant 1 : index
    %c0_91 = arith.constant 0 : index
    %c0_92 = arith.constant 0 : index
    %168 = vector.load %arg6[%c1_90, %c0_91, %c0_92] : memref<2x64x1xf32, #tpu.memory_space<vmem>>, vector<1x64x1xf32>
    %169 = vector.shape_cast %168 : vector<1x64x1xf32> to vector<64x1xf32>
    %170 = vector.broadcast %47 : vector<1x64xf32> to vector<64x64xf32>
    %171 = arith.mulf %9, %170 : vector<64x64xf32>
    %172 = vector.broadcast %138 : vector<64x1xf32> to vector<64x64xf32>
    %173 = arith.mulf %172, %171 : vector<64x64xf32>
    %cst_93 = arith.constant dense<0.000000e+00> : vector<64xf32>
    %174 = vector.multi_reduction <add>, %173, %cst_93 [0] : vector<64x64xf32> to vector<64xf32>
    %175 = vector.shape_cast %174 : vector<64xf32> to vector<1x64xf32>
    %176 = vector.broadcast %146 : vector<64x1xf32> to vector<64x64xf32>
    %177 = arith.mulf %176, %171 : vector<64x64xf32>
    %cst_94 = arith.constant dense<0.000000e+00> : vector<64xf32>
    %178 = vector.multi_reduction <add>, %177, %cst_94 [0] : vector<64x64xf32> to vector<64xf32>
    %179 = vector.shape_cast %178 : vector<64xf32> to vector<1x64xf32>
    %180 = vector.broadcast %161 : vector<1x1xf32> to vector<1x64xf32>
    %181 = arith.mulf %180, %175 : vector<1x64xf32>
    %182 = vector.broadcast %164 : vector<1x1xf32> to vector<1x64xf32>
    %183 = arith.mulf %182, %179 : vector<1x64xf32>
    %184 = arith.addf %181, %183 : vector<1x64xf32>
    %185 = vector.broadcast %164 : vector<1x1xf32> to vector<1x64xf32>
    %186 = arith.mulf %185, %175 : vector<1x64xf32>
    %187 = vector.broadcast %165 : vector<1x1xf32> to vector<1x64xf32>
    %188 = arith.mulf %187, %179 : vector<1x64xf32>
    %189 = arith.addf %186, %188 : vector<1x64xf32>
    %190 = vector.broadcast %167 : vector<64x1xf32> to vector<64x64xf32>
    %191 = vector.broadcast %184 : vector<1x64xf32> to vector<64x64xf32>
    %192 = arith.mulf %190, %191 : vector<64x64xf32>
    %193 = vector.broadcast %169 : vector<64x1xf32> to vector<64x64xf32>
    %194 = vector.broadcast %189 : vector<1x64xf32> to vector<64x64xf32>
    %195 = arith.mulf %193, %194 : vector<64x64xf32>
    %196 = arith.addf %192, %195 : vector<64x64xf32>
    %197 = arith.addf %196, %9 : vector<64x64xf32>
    %c0_95 = arith.constant 0 : index
    %c0_96 = arith.constant 0 : index
    %c0_97 = arith.constant 0 : index
    %c0_98 = arith.constant 0 : index
    %198 = vector.load %arg10[%c0_95, %c0_96, %c0_97, %c0_98] : memref<1x1x64x64xf32, #tpu.memory_space<vmem>>, vector<1x1x64x64xf32>
    %199 = vector.shape_cast %198 : vector<1x1x64x64xf32> to vector<64x64xf32>
    %200 = vector.shape_cast %197 : vector<64x64xf32> to vector<1x1x64x64xf32>
    tpu.vector_store %arg10[%c0_95, %c0_96, %c0_97, %c0_98], %200 {strides = array<i32>} : memref<1x1x64x64xf32, #tpu.memory_space<vmem>>, vector<1x1x64x64xf32>,
    %201 = vector.broadcast %71 : vector<1x64xf32> to vector<64x64xf32>
    %202 = arith.mulf %11, %201 : vector<64x64xf32>
    %203 = vector.broadcast %138 : vector<64x1xf32> to vector<64x64xf32>
    %204 = arith.mulf %203, %202 : vector<64x64xf32>
    %cst_99 = arith.constant dense<0.000000e+00> : vector<64xf32>
    %205 = vector.multi_reduction <add>, %204, %cst_99 [0] : vector<64x64xf32> to vector<64xf32>
    %206 = vector.shape_cast %205 : vector<64xf32> to vector<1x64xf32>
    %207 = vector.broadcast %146 : vector<64x1xf32> to vector<64x64xf32>
    %208 = arith.mulf %207, %202 : vector<64x64xf32>
    %cst_100 = arith.constant dense<0.000000e+00> : vector<64xf32>
    %209 = vector.multi_reduction <add>, %208, %cst_100 [0] : vector<64x64xf32> to vector<64xf32>
    %210 = vector.shape_cast %209 : vector<64xf32> to vector<1x64xf32>
    %211 = vector.broadcast %161 : vector<1x1xf32> to vector<1x64xf32>
    %212 = arith.mulf %211, %206 : vector<1x64xf32>
    %213 = vector.broadcast %164 : vector<1x1xf32> to vector<1x64xf32>
    %214 = arith.mulf %213, %210 : vector<1x64xf32>
    %215 = arith.addf %212, %214 : vector<1x64xf32>
    %216 = vector.broadcast %164 : vector<1x1xf32> to vector<1x64xf32>
    %217 = arith.mulf %216, %206 : vector<1x64xf32>
    %218 = vector.broadcast %165 : vector<1x1xf32> to vector<1x64xf32>
    %219 = arith.mulf %218, %210 : vector<1x64xf32>
    %220 = arith.addf %217, %219 : vector<1x64xf32>
    %221 = vector.broadcast %167 : vector<64x1xf32> to vector<64x64xf32>
    %222 = vector.broadcast %215 : vector<1x64xf32> to vector<64x64xf32>
    %223 = arith.mulf %221, %222 : vector<64x64xf32>
    %224 = vector.broadcast %169 : vector<64x1xf32> to vector<64x64xf32>
    %225 = vector.broadcast %220 : vector<1x64xf32> to vector<64x64xf32>
    %226 = arith.mulf %224, %225 : vector<64x64xf32>
    %227 = arith.addf %223, %226 : vector<64x64xf32>
    %228 = arith.addf %227, %11 : vector<64x64xf32>
    %c0_101 = arith.constant 0 : index
    %c0_102 = arith.constant 0 : index
    %c0_103 = arith.constant 0 : index
    %c0_104 = arith.constant 0 : index
    %229 = vector.load %arg11[%c0_101, %c0_102, %c0_103, %c0_104] : memref<1x1x64x64xf32, #tpu.memory_space<vmem>>, vector<1x1x64x64xf32>
    %230 = vector.shape_cast %229 : vector<1x1x64x64xf32> to vector<64x64xf32>
    %231 = vector.shape_cast %228 : vector<64x64xf32> to vector<1x1x64x64xf32>
    tpu.vector_store %arg11[%c0_101, %c0_102, %c0_103, %c0_104], %231 {strides = array<i32>} : memref<1x1x64x64xf32, #tpu.memory_space<vmem>>, vector<1x1x64x64xf32>,
    return
  }
  func.func @transform_0(%arg0: i32, %arg1: i32) -> (i32, i32, i32, i32) {
    %c0_i32 = arith.constant 0 : i32
    %c0_i32_0 = arith.constant 0 : i32
    %c0_i32_1 = arith.constant 0 : i32
    return %arg0, %arg1, %c0_i32, %c0_i32_0 : i32, i32, i32, i32
  }
  func.func @transform_1(%arg0: i32, %arg1: i32) -> (i32, i32, i32, i32) {
    %c0_i32 = arith.constant 0 : i32
    %c0_i32_0 = arith.constant 0 : i32
    %c0_i32_1 = arith.constant 0 : i32
    return %arg0, %arg1, %c0_i32, %c0_i32_0 : i32, i32, i32, i32
  }
  func.func @transform_2(%arg0: i32, %arg1: i32) -> (i32, i32, i32) {
    %c0_i32 = arith.constant 0 : i32
    %c0_i32_0 = arith.constant 0 : i32
    %c0_i32_1 = arith.constant 0 : i32
    return %arg1, %c0_i32, %c0_i32_0 : i32, i32, i32
  }
  func.func @transform_3(%arg0: i32, %arg1: i32) -> (i32, i32, i32) {
    %c0_i32 = arith.constant 0 : i32
    %c0_i32_0 = arith.constant 0 : i32
    %c0_i32_1 = arith.constant 0 : i32
    return %arg1, %c0_i32, %c0_i32_0 : i32, i32, i32
  }
  func.func @transform_4(%arg0: i32, %arg1: i32) -> (i32, i32, i32) {
    %c0_i32 = arith.constant 0 : i32
    %c0_i32_0 = arith.constant 0 : i32
    %c0_i32_1 = arith.constant 0 : i32
    %c0_i32_2 = arith.constant 0 : i32
    return %c0_i32, %c0_i32_0, %c0_i32_1 : i32, i32, i32
  }
  func.func @transform_5(%arg0: i32, %arg1: i32) -> (i32, i32, i32, i32) {
    %c0_i32 = arith.constant 0 : i32
    %c0_i32_0 = arith.constant 0 : i32
    %c0_i32_1 = arith.constant 0 : i32
    %c0_i32_2 = arith.constant 0 : i32
    %c0_i32_3 = arith.constant 0 : i32
    return %c0_i32, %c0_i32_0, %c0_i32_1, %c0_i32_2 : i32, i32, i32, i32
  }
  func.func @transform_6(%arg0: i32, %arg1: i32) -> (i32, i32, i32) {
    %c0_i32 = arith.constant 0 : i32
    %c0_i32_0 = arith.constant 0 : i32
    %c0_i32_1 = arith.constant 0 : i32
    %c0_i32_2 = arith.constant 0 : i32
    return %c0_i32, %c0_i32_0, %c0_i32_1 : i32, i32, i32
  }
  func.func @transform_7(%arg0: i32, %arg1: i32) -> i32 {
    %c0_i32 = arith.constant 0 : i32
    %c0_i32_0 = arith.constant 0 : i32
    return %c0_i32 : i32
  }
  func.func @transform_8(%arg0: i32, %arg1: i32) -> (i32, i32, i32, i32) {
    %c0_i32 = arith.constant 0 : i32
    %c0_i32_0 = arith.constant 0 : i32
    %c0_i32_1 = arith.constant 0 : i32
    return %arg0, %arg1, %c0_i32, %c0_i32_0 : i32, i32, i32, i32
  }
  func.func @transform_9(%arg0: i32, %arg1: i32) -> (i32, i32, i32, i32) {
    %c0_i32 = arith.constant 0 : i32
    %c0_i32_0 = arith.constant 0 : i32
    %c0_i32_1 = arith.constant 0 : i32
    return %arg0, %arg1, %c0_i32, %c0_i32_0 : i32, i32, i32, i32
  }
}

module attributes {stable_mosaic.version = 11 : i64} {
  func.func @_fused_layer_kernel(%arg0: i32, %arg1: i32, %arg2: memref<1x1x128x16xf32, #tpu.memory_space<vmem>>, %arg3: memref<1x1x128x16xf32, #tpu.memory_space<vmem>>, %arg4: memref<1x1x16xf32, #tpu.memory_space<vmem>>, %arg5: memref<1x1x16xf32, #tpu.memory_space<vmem>>, %arg6: memref<2x128x1xf32, #tpu.memory_space<vmem>>, %arg7: memref<2x2x16x16xf32, #tpu.memory_space<vmem>>, %arg8: memref<2x16x16xf32, #tpu.memory_space<vmem>>, %arg9: memref<1xf32, #tpu.memory_space<smem>>, %arg10: memref<1x1x128x16xf32, #tpu.memory_space<vmem>>, %arg11: memref<1x1x128x16xf32, #tpu.memory_space<vmem>>) attributes {dimension_semantics = [#tpu.dimension_semantics<parallel>, #tpu.dimension_semantics<parallel>], iteration_bounds = array<i64: 3, 2>, scalar_prefetch = 0 : i64, scratch_operands = 0 : i64, tpu.core_type = #tpu.core_type<tc>, window_params = [{transform_indices = @transform_0, window_bounds = array<i64: 1, 1, 128, 16>}, {transform_indices = @transform_1, window_bounds = array<i64: 1, 1, 128, 16>}, {transform_indices = @transform_2, window_bounds = array<i64: 1, 1, 16>}, {transform_indices = @transform_3, window_bounds = array<i64: 1, 1, 16>}, {pipeline_mode = #tpu.pipeline_mode<synchronous>, transform_indices = @transform_4, window_bounds = array<i64: 2, 128, 1>}, {pipeline_mode = #tpu.pipeline_mode<synchronous>, transform_indices = @transform_5, window_bounds = array<i64: 2, 2, 16, 16>}, {pipeline_mode = #tpu.pipeline_mode<synchronous>, transform_indices = @transform_6, window_bounds = array<i64: 2, 16, 16>}, {transform_indices = @transform_7, window_bounds = array<i64: 1>}, {transform_indices = @transform_8, window_bounds = array<i64: 1, 1, 128, 16>}, {transform_indices = @transform_9, window_bounds = array<i64: 1, 1, 128, 16>}]} {
    %c0 = arith.constant 0 : index
    %c0_0 = arith.constant 0 : index
    %c0_1 = arith.constant 0 : index
    %c0_2 = arith.constant 0 : index
    %0 = vector.load %arg2[%c0, %c0_0, %c0_1, %c0_2] : memref<1x1x128x16xf32, #tpu.memory_space<vmem>>, vector<1x1x128x16xf32>
    %1 = vector.shape_cast %0 : vector<1x1x128x16xf32> to vector<128x16xf32>
    %c0_3 = arith.constant 0 : index
    %c0_4 = arith.constant 0 : index
    %c0_5 = arith.constant 0 : index
    %c0_6 = arith.constant 0 : index
    %2 = vector.load %arg3[%c0_3, %c0_4, %c0_5, %c0_6] : memref<1x1x128x16xf32, #tpu.memory_space<vmem>>, vector<1x1x128x16xf32>
    %3 = vector.shape_cast %2 : vector<1x1x128x16xf32> to vector<128x16xf32>
    %c0_7 = arith.constant 0 : index
    %c0_8 = arith.constant 0 : index
    %c0_9 = arith.constant 0 : index
    %4 = vector.load %arg4[%c0_7, %c0_8, %c0_9] : memref<1x1x16xf32, #tpu.memory_space<vmem>>, vector<1x1x16xf32>
    %5 = vector.shape_cast %4 : vector<1x1x16xf32> to vector<1x16xf32>
    %c0_10 = arith.constant 0 : index
    %c0_11 = arith.constant 0 : index
    %c0_12 = arith.constant 0 : index
    %6 = vector.load %arg5[%c0_10, %c0_11, %c0_12] : memref<1x1x16xf32, #tpu.memory_space<vmem>>, vector<1x1x16xf32>
    %7 = vector.shape_cast %6 : vector<1x1x16xf32> to vector<1x16xf32>
    %8 = vector.broadcast %5 : vector<1x16xf32> to vector<128x16xf32>
    %9 = arith.mulf %1, %8 : vector<128x16xf32>
    %10 = vector.broadcast %7 : vector<1x16xf32> to vector<128x16xf32>
    %11 = arith.mulf %3, %10 : vector<128x16xf32>
    %c0_13 = arith.constant 0 : index
    %c0_14 = arith.constant 0 : index
    %c0_15 = arith.constant 0 : index
    %c0_16 = arith.constant 0 : index
    %12 = vector.load %arg7[%c0_13, %c0_14, %c0_15, %c0_16] : memref<2x2x16x16xf32, #tpu.memory_space<vmem>>, vector<1x1x16x16xf32>
    %13 = vector.shape_cast %12 : vector<1x1x16x16xf32> to vector<16x16xf32>
    %c0_17 = arith.constant 0 : index
    %c1 = arith.constant 1 : index
    %c0_18 = arith.constant 0 : index
    %c0_19 = arith.constant 0 : index
    %14 = vector.load %arg7[%c0_17, %c1, %c0_18, %c0_19] : memref<2x2x16x16xf32, #tpu.memory_space<vmem>>, vector<1x1x16x16xf32>
    %15 = vector.shape_cast %14 : vector<1x1x16x16xf32> to vector<16x16xf32>
    %c1_20 = arith.constant 1 : index
    %c0_21 = arith.constant 0 : index
    %c0_22 = arith.constant 0 : index
    %c0_23 = arith.constant 0 : index
    %16 = vector.load %arg7[%c1_20, %c0_21, %c0_22, %c0_23] : memref<2x2x16x16xf32, #tpu.memory_space<vmem>>, vector<1x1x16x16xf32>
    %17 = vector.shape_cast %16 : vector<1x1x16x16xf32> to vector<16x16xf32>
    %c1_24 = arith.constant 1 : index
    %c1_25 = arith.constant 1 : index
    %c0_26 = arith.constant 0 : index
    %c0_27 = arith.constant 0 : index
    %18 = vector.load %arg7[%c1_24, %c1_25, %c0_26, %c0_27] : memref<2x2x16x16xf32, #tpu.memory_space<vmem>>, vector<1x1x16x16xf32>
    %19 = vector.shape_cast %18 : vector<1x1x16x16xf32> to vector<16x16xf32>
    %c0_28 = arith.constant 0 : index
    %c0_29 = arith.constant 0 : index
    %c0_30 = arith.constant 0 : index
    %20 = vector.load %arg8[%c0_28, %c0_29, %c0_30] : memref<2x16x16xf32, #tpu.memory_space<vmem>>, vector<1x16x16xf32>
    %21 = vector.shape_cast %20 : vector<1x16x16xf32> to vector<16x16xf32>
    %c1_31 = arith.constant 1 : index
    %c0_32 = arith.constant 0 : index
    %c0_33 = arith.constant 0 : index
    %22 = vector.load %arg8[%c1_31, %c0_32, %c0_33] : memref<2x16x16xf32, #tpu.memory_space<vmem>>, vector<1x16x16xf32>
    %23 = vector.shape_cast %22 : vector<1x16x16xf32> to vector<16x16xf32>
    %cst = arith.constant dense<0.000000e+00> : vector<16xf32>
    %24 = vector.multi_reduction <add>, %9, %cst [0] : vector<128x16xf32> to vector<16xf32>
    %25 = vector.shape_cast %24 : vector<16xf32> to vector<1x16xf32>
    %cst_34 = arith.constant 1.280000e+02 : f32
    %26 = vector.broadcast %cst_34 : f32 to vector<1x16xf32>
    %27 = arith.divf %25, %26 : vector<1x16xf32>
    %cst_35 = arith.constant dense<0xFF800000> : vector<16xf32>
    %28 = vector.multi_reduction <maximumf>, %9, %cst_35 [0] : vector<128x16xf32> to vector<16xf32>
    %29 = vector.shape_cast %28 : vector<16xf32> to vector<1x16xf32>
    %cst_36 = arith.constant dense<0.000000e+00> : vector<1x16xf32>
    %30 = tpu.matmul %27, %13, %cst_36 {dimension_numbers = #tpu.dot_dimension_numbers<[1], [0], [0], [1], [0, 0, 1, 1], [], []>} : vector<1x16xf32>, vector<16x16xf32>, vector<1x16xf32> -> vector<1x16xf32>
    %cst_37 = arith.constant dense<0.000000e+00> : vector<1x16xf32>
    %31 = tpu.matmul %29, %17, %cst_37 {dimension_numbers = #tpu.dot_dimension_numbers<[1], [0], [0], [1], [0, 0, 1, 1], [], []>} : vector<1x16xf32>, vector<16x16xf32>, vector<1x16xf32> -> vector<1x16xf32>
    %32 = arith.addf %30, %31 : vector<1x16xf32>
    %cst_38 = arith.constant 0.000000e+00 : f32
    %33 = vector.broadcast %cst_38 : f32 to vector<1x16xf32>
    %34 = arith.maximumf %32, %33 : vector<1x16xf32>
    %cst_39 = arith.constant dense<0.000000e+00> : vector<1x16xf32>
    %35 = tpu.matmul %27, %15, %cst_39 {dimension_numbers = #tpu.dot_dimension_numbers<[1], [0], [0], [1], [0, 0, 1, 1], [], []>} : vector<1x16xf32>, vector<16x16xf32>, vector<1x16xf32> -> vector<1x16xf32>
    %cst_40 = arith.constant dense<0.000000e+00> : vector<1x16xf32>
    %36 = tpu.matmul %29, %19, %cst_40 {dimension_numbers = #tpu.dot_dimension_numbers<[1], [0], [0], [1], [0, 0, 1, 1], [], []>} : vector<1x16xf32>, vector<16x16xf32>, vector<1x16xf32> -> vector<1x16xf32>
    %37 = arith.addf %35, %36 : vector<1x16xf32>
    %cst_41 = arith.constant 0.000000e+00 : f32
    %38 = vector.broadcast %cst_41 : f32 to vector<1x16xf32>
    %39 = arith.maximumf %37, %38 : vector<1x16xf32>
    %cst_42 = arith.constant dense<0.000000e+00> : vector<1x16xf32>
    %40 = tpu.matmul %34, %21, %cst_42 {dimension_numbers = #tpu.dot_dimension_numbers<[1], [0], [0], [1], [0, 0, 1, 1], [], []>} : vector<1x16xf32>, vector<16x16xf32>, vector<1x16xf32> -> vector<1x16xf32>
    %cst_43 = arith.constant dense<0.000000e+00> : vector<1x16xf32>
    %41 = tpu.matmul %39, %23, %cst_43 {dimension_numbers = #tpu.dot_dimension_numbers<[1], [0], [0], [1], [0, 0, 1, 1], [], []>} : vector<1x16xf32>, vector<16x16xf32>, vector<1x16xf32> -> vector<1x16xf32>
    %42 = arith.addf %40, %41 : vector<1x16xf32>
    %43 = arith.negf %42 : vector<1x16xf32>
    %44 = math.exp %43 : vector<1x16xf32>
    %cst_44 = arith.constant 1.000000e+00 : f32
    %45 = vector.broadcast %cst_44 : f32 to vector<1x16xf32>
    %46 = arith.addf %45, %44 : vector<1x16xf32>
    %47 = arith.divf %45, %46 : vector<1x16xf32>
    %cst_45 = arith.constant dense<0.000000e+00> : vector<16xf32>
    %48 = vector.multi_reduction <add>, %11, %cst_45 [0] : vector<128x16xf32> to vector<16xf32>
    %49 = vector.shape_cast %48 : vector<16xf32> to vector<1x16xf32>
    %cst_46 = arith.constant 1.280000e+02 : f32
    %50 = vector.broadcast %cst_46 : f32 to vector<1x16xf32>
    %51 = arith.divf %49, %50 : vector<1x16xf32>
    %cst_47 = arith.constant dense<0xFF800000> : vector<16xf32>
    %52 = vector.multi_reduction <maximumf>, %11, %cst_47 [0] : vector<128x16xf32> to vector<16xf32>
    %53 = vector.shape_cast %52 : vector<16xf32> to vector<1x16xf32>
    %cst_48 = arith.constant dense<0.000000e+00> : vector<1x16xf32>
    %54 = tpu.matmul %51, %13, %cst_48 {dimension_numbers = #tpu.dot_dimension_numbers<[1], [0], [0], [1], [0, 0, 1, 1], [], []>} : vector<1x16xf32>, vector<16x16xf32>, vector<1x16xf32> -> vector<1x16xf32>
    %cst_49 = arith.constant dense<0.000000e+00> : vector<1x16xf32>
    %55 = tpu.matmul %53, %17, %cst_49 {dimension_numbers = #tpu.dot_dimension_numbers<[1], [0], [0], [1], [0, 0, 1, 1], [], []>} : vector<1x16xf32>, vector<16x16xf32>, vector<1x16xf32> -> vector<1x16xf32>
    %56 = arith.addf %54, %55 : vector<1x16xf32>
    %cst_50 = arith.constant 0.000000e+00 : f32
    %57 = vector.broadcast %cst_50 : f32 to vector<1x16xf32>
    %58 = arith.maximumf %56, %57 : vector<1x16xf32>
    %cst_51 = arith.constant dense<0.000000e+00> : vector<1x16xf32>
    %59 = tpu.matmul %51, %15, %cst_51 {dimension_numbers = #tpu.dot_dimension_numbers<[1], [0], [0], [1], [0, 0, 1, 1], [], []>} : vector<1x16xf32>, vector<16x16xf32>, vector<1x16xf32> -> vector<1x16xf32>
    %cst_52 = arith.constant dense<0.000000e+00> : vector<1x16xf32>
    %60 = tpu.matmul %53, %19, %cst_52 {dimension_numbers = #tpu.dot_dimension_numbers<[1], [0], [0], [1], [0, 0, 1, 1], [], []>} : vector<1x16xf32>, vector<16x16xf32>, vector<1x16xf32> -> vector<1x16xf32>
    %61 = arith.addf %59, %60 : vector<1x16xf32>
    %cst_53 = arith.constant 0.000000e+00 : f32
    %62 = vector.broadcast %cst_53 : f32 to vector<1x16xf32>
    %63 = arith.maximumf %61, %62 : vector<1x16xf32>
    %cst_54 = arith.constant dense<0.000000e+00> : vector<1x16xf32>
    %64 = tpu.matmul %58, %21, %cst_54 {dimension_numbers = #tpu.dot_dimension_numbers<[1], [0], [0], [1], [0, 0, 1, 1], [], []>} : vector<1x16xf32>, vector<16x16xf32>, vector<1x16xf32> -> vector<1x16xf32>
    %cst_55 = arith.constant dense<0.000000e+00> : vector<1x16xf32>
    %65 = tpu.matmul %63, %23, %cst_55 {dimension_numbers = #tpu.dot_dimension_numbers<[1], [0], [0], [1], [0, 0, 1, 1], [], []>} : vector<1x16xf32>, vector<16x16xf32>, vector<1x16xf32> -> vector<1x16xf32>
    %66 = arith.addf %64, %65 : vector<1x16xf32>
    %67 = arith.negf %66 : vector<1x16xf32>
    %68 = math.exp %67 : vector<1x16xf32>
    %cst_56 = arith.constant 1.000000e+00 : f32
    %69 = vector.broadcast %cst_56 : f32 to vector<1x16xf32>
    %70 = arith.addf %69, %68 : vector<1x16xf32>
    %71 = arith.divf %69, %70 : vector<1x16xf32>
    %cst_57 = arith.constant dense<0.000000e+00> : vector<1xf32>
    %72 = vector.multi_reduction <add>, %5, %cst_57 [1] : vector<1x16xf32> to vector<1xf32>
    %73 = vector.shape_cast %72 : vector<1xf32> to vector<1x1xf32>
    %cst_58 = arith.constant 1.600000e+01 : f32
    %74 = vector.broadcast %cst_58 : f32 to vector<1x1xf32>
    %75 = arith.divf %73, %74 : vector<1x1xf32>
    %cst_59 = arith.constant dense<0.000000e+00> : vector<1xf32>
    %76 = vector.multi_reduction <add>, %7, %cst_59 [1] : vector<1x16xf32> to vector<1xf32>
    %77 = vector.shape_cast %76 : vector<1xf32> to vector<1x1xf32>
    %cst_60 = arith.constant 1.600000e+01 : f32
    %78 = vector.broadcast %cst_60 : f32 to vector<1x1xf32>
    %79 = arith.divf %77, %78 : vector<1x1xf32>
    %cst_61 = arith.constant dense<0.000000e+00> : vector<128xf32>
    %80 = vector.multi_reduction <add>, %9, %cst_61 [1] : vector<128x16xf32> to vector<128xf32>
    %81 = vector.shape_cast %80 : vector<128xf32> to vector<128x1xf32>
    %cst_62 = arith.constant 1.600000e+01 : f32
    %82 = vector.broadcast %cst_62 : f32 to vector<128x1xf32>
    %83 = arith.divf %81, %82 : vector<128x1xf32>
    %cst_63 = arith.constant 9.99999997E-7 : f32
    %84 = vector.broadcast %cst_63 : f32 to vector<1x1xf32>
    %85 = arith.addf %75, %84 : vector<1x1xf32>
    %86 = vector.broadcast %85 : vector<1x1xf32> to vector<128x1xf32>
    %87 = arith.divf %83, %86 : vector<128x1xf32>
    %88 = arith.subf %1, %9 : vector<128x16xf32>
    %cst_64 = arith.constant dense<0.000000e+00> : vector<128xf32>
    %89 = vector.multi_reduction <add>, %88, %cst_64 [1] : vector<128x16xf32> to vector<128xf32>
    %90 = vector.shape_cast %89 : vector<128xf32> to vector<128x1xf32>
    %cst_65 = arith.constant 1.600000e+01 : f32
    %91 = vector.broadcast %cst_65 : f32 to vector<128x1xf32>
    %92 = arith.divf %90, %91 : vector<128x1xf32>
    %cst_66 = arith.constant 1.000000e+00 : f32
    %93 = vector.broadcast %cst_66 : f32 to vector<1x1xf32>
    %94 = arith.subf %93, %75 : vector<1x1xf32>
    %cst_67 = arith.constant 9.99999997E-7 : f32
    %95 = vector.broadcast %cst_67 : f32 to vector<1x1xf32>
    %96 = arith.addf %94, %95 : vector<1x1xf32>
    %97 = vector.broadcast %96 : vector<1x1xf32> to vector<128x1xf32>
    %98 = arith.divf %92, %97 : vector<128x1xf32>
    %cst_68 = arith.constant dense<0.000000e+00> : vector<128xf32>
    %99 = vector.multi_reduction <add>, %11, %cst_68 [1] : vector<128x16xf32> to vector<128xf32>
    %100 = vector.shape_cast %99 : vector<128xf32> to vector<128x1xf32>
    %cst_69 = arith.constant 1.600000e+01 : f32
    %101 = vector.broadcast %cst_69 : f32 to vector<128x1xf32>
    %102 = arith.divf %100, %101 : vector<128x1xf32>
    %cst_70 = arith.constant 9.99999997E-7 : f32
    %103 = vector.broadcast %cst_70 : f32 to vector<1x1xf32>
    %104 = arith.addf %79, %103 : vector<1x1xf32>
    %105 = vector.broadcast %104 : vector<1x1xf32> to vector<128x1xf32>
    %106 = arith.divf %102, %105 : vector<128x1xf32>
    %107 = arith.subf %3, %11 : vector<128x16xf32>
    %cst_71 = arith.constant dense<0.000000e+00> : vector<128xf32>
    %108 = vector.multi_reduction <add>, %107, %cst_71 [1] : vector<128x16xf32> to vector<128xf32>
    %109 = vector.shape_cast %108 : vector<128xf32> to vector<128x1xf32>
    %cst_72 = arith.constant 1.600000e+01 : f32
    %110 = vector.broadcast %cst_72 : f32 to vector<128x1xf32>
    %111 = arith.divf %109, %110 : vector<128x1xf32>
    %cst_73 = arith.constant 1.000000e+00 : f32
    %112 = vector.broadcast %cst_73 : f32 to vector<1x1xf32>
    %113 = arith.subf %112, %79 : vector<1x1xf32>
    %cst_74 = arith.constant 9.99999997E-7 : f32
    %114 = vector.broadcast %cst_74 : f32 to vector<1x1xf32>
    %115 = arith.addf %113, %114 : vector<1x1xf32>
    %116 = vector.broadcast %115 : vector<1x1xf32> to vector<128x1xf32>
    %117 = arith.divf %111, %116 : vector<128x1xf32>
    %c0_75 = arith.constant 0 : index
    %118 = memref.load %arg9[%c0_75] : memref<1xf32, #tpu.memory_space<smem>>
    %119 = vector.broadcast %118 : f32 to vector<128x1xf32>
    %120 = arith.mulf %119, %98 : vector<128x1xf32>
    %cst_76 = arith.constant 1.000000e+00 : f32
    %121 = arith.subf %cst_76, %118 : f32
    %122 = vector.broadcast %121 : f32 to vector<128x1xf32>
    %123 = arith.mulf %122, %117 : vector<128x1xf32>
    %124 = arith.addf %120, %123 : vector<128x1xf32>
    %125 = vector.broadcast %118 : f32 to vector<128x1xf32>
    %126 = arith.mulf %125, %87 : vector<128x1xf32>
    %cst_77 = arith.constant 1.000000e+00 : f32
    %127 = arith.subf %cst_77, %118 : f32
    %128 = vector.broadcast %127 : f32 to vector<128x1xf32>
    %129 = arith.mulf %128, %106 : vector<128x1xf32>
    %130 = arith.addf %126, %129 : vector<128x1xf32>
    %131 = arith.mulf %124, %124 : vector<128x1xf32>
    %cst_78 = arith.constant dense<0.000000e+00> : vector<1xf32>
    %132 = vector.multi_reduction <add>, %131, %cst_78 [0] : vector<128x1xf32> to vector<1xf32>
    %133 = vector.shape_cast %132 : vector<1xf32> to vector<1x1xf32>
    %134 = math.sqrt %133 : vector<1x1xf32>
    %cst_79 = arith.constant 9.99999997E-7 : f32
    %135 = vector.broadcast %cst_79 : f32 to vector<1x1xf32>
    %136 = arith.addf %134, %135 : vector<1x1xf32>
    %137 = vector.broadcast %136 : vector<1x1xf32> to vector<128x1xf32>
    %138 = arith.divf %124, %137 : vector<128x1xf32>
    %139 = arith.mulf %130, %130 : vector<128x1xf32>
    %cst_80 = arith.constant dense<0.000000e+00> : vector<1xf32>
    %140 = vector.multi_reduction <add>, %139, %cst_80 [0] : vector<128x1xf32> to vector<1xf32>
    %141 = vector.shape_cast %140 : vector<1xf32> to vector<1x1xf32>
    %142 = math.sqrt %141 : vector<1x1xf32>
    %cst_81 = arith.constant 9.99999997E-7 : f32
    %143 = vector.broadcast %cst_81 : f32 to vector<1x1xf32>
    %144 = arith.addf %142, %143 : vector<1x1xf32>
    %145 = vector.broadcast %144 : vector<1x1xf32> to vector<128x1xf32>
    %146 = arith.divf %130, %145 : vector<128x1xf32>
    %147 = arith.mulf %138, %138 : vector<128x1xf32>
    %cst_82 = arith.constant dense<0.000000e+00> : vector<1xf32>
    %148 = vector.multi_reduction <add>, %147, %cst_82 [0] : vector<128x1xf32> to vector<1xf32>
    %149 = vector.shape_cast %148 : vector<1xf32> to vector<1x1xf32>
    %150 = arith.mulf %138, %146 : vector<128x1xf32>
    %cst_83 = arith.constant dense<0.000000e+00> : vector<1xf32>
    %151 = vector.multi_reduction <add>, %150, %cst_83 [0] : vector<128x1xf32> to vector<1xf32>
    %152 = vector.shape_cast %151 : vector<1xf32> to vector<1x1xf32>
    %153 = arith.mulf %146, %146 : vector<128x1xf32>
    %cst_84 = arith.constant dense<0.000000e+00> : vector<1xf32>
    %154 = vector.multi_reduction <add>, %153, %cst_84 [0] : vector<128x1xf32> to vector<1xf32>
    %155 = vector.shape_cast %154 : vector<1xf32> to vector<1x1xf32>
    %156 = arith.mulf %149, %155 : vector<1x1xf32>
    %157 = arith.mulf %152, %152 : vector<1x1xf32>
    %158 = arith.subf %156, %157 : vector<1x1xf32>
    %cst_85 = arith.constant 1.000000e+00 : f32
    %159 = vector.broadcast %cst_85 : f32 to vector<1x1xf32>
    %160 = arith.divf %159, %158 : vector<1x1xf32>
    %161 = arith.mulf %155, %160 : vector<1x1xf32>
    %cst_86 = arith.constant 0.000000e+00 : f32
    %162 = vector.broadcast %cst_86 : f32 to vector<1x1xf32>
    %163 = arith.subf %162, %152 : vector<1x1xf32>
    %164 = arith.mulf %163, %160 : vector<1x1xf32>
    %165 = arith.mulf %149, %160 : vector<1x1xf32>
    %c0_87 = arith.constant 0 : index
    %c0_88 = arith.constant 0 : index
    %c0_89 = arith.constant 0 : index
    %166 = vector.load %arg6[%c0_87, %c0_88, %c0_89] : memref<2x128x1xf32, #tpu.memory_space<vmem>>, vector<1x128x1xf32>
    %167 = vector.shape_cast %166 : vector<1x128x1xf32> to vector<128x1xf32>
    %c1_90 = arith.constant 1 : index
    %c0_91 = arith.constant 0 : index
    %c0_92 = arith.constant 0 : index
    %168 = vector.load %arg6[%c1_90, %c0_91, %c0_92] : memref<2x128x1xf32, #tpu.memory_space<vmem>>, vector<1x128x1xf32>
    %169 = vector.shape_cast %168 : vector<1x128x1xf32> to vector<128x1xf32>
    %170 = vector.broadcast %47 : vector<1x16xf32> to vector<128x16xf32>
    %171 = arith.mulf %9, %170 : vector<128x16xf32>
    %172 = vector.broadcast %138 : vector<128x1xf32> to vector<128x16xf32>
    %173 = arith.mulf %172, %171 : vector<128x16xf32>
    %cst_93 = arith.constant dense<0.000000e+00> : vector<16xf32>
    %174 = vector.multi_reduction <add>, %173, %cst_93 [0] : vector<128x16xf32> to vector<16xf32>
    %175 = vector.shape_cast %174 : vector<16xf32> to vector<1x16xf32>
    %176 = vector.broadcast %146 : vector<128x1xf32> to vector<128x16xf32>
    %177 = arith.mulf %176, %171 : vector<128x16xf32>
    %cst_94 = arith.constant dense<0.000000e+00> : vector<16xf32>
    %178 = vector.multi_reduction <add>, %177, %cst_94 [0] : vector<128x16xf32> to vector<16xf32>
    %179 = vector.shape_cast %178 : vector<16xf32> to vector<1x16xf32>
    %180 = vector.broadcast %161 : vector<1x1xf32> to vector<1x16xf32>
    %181 = arith.mulf %180, %175 : vector<1x16xf32>
    %182 = vector.broadcast %164 : vector<1x1xf32> to vector<1x16xf32>
    %183 = arith.mulf %182, %179 : vector<1x16xf32>
    %184 = arith.addf %181, %183 : vector<1x16xf32>
    %185 = vector.broadcast %164 : vector<1x1xf32> to vector<1x16xf32>
    %186 = arith.mulf %185, %175 : vector<1x16xf32>
    %187 = vector.broadcast %165 : vector<1x1xf32> to vector<1x16xf32>
    %188 = arith.mulf %187, %179 : vector<1x16xf32>
    %189 = arith.addf %186, %188 : vector<1x16xf32>
    %190 = vector.broadcast %167 : vector<128x1xf32> to vector<128x16xf32>
    %191 = vector.broadcast %184 : vector<1x16xf32> to vector<128x16xf32>
    %192 = arith.mulf %190, %191 : vector<128x16xf32>
    %193 = vector.broadcast %169 : vector<128x1xf32> to vector<128x16xf32>
    %194 = vector.broadcast %189 : vector<1x16xf32> to vector<128x16xf32>
    %195 = arith.mulf %193, %194 : vector<128x16xf32>
    %196 = arith.addf %192, %195 : vector<128x16xf32>
    %197 = arith.addf %196, %9 : vector<128x16xf32>
    %c0_95 = arith.constant 0 : index
    %c0_96 = arith.constant 0 : index
    %c0_97 = arith.constant 0 : index
    %c0_98 = arith.constant 0 : index
    %198 = vector.load %arg10[%c0_95, %c0_96, %c0_97, %c0_98] : memref<1x1x128x16xf32, #tpu.memory_space<vmem>>, vector<1x1x128x16xf32>
    %199 = vector.shape_cast %198 : vector<1x1x128x16xf32> to vector<128x16xf32>
    %200 = vector.shape_cast %197 : vector<128x16xf32> to vector<1x1x128x16xf32>
    tpu.vector_store %arg10[%c0_95, %c0_96, %c0_97, %c0_98], %200 {strides = array<i32>} : memref<1x1x128x16xf32, #tpu.memory_space<vmem>>, vector<1x1x128x16xf32>,
    %201 = vector.broadcast %71 : vector<1x16xf32> to vector<128x16xf32>
    %202 = arith.mulf %11, %201 : vector<128x16xf32>
    %203 = vector.broadcast %138 : vector<128x1xf32> to vector<128x16xf32>
    %204 = arith.mulf %203, %202 : vector<128x16xf32>
    %cst_99 = arith.constant dense<0.000000e+00> : vector<16xf32>
    %205 = vector.multi_reduction <add>, %204, %cst_99 [0] : vector<128x16xf32> to vector<16xf32>
    %206 = vector.shape_cast %205 : vector<16xf32> to vector<1x16xf32>
    %207 = vector.broadcast %146 : vector<128x1xf32> to vector<128x16xf32>
    %208 = arith.mulf %207, %202 : vector<128x16xf32>
    %cst_100 = arith.constant dense<0.000000e+00> : vector<16xf32>
    %209 = vector.multi_reduction <add>, %208, %cst_100 [0] : vector<128x16xf32> to vector<16xf32>
    %210 = vector.shape_cast %209 : vector<16xf32> to vector<1x16xf32>
    %211 = vector.broadcast %161 : vector<1x1xf32> to vector<1x16xf32>
    %212 = arith.mulf %211, %206 : vector<1x16xf32>
    %213 = vector.broadcast %164 : vector<1x1xf32> to vector<1x16xf32>
    %214 = arith.mulf %213, %210 : vector<1x16xf32>
    %215 = arith.addf %212, %214 : vector<1x16xf32>
    %216 = vector.broadcast %164 : vector<1x1xf32> to vector<1x16xf32>
    %217 = arith.mulf %216, %206 : vector<1x16xf32>
    %218 = vector.broadcast %165 : vector<1x1xf32> to vector<1x16xf32>
    %219 = arith.mulf %218, %210 : vector<1x16xf32>
    %220 = arith.addf %217, %219 : vector<1x16xf32>
    %221 = vector.broadcast %167 : vector<128x1xf32> to vector<128x16xf32>
    %222 = vector.broadcast %215 : vector<1x16xf32> to vector<128x16xf32>
    %223 = arith.mulf %221, %222 : vector<128x16xf32>
    %224 = vector.broadcast %169 : vector<128x1xf32> to vector<128x16xf32>
    %225 = vector.broadcast %220 : vector<1x16xf32> to vector<128x16xf32>
    %226 = arith.mulf %224, %225 : vector<128x16xf32>
    %227 = arith.addf %223, %226 : vector<128x16xf32>
    %228 = arith.addf %227, %11 : vector<128x16xf32>
    %c0_101 = arith.constant 0 : index
    %c0_102 = arith.constant 0 : index
    %c0_103 = arith.constant 0 : index
    %c0_104 = arith.constant 0 : index
    %229 = vector.load %arg11[%c0_101, %c0_102, %c0_103, %c0_104] : memref<1x1x128x16xf32, #tpu.memory_space<vmem>>, vector<1x1x128x16xf32>
    %230 = vector.shape_cast %229 : vector<1x1x128x16xf32> to vector<128x16xf32>
    %231 = vector.shape_cast %228 : vector<128x16xf32> to vector<1x1x128x16xf32>
    tpu.vector_store %arg11[%c0_101, %c0_102, %c0_103, %c0_104], %231 {strides = array<i32>} : memref<1x1x128x16xf32, #tpu.memory_space<vmem>>, vector<1x1x128x16xf32>,
    return
  }
  func.func @transform_0(%arg0: i32, %arg1: i32) -> (i32, i32, i32, i32) {
    %c0_i32 = arith.constant 0 : i32
    %c0_i32_0 = arith.constant 0 : i32
    %c0_i32_1 = arith.constant 0 : i32
    return %arg0, %arg1, %c0_i32, %c0_i32_0 : i32, i32, i32, i32
  }
  func.func @transform_1(%arg0: i32, %arg1: i32) -> (i32, i32, i32, i32) {
    %c0_i32 = arith.constant 0 : i32
    %c0_i32_0 = arith.constant 0 : i32
    %c0_i32_1 = arith.constant 0 : i32
    return %arg0, %arg1, %c0_i32, %c0_i32_0 : i32, i32, i32, i32
  }
  func.func @transform_2(%arg0: i32, %arg1: i32) -> (i32, i32, i32) {
    %c0_i32 = arith.constant 0 : i32
    %c0_i32_0 = arith.constant 0 : i32
    %c0_i32_1 = arith.constant 0 : i32
    return %arg1, %c0_i32, %c0_i32_0 : i32, i32, i32
  }
  func.func @transform_3(%arg0: i32, %arg1: i32) -> (i32, i32, i32) {
    %c0_i32 = arith.constant 0 : i32
    %c0_i32_0 = arith.constant 0 : i32
    %c0_i32_1 = arith.constant 0 : i32
    return %arg1, %c0_i32, %c0_i32_0 : i32, i32, i32
  }
  func.func @transform_4(%arg0: i32, %arg1: i32) -> (i32, i32, i32) {
    %c0_i32 = arith.constant 0 : i32
    %c0_i32_0 = arith.constant 0 : i32
    %c0_i32_1 = arith.constant 0 : i32
    %c0_i32_2 = arith.constant 0 : i32
    return %c0_i32, %c0_i32_0, %c0_i32_1 : i32, i32, i32
  }
  func.func @transform_5(%arg0: i32, %arg1: i32) -> (i32, i32, i32, i32) {
    %c0_i32 = arith.constant 0 : i32
    %c0_i32_0 = arith.constant 0 : i32
    %c0_i32_1 = arith.constant 0 : i32
    %c0_i32_2 = arith.constant 0 : i32
    %c0_i32_3 = arith.constant 0 : i32
    return %c0_i32, %c0_i32_0, %c0_i32_1, %c0_i32_2 : i32, i32, i32, i32
  }
  func.func @transform_6(%arg0: i32, %arg1: i32) -> (i32, i32, i32) {
    %c0_i32 = arith.constant 0 : i32
    %c0_i32_0 = arith.constant 0 : i32
    %c0_i32_1 = arith.constant 0 : i32
    %c0_i32_2 = arith.constant 0 : i32
    return %c0_i32, %c0_i32_0, %c0_i32_1 : i32, i32, i32
  }
  func.func @transform_7(%arg0: i32, %arg1: i32) -> i32 {
    %c0_i32 = arith.constant 0 : i32
    %c0_i32_0 = arith.constant 0 : i32
    return %c0_i32 : i32
  }
  func.func @transform_8(%arg0: i32, %arg1: i32) -> (i32, i32, i32, i32) {
    %c0_i32 = arith.constant 0 : i32
    %c0_i32_0 = arith.constant 0 : i32
    %c0_i32_1 = arith.constant 0 : i32
    return %arg0, %arg1, %c0_i32, %c0_i32_0 : i32, i32, i32, i32
  }
  func.func @transform_9(%arg0: i32, %arg1: i32) -> (i32, i32, i32, i32) {
    %c0_i32 = arith.constant 0 : i32
    %c0_i32_0 = arith.constant 0 : i32
    %c0_i32_1 = arith.constant 0 : i32
    return %arg0, %arg1, %c0_i32, %c0_i32_0 : i32, i32, i32, i32
  }
}

</mosaic_0001>

<bundles_post_ra>
// kernel: restnet_forward.3
= control target key start
LH: loop header
LB: loop body
LE: loop exit
PB: predicated region body
PF: predicated region fallthrough
CT: control target
= control target key end

     0   :  { %s3856_s11 = smov 0   ;;  %s3858_s12 = smov 0   ;;  %s6310_s0 = inlined_call_operand.vmem [shape: f32[4,2,32,256], index: 0, kind: input, shape index: {}]   ;;  %s6311_s1 = inlined_call_operand.vmem [shape: f32[4,2,32,256], index: 1, kind: input, shape index: {}]   ;;  %s6312_s2 = inlined_call_operand.vmem [shape: f32[2,1,256], index: 2, kind: input, shape index: {}]   ;;  %s6313_s3 = inlined_call_operand.vmem [shape: f32[2,1,256], index: 3, kind: input, shape index: {}]   ;;  %s6314_s4 = inlined_call_operand.vmem [shape: f32[2,32,1], index: 4, kind: input, shape index: {}]   ;;  %s6315_s5 = inlined_call_operand.vmem [shape: f32[2,2,256,256], index: 5, kind: input, shape index: {}]   ;;  %s6316_s6 = inlined_call_operand.vmem [shape: f32[2,256,256], index: 6, kind: input, shape index: {}]   ;;  %s6317_s7 = inlined_call_operand.<no memory space> [shape: f32[1], index: 7, kind: input, shape index: {}]   ;;  %s6318_s8 = inlined_call_operand.vmem [shape: f32[4,2,32,256], index: 8, kind: output, shape index: {0}]   ;;  %s6319_s9 = inlined_call_operand.vmem [shape: f32[4,2,32,256], index: 9, kind: output, shape index: {1}]  }
   0x1   :  { %15 = sst [smem:[#allocation2]] %s6317_s7  ;;  %s3860_s13 = smov 0  }
   0x2   :  { %s3862_s14 = smov 0   ;;  %s3864_s15 = smov 0  }
   0x3 LB: > { %s30_s7 = sadd.s32 1, %s3792_s13  ;;  %s33_s16 = sadd.s32 1, %s3796_s14  ;;  %s3800_s15 = sphi %s3864_s15, %s21_s15   ;;  %s3796_s14 = sphi %s3862_s14, %s6760_s14   ;;  %s3792_s13 = sphi %s3860_s13, %s6759_s13   ;;  %s3788_s12 = sphi %s3858_s12, %s6758_s12   ;;  %s3784_s11 = sphi %s3856_s11, %s6757_s11  }
   0x4   : > { %p31_p0 = scmp.ge.s32.totalorder %s30_s7, 2  ;;  %p2616_p1 = scmp.ge.s32.totalorder %s3800_s15, 1 }
   0x5   : > { %p347_p2 = scmp.lt.s32.totalorder %s3800_s15, 9 }
   0x6   : > { %s6762_s7 = smov (%p31_p0, %s30_s7), 0  ;;  %s6764_s16 = smov (!%p31_p0, %s33_s16), %s3796_s14 }
   0x7   : > { %p348_p3 = pnand %p2616_p1, %p347_p2  ;;  %p35_p4 = scmp.ge.s32.totalorder %s6764_s16, 4 }
   0x9   : > { %s6766_s16 = smov (%p35_p4, %s6764_s16), 0  ;;  %351 = sbr.rel (%p348_p3) target bundleno = 1116 (0x45c), region = 52 }
  0x10   : > { %v2696_v0 = vld [vmem:[%s6315_s5 + $0x408] sm:$0xff]  ;;  %v2698_v1 = vld [vmem:[%s6315_s5 + $0x418] sm:$0xff]  ;;  %v2695_v5 = vld [vmem:[%s6315_s5 + $0x400] sm:$0xff]  ;;  %p417_p5 = scmp.lt.s32.totalorder %s3788_s12, 3  ;;  %p419_p6 = scmp.lt.s32.totalorder %s3784_s11, 1  ;;  %vm1866_vm0 = vcmask 1040384  }
  0x11   : > { %v2760_v2 = vld [vmem:[%s6315_s5 + $0x608] sm:$0xff]  ;;  %v3899_v3 = vpack.c.bf16 %v2698_v1, %v2696_v0  ;;  %v2762_v4 = vld [vmem:[%s6315_s5 + $0x618] sm:$0xff]  ;;  %v2697_v6 = vld [vmem:[%s6315_s5 + $0x410] sm:$0xff] }
  0x12   : > { %v3910_v7 = vpack.c.bf16 %v2762_v4, %v2760_v2  ;;  %v3912_v8 = vpack.c.bf16 %v2697_v6, %v2695_v5  ;;  %v2759_v9 = vld [vmem:[%s6315_s5 + $0x600] sm:$0xff]  ;;  %v2761_v10 = vld [vmem:[%s6315_s5 + $0x610] sm:$0xff]  ;;  %v2700_v11 = vld [vmem:[%s6315_s5 + $0x428] sm:$0xff]  ;;  %s6768_s12 = smov (!%p417_p5, %s3788_s12), 3  ;;  %s6770_s11 = smov (!%p419_p6, %s3784_s11), 1 }
  0x13   : > { %2898 = vmatprep.subr.bf16.mxu0 %v3899_v3  ;;  %v3924_v12 = vpack.c.bf16 %v2761_v10, %v2759_v9  ;;  %v2702_v13 = vld [vmem:[%s6315_s5 + $0x438] sm:$0xff]  ;;  %v2764_v14 = vld [vmem:[%s6315_s5 + $0x628] sm:$0xff]  ;;  %v2699_v18 = vld [vmem:[%s6315_s5 + $0x420] sm:$0xff]  ;;  %s2617_s19 = sshll.u32 %s6770_s11, 3  ;;  %s2618_s20 = sshll.u32 %s6768_s12, 4 }
  0x14   : > { %6483 = vst [vmem:[#allocation3_spill] sm:$0xff] %v3910_v7  ;;  %v2766_v15 = vld [vmem:[%s6315_s5 + $0x638] sm:$0xff]  ;;  %3026 = vmatprep.subr.bf16.mxu1 %v3910_v7  ;;  %2900 = vmatpush1.bf16.msra.mxu0 %v3912_v8  ;;  %v3937_v16 = vpack.c.bf16 %v2702_v13, %v2700_v11  ;;  %v2701_v19 = vld [vmem:[%s6315_s5 + $0x430] sm:$0xff]  ;;  %v2763_v20 = vld [vmem:[%s6315_s5 + $0x620] sm:$0xff]  ;;  %s423_s17 = sadd.s32 %s2618_s20, %s2617_s19 }
  0x15   : > { %6484 = vst [vmem:[#allocation4_spill] sm:$0xff] %v3924_v12  ;;  %v3939_v17 = vpack.c.bf16 %v2766_v15, %v2764_v14  ;;  %3028 = vmatpush1.bf16.msra.mxu1 %v3924_v12  ;;  %v3951_v21 = vpack.c.bf16 %v2701_v19, %v2699_v18  ;;  %v2765_v22 = vld [vmem:[%s6315_s5 + $0x630] sm:$0xff]  ;;  %v2704_v23 = vld [vmem:[%s6315_s5 + $0x448] sm:$0xff]  ;;  %v2706_v24 = vld [vmem:[%s6315_s5 + $0x458] sm:$0xff]  ;;  %s4287_s29 = sshll.u32 %s423_s17, 3  ;;  %s2623_s17 = sshll.u32 %s6770_s11, 1 }
  0x16   : > { %2902 = vmatprep.subr.bf16.mxu0 %v3937_v16  ;;  %v3964_v25 = vpack.c.bf16 %v2765_v22, %v2763_v20  ;;  %v3966_v26 = vpack.c.bf16 %v2706_v24, %v2704_v23  ;;  %v2768_v27 = vld [vmem:[%s6315_s5 + $0x648] sm:$0xff]  ;;  %v2770_v28 = vld [vmem:[%s6315_s5 + $0x658] sm:$0xff]  ;;  %v2703_v29 = vld [vmem:[%s6315_s5 + $0x440] sm:$0xff]  ;;  %s4329_s24 = scalar_lea.vmem %s6310_s0, %s4287_s29  ;;  %s438_s10 = scalar_lea.vmem %s6312_s2, %s2623_s17 }
  0x17   : > { %6485 = vst [vmem:[#allocation5_spill] sm:$0xff] %v3939_v17  ;;  %3030 = vmatprep.subr.bf16.mxu1 %v3939_v17  ;;  %v3977_v30 = vpack.c.bf16 %v2770_v28, %v2768_v27  ;;  %v2705_v31 = vld [vmem:[%s6315_s5 + $0x450] sm:$0xff]  ;;  %v2767_v32 = vld [vmem:[%s6315_s5 + $0x640] sm:$0xff]  ;;  %v2708_v35 = vld [vmem:[%s6315_s5 + $0x468] sm:$0xff]  ;;  %s442_s12 = scalar_lea.vmem %s6313_s3, %s2623_s17  ;;  %s5485_s19 = scalar_lea.vmem %s6311_s1, %s4287_s29 }
  0x18   : > { %6486 = vst [vmem:[#allocation6_spill] sm:$0xff] %v3964_v25  ;;  %v2769_v33 = vld [vmem:[%s6315_s5 + $0x650] sm:$0xff]  ;;  %2904 = vmatpush1.bf16.msra.mxu0 %v3951_v21  ;;  %v3989_v34 = vpack.c.bf16 %v2705_v31, %v2703_v29  ;;  %v2710_v36 = vld [vmem:[%s6315_s5 + $0x478] sm:$0xff]  ;;  %v2772_v37 = vld [vmem:[%s6315_s5 + $0x668] sm:$0xff]  ;;  %s460_s26 = scalar_lea.vmem %s6319_s9, %s4287_s29 }
  0x19   : > { %6487 = vst [vmem:[#allocation7_spill] sm:$0xff] %v3977_v30  ;;  %3032 = vmatpush1.bf16.msra.mxu1 %v3964_v25  ;;  %2906 = vmatprep.subr.bf16.mxu0 %v3966_v26  ;;  %v4002_v38 = vpack.c.bf16 %v2769_v33, %v2767_v32  ;;  %v4004_v39 = vpack.c.bf16 %v2710_v36, %v2708_v35  ;;  %v2774_v40 = vld [vmem:[%s6315_s5 + $0x678] sm:$0xff]  ;;  %v2707_v41 = vld [vmem:[%s6315_s5 + $0x460] sm:$0xff]  ;;  %v2709_v42 = vld [vmem:[%s6315_s5 + $0x470] sm:$0xff] }
  0x1a   : > { %3034 = vmatprep.subr.bf16.mxu1 %v3977_v30  ;;  %v4016_v43 = vpack.c.bf16 %v2774_v40, %v2772_v37  ;;  %v2771_v44 = vld [vmem:[%s6315_s5 + $0x660] sm:$0xff]  ;;  %v2773_v45 = vld [vmem:[%s6315_s5 + $0x670] sm:$0xff]  ;;  %v2712_v46 = vld [vmem:[%s6315_s5 + $0x488] sm:$0xff]  ;;  %v4037_v50 = vpack.c.bf16 %v2709_v42, %v2707_v41 }
  0x1b   : > { %6488 = vst [vmem:[#allocation8_spill] sm:$0xff] %v4002_v38  ;;  %v2714_v47 = vld [vmem:[%s6315_s5 + $0x498] sm:$0xff]  ;;  %v2776_v48 = vld [vmem:[%s6315_s5 + $0x688] sm:$0xff]  ;;  %v4041_v51 = vpack.c.bf16 %v2773_v45, %v2771_v44  ;;  %v2711_v53 = vld [vmem:[%s6315_s5 + $0x480] sm:$0xff] }
  0x1c   : > { %6489 = vst [vmem:[#allocation9_spill] sm:$0xff] %v4016_v43  ;;  %v2778_v49 = vld [vmem:[%s6315_s5 + $0x698] sm:$0xff]  ;;  %2908 = vmatpush1.bf16.msra.mxu0 %v3989_v34  ;;  %v4043_v52 = vpack.c.bf16 %v2714_v47, %v2712_v46  ;;  %v2713_v54 = vld [vmem:[%s6315_s5 + $0x490] sm:$0xff]  ;;  %v2775_v55 = vld [vmem:[%s6315_s5 + $0x680] sm:$0xff] }
  0x1d   : > { %3036 = vmatpush1.bf16.msra.mxu1 %v4002_v38  ;;  %2910 = vmatprep.subr.bf16.mxu0 %v4004_v39  ;;  %6490 = vst [vmem:[#allocation10_spill] sm:$0xff] %v4041_v51  ;;  %v4055_v56 = vpack.c.bf16 %v2778_v49, %v2776_v48  ;;  %v2777_v57 = vld [vmem:[%s6315_s5 + $0x690] sm:$0xff]  ;;  %v2716_v58 = vld [vmem:[%s6315_s5 + $0x4a8] sm:$0xff]  ;;  %v2718_v59 = vld [vmem:[%s6315_s5 + $0x4b8] sm:$0xff]  ;;  %v4073_v62 = vpack.c.bf16 %v2713_v54, %v2711_v53 }
  0x1e   : > { %3038 = vmatprep.subr.bf16.mxu1 %v4016_v43  ;;  %v2780_v60 = vld [vmem:[%s6315_s5 + $0x6a8] sm:$0xff]  ;;  %v2782_v61 = vld [vmem:[%s6315_s5 + $0x6b8] sm:$0xff]  ;;  %v4077_v63 = vpack.c.bf16 %v2777_v57, %v2775_v55  ;;  %v4079_v0 = vpack.c.bf16 %v2718_v59, %v2716_v58  ;;  %v2715_v1 = vld [vmem:[%s6315_s5 + $0x4a0] sm:$0xff] }
  0x1f   : > { %6491 = vst [vmem:[#allocation11_spill] sm:$0xff] %v4055_v56  ;;  %v2717_v2 = vld [vmem:[%s6315_s5 + $0x4b0] sm:$0xff]  ;;  %v2779_v4 = vld [vmem:[%s6315_s5 + $0x6a0] sm:$0xff]  ;;  %v4091_v5 = vpack.c.bf16 %v2782_v61, %v2780_v60  ;;  %v2720_v9 = vld [vmem:[%s6315_s5 + $0x4c8] sm:$0xff] }
  0x20   : > { %2912 = vmatpush1.bf16.msra.mxu0 %v4037_v50  ;;  %6492 = vst [vmem:[#allocation12_spill] sm:$0xff] %v4077_v63  ;;  %v2781_v6 = vld [vmem:[%s6315_s5 + $0x6b0] sm:$0xff]  ;;  %v2722_v10 = vld [vmem:[%s6315_s5 + $0x4d8] sm:$0xff]  ;;  %v2784_v11 = vld [vmem:[%s6315_s5 + $0x6c8] sm:$0xff]  ;;  %v4109_v14 = vpack.c.bf16 %v2717_v2, %v2715_v1 }
  0x21   : > { %3040 = vmatpush1.bf16.msra.mxu1 %v4041_v51  ;;  %2914 = vmatprep.subr.bf16.mxu0 %v4043_v52  ;;  %6493 = vst [vmem:[#allocation13_spill] sm:$0xff] %v4091_v5  ;;  %v2786_v13 = vld [vmem:[%s6315_s5 + $0x6d8] sm:$0xff]  ;;  %v4113_v15 = vpack.c.bf16 %v2781_v6, %v2779_v4  ;;  %v4115_v18 = vpack.c.bf16 %v2722_v10, %v2720_v9  ;;  %v2719_v19 = vld [vmem:[%s6315_s5 + $0x4c0] sm:$0xff]  ;;  %v2721_v20 = vld [vmem:[%s6315_s5 + $0x4d0] sm:$0xff] }
  0x22   : > { %3042 = vmatprep.subr.bf16.mxu1 %v4055_v56  ;;  %v2783_v22 = vld [vmem:[%s6315_s5 + $0x6c0] sm:$0xff]  ;;  %v4127_v23 = vpack.c.bf16 %v2786_v13, %v2784_v11  ;;  %v2785_v24 = vld [vmem:[%s6315_s5 + $0x6d0] sm:$0xff]  ;;  %v2724_v27 = vld [vmem:[%s6315_s5 + $0x4e8] sm:$0xff]  ;;  %v4147_v32 = vpack.c.bf16 %v2721_v20, %v2719_v19  ;;  %v480_v19 = vlaneseq }
  0x23   : > { %6494 = vst [vmem:[#allocation14_spill] sm:$0xff] %v4113_v15  ;;  %v2726_v28 = vld [vmem:[%s6315_s5 + $0x4f8] sm:$0xff]  ;;  %v2788_v29 = vld [vmem:[%s6315_s5 + $0x6e8] sm:$0xff]  ;;  %v4151_v33 = vpack.c.bf16 %v2785_v24, %v2783_v22  ;;  %v2723_v36 = vld [vmem:[%s6315_s5 + $0x4e0] sm:$0xff] }
  0x24   : > { %2916 = vmatpush1.bf16.msra.mxu0 %v4073_v62  ;;  %6495 = vst [vmem:[#allocation15_spill] sm:$0xff] %v4127_v23  ;;  %v2790_v31 = vld [vmem:[%s6315_s5 + $0x6f8] sm:$0xff]  ;;  %v4153_v35 = vpack.c.bf16 %v2726_v28, %v2724_v27  ;;  %v2725_v37 = vld [vmem:[%s6315_s5 + $0x4f0] sm:$0xff]  ;;  %v2787_v40 = vld [vmem:[%s6315_s5 + $0x6e0] sm:$0xff] }
  0x25   : > { %3044 = vmatpush1.bf16.msra.mxu1 %v4077_v63  ;;  %2918 = vmatprep.subr.bf16.mxu0 %v4079_v0  ;;  %6496 = vst [vmem:[#allocation16_spill] sm:$0xff] %v4151_v33  ;;  %v4165_v41 = vpack.c.bf16 %v2790_v31, %v2788_v29  ;;  %v2789_v42 = vld [vmem:[%s6315_s5 + $0x6f0] sm:$0xff]  ;;  %v2728_v44 = vld [vmem:[%s6315_s5 + $0x508] sm:$0xff]  ;;  %v2730_v45 = vld [vmem:[%s6315_s5 + $0x518] sm:$0xff]  ;;  %v4193_v48 = vpack.c.bf16 %v2725_v37, %v2723_v36 }
  0x26   : > { %3046 = vmatprep.subr.bf16.mxu1 %v4091_v5  ;;  %v2792_v46 = vld [vmem:[%s6315_s5 + $0x708] sm:$0xff]  ;;  %v2794_v47 = vld [vmem:[%s6315_s5 + $0x718] sm:$0xff]  ;;  %v4197_v49 = vpack.c.bf16 %v2789_v42, %v2787_v40  ;;  %v4199_v53 = vpack.c.bf16 %v2730_v45, %v2728_v44  ;;  %v2727_v54 = vld [vmem:[%s6315_s5 + $0x500] sm:$0xff] }
  0x27   : > { %6497 = vst [vmem:[#allocation17_spill] sm:$0xff] %v4165_v41  ;;  %v2729_v55 = vld [vmem:[%s6315_s5 + $0x510] sm:$0xff]  ;;  %v2791_v57 = vld [vmem:[%s6315_s5 + $0x700] sm:$0xff]  ;;  %v4211_v58 = vpack.c.bf16 %v2794_v47, %v2792_v46  ;;  %v2732_v60 = vld [vmem:[%s6315_s5 + $0x528] sm:$0xff]  ;;  %v4289_v46 = vshrl.u32 %v480_v19, 7 }
  0x28   : > { %2920 = vmatpush1.bf16.msra.mxu0 %v4109_v14  ;;  %6498 = vst [vmem:[#allocation18_spill] sm:$0xff] %v4197_v49  ;;  %v2793_v59 = vld [vmem:[%s6315_s5 + $0x710] sm:$0xff]  ;;  %v2734_v61 = vld [vmem:[%s6315_s5 + $0x538] sm:$0xff]  ;;  %v2796_v1 = vld [vmem:[%s6315_s5 + $0x728] sm:$0xff]  ;;  %v4231_v4 = vpack.c.bf16 %v2729_v55, %v2727_v54 }
  0x29   : > { %3048 = vmatpush1.bf16.msra.mxu1 %v4113_v15  ;;  %2922 = vmatprep.subr.bf16.mxu0 %v4115_v18  ;;  %6499 = vst [vmem:[#allocation19_spill] sm:$0xff] %v4211_v58  ;;  %v2798_v2 = vld [vmem:[%s6315_s5 + $0x738] sm:$0xff]  ;;  %v4235_v6 = vpack.c.bf16 %v2793_v59, %v2791_v57  ;;  %v4237_v9 = vpack.c.bf16 %v2734_v61, %v2732_v60  ;;  %v2731_v10 = vld [vmem:[%s6315_s5 + $0x520] sm:$0xff]  ;;  %v2733_v11 = vld [vmem:[%s6315_s5 + $0x530] sm:$0xff] }
  0x2a   : > { %3050 = vmatprep.subr.bf16.mxu1 %v4127_v23  ;;  %v2795_v13 = vld [vmem:[%s6315_s5 + $0x720] sm:$0xff]  ;;  %v4249_v20 = vpack.c.bf16 %v2798_v2, %v2796_v1  ;;  %v2797_v22 = vld [vmem:[%s6315_s5 + $0x730] sm:$0xff]  ;;  %v2736_v24 = vld [vmem:[%s6315_s5 + $0x548] sm:$0xff]  ;;  %v4267_v31 = vpack.c.bf16 %v2733_v11, %v2731_v10 }
  0x2b   : > { %6500 = vst [vmem:[#allocation20_spill] sm:$0xff] %v4235_v6  ;;  %v2738_v27 = vld [vmem:[%s6315_s5 + $0x558] sm:$0xff]  ;;  %v2800_v28 = vld [vmem:[%s6315_s5 + $0x748] sm:$0xff]  ;;  %v2735_v36 = vld [vmem:[%s6315_s5 + $0x540] sm:$0xff]  ;;  %v4274_v37 = vpack.c.bf16 %v2797_v22, %v2795_v13 }
  0x2c   : > { %2924 = vmatpush1.bf16.msra.mxu0 %v4147_v32  ;;  %6501 = vst [vmem:[#allocation21_spill] sm:$0xff] %v4249_v20  ;;  %v2802_v29 = vld [vmem:[%s6315_s5 + $0x758] sm:$0xff]  ;;  %v4276_v40 = vpack.c.bf16 %v2738_v27, %v2736_v24  ;;  %v2737_v42 = vld [vmem:[%s6315_s5 + $0x550] sm:$0xff]  ;;  %v2799_v44 = vld [vmem:[%s6315_s5 + $0x740] sm:$0xff] }
  0x2d   : > { %3052 = vmatpush1.bf16.msra.mxu1 %v4151_v33  ;;  %2926 = vmatprep.subr.bf16.mxu0 %v4153_v35  ;;  %6502 = vst [vmem:[#allocation22_spill] sm:$0xff] %v4274_v37  ;;  %v2801_v45 = vld [vmem:[%s6315_s5 + $0x750] sm:$0xff]  ;;  %v4292_v47 = vpack.c.bf16 %v2802_v29, %v2800_v28  ;;  %v2740_v54 = vld [vmem:[%s6315_s5 + $0x568] sm:$0xff]  ;;  %v2742_v55 = vld [vmem:[%s6315_s5 + $0x578] sm:$0xff]  ;;  %v4314_v1 = vpack.c.bf16 %v2737_v42, %v2735_v36  ;;  %v4352_v28 = vsub.s32 0, %v4289_v46 }
  0x2e   : > { %3054 = vmatprep.subr.bf16.mxu1 %v4165_v41  ;;  %v2804_v57 = vld [vmem:[%s6315_s5 + $0x768] sm:$0xff]  ;;  %v2806_v59 = vld [vmem:[%s6315_s5 + $0x778] sm:$0xff]  ;;  %v2739_v60 = vld [vmem:[%s6315_s5 + $0x560] sm:$0xff]  ;;  %v4333_v13 = vpack.c.bf16 %v2801_v45, %v2799_v44  ;;  %v4335_v19 = vpack.c.bf16 %v2742_v55, %v2740_v54 }
  0x2f   : > { %6503 = vst [vmem:[#allocation23_spill] sm:$0xff] %v4292_v47  ;;  %v2741_v61 = vld [vmem:[%s6315_s5 + $0x570] sm:$0xff]  ;;  %v2803_v2 = vld [vmem:[%s6315_s5 + $0x760] sm:$0xff]  ;;  %v2744_v11 = vld [vmem:[%s6315_s5 + $0x588] sm:$0xff]  ;;  %v4356_v36 = vpack.c.bf16 %v2806_v59, %v2804_v57 }
  0x30   : > { %2928 = vmatpush1.bf16.msra.mxu0 %v4193_v48  ;;  %v2805_v10 = vld [vmem:[%s6315_s5 + $0x770] sm:$0xff]  ;;  %6504 = vst [vmem:[#allocation24_spill] sm:$0xff] %v4333_v13  ;;  %v2746_v22 = vld [vmem:[%s6315_s5 + $0x598] sm:$0xff]  ;;  %v2808_v24 = vld [vmem:[%s6315_s5 + $0x788] sm:$0xff]  ;;  %v4373_v59 = vpack.c.bf16 %v2741_v61, %v2739_v60 }
  0x31   : > { %3056 = vmatpush1.bf16.msra.mxu1 %v4197_v49  ;;  %2930 = vmatprep.subr.bf16.mxu0 %v4199_v53  ;;  %v2810_v27 = vld [vmem:[%s6315_s5 + $0x798] sm:$0xff]  ;;  %6505 = vst [vmem:[#allocation25_spill] sm:$0xff] %v4352_v28  ;;  %6506 = vst [vmem:[#allocation26_spill] sm:$0xff] %v4356_v36  ;;  %v2743_v42 = vld [vmem:[%s6315_s5 + $0x580] sm:$0xff]  ;;  %v4375_v29 = vpack.c.bf16 %v2805_v10, %v2803_v2  ;;  %v6508_v2 = vsub.s32 1, %v4289_v46 }
  0x32   : > { %3058 = vmatprep.subr.bf16.mxu1 %v4211_v58  ;;  %v2745_v44 = vld [vmem:[%s6315_s5 + $0x590] sm:$0xff]  ;;  %v2807_v45 = vld [vmem:[%s6315_s5 + $0x780] sm:$0xff]  ;;  %v462_v55 = vld [vmem:[%s4329_s24 + $0x8] sm:$0xff] }
  0x33   : > { %v2809_v54 = vld [vmem:[%s6315_s5 + $0x790] sm:$0xff]  ;;  %v464_v57 = vld [vmem:[%s4329_s24 + $0x18] sm:$0xff]  ;;  %6507 = vst [vmem:[#allocation27_spill] sm:$0xff] %v4375_v29  ;;  %v2748_v58 = vld [vmem:[%s6315_s5 + $0x5a8] sm:$0xff] }
  0x34   : > { %2932 = vmatpush1.bf16.msra.mxu0 %v4231_v4  ;;  %v2750_v60 = vld [vmem:[%s6315_s5 + $0x5b8] sm:$0xff]  ;;  %v4402_v49 = vpack.c.bf16 %v2809_v54, %v2807_v45  ;;  %v463_v41 = vld [vmem:[%s4329_s24 + $0x10] sm:$0xff]  ;;  %v465_v33 = vld [vmem:[%s4329_s24 + $0x20] sm:$0xff] }
  0x35   : > { %3060 = vmatpush1.bf16.msra.mxu1 %v4235_v6  ;;  %2934 = vmatprep.subr.bf16.mxu0 %v4237_v9  ;;  %v4381_v6 = vpack.c.bf16 %v2746_v22, %v2744_v11  ;;  %v4398_v11 = vpack.c.bf16 %v2810_v27, %v2808_v24  ;;  %v4400_v22 = vpack.c.bf16 %v2745_v44, %v2743_v42  ;;  %v467_v23 = vld [vmem:[%s4329_s24 + $0x30] sm:$0xff]  ;;  %v2812_v15 = vld [vmem:[%s6315_s5 + $0x7a8] sm:$0xff]  ;;  %v2755_v12 = vld [vmem:[%s6315_s5 + $0x5e0] sm:$0xff] }
  0x36   : > { %3062 = vmatprep.subr.bf16.mxu1 %v4249_v20  ;;  %v477_v20 = vld [vmem:[%s438_s10] sm:$0x3]  ;;  %6510 = vst [vmem:[#allocation29_spill] sm:$0xff] %v4402_v49 }
  0x37   : > { %v4390_v61 = vrot.slane %v477_v20, %v4352_v28  ;;  %v4394_v10 = vrot.slane %v477_v20, %v6508_v2  ;;  %6509 = vst [vmem:[#allocation28_spill] sm:$0xff] %v4398_v11  ;;  %v2814_v20 = vld [vmem:[%s6315_s5 + $0x7b8] sm:$0xff] }
  0x38   : > { %2936 = vmatpush1.bf16.msra.mxu0 %v4267_v31 }
  0x39   : > { %3064 = vmatpush1.bf16.msra.mxu1 %v4274_v37  ;;  %2938 = vmatprep.subr.bf16.mxu0 %v4276_v40  ;;  %v468_v37 = vld [vmem:[%s4329_s24 + $0x38] sm:$0xff]  ;;  %v4414_v2 = vmul.f32 %v4394_v10, %v462_v55  ;;  %v4417_v24 = vmul.f32 %v4394_v10, %v464_v57  ;;  %v4430_v45 = vmul.f32 %v4390_v61, %v463_v41  ;;  %v2749_v41 = vld [vmem:[%s6315_s5 + $0x5b0] sm:$0xff] }
  0x3a   : > { %3066 = vmatprep.subr.bf16.mxu1 %v4292_v47  ;;  %v466_v47 = vld [vmem:[%s4329_s24 + $0x28] sm:$0xff]  ;;  %v4423_v42 = vmul.f32 %v4394_v10, %v468_v37  ;;  %v4433_v54 = vmul.f32 %v4390_v61, %v465_v33  ;;  %v4436_v55 = vmul.f32 %v4390_v61, %v467_v23  ;;  %v4440_v37 = vpack.c.bf16 %v2750_v60, %v2748_v58  ;;  %v2811_v33 = vld [vmem:[%s6315_s5 + $0x7a0] sm:$0xff]  ;;  %v2813_v57 = vld [vmem:[%s6315_s5 + $0x7b0] sm:$0xff] }
  0x3b   : > { %6511 = vst [vmem:[#allocation30_spill] sm:$0xff] %v4414_v2  ;;  %6512 = vst [vmem:[#allocation31_spill] sm:$0xff] %v4417_v24  ;;  %v4420_v27 = vmul.f32 %v4394_v10, %v466_v47  ;;  %v2747_v47 = vld [vmem:[%s6315_s5 + $0x5a0] sm:$0xff]  ;;  %v4456_v58 = vpack.c.bf16 %v2814_v20, %v2812_v15  ;;  %v2752_v60 = vld [vmem:[%s6315_s5 + $0x5c8] sm:$0xff]  ;;  %v914_v51 = vadd.f32 %v4417_v24, %v4414_v2 }
  0x3c   : > { %2940 = vmatpush1.bf16.msra.mxu0 %v4314_v1  ;;  %6514 = vst [vmem:[#allocation33_spill] sm:$0xff] %v4423_v42  ;;  %6516 = vst [vmem:[#allocation35_spill] sm:$0xff] %v4430_v45  ;;  %v2816_v15 = vld [vmem:[%s6315_s5 + $0x7c8] sm:$0xff]  ;;  %v2818_v20 = vld [vmem:[%s6315_s5 + $0x7d8] sm:$0xff]  ;;  %v4478_v63 = vpack.c.bf16 %v2749_v41, %v2747_v47  ;;  %v4484_v43 = vpack.c.bf16 %v2813_v57, %v2811_v33 }
  0x3d   : > { %3068 = vmatpush1.bf16.msra.mxu1 %v4333_v13  ;;  %2942 = vmatprep.subr.bf16.mxu0 %v4335_v19  ;;  %v461_v13 = vld [vmem:[%s4329_s24] sm:$0xff]  ;;  %6513 = vst [vmem:[#allocation32_spill] sm:$0xff] %v4420_v27  ;;  %6517 = vst [vmem:[#allocation36_spill] sm:$0xff] %v4433_v54  ;;  %v935_v23 = vmax.f32 %v4414_v2, %v4420_v27  ;;  %v2753_v47 = vld [vmem:[%s6315_s5 + $0x5d0] sm:$0xff]  ;;  %v4498_v41 = vpack.c.bf16 %v2818_v20, %v2816_v15 }
  0x3e   : > { %3070 = vmatprep.subr.bf16.mxu1 %v4356_v36  ;;  %v4427_v44 = vmul.f32 %v4390_v61, %v461_v13  ;;  %6518 = vst [vmem:[#allocation37_spill] sm:$0xff] %v4436_v55  ;;  %v936_v13 = vmax.f32 %v4417_v24, %v4423_v42  ;;  %6519 = vst [vmem:[#allocation38_spill] sm:$0xff] %v4456_v58  ;;  %v2756_v33 = vld [vmem:[%s6315_s5 + $0x5e8] sm:$0xff]  ;;  %v2822_v20 = vld [vmem:[%s6315_s5 + $0x7f8] sm:$0xff] }
  0x3f   : > { %6520 = vst [vmem:[#allocation39_spill] sm:$0xff] %v4484_v43  ;;  %6521 = vst [vmem:[#allocation40_spill] sm:$0xff] %v4498_v41  ;;  %v2820_v15 = vld [vmem:[%s6315_s5 + $0x7e8] sm:$0xff] }
  0x40   : > { %2944 = vmatpush1.bf16.msra.mxu0 %v4373_v59  ;;  %6515 = vst [vmem:[#allocation34_spill] sm:$0xff] %v4427_v44  ;;  %v926_v36 = vmax.f32 %v4427_v44, %v4433_v54  ;;  %v937_v5 = vmax.f32 %v935_v23, %v936_v13  ;;  %v2751_v23 = vld [vmem:[%s6315_s5 + $0x5c0] sm:$0xff]  ;;  %v2758_v13 = vld [vmem:[%s6315_s5 + $0x5f8] sm:$0xff] }
  0x41   : > { %3072 = vmatpush1.bf16.msra.mxu1 %v4375_v29  ;;  %2946 = vmatprep.subr.bf16.mxu0 %v4381_v6  ;;  %v2754_v29 = vld [vmem:[%s6315_s5 + $0x5d8] sm:$0xff]  ;;  %v4524_v17 = vpack.c.bf16 %v2758_v13, %v2756_v33  ;;  %v518_v13 = vld [vmem:[%s6315_s5 + $0x8] sm:$0xff] }
  0x42   : > { %3074 = vmatprep.subr.bf16.mxu1 %v4398_v11  ;;  %v927_v11 = vmax.f32 %v4430_v45, %v4436_v55  ;;  %v4486_v38 = vpack.c.bf16 %v2754_v29, %v2752_v60  ;;  %v2817_v29 = vld [vmem:[%s6315_s5 + $0x7d0] sm:$0xff]  ;;  %v915_v60 = vadd.f32 %v914_v51, %v4420_v27 }
  0x44   : > { %2948 = vmatpush1.bf16.msra.mxu0 %v4400_v22  ;;  %v928_v56 = vmax.f32 %v926_v36, %v927_v11  ;;  %v2815_v36 = vld [vmem:[%s6315_s5 + $0x7c0] sm:$0xff]  ;;  %v938_v11 = vrot.slane %v937_v5, 4  ;;  %v916_v25 = vadd.f32 %v915_v60, %v4423_v42 }
  0x45   : > { %3076 = vmatpush1.bf16.msra.mxu1 %v4402_v49  ;;  %2950 = vmatprep.subr.bf16.mxu0 %v4440_v37  ;;  %v4517_v49 = vpack.c.bf16 %v2753_v47, %v2751_v23  ;;  %v4522_v51 = vpack.c.bf16 %v2817_v29, %v2815_v36  ;;  %v2819_v47 = vld [vmem:[%s6315_s5 + $0x7e0] sm:$0xff]  ;;  %v2821_v36 = vld [vmem:[%s6315_s5 + $0x7f0] sm:$0xff] }
  0x46   : > { %3078 = vmatprep.subr.bf16.mxu1 %v4456_v58  ;;  %v929_v57 = vrot.slane %v928_v56, 4  ;;  %v939_v58 = vmax.f32 %v937_v5, %v938_v11  ;;  %v2757_v5 = vld [vmem:[%s6315_s5 + $0x5f0] sm:$0xff]  ;;  %v917_v29 = vrot.slane %v916_v25, 4 }
  0x47   : > { %6522 = vst [vmem:[#allocation41_spill] sm:$0xff] %v4522_v51  ;;  %v4548_v60 = vpack.c.bf16 %v2757_v5, %v2755_v12  ;;  %v517_v12 = vld [vmem:[%s6315_s5] sm:$0xff]  ;;  %v519_v5 = vld [vmem:[%s6315_s5 + $0x10] sm:$0xff] }
  0x48   : > { %2952 = vmatpush1.bf16.msra.mxu0 %v4478_v63  ;;  %v930_v30 = vmax.f32 %v928_v56, %v929_v57  ;;  %v940_v23 = vrot.slane %v939_v58, 2  ;;  %v4533_v56 = vpack.c.bf16 %v2822_v20, %v2820_v15  ;;  %v520_v57 = vld [vmem:[%s6315_s5 + $0x18] sm:$0xff]  ;;  %v2632_v15 = vld [vmem:[%s6315_s5 + $0x208] sm:$0xff]  ;;  %v4590_v27 = vpack.c.bf16 %v519_v5, %v517_v12 }
  0x49   : > { %3080 = vmatpush1.bf16.msra.mxu1 %v4484_v43  ;;  %2954 = vmatprep.subr.bf16.mxu0 %v4486_v38  ;;  %v526_v12 = vld [vmem:[%s6315_s5 + $0x48] sm:$0xff]  ;;  %v528_v5 = vld [vmem:[%s6315_s5 + $0x58] sm:$0xff] }
  0x4a   : > { %3082 = vmatprep.subr.bf16.mxu1 %v4498_v41  ;;  %6523 = vst [vmem:[#allocation42_spill] sm:$0xff] %v4533_v56  ;;  %v931_v11 = vrot.slane %v930_v30, 2  ;;  %v941_v33 = vmax.f32 %v939_v58, %v940_v23  ;;  %v2634_v58 = vld [vmem:[%s6315_s5 + $0x218] sm:$0xff]  ;;  %v918_v23 = vadd.f32 %v917_v29, %v916_v25  ;;  %v4558_v41 = vpack.c.bf16 %v2821_v36, %v2819_v47  ;;  %v2633_v47 = vld [vmem:[%s6315_s5 + $0x210] sm:$0xff]  ;;  %v522_v36 = vld [vmem:[%s6315_s5 + $0x28] sm:$0xff] }
  0x4b   : > { %v4570_v25 = vpack.c.bf16 %v520_v57, %v518_v13  ;;  %v524_v29 = vld [vmem:[%s6315_s5 + $0x38] sm:$0xff]  ;;  %v4581_v42 = vpack.c.bf16 %v2634_v58, %v2632_v15  ;;  %v2636_v13 = vld [vmem:[%s6315_s5 + $0x228] sm:$0xff]  ;;  %v521_v15 = vld [vmem:[%s6315_s5 + $0x20] sm:$0xff] }
  0x4c   : > { %2956 = vmatpush1.bf16.msra.mxu0 %v4517_v49  ;;  %v932_v20 = vmax.f32 %v930_v30, %v931_v11  ;;  %6524 = vst [vmem:[#allocation43_spill] sm:$0xff] %v4558_v41  ;;  %v942_v43 = vrot.slane %v941_v33, 1  ;;  %v2631_v30 = vld [vmem:[%s6315_s5 + $0x200] sm:$0xff]  ;;  %v2638_v57 = vld [vmem:[%s6315_s5 + $0x238] sm:$0xff]  ;;  %v523_v58 = vld [vmem:[%s6315_s5 + $0x30] sm:$0xff] }
  0x4d   : > { %3084 = vmatpush1.bf16.msra.mxu1 %v4522_v51  ;;  %2958 = vmatprep.subr.bf16.mxu0 %v4524_v17  ;;  %v919_v51 = vrot.slane %v918_v23, 2  ;;  %6525 = vst [vmem:[#allocation44_spill] sm:$0xff] %v4581_v42 }
  0x4e   : > { %3086 = vmatprep.subr.bf16.mxu1 %v4533_v56  ;;  %v933_v11 = vrot.slane %v932_v20, 1  ;;  %v943_v7 = vmax.f32 %v941_v33, %v942_v43  ;;  %v4593_v43 = vpack.c.bf16 %v2633_v47, %v2631_v30  ;;  %v4595_v33 = vpack.c.bf16 %v524_v29, %v522_v36 }
  0x4f   : > { %v920_v24 = vadd.f32 %v919_v51, %v918_v23  ;;  %v4607_v51 = vpack.c.bf16 %v2638_v57, %v2636_v13  ;;  %v2637_v23 = vld [vmem:[%s6315_s5 + $0x230] sm:$0xff]  ;;  %v4626_v47 = vpack.c.bf16 %v523_v58, %v521_v15  ;;  %v4632_v13 = vpack.c.bf16 %v528_v5, %v526_v12  ;;  %v525_v57 = vld [vmem:[%s6315_s5 + $0x40] sm:$0xff]  ;;  %v530_v58 = vld [vmem:[%s6315_s5 + $0x68] sm:$0xff] }
  0x50   : > { %2960 = vmatpush1.bf16.msra.mxu0 %v4548_v60  ;;  %v934_v56 = vmax.f32 %v932_v20, %v933_v11  ;;  %1008 = vmatprep.mubr.f32.mxu0 %v943_v7  ;;  %6526 = vst [vmem:[#allocation45_spill] sm:$0xff] %v4593_v43  ;;  %v2635_v20 = vld [vmem:[%s6315_s5 + $0x220] sm:$0xff]  ;;  %v2642_v11 = vld [vmem:[%s6315_s5 + $0x258] sm:$0xff]  ;;  %v2641_v15 = vld [vmem:[%s6315_s5 + $0x250] sm:$0xff] }
  0x51   : > { %3088 = vmatpush1.bf16.msra.mxu1 %v4558_v41  ;;  %2962 = vmatprep.subr.bf16.mxu0 %v4570_v25  ;;  %6527 = vst [vmem:[#allocation46_spill] sm:$0xff] %v4607_v51  ;;  %v921_v30 = vrot.slane %v920_v24, 1  ;;  %v4630_v29 = vpack.c.bf16 %v2637_v23, %v2635_v20  ;;  %6529 = vst [vmem:[#allocation48_spill] sm:$0xff] %v4632_v13  ;;  %v532_v20 = vld [vmem:[%s6315_s5 + $0x78] sm:$0xff]  ;;  %v2644_v12 = vld [vmem:[%s6315_s5 + $0x268] sm:$0xff] }
  0x52   : > { %1152 = vmatprep.mubr.f32.mxu1 %v943_v7  ;;  %3090 = vmatprep.subr.bf16.mxu1 %v4581_v42  ;;  %v2640_v7 = vld [vmem:[%s6315_s5 + $0x248] sm:$0xff]  ;;  %v527_v42 = vld [vmem:[%s6315_s5 + $0x50] sm:$0xff]  ;;  %v2646_v5 = vld [vmem:[%s6315_s5 + $0x278] sm:$0xff] }
  0x53   : > { %1009 = vmatmul.mubr.f32.vlgmr.msra.gmra.mrb[0].mxu0 %v934_v56  ;;  %v922_v36 = vadd.f32 %v921_v30, %v920_v24  ;;  %6528 = vst [vmem:[#allocation47_spill] sm:$0xff] %v4630_v29  ;;  %v2639_v24 = vld [vmem:[%s6315_s5 + $0x240] sm:$0xff]  ;;  %v4662_v30 = vpack.c.bf16 %v527_v42, %v525_v57  ;;  %v4680_v57 = vpack.c.bf16 %v2646_v5, %v2644_v12  ;;  %v2650_v12 = vld [vmem:[%s6315_s5 + $0x298] sm:$0xff] }
  0x54   : > { %2964 = vmatpush1.bf16.msra.mxu0 %v4590_v27  ;;  %1153 = vmatmul.mubr.f32.vlgmr.msra.gmra.mrb[0].mxu1 %v934_v56  ;;  %v4644_v56 = vpack.c.bf16 %v2642_v11, %v2640_v7  ;;  %v4666_v7 = vpack.c.bf16 %v2641_v15, %v2639_v24  ;;  %v4668_v11 = vpack.c.bf16 %v532_v20, %v530_v58  ;;  %v2643_v42 = vld [vmem:[%s6315_s5 + $0x260] sm:$0xff]  ;;  %v2645_v24 = vld [vmem:[%s6315_s5 + $0x270] sm:$0xff]  ;;  %v534_v15 = vld [vmem:[%s6315_s5 + $0x88] sm:$0xff] }
  0x55   : > { %3092 = vmatpush1.bf16.msra.mxu1 %v4593_v43  ;;  %2966 = vmatprep.subr.bf16.mxu0 %v4595_v33  ;;  %v925_v23 = vmul.f32 0.03125, %v922_v36  ;;  %6531 = vst [vmem:[#allocation50_spill] sm:$0xff] %v4662_v30  ;;  %v529_v36 = vld [vmem:[%s6315_s5 + $0x60] sm:$0xff]  ;;  %6534 = vst [vmem:[#allocation53_spill] sm:$0xff] %v4680_v57  ;;  %v536_v58 = vld [vmem:[%s6315_s5 + $0x98] sm:$0xff] }
  0x56   : > { %3094 = vmatprep.subr.bf16.mxu1 %v4607_v51  ;;  %6530 = vst [vmem:[#allocation49_spill] sm:$0xff] %v4644_v56  ;;  %6532 = vst [vmem:[#allocation51_spill] sm:$0xff] %v4666_v7  ;;  %v531_v51 = vld [vmem:[%s6315_s5 + $0x70] sm:$0xff]  ;;  %v2648_v20 = vld [vmem:[%s6315_s5 + $0x288] sm:$0xff] }
  0x57   : > { %1079 = vmatprep.mubr.f32.mxu0 %v925_v23  ;;  %6533 = vst [vmem:[#allocation52_spill] sm:$0xff] %v4668_v11  ;;  %1223 = vmatprep.mubr.f32.mxu1 %v925_v23  ;;  %v4698_v5 = vpack.c.bf16 %v531_v51, %v529_v36  ;;  %v533_v23 = vld [vmem:[%s6315_s5 + $0x80] sm:$0xff]  ;;  %v535_v43 = vld [vmem:[%s6315_s5 + $0x90] sm:$0xff]  ;;  %v4716_v36 = vpack.c.bf16 %v2650_v12, %v2648_v20  ;;  %v2654_v20 = vld [vmem:[%s6315_s5 + $0x2b8] sm:$0xff] }
  0x58   : > { %2968 = vmatpush1.bf16.msra.mxu0 %v4626_v47  ;;  %v2647_v51 = vld [vmem:[%s6315_s5 + $0x280] sm:$0xff]  ;;  %v4734_v12 = vpack.c.bf16 %v535_v43, %v533_v23 }
  0x59   : > { %3096 = vmatpush1.bf16.msra.mxu1 %v4630_v29  ;;  %2970 = vmatprep.subr.bf16.mxu0 %v4632_v13  ;;  %6535 = vst [vmem:[#allocation54_spill] sm:$0xff] %v4698_v5  ;;  %v4704_v29 = vpack.c.bf16 %v536_v58, %v534_v15  ;;  %6538 = vst [vmem:[#allocation57_spill] sm:$0xff] %v4716_v36  ;;  %v540_v15 = vld [vmem:[%s6315_s5 + $0xb8] sm:$0xff]  ;;  %v2652_v58 = vld [vmem:[%s6315_s5 + $0x2a8] sm:$0xff] }
  0x5a   : > { %3098 = vmatprep.subr.bf16.mxu1 %v4644_v56  ;;  %v4702_v56 = vpack.c.bf16 %v2645_v24, %v2643_v42  ;;  %v2649_v42 = vld [vmem:[%s6315_s5 + $0x290] sm:$0xff]  ;;  %v538_v24 = vld [vmem:[%s6315_s5 + $0xa8] sm:$0xff]  ;;  %6539 = vst [vmem:[#allocation58_spill] sm:$0xff] %v4734_v12  ;;  %v537_v41 = vld [vmem:[%s6315_s5 + $0xa0] sm:$0xff]  ;;  %v4752_v23 = vpack.c.bf16 %v2654_v20, %v2652_v58 }
  0x5b   : > { %6537 = vst [vmem:[#allocation56_spill] sm:$0xff] %v4704_v29  ;;  %v2651_v43 = vld [vmem:[%s6315_s5 + $0x2a0] sm:$0xff]  ;;  %v2658_v58 = vld [vmem:[%s6315_s5 + $0x2d8] sm:$0xff]  ;;  %v563_v13 = vld [vmem:[%s6315_s5 + $0x170] sm:$0xff] }
  0x5c   : > { %2972 = vmatpush1.bf16.msra.mxu0 %v4662_v30  ;;  %6536 = vst [vmem:[#allocation55_spill] sm:$0xff] %v4702_v56  ;;  %6542 = vst [vmem:[#allocation61_spill] sm:$0xff] %v4752_v23  ;;  %v551_v30 = vld [vmem:[%s6315_s5 + $0x110] sm:$0xff] }
  0x5d   : > { %3100 = vmatpush1.bf16.msra.mxu1 %v4666_v7  ;;  %2974 = vmatprep.subr.bf16.mxu0 %v4668_v11  ;;  %v4740_v7 = vpack.c.bf16 %v540_v15, %v538_v24  ;;  %v539_v11 = vld [vmem:[%s6315_s5 + $0xb0] sm:$0xff]  ;;  %v544_v24 = vld [vmem:[%s6315_s5 + $0xd8] sm:$0xff]  ;;  %v2656_v15 = vld [vmem:[%s6315_s5 + $0x2c8] sm:$0xff] }
  0x5e   : > { %3102 = vmatprep.subr.bf16.mxu1 %v4680_v57  ;;  %v4738_v57 = vpack.c.bf16 %v2649_v42, %v2647_v51  ;;  %v2653_v51 = vld [vmem:[%s6315_s5 + $0x2b0] sm:$0xff]  ;;  %v542_v42 = vld [vmem:[%s6315_s5 + $0xc8] sm:$0xff]  ;;  %v4770_v20 = vpack.c.bf16 %v539_v11, %v537_v41  ;;  %v2655_v41 = vld [vmem:[%s6315_s5 + $0x2c0] sm:$0xff]  ;;  %v4788_v11 = vpack.c.bf16 %v2658_v58, %v2656_v15 }
  0x5f   : > { %6541 = vst [vmem:[#allocation60_spill] sm:$0xff] %v4740_v7  ;;  %v2662_v15 = vld [vmem:[%s6315_s5 + $0x2f8] sm:$0xff] }
  0x60   : > { %2976 = vmatpush1.bf16.msra.mxu0 %v4698_v5  ;;  %6540 = vst [vmem:[#allocation59_spill] sm:$0xff] %v4738_v57  ;;  %6543 = vst [vmem:[#allocation62_spill] sm:$0xff] %v4770_v20  ;;  %v543_v5 = vld [vmem:[%s6315_s5 + $0xd0] sm:$0xff] }
  0x61   : > { %3104 = vmatpush1.bf16.msra.mxu1 %v4702_v56  ;;  %2978 = vmatprep.subr.bf16.mxu0 %v4704_v29  ;;  %v4776_v56 = vpack.c.bf16 %v544_v24, %v542_v42  ;;  %v541_v29 = vld [vmem:[%s6315_s5 + $0xc0] sm:$0xff]  ;;  %6546 = vst [vmem:[#allocation65_spill] sm:$0xff] %v4788_v11  ;;  %v548_v42 = vld [vmem:[%s6315_s5 + $0xf8] sm:$0xff]  ;;  %v2660_v24 = vld [vmem:[%s6315_s5 + $0x2e8] sm:$0xff] }
  0x62   : > { %3106 = vmatprep.subr.bf16.mxu1 %v4716_v36  ;;  %v4774_v36 = vpack.c.bf16 %v2653_v51, %v2651_v43  ;;  %v2657_v43 = vld [vmem:[%s6315_s5 + $0x2d0] sm:$0xff]  ;;  %v546_v51 = vld [vmem:[%s6315_s5 + $0xe8] sm:$0xff]  ;;  %v4806_v58 = vpack.c.bf16 %v543_v5, %v541_v29  ;;  %v2659_v29 = vld [vmem:[%s6315_s5 + $0x2e0] sm:$0xff]  ;;  %v4824_v5 = vpack.c.bf16 %v2662_v15, %v2660_v24  ;;  %v905_v15 = vadd.f32 %v4430_v45, %v4427_v44 }
  0x63   : > { %6545 = vst [vmem:[#allocation64_spill] sm:$0xff] %v4776_v56  ;;  %v2666_v24 = vld [vmem:[%s6315_s5 + $0x318] sm:$0xff] }
  0x64   : > { %2980 = vmatpush1.bf16.msra.mxu0 %v4734_v12  ;;  %6544 = vst [vmem:[#allocation63_spill] sm:$0xff] %v4774_v36  ;;  %6547 = vst [vmem:[#allocation66_spill] sm:$0xff] %v4806_v58  ;;  %v547_v12 = vld [vmem:[%s6315_s5 + $0xf0] sm:$0xff] }
  0x65   : > { %3108 = vmatpush1.bf16.msra.mxu1 %v4738_v57  ;;  %2982 = vmatprep.subr.bf16.mxu0 %v4740_v7  ;;  %v4812_v57 = vpack.c.bf16 %v548_v42, %v546_v51  ;;  %v545_v7 = vld [vmem:[%s6315_s5 + $0xe0] sm:$0xff]  ;;  %6550 = vst [vmem:[#allocation69_spill] sm:$0xff] %v4824_v5  ;;  %v552_v51 = vld [vmem:[%s6315_s5 + $0x118] sm:$0xff]  ;;  %v2664_v42 = vld [vmem:[%s6315_s5 + $0x308] sm:$0xff] }
  0x66   : > { %3110 = vmatprep.subr.bf16.mxu1 %v4752_v23  ;;  %v4810_v23 = vpack.c.bf16 %v2657_v43, %v2655_v41  ;;  %v2661_v41 = vld [vmem:[%s6315_s5 + $0x2f0] sm:$0xff]  ;;  %v550_v43 = vld [vmem:[%s6315_s5 + $0x108] sm:$0xff] }
  0x67   : > { %6549 = vst [vmem:[#allocation68_spill] sm:$0xff] %v4812_v57 }
  0x68   : > { %2984 = vmatpush1.bf16.msra.mxu0 %v4770_v20  ;;  %6548 = vst [vmem:[#allocation67_spill] sm:$0xff] %v4810_v23  ;;  %v549_v20 = vld [vmem:[%s6315_s5 + $0x100] sm:$0xff] }
  0x69   : > { %3112 = vmatpush1.bf16.msra.mxu1 %v4774_v36  ;;  %2986 = vmatprep.subr.bf16.mxu0 %v4776_v56  ;;  %v4848_v36 = vpack.c.bf16 %v2661_v41, %v2659_v29  ;;  %v4850_v56 = vpack.c.bf16 %v552_v51, %v550_v43  ;;  %v2665_v29 = vld [vmem:[%s6315_s5 + $0x310] sm:$0xff]  ;;  %v554_v41 = vld [vmem:[%s6315_s5 + $0x128] sm:$0xff]  ;;  %v556_v43 = vld [vmem:[%s6315_s5 + $0x138] sm:$0xff] }
  0x6a   : > { %3114 = vmatprep.subr.bf16.mxu1 %v4788_v11  ;;  %v4844_v11 = vpack.c.bf16 %v547_v12, %v545_v7  ;;  %v2663_v7 = vld [vmem:[%s6315_s5 + $0x300] sm:$0xff]  ;;  %v4862_v12 = vpack.c.bf16 %v2666_v24, %v2664_v42  ;;  %v2668_v51 = vld [vmem:[%s6315_s5 + $0x328] sm:$0xff]  ;;  %v2670_v42 = vld [vmem:[%s6315_s5 + $0x338] sm:$0xff]  ;;  %v906_v24 = vadd.f32 %v905_v15, %v4433_v54 }
  0x6b   : > { %6552 = vst [vmem:[#allocation71_spill] sm:$0xff] %v4848_v36  ;;  %6553 = vst [vmem:[#allocation72_spill] sm:$0xff] %v4850_v56  ;;  %v555_v15 = vld [vmem:[%s6315_s5 + $0x130] sm:$0xff] }
  0x6c   : > { %2988 = vmatpush1.bf16.msra.mxu0 %v4806_v58  ;;  %6551 = vst [vmem:[#allocation70_spill] sm:$0xff] %v4844_v11  ;;  %6554 = vst [vmem:[#allocation73_spill] sm:$0xff] %v4862_v12  ;;  %v553_v58 = vld [vmem:[%s6315_s5 + $0x120] sm:$0xff] }
  0x6d   : > { %3116 = vmatpush1.bf16.msra.mxu1 %v4810_v23  ;;  %2990 = vmatprep.subr.bf16.mxu0 %v4812_v57  ;;  %v4885_v23 = vpack.c.bf16 %v2665_v29, %v2663_v7  ;;  %v4887_v57 = vpack.c.bf16 %v556_v43, %v554_v41  ;;  %v2669_v7 = vld [vmem:[%s6315_s5 + $0x330] sm:$0xff]  ;;  %v558_v29 = vld [vmem:[%s6315_s5 + $0x148] sm:$0xff]  ;;  %v560_v41 = vld [vmem:[%s6315_s5 + $0x158] sm:$0xff] }
  0x6e   : > { %3118 = vmatprep.subr.bf16.mxu1 %v4824_v5  ;;  %v4881_v5 = vpack.c.bf16 %v551_v30, %v549_v20  ;;  %v2667_v30 = vld [vmem:[%s6315_s5 + $0x320] sm:$0xff]  ;;  %v4899_v20 = vpack.c.bf16 %v2670_v42, %v2668_v51  ;;  %v2672_v43 = vld [vmem:[%s6315_s5 + $0x348] sm:$0xff]  ;;  %v2674_v51 = vld [vmem:[%s6315_s5 + $0x358] sm:$0xff]  ;;  %v907_v42 = vadd.f32 %v906_v24, %v4436_v55 }
  0x6f   : > { %6556 = vst [vmem:[#allocation75_spill] sm:$0xff] %v4885_v23  ;;  %6557 = vst [vmem:[#allocation76_spill] sm:$0xff] %v4887_v57  ;;  %v559_v24 = vld [vmem:[%s6315_s5 + $0x150] sm:$0xff] }
  0x70   : > { %2992 = vmatpush1.bf16.msra.mxu0 %v4844_v11  ;;  %6555 = vst [vmem:[#allocation74_spill] sm:$0xff] %v4881_v5  ;;  %6558 = vst [vmem:[#allocation77_spill] sm:$0xff] %v4899_v20  ;;  %v557_v11 = vld [vmem:[%s6315_s5 + $0x140] sm:$0xff] }
  0x71   : > { %3120 = vmatpush1.bf16.msra.mxu1 %v4848_v36  ;;  %2994 = vmatprep.subr.bf16.mxu0 %v4850_v56  ;;  %v4922_v36 = vpack.c.bf16 %v2669_v7, %v2667_v30  ;;  %v4924_v56 = vpack.c.bf16 %v560_v41, %v558_v29  ;;  %v2673_v30 = vld [vmem:[%s6315_s5 + $0x350] sm:$0xff]  ;;  %v562_v7 = vld [vmem:[%s6315_s5 + $0x168] sm:$0xff]  ;;  %v564_v29 = vld [vmem:[%s6315_s5 + $0x178] sm:$0xff] }
  0x72   : > { %3122 = vmatprep.subr.bf16.mxu1 %v4862_v12  ;;  %v4918_v12 = vpack.c.bf16 %v555_v15, %v553_v58  ;;  %v2671_v58 = vld [vmem:[%s6315_s5 + $0x340] sm:$0xff]  ;;  %v4936_v15 = vpack.c.bf16 %v2674_v51, %v2672_v43  ;;  %v2676_v41 = vld [vmem:[%s6315_s5 + $0x368] sm:$0xff]  ;;  %v2678_v43 = vld [vmem:[%s6315_s5 + $0x378] sm:$0xff]  ;;  %v908_v51 = vrot.slane %v907_v42, 4 }
  0x73   : > { %6560 = vst [vmem:[#allocation79_spill] sm:$0xff] %v4922_v36  ;;  %6561 = vst [vmem:[#allocation80_spill] sm:$0xff] %v4924_v56 }
  0x74   : > { %2996 = vmatpush1.bf16.msra.mxu0 %v4881_v5  ;;  %6559 = vst [vmem:[#allocation78_spill] sm:$0xff] %v4918_v12  ;;  %6562 = vst [vmem:[#allocation81_spill] sm:$0xff] %v4936_v15  ;;  %v561_v5 = vld [vmem:[%s6315_s5 + $0x160] sm:$0xff] }
  0x75   : > { %3124 = vmatpush1.bf16.msra.mxu1 %v4885_v23  ;;  %2998 = vmatprep.subr.bf16.mxu0 %v4887_v57  ;;  %v4958_v23 = vpack.c.bf16 %v2673_v30, %v2671_v58  ;;  %v4960_v57 = vpack.c.bf16 %v564_v29, %v562_v7  ;;  %v2677_v58 = vld [vmem:[%s6315_s5 + $0x370] sm:$0xff]  ;;  %v566_v30 = vld [vmem:[%s6315_s5 + $0x188] sm:$0xff]  ;;  %v568_v7 = vld [vmem:[%s6315_s5 + $0x198] sm:$0xff] }
  0x76   : > { %3126 = vmatprep.subr.bf16.mxu1 %v4899_v20  ;;  %v4954_v20 = vpack.c.bf16 %v559_v24, %v557_v11  ;;  %v2675_v11 = vld [vmem:[%s6315_s5 + $0x360] sm:$0xff]  ;;  %v4972_v24 = vpack.c.bf16 %v2678_v43, %v2676_v41  ;;  %v2680_v29 = vld [vmem:[%s6315_s5 + $0x388] sm:$0xff]  ;;  %v2682_v41 = vld [vmem:[%s6315_s5 + $0x398] sm:$0xff]  ;;  %v909_v43 = vadd.f32 %v908_v51, %v907_v42 }
  0x77   : > { %6564 = vst [vmem:[#allocation83_spill] sm:$0xff] %v4958_v23  ;;  %6565 = vst [vmem:[#allocation84_spill] sm:$0xff] %v4960_v57  ;;  %v567_v42 = vld [vmem:[%s6315_s5 + $0x190] sm:$0xff] }
  0x78   : > { %3000 = vmatpush1.bf16.msra.mxu0 %v4918_v12  ;;  %6563 = vst [vmem:[#allocation82_spill] sm:$0xff] %v4954_v20  ;;  %6566 = vst [vmem:[#allocation85_spill] sm:$0xff] %v4972_v24  ;;  %v565_v12 = vld [vmem:[%s6315_s5 + $0x180] sm:$0xff]  ;;  %v2681_v51 = vld [vmem:[%s6315_s5 + $0x390] sm:$0xff] }
  0x79   : > { %3128 = vmatpush1.bf16.msra.mxu1 %v4922_v36  ;;  %3002 = vmatprep.subr.bf16.mxu0 %v4924_v56  ;;  %v4994_v36 = vpack.c.bf16 %v2677_v58, %v2675_v11  ;;  %v4996_v56 = vpack.c.bf16 %v568_v7, %v566_v30  ;;  %v570_v11 = vld [vmem:[%s6315_s5 + $0x1a8] sm:$0xff]  ;;  %v572_v58 = vld [vmem:[%s6315_s5 + $0x1b8] sm:$0xff] }
  0x7a   : > { %3130 = vmatprep.subr.bf16.mxu1 %v4936_v15  ;;  %v4990_v15 = vpack.c.bf16 %v563_v13, %v561_v5  ;;  %v2679_v13 = vld [vmem:[%s6315_s5 + $0x380] sm:$0xff]  ;;  %v5008_v5 = vpack.c.bf16 %v2682_v41, %v2680_v29  ;;  %v2684_v30 = vld [vmem:[%s6315_s5 + $0x3a8] sm:$0xff]  ;;  %v2686_v7 = vld [vmem:[%s6315_s5 + $0x3b8] sm:$0xff]  ;;  %v910_v29 = vrot.slane %v909_v43, 2  ;;  %v5026_v41 = vpack.c.bf16 %v567_v42, %v565_v12 }
  0x7b   : > { %6568 = vst [vmem:[#allocation87_spill] sm:$0xff] %v4994_v36  ;;  %6569 = vst [vmem:[#allocation88_spill] sm:$0xff] %v4996_v56  ;;  %v2683_v12 = vld [vmem:[%s6315_s5 + $0x3a0] sm:$0xff]  ;;  %v5044_v42 = vpack.c.bf16 %v2686_v7, %v2684_v30  ;;  %v2690_v30 = vld [vmem:[%s6315_s5 + $0x3d8] sm:$0xff] }
  0x7c   : > { %3004 = vmatpush1.bf16.msra.mxu0 %v4954_v20  ;;  %6567 = vst [vmem:[#allocation86_spill] sm:$0xff] %v4990_v15  ;;  %6570 = vst [vmem:[#allocation89_spill] sm:$0xff] %v5008_v5  ;;  %v571_v20 = vld [vmem:[%s6315_s5 + $0x1b0] sm:$0xff]  ;;  %v911_v7 = vadd.f32 %v910_v29, %v909_v43 }
  0x7d   : > { %3132 = vmatpush1.bf16.msra.mxu1 %v4958_v23  ;;  %3006 = vmatprep.subr.bf16.mxu0 %v4960_v57  ;;  %6571 = vst [vmem:[#allocation90_spill] sm:$0xff] %v5026_v41  ;;  %v5032_v23 = vpack.c.bf16 %v572_v58, %v570_v11  ;;  %v569_v57 = vld [vmem:[%s6315_s5 + $0x1a0] sm:$0xff]  ;;  %6574 = vst [vmem:[#allocation93_spill] sm:$0xff] %v5044_v42  ;;  %v576_v11 = vld [vmem:[%s6315_s5 + $0x1d8] sm:$0xff] }
  0x7e   : > { %3134 = vmatprep.subr.bf16.mxu1 %v4972_v24  ;;  %v5030_v24 = vpack.c.bf16 %v2681_v51, %v2679_v13  ;;  %v2685_v13 = vld [vmem:[%s6315_s5 + $0x3b0] sm:$0xff]  ;;  %v574_v51 = vld [vmem:[%s6315_s5 + $0x1c8] sm:$0xff] }
  0x7f   : > { %6573 = vst [vmem:[#allocation92_spill] sm:$0xff] %v5032_v23  ;;  %v2688_v58 = vld [vmem:[%s6315_s5 + $0x3c8] sm:$0xff]  ;;  %v575_v43 = vld [vmem:[%s6315_s5 + $0x1d0] sm:$0xff] }
  0x80   : > { %3008 = vmatpush1.bf16.msra.mxu0 %v4990_v15  ;;  %6572 = vst [vmem:[#allocation91_spill] sm:$0xff] %v5030_v24  ;;  %v573_v15 = vld [vmem:[%s6315_s5 + $0x1c0] sm:$0xff]  ;;  %v2689_v29 = vld [vmem:[%s6315_s5 + $0x3d0] sm:$0xff] }
  0x81   : > { %3136 = vmatpush1.bf16.msra.mxu1 %v4994_v36  ;;  %3010 = vmatprep.subr.bf16.mxu0 %v4996_v56  ;;  %v5066_v36 = vpack.c.bf16 %v2685_v13, %v2683_v12  ;;  %v5068_v56 = vpack.c.bf16 %v576_v11, %v574_v51  ;;  %v578_v12 = vld [vmem:[%s6315_s5 + $0x1e8] sm:$0xff]  ;;  %v580_v13 = vld [vmem:[%s6315_s5 + $0x1f8] sm:$0xff] }
  0x82   : > { %3138 = vmatprep.subr.bf16.mxu1 %v5008_v5  ;;  %v5062_v5 = vpack.c.bf16 %v571_v20, %v569_v57  ;;  %v2687_v57 = vld [vmem:[%s6315_s5 + $0x3c0] sm:$0xff]  ;;  %v5080_v20 = vpack.c.bf16 %v2690_v30, %v2688_v58  ;;  %v2692_v51 = vld [vmem:[%s6315_s5 + $0x3e8] sm:$0xff]  ;;  %v2694_v11 = vld [vmem:[%s6315_s5 + $0x3f8] sm:$0xff]  ;;  %v912_v58 = vrot.slane %v911_v7, 1  ;;  %v5098_v30 = vpack.c.bf16 %v575_v43, %v573_v15 }
  0x83   : > { %6575 = vst [vmem:[#allocation94_spill] sm:$0xff] %v5066_v36  ;;  %v2691_v15 = vld [vmem:[%s6315_s5 + $0x3e0] sm:$0xff]  ;;  %v5116_v43 = vpack.c.bf16 %v2694_v11, %v2692_v51 }
  0x84   : > { %3012 = vmatpush1.bf16.msra.mxu0 %v5026_v41  ;;  %6576 = vst [vmem:[#allocation95_spill] sm:$0xff] %v5080_v20  ;;  %v579_v41 = vld [vmem:[%s6315_s5 + $0x1f0] sm:$0xff] }
  0x85   : > { %3140 = vmatpush1.bf16.msra.mxu1 %v5030_v24  ;;  %3014 = vmatprep.subr.bf16.mxu0 %v5032_v23  ;;  %v5104_v24 = vpack.c.bf16 %v580_v13, %v578_v12  ;;  %v577_v23 = vld [vmem:[%s6315_s5 + $0x1e0] sm:$0xff]  ;;  %6578 = vst [vmem:[#allocation97_spill] sm:$0xff] %v5116_v43  ;;  %v2826_v12 = vld [vmem:[%s6316_s6 + $0x218] sm:$0xff]  ;;  %v913_v13 = vadd.f32 %v912_v58, %v911_v7  ;;  %v2825_v7 = vld [vmem:[%s6316_s6 + $0x210] sm:$0xff] }
  0x86   : > { %3142 = vmatprep.subr.bf16.mxu1 %v5044_v42  ;;  %v5102_v42 = vpack.c.bf16 %v2689_v29, %v2687_v57  ;;  %v2693_v57 = vld [vmem:[%s6315_s5 + $0x3f0] sm:$0xff]  ;;  %v2824_v29 = vld [vmem:[%s6316_s6 + $0x208] sm:$0xff] }
  0x87   : > { %v5132_v51 = vpack.c.bf16 %v2693_v57, %v2691_v15  ;;  %v5134_v11 = vpack.c.bf16 %v2826_v12, %v2824_v29  ;;  %v924_v58 = vmul.f32 0.03125, %v913_v13  ;;  %v2827_v29 = vld [vmem:[%s6316_s6 + $0x220] sm:$0xff]  ;;  %v2829_v12 = vld [vmem:[%s6316_s6 + $0x230] sm:$0xff]  ;;  %v2832_v13 = vld [vmem:[%s6316_s6 + $0x248] sm:$0xff] }
  0x88   : > { %3016 = vmatpush1.bf16.msra.mxu0 %v5062_v5  ;;  %6577 = vst [vmem:[#allocation96_spill] sm:$0xff] %v5102_v42 }
  0x89   : > { %3144 = vmatpush1.bf16.msra.mxu1 %v5066_v36  ;;  %3018 = vmatprep.subr.bf16.mxu0 %v5068_v56  ;;  %v5128_v36 = vpack.c.bf16 %v579_v41, %v577_v23  ;;  %6579 = vst [vmem:[#allocation98_spill] sm:$0xff] %v5132_v51  ;;  %v2828_v23 = vld [vmem:[%s6316_s6 + $0x228] sm:$0xff]  ;;  %v2830_v41 = vld [vmem:[%s6316_s6 + $0x238] sm:$0xff] }
  0x8a   : > { %3146 = vmatprep.subr.bf16.mxu1 %v5080_v20  ;;  %v2823_v20 = vld [vmem:[%s6316_s6 + $0x200] sm:$0xff]  ;;  %v5154_v57 = vpack.c.bf16 %v2830_v41, %v2828_v23 }
  0x8b   : > { %v5150_v15 = vpack.c.bf16 %v2825_v7, %v2823_v20  ;;  %v2834_v20 = vld [vmem:[%s6316_s6 + $0x258] sm:$0xff]  ;;  %v5170_v7 = vpack.c.bf16 %v2829_v12, %v2827_v29  ;;  %v2831_v41 = vld [vmem:[%s6316_s6 + $0x240] sm:$0xff] }
  0x8c   : > { %3020 = vmatpush1.bf16.msra.mxu0 %v5098_v30  ;;  %v5173_v23 = vpack.c.bf16 %v2834_v20, %v2832_v13  ;;  %v2837_v13 = vld [vmem:[%s6316_s6 + $0x270] sm:$0xff] }
  0x8d   : > { %3148 = vmatpush1.bf16.msra.mxu1 %v5102_v42  ;;  %3022 = vmatprep.subr.bf16.mxu0 %v5104_v24 }
  0x8e   : > { %3150 = vmatprep.subr.bf16.mxu1 %v5116_v43  ;;  %v3755_v43 = vld [vmem:[%s4329_s24 + $0x8] sm:$0xff] }
  0x8f   : > { %v1907_v42 = vsub.f32 %v3755_v43, %v4414_v2 }
  0x90   : > { %3024 = vmatpush1.bf16.msra.mxu0 %v5128_v36 }
  0x91   : > { %3152 = vmatpush1.bf16.msra.mxu1 %v5132_v51  ;;  %3154 = vmatprep.subr.bf16.mxu0 %v5134_v11  ;;  %v2833_v51 = vld [vmem:[%s6316_s6 + $0x250] sm:$0xff] }
  0x92   : > { %3282 = vmatprep.subr.bf16.mxu1 %v3899_v3  ;;  %v2836_v3 = vld [vmem:[%s6316_s6 + $0x268] sm:$0xff]  ;;  %v5190_v29 = vpack.c.bf16 %v2833_v51, %v2831_v41  ;;  %v2842_v51 = vld [vmem:[%s6316_s6 + $0x298] sm:$0xff] }
  0x93   : > { %1080 = vmatmul.mubr.f32.vlgmr.msra.gmra.mrb[0].mxu0 %v924_v58 }
  0x94   : > { %1224 = vmatmul.mubr.f32.vlgmr.msra.gmra.mrb[0].mxu1 %v924_v58  ;;  %3156 = vmatpush1.bf16.msra.mxu0 %v5150_v15  ;;  %v2838_v58 = vld [vmem:[%s6316_s6 + $0x278] sm:$0xff] }
  0x95   : > { %3158 = vmatprep.subr.bf16.mxu0 %v5154_v57  ;;  %3284 = vmatpush1.bf16.msra.mxu1 %v3912_v8  ;;  %v5193_v12 = vpack.c.bf16 %v2838_v58, %v2836_v3  ;;  %v2835_v8 = vld [vmem:[%s6316_s6 + $0x260] sm:$0xff]  ;;  %v2841_v3 = vld [vmem:[%s6316_s6 + $0x290] sm:$0xff]  ;;  %v2846_v58 = vld [vmem:[%s6316_s6 + $0x2b8] sm:$0xff] }
  0x96   : > { %3286 = vmatprep.subr.bf16.mxu1 %v3937_v16  ;;  %v2840_v16 = vld [vmem:[%s6316_s6 + $0x288] sm:$0xff]  ;;  %v5210_v20 = vpack.c.bf16 %v2837_v13, %v2835_v8 }
  0x97   : > { %v5213_v41 = vpack.c.bf16 %v2842_v51, %v2840_v16  ;;  %v2845_v16 = vld [vmem:[%s6316_s6 + $0x2b0] sm:$0xff]  ;;  %v2850_v51 = vld [vmem:[%s6316_s6 + $0x2d8] sm:$0xff] }
  0x98   : > { %3160 = vmatpush1.bf16.msra.mxu0 %v5170_v7 }
  0x99   : > { %3162 = vmatprep.subr.bf16.mxu0 %v5173_v23  ;;  %3288 = vmatpush1.bf16.msra.mxu1 %v3951_v21  ;;  %v2839_v21 = vld [vmem:[%s6316_s6 + $0x280] sm:$0xff] }
  0x9a   : > { %3290 = vmatprep.subr.bf16.mxu1 %v3966_v26  ;;  %v2844_v26 = vld [vmem:[%s6316_s6 + $0x2a8] sm:$0xff]  ;;  %v5230_v8 = vpack.c.bf16 %v2841_v3, %v2839_v21 }
  0x9b   : > { %v5233_v13 = vpack.c.bf16 %v2846_v58, %v2844_v26  ;;  %v2849_v26 = vld [vmem:[%s6316_s6 + $0x2d0] sm:$0xff]  ;;  %v2854_v58 = vld [vmem:[%s6316_s6 + $0x2f8] sm:$0xff] }
  0x9c   : > { %3164 = vmatpush1.bf16.msra.mxu0 %v5190_v29 }
  0x9d   : > { %3166 = vmatprep.subr.bf16.mxu0 %v5193_v12  ;;  %3292 = vmatpush1.bf16.msra.mxu1 %v3989_v34  ;;  %v2843_v34 = vld [vmem:[%s6316_s6 + $0x2a0] sm:$0xff] }
  0x9e   : > { %3294 = vmatprep.subr.bf16.mxu1 %v4004_v39  ;;  %v2848_v39 = vld [vmem:[%s6316_s6 + $0x2c8] sm:$0xff]  ;;  %v5250_v21 = vpack.c.bf16 %v2845_v16, %v2843_v34 }
  0x9f   : > { %v5253_v3 = vpack.c.bf16 %v2850_v51, %v2848_v39  ;;  %v2853_v39 = vld [vmem:[%s6316_s6 + $0x2f0] sm:$0xff]  ;;  %v2858_v51 = vld [vmem:[%s6316_s6 + $0x318] sm:$0xff] }
  0xa0   : > { %3168 = vmatpush1.bf16.msra.mxu0 %v5210_v20 }
  0xa1   : > { %3170 = vmatprep.subr.bf16.mxu0 %v5213_v41  ;;  %3296 = vmatpush1.bf16.msra.mxu1 %v4037_v50  ;;  %v2847_v50 = vld [vmem:[%s6316_s6 + $0x2c0] sm:$0xff] }
  0xa2   : > { %3298 = vmatprep.subr.bf16.mxu1 %v4043_v52  ;;  %v2852_v52 = vld [vmem:[%s6316_s6 + $0x2e8] sm:$0xff]  ;;  %v5270_v34 = vpack.c.bf16 %v2849_v26, %v2847_v50 }
  0xa3   : > { %v5273_v16 = vpack.c.bf16 %v2854_v58, %v2852_v52  ;;  %v2857_v52 = vld [vmem:[%s6316_s6 + $0x310] sm:$0xff]  ;;  %v2862_v58 = vld [vmem:[%s6316_s6 + $0x338] sm:$0xff] }
  0xa4   : > { %3172 = vmatpush1.bf16.msra.mxu0 %v5230_v8 }
  0xa5   : > { %3174 = vmatprep.subr.bf16.mxu0 %v5233_v13  ;;  %3300 = vmatpush1.bf16.msra.mxu1 %v4073_v62  ;;  %v2851_v62 = vld [vmem:[%s6316_s6 + $0x2e0] sm:$0xff] }
  0xa6   : > { %3302 = vmatprep.subr.bf16.mxu1 %v4079_v0  ;;  %v2856_v0 = vld [vmem:[%s6316_s6 + $0x308] sm:$0xff]  ;;  %v5290_v50 = vpack.c.bf16 %v2853_v39, %v2851_v62 }
  0xa7   : > { %v5293_v26 = vpack.c.bf16 %v2858_v51, %v2856_v0  ;;  %v2861_v0 = vld [vmem:[%s6316_s6 + $0x330] sm:$0xff]  ;;  %v2866_v51 = vld [vmem:[%s6316_s6 + $0x358] sm:$0xff] }
  0xa8   : > { %3176 = vmatpush1.bf16.msra.mxu0 %v5250_v21 }
  0xa9   : > { %3178 = vmatprep.subr.bf16.mxu0 %v5253_v3  ;;  %3304 = vmatpush1.bf16.msra.mxu1 %v4109_v14  ;;  %v2855_v14 = vld [vmem:[%s6316_s6 + $0x300] sm:$0xff] }
  0xaa   : > { %3306 = vmatprep.subr.bf16.mxu1 %v4115_v18  ;;  %v2860_v18 = vld [vmem:[%s6316_s6 + $0x328] sm:$0xff]  ;;  %v5310_v62 = vpack.c.bf16 %v2857_v52, %v2855_v14 }
  0xab   : > { %v5313_v39 = vpack.c.bf16 %v2862_v58, %v2860_v18  ;;  %v2865_v18 = vld [vmem:[%s6316_s6 + $0x350] sm:$0xff]  ;;  %v2870_v58 = vld [vmem:[%s6316_s6 + $0x378] sm:$0xff] }
  0xac   : > { %3180 = vmatpush1.bf16.msra.mxu0 %v5270_v34 }
  0xad   : > { %3182 = vmatprep.subr.bf16.mxu0 %v5273_v16  ;;  %3308 = vmatpush1.bf16.msra.mxu1 %v4147_v32  ;;  %v2859_v32 = vld [vmem:[%s6316_s6 + $0x320] sm:$0xff] }
  0xae   : > { %3310 = vmatprep.subr.bf16.mxu1 %v4153_v35  ;;  %v2864_v35 = vld [vmem:[%s6316_s6 + $0x348] sm:$0xff]  ;;  %v5330_v14 = vpack.c.bf16 %v2861_v0, %v2859_v32 }
  0xaf   : > { %v5333_v52 = vpack.c.bf16 %v2866_v51, %v2864_v35  ;;  %v2869_v35 = vld [vmem:[%s6316_s6 + $0x370] sm:$0xff]  ;;  %v2874_v51 = vld [vmem:[%s6316_s6 + $0x398] sm:$0xff] }
  0xb0   : > { %3184 = vmatpush1.bf16.msra.mxu0 %v5290_v50 }
  0xb1   : > { %3186 = vmatprep.subr.bf16.mxu0 %v5293_v26  ;;  %3312 = vmatpush1.bf16.msra.mxu1 %v4193_v48  ;;  %v2863_v48 = vld [vmem:[%s6316_s6 + $0x340] sm:$0xff] }
  0xb2   : > { %3314 = vmatprep.subr.bf16.mxu1 %v4199_v53  ;;  %v2868_v53 = vld [vmem:[%s6316_s6 + $0x368] sm:$0xff]  ;;  %v5350_v32 = vpack.c.bf16 %v2865_v18, %v2863_v48 }
  0xb3   : > { %v5353_v0 = vpack.c.bf16 %v2870_v58, %v2868_v53  ;;  %v2873_v53 = vld [vmem:[%s6316_s6 + $0x390] sm:$0xff]  ;;  %v2878_v58 = vld [vmem:[%s6316_s6 + $0x3b8] sm:$0xff] }
  0xb4   : > { %3188 = vmatpush1.bf16.msra.mxu0 %v5310_v62 }
  0xb5   : > { %3190 = vmatprep.subr.bf16.mxu0 %v5313_v39  ;;  %3316 = vmatpush1.bf16.msra.mxu1 %v4231_v4  ;;  %v2867_v4 = vld [vmem:[%s6316_s6 + $0x360] sm:$0xff] }
  0xb6   : > { %3318 = vmatprep.subr.bf16.mxu1 %v4237_v9  ;;  %v2872_v9 = vld [vmem:[%s6316_s6 + $0x388] sm:$0xff]  ;;  %v5370_v48 = vpack.c.bf16 %v2869_v35, %v2867_v4 }
  0xb7   : > { %v5373_v18 = vpack.c.bf16 %v2874_v51, %v2872_v9  ;;  %v2877_v9 = vld [vmem:[%s6316_s6 + $0x3b0] sm:$0xff]  ;;  %v2882_v51 = vld [vmem:[%s6316_s6 + $0x3d8] sm:$0xff] }
  0xb8   : > { %3192 = vmatpush1.bf16.msra.mxu0 %v5330_v14 }
  0xb9   : > { %3194 = vmatprep.subr.bf16.mxu0 %v5333_v52  ;;  %3320 = vmatpush1.bf16.msra.mxu1 %v4267_v31  ;;  %v2871_v31 = vld [vmem:[%s6316_s6 + $0x380] sm:$0xff] }
  0xba   : > { %3322 = vmatprep.subr.bf16.mxu1 %v4276_v40  ;;  %v2876_v40 = vld [vmem:[%s6316_s6 + $0x3a8] sm:$0xff]  ;;  %v5390_v4 = vpack.c.bf16 %v2873_v53, %v2871_v31 }
  0xbb   : > { %v5393_v35 = vpack.c.bf16 %v2878_v58, %v2876_v40  ;;  %v2881_v40 = vld [vmem:[%s6316_s6 + $0x3d0] sm:$0xff] }
  0xbc   : > { %3196 = vmatpush1.bf16.msra.mxu0 %v5350_v32 }
  0xbd   : > { %3198 = vmatprep.subr.bf16.mxu0 %v5353_v0  ;;  %3324 = vmatpush1.bf16.msra.mxu1 %v4314_v1  ;;  %v2875_v1 = vld [vmem:[%s6316_s6 + $0x3a0] sm:$0xff] }
  0xbe   : > { %3326 = vmatprep.subr.bf16.mxu1 %v4335_v19  ;;  %v2880_v19 = vld [vmem:[%s6316_s6 + $0x3c8] sm:$0xff]  ;;  %v5410_v31 = vpack.c.bf16 %v2877_v9, %v2875_v1  ;;  %v1867_v1 = vsel %vm1866_vm0, %v4390_v61, 0.0  ;;  %v1868_v9 = vsel %vm1866_vm0, %v4394_v10, 0.0 }
  0xbf   : > { %v5413_v53 = vpack.c.bf16 %v2882_v51, %v2880_v19  ;;  %v1880_v19 = vadd.f32 %v4414_v2, %v4427_v44  ;;  %v1869_v51 = vadd.f32 %v1868_v9, %v1867_v1  ;;  %v471_v1 = vld [vmem:[%s5485_s19 + $0x10] sm:$0xff] }
  0xc0   : > { %3200 = vmatpush1.bf16.msra.mxu0 %v5370_v48  ;;  %6580 = vst [vmem:[#allocation99_spill] sm:$0xff] %v5410_v31 }
  0xc1   : > { %3202 = vmatprep.subr.bf16.mxu0 %v5373_v18  ;;  %3328 = vmatpush1.bf16.msra.mxu1 %v4373_v59  ;;  %6581 = vst [vmem:[#allocation100_spill] sm:$0xff] %v5413_v53  ;;  %v2879_v59 = vld [vmem:[%s6316_s6 + $0x3c0] sm:$0xff] }
  0xc2   : > { %3330 = vmatprep.subr.bf16.mxu1 %v4381_v6  ;;  %v5424_v6 = vpack.c.bf16 %v2881_v40, %v2879_v59  ;;  %v478_v59 = vld [vmem:[%s442_s12] sm:$0x3]  ;;  %1881 = vadd.xlane.f32.xlu1 %v1880_v19  ;;  %s6005_s12 = sld [smem:[#allocation2]] }
  0xc3   : > { %v5471_v40 = vrot.slane %v478_v59, %v4352_v28  ;;  %1870 = vadd.xlane.f32.xlu0 %v1869_v51  ;;  %v472_v51 = vld [vmem:[%s5485_s19 + $0x18] sm:$0xff]  ;;  %v3756_v28 = vld [vmem:[%s4329_s24 + $0x10] sm:$0xff] }
  0xc4   : > { %3204 = vmatpush1.bf16.msra.mxu0 %v5390_v4  ;;  %6582 = vst [vmem:[#allocation101_spill] sm:$0xff] %v5424_v6 }
  0xc5   : > { %3206 = vmatprep.subr.bf16.mxu0 %v5393_v35  ;;  %3332 = vmatpush1.bf16.msra.mxu1 %v4400_v22  ;;  %v2884_v22 = vld [vmem:[%s6316_s6 + $0x3e8] sm:$0xff]  ;;  %v1874_v61 = vsel %vm1866_vm0, %v5471_v40, 0.0 }
  0xc6   : > { %3334 = vmatprep.subr.bf16.mxu1 %v4440_v37 }
  0xc8   : > { %3208 = vmatpush1.bf16.msra.mxu0 %v5410_v31  ;;  %s2008_s11 = ssub.f32 1.0, %s6005_s12 }
  0xc9   : > { %3210 = vmatprep.subr.bf16.mxu0 %v5413_v53  ;;  %3336 = vmatpush1.bf16.msra.mxu1 %v4478_v63  ;;  %v2886_v63 = vld [vmem:[%s6316_s6 + $0x3f8] sm:$0xff] }
  0xca   : > { %3338 = vmatprep.subr.bf16.mxu1 %v4486_v38  ;;  %v5440_v38 = vpack.c.bf16 %v2886_v63, %v2884_v22  ;;  %v6586_v22 = vsub.s32 1, %v4289_v46  ;;  %v469_v46 = vld [vmem:[%s5485_s19] sm:$0xff] }
  0xcb   : > { %v5491_v9 = vmul.f32 %v5471_v40, %v469_v46 }
  0xcc   : > { %3212 = vmatpush1.bf16.msra.mxu0 %v5424_v6  ;;  %6583 = vst [vmem:[#allocation102_spill] sm:$0xff] %v5440_v38  ;;  %v5475_v63 = vrot.slane %v478_v59, %v6586_v22  ;;  %v5498_v59 = vmul.f32 %v5471_v40, %v471_v1 }
  0xcd   : > { %3340 = vmatpush1.bf16.msra.mxu1 %v4517_v49  ;;  %v2883_v49 = vld [vmem:[%s6316_s6 + $0x3e0] sm:$0xff]  ;;  %3214 = vmatprep.subr.bf16.mxu0 %v5440_v38  ;;  %6588 = vst [vmem:[#allocation105_spill] sm:$0xff] %v5491_v9 }
  0xce   : > { %3342 = vmatprep.subr.bf16.mxu1 %v4524_v17  ;;  %v2885_v17 = vld [vmem:[%s6316_s6 + $0x3f0] sm:$0xff]  ;;  %v1875_v10 = vsel %vm1866_vm0, %v5475_v63, 0.0  ;;  %6590 = vst [vmem:[#allocation107_spill] sm:$0xff] %v5498_v59  ;;  %v5501_v22 = vmul.f32 %v5475_v63, %v472_v51  ;;  %v1969_v43 = vsub.f32 %v471_v1, %v5498_v59 }
  0xcf   : > { %v5448_v37 = vpack.c.bf16 %v2885_v17, %v2883_v49  ;;  %v1876_v49 = vadd.f32 %v1875_v10, %v1874_v61  ;;  %v6587_v17 = vld [vmem:[#allocation31_spill] sm:$0xff] }
  0xd0   : > { %6591 = vst [vmem:[#allocation108_spill] sm:$0xff] %v5501_v22  ;;  %v1944_v10 = vadd.f32 %v5501_v22, %v5498_v59  ;;  %v1970_v2 = vsub.f32 %v472_v51, %v5501_v22 }
  0xd1   : > { %3344 = vmatpush1.bf16.msra.mxu1 %v4548_v60  ;;  %6584 = vst [vmem:[#allocation103_spill] sm:$0xff] %v5448_v37  ;;  %3216 = vmatpush1.bf16.msra.mxu0 %v5448_v37  ;;  %v777_v60 = vld [vmem:[%s6316_s6 + $0x8] sm:$0xff]  ;;  %v3757_v37 = vld [vmem:[%s4329_s24 + $0x18] sm:$0xff] }
  0xd2   : > { %3346 = vmatprep.subr.bf16.mxu1 %v4570_v25  ;;  %v779_v25 = vld [vmem:[%s6316_s6 + $0x18] sm:$0xff]  ;;  %1877 = vadd.xlane.f32.xlu0 %v1876_v49  ;;  %v3754_v49 = vld [vmem:[%s4329_s24] sm:$0xff]  ;;  %v1909_v38 = vsub.f32 %v3757_v37, %v6587_v17 }
  0xd3   : > { %v5458_v58 = vpack.c.bf16 %v779_v25, %v777_v60  ;;  %v1883_v60 = vadd.f32 %v6587_v17, %v4430_v45  ;;  %v470_v25 = vld [vmem:[%s5485_s19 + $0x8] sm:$0xff]  ;;  %v782_v17 = vld [vmem:[%s6316_s6 + $0x30] sm:$0xff] }
  0xd4   : > { %v5494_v19 = vmul.f32 %v5475_v63, %v470_v25 }
  0xd5   : > { %6585 = vst [vmem:[#allocation104_spill] sm:$0xff] %v5458_v58  ;;  %3218 = vmatprep.subr.bf16.mxu0 %v5458_v58  ;;  %1884 = vadd.xlane.f32.xlu1 %v1883_v60  ;;  %v1906_v60 = vsub.f32 %v3754_v49, %v4427_v44  ;;  %v1908_v58 = vsub.f32 %v3756_v28, %v4430_v45  ;;  %v3758_v44 = vld [vmem:[%s4329_s24 + $0x20] sm:$0xff] }
  0xd6   : > { %6589 = vst [vmem:[#allocation106_spill] sm:$0xff] %v5494_v19  ;;  %v1941_v61 = vadd.f32 %v5494_v19, %v5491_v9  ;;  %v1968_v49 = vsub.f32 %v470_v25, %v5494_v19  ;;  %v1978_v45 = vadd.f32 %v1970_v2, %v1969_v43  ;;  %v1910_v37 = vsub.f32 %v3758_v44, %v4433_v54  ;;  %v474_v25 = vld [vmem:[%s5485_s19 + $0x28] sm:$0xff]  ;;  %v6595_v43 = vld [vmem:[#allocation33_spill] sm:$0xff] }
  0xd7   : > { %v1914_v6 = vadd.f32 %v1907_v42, %v1906_v60  ;;  %v1917_v53 = vadd.f32 %v1909_v38, %v1908_v58  ;;  %v3759_v42 = vld [vmem:[%s4329_s24 + $0x28] sm:$0xff]  ;;  %v5531_v2 = vmul.f32 %v5475_v63, %v474_v25  ;;  %v3760_v60 = vld [vmem:[%s4329_s24 + $0x30] sm:$0xff] }
  0xd8   : > { %1942 = vadd.xlane.f32.xlu0 %v1941_v61  ;;  %v1967_v61 = vsub.f32 %v469_v46, %v5491_v9  ;;  %v6592_v38 = vld [vmem:[#allocation32_spill] sm:$0xff]  ;;  %v473_v46 = vld [vmem:[%s5485_s19 + $0x20] sm:$0xff] }
  0xd9   : > { %1945 = vadd.xlane.f32.xlu1 %v1944_v10  ;;  %v1886_v58 = vadd.f32 %v6592_v38, %v4433_v54  ;;  %6594 = vst [vmem:[#allocation110_spill] sm:$0xff] %v5531_v2 }
  0xda   : > { %v1975_v28 = vadd.f32 %v1968_v49, %v1967_v61  ;;  %v1912_v61 = vsub.f32 %v3760_v60, %v4436_v55  ;;  %v3761_v49 = vld [vmem:[%s4329_s24 + $0x38] sm:$0xff]  ;;  %s451_s24 = scalar_lea.vmem %s6318_s8, %s4287_s29 }
  0xdc   : > { %1915 = vadd.xlane.f32.xlu0 %v1914_v6  ;;  %v1911_v6 = vsub.f32 %v3759_v42, %v6592_v38  ;;  %v475_v42 = vld [vmem:[%s5485_s19 + $0x30] sm:$0xff] }
  0xdd   : > { %1918 = vadd.xlane.f32.xlu1 %v1917_v53  ;;  %v5528_v53 = vmul.f32 %v5471_v40, %v473_v46 }
  0xde   : > { %v1920_v1 = vadd.f32 %v1911_v6, %v1910_v37  ;;  %v1889_v37 = vadd.f32 %v6595_v43, %v4436_v55  ;;  %v476_v6 = vld [vmem:[%s5485_s19 + $0x38] sm:$0xff] }
  0xdf   : > { %6593 = vst [vmem:[#allocation109_spill] sm:$0xff] %v5528_v53  ;;  %v1971_v44 = vsub.f32 %v473_v46, %v5528_v53  ;;  %v1947_v51 = vadd.f32 %v5531_v2, %v5528_v53  ;;  %v5546_v46 = vmul.f32 %v5471_v40, %v475_v42 }
  0xe0   : > { %1976 = vadd.xlane.f32.xlu0 %v1975_v28  ;;  %v1913_v28 = vsub.f32 %v3761_v49, %v6595_v43  ;;  %v778_v43 = vld [vmem:[%s6316_s6 + $0x10] sm:$0xff] }
  0xe1   : > { %1979 = vadd.xlane.f32.xlu1 %v1978_v45  ;;  %v1972_v45 = vsub.f32 %v474_v25, %v5531_v2  ;;  %6596 = vst [vmem:[#allocation111_spill] sm:$0xff] %v5546_v46  ;;  %v5549_v25 = vmul.f32 %v5475_v63, %v476_v6  ;;  %v1406_v63 = vmax.f32 %v5491_v9, %v5528_v53 }
  0xe2   : > { %v1407_v60 = vmax.f32 %v5498_v59, %v5546_v46 }
  0xe3   : > { %v1981_v10 = vadd.f32 %v1972_v45, %v1971_v44  ;;  %6597 = vst [vmem:[#allocation112_spill] sm:$0xff] %v5549_v25  ;;  %v1974_v44 = vsub.f32 %v476_v6, %v5549_v25  ;;  %v1950_v45 = vadd.f32 %v5549_v25, %v5546_v46  ;;  %v1416_v40 = vmax.f32 %v5501_v22, %v5549_v25 }
  0xe4   : > { %1887 = vadd.xlane.f32.xlu0 %v1886_v58  ;;  %v1923_v58 = vadd.f32 %v1913_v28, %v1912_v61  ;;  %v1408_v49 = vmax.f32 %v1406_v63, %v1407_v60  ;;  %v781_v63 = vld [vmem:[%s6316_s6 + $0x28] sm:$0xff]  ;;  %v783_v60 = vld [vmem:[%s6316_s6 + $0x38] sm:$0xff] }
  0xe5   : > { %1921 = vadd.xlane.f32.xlu1 %v1920_v1  ;;  %v1973_v1 = vsub.f32 %v475_v42, %v5546_v46 }
  0xe8   : > { %1948 = vadd.xlane.f32.xlu0 %v1947_v51  ;;  %v1984_v51 = vadd.f32 %v1974_v44, %v1973_v1 }
  0xe9   : > { %1982 = vadd.xlane.f32.xlu1 %v1981_v10  ;;  %v1415_v10 = vmax.f32 %v5494_v19, %v5531_v2 }
  0xeb   : > { %v1417_v61 = vmax.f32 %v1415_v10, %v1416_v40 }
  0xec   : > { %1890 = vadd.xlane.f32.xlu0 %v1889_v37  ;;  %v1409_v37 = vrot.slane %v1408_v49, 4 }
  0xed   : > { %1924 = vadd.xlane.f32.xlu1 %v1923_v58  ;;  %v1418_v28 = vrot.slane %v1417_v61, 4 }
  0xee   : > { %v1410_v6 = vmax.f32 %v1408_v49, %v1409_v37 }
  0xef   : > { %v1419_v42 = vmax.f32 %v1417_v61, %v1418_v28 }
  0xf0   : > { %1951 = vadd.xlane.f32.xlu0 %v1950_v45  ;;  %v1411_v1 = vrot.slane %v1410_v6, 2 }
  0xf1   : > { %1985 = vadd.xlane.f32.xlu1 %v1984_v51  ;;  %v1420_v58 = vrot.slane %v1419_v42, 2  ;;  %v776_v51 = vld [vmem:[%s6316_s6] sm:$0xff] }
  0xf2   : > { %v1412_v38 = vmax.f32 %v1410_v6, %v1411_v1  ;;  %v5581_v6 = vpack.c.bf16 %v783_v60, %v781_v63  ;;  %v780_v1 = vld [vmem:[%s6316_s6 + $0x20] sm:$0xff]  ;;  %v790_v60 = vld [vmem:[%s6316_s6 + $0x70] sm:$0xff] }
  0xf3   : > { %v1421_v44 = vmax.f32 %v1419_v42, %v1420_v58  ;;  %v5577_v42 = vpack.c.bf16 %v778_v43, %v776_v51  ;;  %v785_v43 = vld [vmem:[%s6316_s6 + $0x48] sm:$0xff] }
  0xf4   : > { %v1413_v28 = vrot.slane %v1412_v38, 1 }
  0xf5   : > { %v1422_v61 = vrot.slane %v1421_v44, 1 }
  0xf6   : > { %v5589_v54 = vmax.f32 %v1412_v38, %v1413_v28  ;;  %v5600_v38 = vpack.c.bf16 %v782_v17, %v780_v1  ;;  %v794_v1 = vld [vmem:[%s6316_s6 + $0x90] sm:$0xff] }
  0xf7   : > { %v5579_v58 = vmax.f32 %v1421_v44, %v1422_v61  ;;  %v787_v44 = vld [vmem:[%s6316_s6 + $0x58] sm:$0xff] }
  0xf8   : > { %v5603_v51 = vpack.c.bf16 %v787_v44, %v785_v43  ;;  %v795_v61 = vld [vmem:[%s6316_s6 + $0x98] sm:$0xff]  ;;  %v797_v44 = vld [vmem:[%s6316_s6 + $0xa8] sm:$0xff] }
  0xf9   : > { %1488 = vmatprep.mubr.f32.mxu1 %v5579_v58  ;;  %v6599_v43 = vld [vmem:[#allocation50_spill] sm:$0xff] }
  0xfa   : > { %1489 = vmatmul.mubr.f32.vlgmr.msra.gmra.mrb[2].mxu1 %v5589_v54 }
  0xfb   : > { %3348 = vmatpush1.bf16.msra.mxu1 %v4590_v27  ;;  %v788_v27 = vld [vmem:[%s6316_s6 + $0x60] sm:$0xff] }
  0xfc   : > { %3350 = vmatprep.subr.bf16.mxu1 %v4595_v33  ;;  %v793_v33 = vld [vmem:[%s6316_s6 + $0x88] sm:$0xff]  ;;  %v5640_v28 = vpack.c.bf16 %v790_v60, %v788_v27  ;;  %v796_v27 = vld [vmem:[%s6316_s6 + $0xa0] sm:$0xff]  ;;  %v798_v60 = vld [vmem:[%s6316_s6 + $0xb0] sm:$0xff] }
  0xff   : > { %3352 = vmatpush1.bf16.msra.mxu1 %v4626_v47  ;;  %v792_v47 = vld [vmem:[%s6316_s6 + $0x80] sm:$0xff] }
 0x166   : > { %v5563_v45 = vpop.f32.mrb[0].mxu0 }
 0x167   : > { %v1225_v10 = vpop.f32.mrb[0].mxu1  ;;  %v1083_v40 = vpop.f32.mrb[1].mxu0 }
 0x168   : > { %v1227_v49 = vpop.f32.mrb[1].mxu1  ;;  %v1230_v55 = vmax.f32 %v1225_v10, 0.0  ;;  %v1087_v31 = vmax.f32 %v1083_v40, 0.0  ;;  %v784_v10 = vld [vmem:[%s6316_s6 + $0x40] sm:$0xff]  ;;  %v786_v40 = vld [vmem:[%s6316_s6 + $0x50] sm:$0xff] }
 0x169   : > { %v1231_v37 = vmax.f32 %v1227_v49, 0.0  ;;  %v5620_v17 = vpack.c.bf16 %v786_v40, %v784_v10  ;;  %v6598_v49 = vld [vmem:[#allocation48_spill] sm:$0xff]  ;;  %v799_v10 = vld [vmem:[%s6316_s6 + $0xb8] sm:$0xff] }
 0x16a   : > { %3354 = vmatprep.subr.bf16.mxu1 %v6598_v49  ;;  %v6600_v40 = vld [vmem:[#allocation52_spill] sm:$0xff]  ;;  %v803_v49 = vld [vmem:[%s6316_s6 + $0xd8] sm:$0xff] }
 0x16b   : > { %1296 = vmatprep.mubr.f32.mxu0 %v1231_v37  ;;  %v5643_v37 = vpack.c.bf16 %v795_v61, %v793_v33  ;;  %3356 = vmatpush1.bf16.msra.mxu1 %v6599_v43  ;;  %v6602_v33 = vld [vmem:[#allocation54_spill] sm:$0xff]  ;;  %v801_v61 = vld [vmem:[%s6316_s6 + $0xc8] sm:$0xff] }
 0x16c   : > { %1297 = vmatmul.mubr.f32.vlgmr.msra.gmra.mrb[2].mxu0 %v1230_v55  ;;  %v789_v55 = vld [vmem:[%s6316_s6 + $0x68] sm:$0xff]  ;;  %3358 = vmatprep.subr.bf16.mxu1 %v6600_v40  ;;  %v5683_v43 = vpack.c.bf16 %v803_v49, %v801_v61  ;;  %v6606_v40 = vld [vmem:[#allocation58_spill] sm:$0xff] }
 0x16d   : > { %3220 = vmatpush1.bf16.msra.mxu0 %v5577_v42  ;;  %1367 = vmatprep.mubr.f32.mxu0 %v1087_v31  ;;  %v791_v31 = vld [vmem:[%s6316_s6 + $0x78] sm:$0xff] }
 0x16e   : > { %3222 = vmatprep.subr.bf16.mxu0 %v5581_v6  ;;  %v5623_v63 = vpack.c.bf16 %v791_v31, %v789_v55  ;;  %v5660_v55 = vpack.c.bf16 %v794_v1, %v792_v47  ;;  %v5663_v31 = vpack.c.bf16 %v799_v10, %v797_v44  ;;  %v6603_v47 = vld [vmem:[#allocation56_spill] sm:$0xff]  ;;  %v5680_v1 = vpack.c.bf16 %v798_v60, %v796_v27  ;;  %v800_v44 = vld [vmem:[%s6316_s6 + $0xc0] sm:$0xff]  ;;  %v802_v10 = vld [vmem:[%s6316_s6 + $0xd0] sm:$0xff] }
 0x16f   : > { %3360 = vmatpush1.bf16.msra.mxu1 %v6602_v33  ;;  %6605 = vst [vmem:[#allocation52_spill] sm:$0xff] %v5683_v43  ;;  %v805_v33 = vld [vmem:[%s6316_s6 + $0xe8] sm:$0xff]  ;;  %v807_v27 = vld [vmem:[%s6316_s6 + $0xf8] sm:$0xff]  ;;  %v5700_v61 = vpack.c.bf16 %v802_v10, %v800_v44 }
 0x170   : > { %6601 = vst [vmem:[#allocation48_spill] sm:$0xff] %v5663_v31  ;;  %3362 = vmatprep.subr.bf16.mxu1 %v6603_v47  ;;  %6604 = vst [vmem:[#allocation50_spill] sm:$0xff] %v5680_v1  ;;  %v6607_v60 = vld [vmem:[#allocation60_spill] sm:$0xff]  ;;  %v5703_v49 = vpack.c.bf16 %v807_v27, %v805_v33  ;;  %v804_v47 = vld [vmem:[%s6316_s6 + $0xe0] sm:$0xff] }
 0x171   : > { %3224 = vmatpush1.bf16.msra.mxu0 %v5600_v38  ;;  %6608 = vst [vmem:[#allocation54_spill] sm:$0xff] %v5700_v61  ;;  %v811_v44 = vld [vmem:[%s6316_s6 + $0x118] sm:$0xff]  ;;  %v6611_v10 = vld [vmem:[#allocation64_spill] sm:$0xff] }
 0x172   : > { %3226 = vmatprep.subr.bf16.mxu0 %v5603_v51  ;;  %6609 = vst [vmem:[#allocation56_spill] sm:$0xff] %v5703_v49 }
 0x173   : > { %3364 = vmatpush1.bf16.msra.mxu1 %v6606_v40  ;;  %v806_v40 = vld [vmem:[%s6316_s6 + $0xf0] sm:$0xff] }
 0x174   : > { %3366 = vmatprep.subr.bf16.mxu1 %v6607_v60  ;;  %v809_v60 = vld [vmem:[%s6316_s6 + $0x108] sm:$0xff]  ;;  %v5720_v33 = vpack.c.bf16 %v806_v40, %v804_v47  ;;  %v815_v47 = vld [vmem:[%s6316_s6 + $0x138] sm:$0xff] }
 0x175   : > { %3228 = vmatpush1.bf16.msra.mxu0 %v5620_v17  ;;  %v5723_v27 = vpack.c.bf16 %v811_v44, %v809_v60  ;;  %v6615_v40 = vld [vmem:[#allocation68_spill] sm:$0xff] }
 0x176   : > { %3230 = vmatprep.subr.bf16.mxu0 %v5623_v63  ;;  %6612 = vst [vmem:[#allocation58_spill] sm:$0xff] %v5720_v33 }
 0x177   : > { %6613 = vst [vmem:[#allocation60_spill] sm:$0xff] %v5723_v27 }
 0x179   : > { %3232 = vmatpush1.bf16.msra.mxu0 %v5640_v28 }
 0x17a   : > { %3234 = vmatprep.subr.bf16.mxu0 %v5643_v37 }
 0x17d   : > { %3236 = vmatpush1.bf16.msra.mxu0 %v5660_v55 }
 0x17e   : > { %3238 = vmatprep.subr.bf16.mxu0 %v5663_v31  ;;  %v6610_v31 = vld [vmem:[#allocation62_spill] sm:$0xff] }
 0x17f   : > { %3368 = vmatpush1.bf16.msra.mxu1 %v6610_v31  ;;  %v808_v31 = vld [vmem:[%s6316_s6 + $0x100] sm:$0xff] }
 0x180   : > { %3370 = vmatprep.subr.bf16.mxu1 %v6611_v10  ;;  %v813_v10 = vld [vmem:[%s6316_s6 + $0x128] sm:$0xff] }
 0x181   : > { %3240 = vmatpush1.bf16.msra.mxu0 %v5680_v1  ;;  %v6614_v1 = vld [vmem:[#allocation66_spill] sm:$0xff]  ;;  %v5743_v44 = vpack.c.bf16 %v815_v47, %v813_v10 }
 0x182   : > { %3242 = vmatprep.subr.bf16.mxu0 %v5683_v43  ;;  %v810_v43 = vld [vmem:[%s6316_s6 + $0x110] sm:$0xff] }
 0x183   : > { %3372 = vmatpush1.bf16.msra.mxu1 %v6614_v1  ;;  %v5740_v60 = vpack.c.bf16 %v810_v43, %v808_v31  ;;  %6617 = vst [vmem:[#allocation64_spill] sm:$0xff] %v5743_v44  ;;  %v812_v1 = vld [vmem:[%s6316_s6 + $0x120] sm:$0xff]  ;;  %v819_v43 = vld [vmem:[%s6316_s6 + $0x158] sm:$0xff]  ;;  %v6619_v31 = vld [vmem:[#allocation72_spill] sm:$0xff] }
 0x184   : > { %3374 = vmatprep.subr.bf16.mxu1 %v6615_v40  ;;  %v817_v40 = vld [vmem:[%s6316_s6 + $0x148] sm:$0xff] }
 0x185   : > { %3244 = vmatpush1.bf16.msra.mxu0 %v5700_v61  ;;  %6616 = vst [vmem:[#allocation62_spill] sm:$0xff] %v5740_v60  ;;  %v6618_v61 = vld [vmem:[#allocation70_spill] sm:$0xff]  ;;  %v5763_v47 = vpack.c.bf16 %v819_v43, %v817_v40 }
 0x186   : > { %3246 = vmatprep.subr.bf16.mxu0 %v5703_v49  ;;  %v814_v49 = vld [vmem:[%s6316_s6 + $0x130] sm:$0xff] }
 0x187   : > { %3376 = vmatpush1.bf16.msra.mxu1 %v6618_v61  ;;  %v5760_v10 = vpack.c.bf16 %v814_v49, %v812_v1  ;;  %6621 = vst [vmem:[#allocation68_spill] sm:$0xff] %v5763_v47  ;;  %v816_v61 = vld [vmem:[%s6316_s6 + $0x140] sm:$0xff]  ;;  %v823_v49 = vld [vmem:[%s6316_s6 + $0x178] sm:$0xff]  ;;  %v6623_v1 = vld [vmem:[#allocation76_spill] sm:$0xff] }
 0x188   : > { %3378 = vmatprep.subr.bf16.mxu1 %v6619_v31  ;;  %v821_v31 = vld [vmem:[%s6316_s6 + $0x168] sm:$0xff] }
 0x189   : > { %3248 = vmatpush1.bf16.msra.mxu0 %v5720_v33  ;;  %6620 = vst [vmem:[#allocation66_spill] sm:$0xff] %v5760_v10  ;;  %v6622_v33 = vld [vmem:[#allocation74_spill] sm:$0xff]  ;;  %v5783_v43 = vpack.c.bf16 %v823_v49, %v821_v31 }
 0x18a   : > { %3250 = vmatprep.subr.bf16.mxu0 %v5723_v27  ;;  %v818_v27 = vld [vmem:[%s6316_s6 + $0x150] sm:$0xff] }
 0x18b   : > { %3380 = vmatpush1.bf16.msra.mxu1 %v6622_v33  ;;  %v5780_v40 = vpack.c.bf16 %v818_v27, %v816_v61  ;;  %6625 = vst [vmem:[#allocation72_spill] sm:$0xff] %v5783_v43  ;;  %v820_v33 = vld [vmem:[%s6316_s6 + $0x160] sm:$0xff]  ;;  %v827_v27 = vld [vmem:[%s6316_s6 + $0x198] sm:$0xff]  ;;  %v6627_v61 = vld [vmem:[#allocation80_spill] sm:$0xff] }
 0x18c   : > { %3382 = vmatprep.subr.bf16.mxu1 %v6623_v1  ;;  %v825_v1 = vld [vmem:[%s6316_s6 + $0x188] sm:$0xff] }
 0x18d   : > { %3252 = vmatpush1.bf16.msra.mxu0 %v5740_v60  ;;  %6624 = vst [vmem:[#allocation70_spill] sm:$0xff] %v5780_v40  ;;  %v6626_v60 = vld [vmem:[#allocation78_spill] sm:$0xff]  ;;  %v5803_v49 = vpack.c.bf16 %v827_v27, %v825_v1  ;;  %v6629_v1 = vld [vmem:[#allocation84_spill] sm:$0xff]  ;;  %v1386_v27 = vadd.f32 %v5498_v59, %v5491_v9 }
 0x18e   : > { %3254 = vmatprep.subr.bf16.mxu0 %v5743_v44  ;;  %v822_v44 = vld [vmem:[%s6316_s6 + $0x170] sm:$0xff]  ;;  %v6631_v59 = vld [vmem:[#allocation86_spill] sm:$0xff] }
 0x18f   : > { %3384 = vmatpush1.bf16.msra.mxu1 %v6626_v60  ;;  %v5800_v31 = vpack.c.bf16 %v822_v44, %v820_v33  ;;  %v824_v60 = vld [vmem:[%s6316_s6 + $0x180] sm:$0xff]  ;;  %v829_v44 = vld [vmem:[%s6316_s6 + $0x1a8] sm:$0xff]  ;;  %v831_v33 = vld [vmem:[%s6316_s6 + $0x1b8] sm:$0xff] }
 0x190   : > { %3386 = vmatprep.subr.bf16.mxu1 %v6627_v61  ;;  %v1395_v61 = vadd.f32 %v5501_v22, %v5494_v19  ;;  %v1387_v22 = vadd.f32 %v1386_v27, %v5528_v53  ;;  %v5829_v19 = vpack.c.bf16 %v831_v33, %v829_v44  ;;  %v6632_v44 = vld [vmem:[#allocation88_spill] sm:$0xff]  ;;  %v3802_v33 = vmov 0  }
 0x191   : > { %3256 = vmatpush1.bf16.msra.mxu0 %v5760_v10  ;;  %v6628_v10 = vld [vmem:[#allocation82_spill] sm:$0xff]  ;;  %3719 = vset.pattern.permute.xlu1 %v3802_v33 }
 0x192   : > { %3258 = vmatprep.subr.bf16.mxu0 %v5763_v47  ;;  %v826_v47 = vld [vmem:[%s6316_s6 + $0x190] sm:$0xff]  ;;  %6630 = vst [vmem:[#allocation74_spill] sm:$0xff] %v5829_v19  ;;  %v1388_v27 = vadd.f32 %v1387_v22, %v5546_v46  ;;  %3718 = vset.pattern.permute.xlu0 %v3802_v33  ;;  %v6633_v33 = vld [vmem:[#allocation90_spill] sm:$0xff] }
 0x193   : > { %3388 = vmatpush1.bf16.msra.mxu1 %v6628_v10  ;;  %v5825_v10 = vpack.c.bf16 %v826_v47, %v824_v60  ;;  %v833_v47 = vld [vmem:[%s6316_s6 + $0x1c8] sm:$0xff]  ;;  %v835_v60 = vld [vmem:[%s6316_s6 + $0x1d8] sm:$0xff]  ;;  %v834_v22 = vld [vmem:[%s6316_s6 + $0x1d0] sm:$0xff] }
 0x194   : > { %3390 = vmatprep.subr.bf16.mxu1 %v6629_v1  ;;  %v830_v1 = vld [vmem:[%s6316_s6 + $0x1b0] sm:$0xff]  ;;  %v5854_v53 = vpack.c.bf16 %v835_v60, %v833_v47  ;;  %v839_v47 = vld [vmem:[%s6316_s6 + $0x1f8] sm:$0xff]  ;;  %v6634_v60 = vld [vmem:[#allocation92_spill] sm:$0xff] }
 0x195   : > { %3260 = vmatpush1.bf16.msra.mxu0 %v5780_v40  ;;  %v828_v40 = vld [vmem:[%s6316_s6 + $0x1a0] sm:$0xff] }
 0x196   : > { %3262 = vmatprep.subr.bf16.mxu0 %v5783_v43  ;;  %v1396_v43 = vadd.f32 %v1395_v61, %v5531_v2 }
 0x197   : > { %3392 = vmatpush1.bf16.msra.mxu1 %v6631_v59  ;;  %v5848_v59 = vpack.c.bf16 %v830_v1, %v828_v40  ;;  %v837_v1 = vld [vmem:[%s6316_s6 + $0x1e8] sm:$0xff] }
 0x198   : > { %v1397_v61 = vadd.f32 %v1396_v43, %v5549_v25  ;;  %3394 = vmatprep.subr.bf16.mxu1 %v6632_v44  ;;  %v2131_v43 = vld [vmem:[%s6314_s4 + $0x8] sm:$0xff]  ;;  %v1389_v25 = vrot.slane %v1388_v27, 4  ;;  %v832_v44 = vld [vmem:[%s6316_s6 + $0x1c0] sm:$0xff] }
 0x199   : > { %3264 = vmatpush1.bf16.msra.mxu0 %v5800_v31  ;;  %2226 = vperm.xlu1 %3719, %v2131_v43   ;;  %v836_v43 = vld [vmem:[%s6316_s6 + $0x1e0] sm:$0xff] }
 0x19a   : > { %3266 = vmatprep.subr.bf16.mxu0 %v5803_v49  ;;  %v1398_v2 = vrot.slane %v1397_v61, 4  ;;  %v1390_v46 = vadd.f32 %v1389_v25, %v1388_v27  ;;  %v838_v25 = vld [vmem:[%s6316_s6 + $0x1f0] sm:$0xff] }
 0x19b   : > { %3396 = vmatpush1.bf16.msra.mxu1 %v6633_v33  ;;  %v5877_v33 = vpack.c.bf16 %v839_v47, %v837_v1  ;;  %v5888_v1 = vpack.c.bf16 %v838_v25, %v836_v43  ;;  %v2133_v47 = vld [vmem:[%s6314_s4 + $0x18] sm:$0xff]  ;;  %v2893_v43 = vld [vmem:[%s6314_s4 + $0x30] sm:$0xff] }
 0x19c   : > { %v1399_v40 = vadd.f32 %v1398_v2, %v1397_v61  ;;  %3398 = vmatprep.subr.bf16.mxu1 %v6634_v60  ;;  %v2132_v2 = vld [vmem:[%s6314_s4 + $0x10] sm:$0xff]  ;;  %v1391_v61 = vrot.slane %v1390_v46, 2  ;;  %v6638_v25 = vld [vmem:[#allocation6_spill] sm:$0xff] }
 0x19d   : > { %3268 = vmatpush1.bf16.msra.mxu0 %v5825_v10  ;;  %2231 = vperm.xlu1 %3719, %v2132_v2   ;;  %v6635_v2 = vld [vmem:[#allocation3_spill] sm:$0xff] }
 0x19e   : > { %3270 = vmatprep.subr.bf16.mxu0 %v5829_v19  ;;  %v1400_v9 = vrot.slane %v1399_v40, 2  ;;  %v5871_v19 = vpack.c.bf16 %v834_v22, %v832_v44  ;;  %v1392_v44 = vadd.f32 %v1391_v61, %v1390_v46  ;;  %v2891_v46 = vld [vmem:[%s6314_s4 + $0x20] sm:$0xff] }
 0x19f   : > { %3400 = vmatpush1.bf16.msra.mxu1 %v5062_v5  ;;  %v2130_v61 = vld [vmem:[%s6314_s4] sm:$0xff] }
 0x1a0   : > { %v1401_v27 = vadd.f32 %v1400_v9, %v1399_v40  ;;  %3402 = vmatprep.subr.bf16.mxu1 %v5068_v56  ;;  %v1393_v60 = vrot.slane %v1392_v44, 1  ;;  %v1086_v40 = vmax.f32 %v5563_v45, 0.0  ;;  %v6636_v45 = vld [vmem:[#allocation4_spill] sm:$0xff]  ;;  %2221 = vperm.xlu0 %3718, %v2130_v61  }
 0x1a1   : > { %3272 = vmatpush1.bf16.msra.mxu0 %v5848_v59  ;;  %2236 = vperm.xlu1 %3719, %v2133_v47   ;;  %v1871_v47 = vpop.xlane.xlu0 %1870 }
 0x1a2   : > { %3274 = vmatprep.subr.bf16.mxu0 %v5854_v53  ;;  %v1402_v22 = vrot.slane %v1401_v27, 1  ;;  %v1394_v56 = vadd.f32 %v1393_v60, %v1392_v44  ;;  %v6641_v44 = vld [vmem:[#allocation9_spill] sm:$0xff]  ;;  %v6662_v60 = vld [vmem:[#allocation39_spill] sm:$0xff] }
 0x1a3   : > { %3404 = vmatpush1.bf16.msra.mxu1 %v5098_v30 }
 0x1a4   : > { %v1403_v5 = vadd.f32 %v1402_v22, %v1401_v27  ;;  %3406 = vmatprep.subr.bf16.mxu1 %v5104_v24  ;;  %v5905_v30 = vmul.f32 0.03125, %v1394_v56  ;;  %v2892_v24 = vld [vmem:[%s6314_s4 + $0x28] sm:$0xff] }
 0x1a5   : > { %3276 = vmatpush1.bf16.msra.mxu0 %v5871_v19  ;;  %2249 = vperm.xlu1 %3719, %v2891_v46   ;;  %v6640_v27 = vld [vmem:[#allocation8_spill] sm:$0xff] }
 0x1a6   : > { %3278 = vmatprep.subr.bf16.mxu0 %v5877_v33  ;;  %v5896_v9 = vmul.f32 0.03125, %v1403_v5  ;;  %v6644_v22 = vld [vmem:[#allocation12_spill] sm:$0xff]  ;;  %v6665_v5 = vld [vmem:[#allocation41_spill] sm:$0xff] }
 0x1a7   : > { %3408 = vmatpush1.bf16.msra.mxu1 %v5128_v36  ;;  %v6637_v36 = vld [vmem:[#allocation5_spill] sm:$0xff]  ;;  %v6666_v56 = vld [vmem:[#allocation100_spill] sm:$0xff] }
 0x1a8   : > { %1559 = vmatprep.mubr.f32.mxu1 %v5896_v9  ;;  %3538 = vmatprep.subr.bf16.mxu1 %v5134_v11  ;;  %v6639_v11 = vld [vmem:[#allocation7_spill] sm:$0xff] }
 0x1a9   : > { %3280 = vmatpush1.bf16.msra.mxu0 %v5888_v1  ;;  %2254 = vperm.xlu1 %3719, %v2892_v24   ;;  %v6671_v24 = vld [vmem:[#allocation44_spill] sm:$0xff] }
 0x1aa   : > { %3410 = vmatprep.subr.bf16.mxu0 %v6635_v2  ;;  %1560 = vmatmul.mubr.f32.vlgmr.msra.gmra.mrb[2].mxu1 %v5905_v30  ;;  %v6669_v2 = vld [vmem:[#allocation43_spill] sm:$0xff] }
 0x1ab   : > { %3540 = vmatpush1.bf16.msra.mxu1 %v5150_v15  ;;  %v6642_v15 = vld [vmem:[#allocation10_spill] sm:$0xff] }
 0x1ac   : > { %1368 = vmatmul.mubr.f32.vlgmr.msra.gmra.mrb[2].mxu0 %v1086_v40  ;;  %3542 = vmatprep.subr.bf16.mxu1 %v5154_v57  ;;  %v6643_v57 = vld [vmem:[#allocation11_spill] sm:$0xff]  ;;  %v6668_v40 = vld [vmem:[#allocation101_spill] sm:$0xff] }
 0x1ad   : > { %3412 = vmatpush1.bf16.msra.mxu0 %v6636_v45  ;;  %1632 = vmatprep.mubr.f32.mxu0 %v5579_v58  ;;  %v2894_v58 = vld [vmem:[%s6314_s4 + $0x38] sm:$0xff]  ;;  %v6672_v45 = vld [vmem:[#allocation103_spill] sm:$0xff] }
 0x1ae   : > { %3414 = vmatprep.subr.bf16.mxu0 %v6637_v36  ;;  %2259 = vperm.xlu1 %3719, %v2893_v43   ;;  %v6673_v36 = vld [vmem:[#allocation45_spill] sm:$0xff]  ;;  %v6674_v43 = vld [vmem:[#allocation46_spill] sm:$0xff] }
 0x1af   : > { %3544 = vmatpush1.bf16.msra.mxu1 %v5170_v7  ;;  %v6645_v7 = vld [vmem:[#allocation13_spill] sm:$0xff] }
 0x1b0   : > { %3546 = vmatprep.subr.bf16.mxu1 %v5173_v23  ;;  %v6646_v23 = vld [vmem:[#allocation14_spill] sm:$0xff] }
 0x1b1   : > { %3416 = vmatpush1.bf16.msra.mxu0 %v6638_v25  ;;  %v6675_v25 = vld [vmem:[#allocation104_spill] sm:$0xff] }
 0x1b2   : > { %3418 = vmatprep.subr.bf16.mxu0 %v6639_v11  ;;  %2264 = vperm.xlu1 %3719, %v2894_v58   ;;  %v1873_v11 = vmul.f32 0.00390625, %v1871_v47  ;;  %v6676_v58 = vld [vmem:[#allocation47_spill] sm:$0xff] }
 0x1b3   : > { %3548 = vmatpush1.bf16.msra.mxu1 %v5190_v29  ;;  %v6647_v29 = vld [vmem:[#allocation15_spill] sm:$0xff] }
 0x1b4   : > { %3550 = vmatprep.subr.bf16.mxu1 %v5193_v12  ;;  %v6648_v12 = vld [vmem:[#allocation16_spill] sm:$0xff] }
 0x1b5   : > { %3420 = vmatpush1.bf16.msra.mxu0 %v6640_v27 }
 0x1b6   : > { %3422 = vmatprep.subr.bf16.mxu0 %v6641_v44 }
 0x1b7   : > { %3552 = vmatpush1.bf16.msra.mxu1 %v5210_v20  ;;  %v6649_v20 = vld [vmem:[#allocation17_spill] sm:$0xff] }
 0x1b8   : > { %3554 = vmatprep.subr.bf16.mxu1 %v5213_v41  ;;  %v6650_v41 = vld [vmem:[#allocation18_spill] sm:$0xff] }
 0x1b9   : > { %3424 = vmatpush1.bf16.msra.mxu0 %v6642_v15  ;;  %v6677_v15 = vld [vmem:[#allocation49_spill] sm:$0xff] }
 0x1ba   : > { %3426 = vmatprep.subr.bf16.mxu0 %v6643_v57 }
 0x1bb   : > { %3556 = vmatpush1.bf16.msra.mxu1 %v5230_v8  ;;  %v6651_v8 = vld [vmem:[#allocation19_spill] sm:$0xff] }
 0x1bc   : > { %3558 = vmatprep.subr.bf16.mxu1 %v5233_v13  ;;  %v6652_v13 = vld [vmem:[#allocation20_spill] sm:$0xff] }
 0x1bd   : > { %3428 = vmatpush1.bf16.msra.mxu0 %v6644_v22  ;;  %v6678_v22 = vld [vmem:[#allocation51_spill] sm:$0xff] }
 0x1be   : > { %3430 = vmatprep.subr.bf16.mxu0 %v6645_v7 }
 0x1bf   : > { %3560 = vmatpush1.bf16.msra.mxu1 %v5250_v21  ;;  %v6653_v21 = vld [vmem:[#allocation21_spill] sm:$0xff] }
 0x1c0   : > { %3562 = vmatprep.subr.bf16.mxu1 %v5253_v3  ;;  %v6654_v3 = vld [vmem:[#allocation22_spill] sm:$0xff] }
 0x1c1   : > { %3432 = vmatpush1.bf16.msra.mxu0 %v6646_v23  ;;  %v6679_v23 = vld [vmem:[#allocation53_spill] sm:$0xff] }
 0x1c2   : > { %3434 = vmatprep.subr.bf16.mxu0 %v6647_v29  ;;  %v1896_v29 = vadd.f32 1e-06, %v1873_v11 }
 0x1c3   : > { %3564 = vmatpush1.bf16.msra.mxu1 %v5270_v34  ;;  %v6655_v34 = vld [vmem:[#allocation23_spill] sm:$0xff] }
 0x1c4   : > { %3566 = vmatprep.subr.bf16.mxu1 %v5273_v16  ;;  %v6656_v16 = vld [vmem:[#allocation24_spill] sm:$0xff] }
 0x1c5   : > { %3436 = vmatpush1.bf16.msra.mxu0 %v6648_v12 }
 0x1c6   : > { %3438 = vmatprep.subr.bf16.mxu0 %v6649_v20 }
 0x1c7   : > { %3568 = vmatpush1.bf16.msra.mxu1 %v5290_v50  ;;  %v6657_v50 = vld [vmem:[#allocation26_spill] sm:$0xff] }
 0x1c8   : > { %3570 = vmatprep.subr.bf16.mxu1 %v5293_v26  ;;  %v6658_v26 = vld [vmem:[#allocation27_spill] sm:$0xff] }
 0x1c9   : > { %3440 = vmatpush1.bf16.msra.mxu0 %v6650_v41 }
 0x1ca   : > { %3442 = vmatprep.subr.bf16.mxu0 %v6651_v8  ;;  %v6680_v8 = vld [vmem:[#allocation55_spill] sm:$0xff] }
 0x1cb   : > { %3572 = vmatpush1.bf16.msra.mxu1 %v5310_v62  ;;  %v6659_v62 = vld [vmem:[#allocation28_spill] sm:$0xff] }
 0x1cc   : > { %3574 = vmatprep.subr.bf16.mxu1 %v5313_v39  ;;  %v6660_v39 = vld [vmem:[#allocation29_spill] sm:$0xff] }
 0x1cd   : > { %3444 = vmatpush1.bf16.msra.mxu0 %v6652_v13 }
 0x1ce   : > { %3446 = vmatprep.subr.bf16.mxu0 %v6653_v21  ;;  %v6681_v21 = vld [vmem:[#allocation57_spill] sm:$0xff] }
 0x1cf   : > { %3576 = vmatpush1.bf16.msra.mxu1 %v5330_v14  ;;  %v6661_v14 = vld [vmem:[#allocation38_spill] sm:$0xff] }
 0x1d0   : > { %3578 = vmatprep.subr.bf16.mxu1 %v5333_v52  ;;  %v1882_v52 = vpop.xlane.xlu1 %1881 }
 0x1d1   : > { %3448 = vmatpush1.bf16.msra.mxu0 %v6654_v3  ;;  %v6682_v3 = vld [vmem:[#allocation25_spill] sm:$0xff] }
 0x1d2   : > { %3450 = vmatprep.subr.bf16.mxu0 %v6655_v34  ;;  %v1900_v34 = vrot.slane %v1896_v29, %v6682_v3 }
 0x1d3   : > { %3580 = vmatpush1.bf16.msra.mxu1 %v5350_v32  ;;  %v6663_v32 = vld [vmem:[#allocation40_spill] sm:$0xff] }
 0x1d4   : > { %3582 = vmatprep.subr.bf16.mxu1 %v5353_v0  ;;  %v6664_v0 = vld [vmem:[#allocation99_spill] sm:$0xff]  ;;  %v1885_v46 = vpop.xlane.xlu1 %1884  ;;  %3720 = vrcp.f32 %v1900_v34 }
 0x1d5   : > { %3452 = vmatpush1.bf16.msra.mxu0 %v6656_v16 }
 0x1d6   : > { %3454 = vmatprep.subr.bf16.mxu0 %v6657_v50 }
 0x1d7   : > { %3584 = vmatpush1.bf16.msra.mxu1 %v5370_v48  ;;  %v1878_v48 = vpop.xlane.xlu0 %1877 }
 0x1d8   : > { %3586 = vmatprep.subr.bf16.mxu1 %v5373_v18  ;;  %v6667_v18 = vld [vmem:[#allocation42_spill] sm:$0xff]  ;;  %v1946_v61 = vpop.xlane.xlu1 %1945  ;;  %v1879_v27 = vmul.f32 0.00390625, %v1878_v48  ;;  %v6687_v48 = vld [vmem:[#allocation67_spill] sm:$0xff] }
 0x1d9   : > { %3456 = vmatpush1.bf16.msra.mxu0 %v6658_v26  ;;  %v6683_v26 = vld [vmem:[#allocation59_spill] sm:$0xff] }
 0x1da   : > { %3458 = vmatprep.subr.bf16.mxu0 %v6659_v62  ;;  %v1991_v7 = vsub.f32 1.0, %v1879_v27  ;;  %v1957_v20 = vadd.f32 1e-06, %v1879_v27  ;;  %v6690_v27 = vld [vmem:[#allocation73_spill] sm:$0xff] }
 0x1db   : > { %3588 = vmatpush1.bf16.msra.mxu1 %v5390_v4  ;;  %v6670_v4 = vld [vmem:[#allocation102_spill] sm:$0xff] }
 0x1dc   : > { %3590 = vmatprep.subr.bf16.mxu1 %v5393_v35  ;;  %v1943_v35 = vpop.xlane.xlu0 %1942  ;;  %v1919_v57 = vpop.xlane.xlu1 %1918  ;;  %v1992_v13 = vadd.f32 1e-06, %v1991_v7  ;;  %v1961_v50 = vrot.slane %v1957_v20, %v6682_v3  ;;  %v2003_v7 = vstv %s6005_s12 }
 0x1dd   : > { %3460 = vmatpush1.bf16.msra.mxu0 %v6660_v39 }
 0x1de   : > { %3462 = vmatprep.subr.bf16.mxu0 %v6661_v14  ;;  %v1996_v62 = vrot.slane %v1992_v13, %v6682_v3  ;;  %v6684_v14 = vld [vmem:[#allocation61_spill] sm:$0xff]  ;;  %v2009_v13 = vstv %s2008_s11 }
 0x1df   : > { %3592 = vmatpush1.bf16.msra.mxu1 %v6664_v0 }
 0x1e0   : > { %3594 = vmatprep.subr.bf16.mxu1 %v6666_v56  ;;  %v1916_v44 = vpop.xlane.xlu0 %1915  ;;  %v1980_v41 = vpop.xlane.xlu1 %1979  ;;  %v6688_v56 = vld [vmem:[#allocation69_spill] sm:$0xff] }
 0x1e1   : > { %3464 = vmatpush1.bf16.msra.mxu0 %v6662_v60  ;;  %v6685_v60 = vld [vmem:[#allocation63_spill] sm:$0xff] }
 0x1e2   : > { %3466 = vmatprep.subr.bf16.mxu0 %v6663_v32  ;;  %v6686_v32 = vld [vmem:[#allocation65_spill] sm:$0xff] }
 0x1e3   : > { %3596 = vmatpush1.bf16.msra.mxu1 %v6668_v40  ;;  %v1892_v40 = vmul.f32 0.00390625, %v1882_v52 }
 0x1e4   : > { %3598 = vmatprep.subr.bf16.mxu1 %v6670_v4  ;;  %v1977_v12 = vpop.xlane.xlu0 %1976  ;;  %v1922_v47 = vpop.xlane.xlu1 %1921  ;;  %v1926_v4 = vmul.f32 0.00390625, %v1916_v44 }
 0x1e5   : > { %3468 = vmatpush1.bf16.msra.mxu0 %v6665_v5 }
 0x1e6   : > { %3470 = vmatprep.subr.bf16.mxu0 %v6667_v18  ;;  %v3721_v18 = vpop.eup %3720 }
 0x1e7   : > { %3600 = vmatpush1.bf16.msra.mxu1 %v6672_v45  ;;  %v1902_v29 = vmul.f32 %v3721_v18, %v1892_v40 }
 0x1e8   : > { %3602 = vmatprep.subr.bf16.mxu1 %v6675_v25  ;;  %v1888_v39 = vpop.xlane.xlu0 %1887  ;;  %v1983_v5 = vpop.xlane.xlu1 %1982  ;;  %v1954_v25 = vmul.f32 0.00390625, %v1946_v61  ;;  %v1928_v61 = vmul.f32 0.00390625, %v1922_v47  ;;  %v6694_v47 = vld [vmem:[#allocation81_spill] sm:$0xff] }
 0x1e9   : > { %3472 = vmatpush1.bf16.msra.mxu0 %v6669_v2  ;;  %v1893_v2 = vmul.f32 0.00390625, %v1885_v46 }
 0x1ea   : > { %3474 = vmatprep.subr.bf16.mxu0 %v6671_v24  ;;  %v1927_v24 = vmul.f32 0.00390625, %v1919_v57  ;;  %v6691_v57 = vld [vmem:[#allocation75_spill] sm:$0xff] }
 0x1eb   : > { %v1903_v52 = vmul.f32 %v3721_v18, %v1893_v2 }
 0x1ec   : > { %1633 = vmatmul.mubr.f32.vlgmr.msra.gmra.mrb[4].mxu0 %v5589_v54  ;;  %v1930_v54 = vsub.f32 1.0, %v1873_v11  ;;  %v1949_v0 = vpop.xlane.xlu0 %1948 }
 0x1ed   : > { %3476 = vmatpush1.bf16.msra.mxu0 %v6673_v36  ;;  %1703 = vmatprep.mubr.f32.mxu0 %v5896_v9  ;;  %v6689_v36 = vld [vmem:[#allocation71_spill] sm:$0xff]  ;;  %v1955_v34 = vmul.f32 0.00390625, %v1949_v0 }
 0x1ee   : > { %3478 = vmatprep.subr.bf16.mxu0 %v6674_v43  ;;  %v1931_v9 = vadd.f32 1e-06, %v1930_v54  ;;  %v1953_v43 = vmul.f32 0.00390625, %v1943_v35  ;;  %v1925_v54 = vpop.xlane.xlu1 %1924  ;;  %v1894_v35 = vmul.f32 0.00390625, %v1888_v39 }
 0x1f0   : > { %v1935_v16 = vrot.slane %v1931_v9, %v6682_v3  ;;  %v1891_v11 = vpop.xlane.xlu0 %1890  ;;  %v1904_v40 = vmul.f32 %v3721_v18, %v1894_v35 }
 0x1f1   : > { %3480 = vmatpush1.bf16.msra.mxu0 %v6676_v58 }
 0x1f2   : > { %3482 = vmatprep.subr.bf16.mxu0 %v6677_v15  ;;  %3722 = vrcp.f32 %v1935_v16  ;;  %v1987_v15 = vmul.f32 0.00390625, %v1977_v12  ;;  %v1989_v16 = vmul.f32 0.00390625, %v1983_v5 }
 0x1f3   : > { %3724 = vrcp.f32 %v1961_v50 }
 0x1f4   : > { %3726 = vrcp.f32 %v1996_v62  ;;  %v1952_v50 = vpop.xlane.xlu0 %1951 }
 0x1f5   : > { %3484 = vmatpush1.bf16.msra.mxu0 %v6678_v22  ;;  %v1956_v0 = vmul.f32 0.00390625, %v1952_v50 }
 0x1f6   : > { %3486 = vmatprep.subr.bf16.mxu0 %v6679_v23  ;;  %v1988_v23 = vmul.f32 0.00390625, %v1980_v41  ;;  %v2019_v41 = vmul.f32 %v2003_v7, %v1903_v52 }
 0x1f9   : > { %3488 = vmatpush1.bf16.msra.mxu0 %v6680_v8  ;;  %v6692_v8 = vld [vmem:[#allocation77_spill] sm:$0xff] }
 0x1fa   : > { %3490 = vmatprep.subr.bf16.mxu0 %v6681_v21 }
 0x1fc   : > { %v3723_v45 = vpop.eup %3722 }
 0x1fd   : > { %3492 = vmatpush1.bf16.msra.mxu0 %v6683_v26  ;;  %v3725_v58 = vpop.eup %3724  ;;  %v1937_v46 = vmul.f32 %v3723_v45, %v1926_v4  ;;  %v1938_v44 = vmul.f32 %v3723_v45, %v1927_v24  ;;  %v2018_v26 = vmul.f32 %v2003_v7, %v1902_v29  ;;  %v1939_v39 = vmul.f32 %v3723_v45, %v1928_v61 }
 0x1fe   : > { %3494 = vmatprep.subr.bf16.mxu0 %v6684_v14  ;;  %v3727_v22 = vpop.eup %3726  ;;  %v1963_v9 = vmul.f32 %v3725_v58, %v1953_v43  ;;  %v1964_v20 = vmul.f32 %v3725_v58, %v1954_v25  ;;  %v1965_v4 = vmul.f32 %v3725_v58, %v1955_v34  ;;  %v1895_v24 = vmul.f32 0.00390625, %v1891_v11 }
 0x1ff   : > { %v1998_v21 = vmul.f32 %v3727_v22, %v1987_v15  ;;  %v1999_v12 = vmul.f32 %v3727_v22, %v1988_v23  ;;  %v2004_v62 = vmul.f32 %v2003_v7, %v1937_v46  ;;  %v2005_v14 = vmul.f32 %v2003_v7, %v1938_v44  ;;  %v6696_v46 = vld [vmem:[#allocation85_spill] sm:$0xff] }
 0x200   : > { %v2000_v5 = vmul.f32 %v3727_v22, %v1989_v16  ;;  %v1929_v43 = vmul.f32 0.00390625, %v1925_v54  ;;  %v2020_v29 = vmul.f32 %v2003_v7, %v1904_v40  ;;  %v2006_v52 = vmul.f32 %v2003_v7, %v1939_v39 }
 0x201   : > { %3496 = vmatpush1.bf16.msra.mxu0 %v6685_v60  ;;  %v1986_v60 = vpop.xlane.xlu1 %1985  ;;  %v2010_v2 = vmul.f32 %v2009_v13, %v1998_v21  ;;  %v1966_v11 = vmul.f32 %v3725_v58, %v1956_v0  ;;  %v6703_v0 = vld [vmem:[#allocation96_spill] sm:$0xff] }
 0x202   : > { %3498 = vmatprep.subr.bf16.mxu0 %v6686_v32  ;;  %v6693_v32 = vld [vmem:[#allocation79_spill] sm:$0xff]  ;;  %v1990_v25 = vmul.f32 0.00390625, %v1986_v60  ;;  %v2012_v35 = vmul.f32 %v2009_v13, %v2000_v5  ;;  %v1940_v54 = vmul.f32 %v3723_v45, %v1929_v43 }
 0x203   : > { %v6023_v44 = vadd.f32 %v2010_v2, %v2004_v62  ;;  %v2025_v50 = vmul.f32 %v2009_v13, %v1966_v11  ;;  %v6699_v62 = vld [vmem:[#allocation91_spill] sm:$0xff] }
 0x204   : > { %v2001_v61 = vmul.f32 %v3727_v22, %v1990_v25  ;;  %v6039_v22 = vadd.f32 %v2012_v35, %v2006_v52  ;;  %v6702_v2 = vld [vmem:[#allocation95_spill] sm:$0xff]  ;;  %v6705_v25 = vld [vmem:[#allocation98_spill] sm:$0xff] }
 0x205   : > { %3500 = vmatpush1.bf16.msra.mxu0 %v6687_v48  ;;  %v2022_v48 = vmul.f32 %v2009_v13, %v1963_v9  ;;  %v1905_v9 = vmul.f32 %v3721_v18, %v1895_v24  ;;  %v2030_v16 = vmul.f32 %v6023_v44, %v6023_v44 }
 0x206   : > { %3502 = vmatprep.subr.bf16.mxu0 %v6688_v56  ;;  %v2023_v56 = vmul.f32 %v2009_v13, %v1964_v20  ;;  %v2032_v40 = vmul.f32 %v6039_v22, %v6039_v22 }
 0x207   : > { %v6018_v15 = vadd.f32 %v2022_v48, %v2018_v26  ;;  %v2021_v58 = vmul.f32 %v2003_v7, %v1905_v9  ;;  %v2007_v26 = vmul.f32 %v2003_v7, %v1940_v54 }
 0x208   : > { %v6020_v23 = vadd.f32 %v2023_v56, %v2019_v41  ;;  %v2013_v41 = vmul.f32 %v2009_v13, %v2001_v61 }
 0x209   : > { %3504 = vmatpush1.bf16.msra.mxu0 %v6689_v36  ;;  %v2011_v36 = vmul.f32 %v2009_v13, %v1999_v12  ;;  %v2056_v21 = vmul.f32 %v6018_v15, %v6018_v15  ;;  %v6698_v12 = vld [vmem:[#allocation89_spill] sm:$0xff]  ;;  %v2029_v48 = vadd.f32 %v2025_v50, %v2021_v58 }
 0x20a   : > { %3506 = vmatprep.subr.bf16.mxu0 %v6690_v27  ;;  %v6695_v27 = vld [vmem:[#allocation83_spill] sm:$0xff]  ;;  %v2057_v34 = vmul.f32 %v6020_v23, %v6020_v23  ;;  %v2017_v39 = vadd.f32 %v2013_v41, %v2007_v26 }
 0x20b   : > { %v6025_v20 = vadd.f32 %v2011_v36, %v2005_v14  ;;  %v6700_v14 = vld [vmem:[#allocation93_spill] sm:$0xff] }
 0x20c   : > { %v2060_v60 = vadd.f32 %v2057_v34, %v2056_v21  ;;  %v2033_v24 = vmul.f32 %v2017_v39, %v2017_v39  ;;  %v6704_v36 = vld [vmem:[#allocation97_spill] sm:$0xff] }
 0x20d   : > { %3508 = vmatpush1.bf16.msra.mxu0 %v6691_v57  ;;  %v2024_v57 = vmul.f32 %v2009_v13, %v1965_v4  ;;  %v2031_v45 = vmul.f32 %v6025_v20, %v6025_v20  ;;  %v2059_v13 = vmul.f32 %v2029_v48, %v2029_v48 }
 0x20e   : > { %3510 = vmatprep.subr.bf16.mxu0 %v6692_v8  ;;  %v6697_v8 = vld [vmem:[#allocation87_spill] sm:$0xff] }
 0x20f   : > { %v6035_v18 = vadd.f32 %v2024_v57, %v2020_v29  ;;  %v2034_v56 = vadd.f32 %v2031_v45, %v2030_v16 }
 0x211   : > { %3512 = vmatpush1.bf16.msra.mxu0 %v6693_v32  ;;  %v2058_v32 = vmul.f32 %v6035_v18, %v6035_v18  ;;  %v2035_v4 = vadd.f32 %v2034_v56, %v2032_v40 }
 0x212   : > { %3514 = vmatprep.subr.bf16.mxu0 %v6694_v47  ;;  %v6701_v47 = vld [vmem:[#allocation94_spill] sm:$0xff] }
 0x213   : > { %v2061_v7 = vadd.f32 %v2060_v60, %v2058_v32  ;;  %v2036_v43 = vadd.f32 %v2035_v4, %v2033_v24 }
 0x215   : > { %3516 = vmatpush1.bf16.msra.mxu0 %v6695_v27  ;;  %v2062_v5 = vadd.f32 %v2061_v7, %v2059_v13  ;;  %v2037_v29 = vrot.slane %v2036_v43, 4 }
 0x216   : > { %3518 = vmatprep.subr.bf16.mxu0 %v6696_v46 }
 0x217   : > { %v2063_v27 = vrot.slane %v2062_v5, 4  ;;  %v2038_v46 = vadd.f32 %v2037_v29, %v2036_v43 }
 0x219   : > { %3520 = vmatpush1.bf16.msra.mxu0 %v6697_v8  ;;  %v2064_v52 = vadd.f32 %v2063_v27, %v2062_v5  ;;  %v2039_v9 = vrot.slane %v2038_v46, 2 }
 0x21a   : > { %3522 = vmatprep.subr.bf16.mxu0 %v6698_v12 }
 0x21b   : > { %v2065_v57 = vrot.slane %v2064_v52, 2  ;;  %v2040_v35 = vadd.f32 %v2039_v9, %v2038_v46 }
 0x21d   : > { %3524 = vmatpush1.bf16.msra.mxu0 %v6699_v62  ;;  %v2066_v11 = vadd.f32 %v2065_v57, %v2064_v52  ;;  %v2041_v61 = vrot.slane %v2040_v35, 1 }
 0x21e   : > { %3526 = vmatprep.subr.bf16.mxu0 %v6700_v14 }
 0x21f   : > { %v2067_v54 = vrot.slane %v2066_v11, 1  ;;  %v2042_v21 = vadd.f32 %v2041_v61, %v2040_v35 }
 0x221   : > { %3528 = vmatpush1.bf16.msra.mxu0 %v6701_v47  ;;  %v2068_v8 = vadd.f32 %v2067_v54, %v2066_v11  ;;  %vm2045_vm2 = vcmp.eq.f32.partialorder %v2042_v21, inf  ;;  %v2048_v45 = vand.u32 2147483648, %v2042_v21  ;;  %vm2047_vm4 = vcmp.eq.f32.partialorder %v2042_v21, 0.0 }
 0x222   : > { %3530 = vmatprep.subr.bf16.mxu0 %v6702_v2 }
 0x223   : > { %3728 = vrsqrt.f32 %v2068_v8  ;;  %vm2071_vm1 = vcmp.eq.f32.partialorder %v2068_v8, inf  ;;  %v2074_v50 = vand.u32 2147483648, %v2068_v8  ;;  %vm2073_vm3 = vcmp.eq.f32.partialorder %v2068_v8, 0.0 }
 0x224   : > { %3730 = vrsqrt.f32 %v2042_v21 }
 0x225   : > { %3532 = vmatpush1.bf16.msra.mxu0 %v6703_v0 }
 0x226   : > { %3534 = vmatprep.subr.bf16.mxu0 %v6704_v36 }
 0x229   : > { %3536 = vmatpush1.bf16.msra.mxu0 %v6705_v25 }
 0x22c   : > { %1704 = vmatmul.mubr.f32.vlgmr.msra.gmra.mrb[4].mxu0 %v5905_v30 }
 0x22d   : > { %v3729_v34 = vpop.eup %3728 }
 0x22e   : > { %v3731_v12 = vpop.eup %3730  ;;  %v2070_v16 = vmul.f32 %v3729_v34, %v2068_v8 }
 0x22f   : > { %v2044_v58 = vmul.f32 %v3731_v12, %v2042_v21 }
 0x230   : > { %v2072_v30 = vsel %vm2071_vm1, %v2068_v8, %v2070_v16 }
 0x231   : > { %v2046_v26 = vsel %vm2045_vm2, %v2042_v21, %v2044_v58  ;;  %v2075_v41 = vsel %vm2073_vm3, %v2074_v50, %v2072_v30 }
 0x232   : > { %v2049_v62 = vsel %vm2047_vm4, %v2048_v45, %v2046_v26  ;;  %v2076_v14 = vadd.f32 1e-06, %v2075_v41 }
 0x233   : > { %v2050_v60 = vadd.f32 1e-06, %v2049_v62 }
 0x234   : > { %3732 = vrcp.f32 %v2076_v14 }
 0x235   : > { %3734 = vrcp.f32 %v2050_v60 }
 0x23e   : > { %v3733_v32 = vpop.eup %3732 }
 0x23f   : > { %v3735_v56 = vpop.eup %3734  ;;  %v6054_v40 = vmul.f32 %v3733_v32, %v6018_v15  ;;  %v6057_v47 = vmul.f32 %v3733_v32, %v6020_v23  ;;  %v6066_v13 = vmul.f32 %v3733_v32, %v6035_v18  ;;  %v6083_v0 = vmul.f32 %v3733_v32, %v2029_v48 }
 0x240   : > { %v6060_v2 = vmul.f32 %v3735_v56, %v6023_v44  ;;  %v6063_v7 = vmul.f32 %v3735_v56, %v6025_v20  ;;  %v6073_v15 = vmul.f32 %v3735_v56, %v6039_v22  ;;  %v6087_v5 = vmul.f32 %v3735_v56, %v2017_v39 }
 0x241   : > { %6706 = vst [vmem:[#allocation76_spill] sm:$0xff] %v6054_v40  ;;  %6707 = vst [vmem:[#allocation78_spill] sm:$0xff] %v6057_v47  ;;  %v2108_v4 = vmul.f32 %v6054_v40, %v6054_v40  ;;  %v2109_v24 = vmul.f32 %v6057_v47, %v6057_v47  ;;  %v2110_v36 = vmul.f32 %v6066_v13, %v6066_v13 }
 0x242   : > { %6708 = vst [vmem:[#allocation80_spill] sm:$0xff] %v6060_v2  ;;  %6709 = vst [vmem:[#allocation82_spill] sm:$0xff] %v6063_v7  ;;  %v2082_v23 = vmul.f32 %v6060_v2, %v6060_v2  ;;  %v2083_v44 = vmul.f32 %v6063_v7, %v6063_v7  ;;  %v2095_v20 = vmul.f32 %v6054_v40, %v6060_v2 }
 0x243   : > { %v2096_v18 = vmul.f32 %v6057_v47, %v6063_v7  ;;  %v2084_v22 = vmul.f32 %v6073_v15, %v6073_v15  ;;  %v2112_v43 = vadd.f32 %v2109_v24, %v2108_v4  ;;  %v2097_v27 = vmul.f32 %v6066_v13, %v6073_v15 }
 0x244   : > { %v2086_v25 = vadd.f32 %v2083_v44, %v2082_v23  ;;  %v2111_v52 = vmul.f32 %v6083_v0, %v6083_v0  ;;  %v2085_v48 = vmul.f32 %v6087_v5, %v6087_v5  ;;  %v2098_v39 = vmul.f32 %v6083_v0, %v6087_v5 }
 0x245   : > { %v2099_v29 = vadd.f32 %v2096_v18, %v2095_v20  ;;  %v2113_v46 = vadd.f32 %v2112_v43, %v2110_v36 }
 0x246   : > { %v2087_v57 = vadd.f32 %v2086_v25, %v2084_v22 }
 0x247   : > { %v2100_v9 = vadd.f32 %v2099_v29, %v2097_v27  ;;  %v2114_v11 = vadd.f32 %v2113_v46, %v2111_v52  ;;  %v6109_v29 = vpop.permute.xlu1 %2226 }
 0x248   : > { %v2088_v35 = vadd.f32 %v2087_v57, %v2085_v48 }
 0x249   : > { %v2101_v54 = vadd.f32 %v2100_v9, %v2098_v39  ;;  %v2115_v61 = vrot.slane %v2114_v11, 4 }
 0x24a   : > { %v2089_v8 = vrot.slane %v2088_v35, 4 }
 0x24b   : > { %v2102_v21 = vrot.slane %v2101_v54, 4  ;;  %v2116_v41 = vadd.f32 %v2115_v61, %v2114_v11  ;;  %v6116_v9 = vpop.permute.xlu1 %2231 }
 0x24c   : > { %v2090_v45 = vadd.f32 %v2089_v8, %v2088_v35  ;;  %6711 = vst [vmem:[#allocation86_spill] sm:$0xff] %v6116_v9  ;;  %v6713_v8 = vld [vmem:[#allocation35_spill] sm:$0xff] }
 0x24d   : > { %v2103_v26 = vadd.f32 %v2102_v21, %v2101_v54  ;;  %v2117_v60 = vrot.slane %v2116_v41, 2  ;;  %v6712_v54 = vld [vmem:[#allocation34_spill] sm:$0xff] }
 0x24e   : > { %v2091_v62 = vrot.slane %v2090_v45, 2 }
 0x24f   : > { %v2104_v14 = vrot.slane %v2103_v26, 2  ;;  %v2118_v4 = vadd.f32 %v2117_v60, %v2116_v41  ;;  %v6717_v41 = vld [vmem:[#allocation37_spill] sm:$0xff] }
 0x250   : > { %v2092_v32 = vadd.f32 %v2091_v62, %v2090_v45  ;;  %v6716_v45 = vld [vmem:[#allocation31_spill] sm:$0xff] }
 0x251   : > { %v2105_v56 = vadd.f32 %v2104_v14, %v2103_v26  ;;  %v2119_v22 = vrot.slane %v2118_v4, 1 }
 0x252   : > { %v2093_v18 = vrot.slane %v2092_v32, 1 }
 0x253   : > { %v2106_v36 = vrot.slane %v2105_v56, 1  ;;  %v6107_v27 = vadd.f32 %v2119_v22, %v2118_v4 }
 0x254   : > { %v6103_v43 = vadd.f32 %v2093_v18, %v2092_v32  ;;  %v6718_v32 = vld [vmem:[#allocation32_spill] sm:$0xff] }
 0x255   : > { %v6105_v25 = vadd.f32 %v2106_v36, %v2105_v56 }
 0x256   : > { %v2121_v52 = vmul.f32 %v6107_v27, %v6103_v43 }
 0x257   : > { %v2122_v48 = vmul.f32 %v6105_v25, %v6105_v25 }
 0x259   : > { %v2123_v35 = vsub.f32 %v2121_v52, %v2122_v48  ;;  %v6134_v52 = vpop.permute.xlu1 %2236 }
 0x25a   : > { %6720 = vst [vmem:[#allocation88_spill] sm:$0xff] %v6134_v52 }
 0x27d   : > { %v6099_v50 = vpop.f32.mrb[2].mxu1 }
 0x27e   : > { %6710 = vst [vmem:[#allocation84_spill] sm:$0xff] %v6099_v50  ;;  %v6101_v30 = vpop.f32.mrb[3].mxu1  ;;  %v6145_v50 = vpop.permute.xlu1 %2249 }
 0x27f   : > { %v1369_v34 = vpop.f32.mrb[2].mxu0  ;;  %6721 = vst [vmem:[#allocation90_spill] sm:$0xff] %v6145_v50 }
 0x280   : > { %v2887_v12 = vmul.f32 -1.442695, %v1369_v34  ;;  %v1371_v16 = vpop.f32.mrb[3].mxu0  ;;  %v6714_v34 = vld [vmem:[#allocation36_spill] sm:$0xff] }
 0x281   : > { %v2888_v58 = vmul.f32 -1.442695, %v1371_v16  ;;  %v6715_v16 = vld [vmem:[#allocation30_spill] sm:$0xff] }
 0x282   : > { %3736 = vpow2.f32 %v2887_v12 }
 0x283   : > { %3738 = vpow2.f32 %v2888_v58 }
 0x28c   : > { %v3737_v24 = vpop.eup %3736 }
 0x28d   : > { %v3739_v23 = vpop.eup %3738  ;;  %v1380_v44 = vadd.f32 1.0, %v3737_v24 }
 0x28e   : > { %v1381_v20 = vadd.f32 1.0, %v3739_v23  ;;  %v6719_v23 = vld [vmem:[#allocation33_spill] sm:$0xff] }
 0x28f   : > { %3740 = vrcp.f32 %v1380_v44 }
 0x290   : > { %3742 = vrcp.f32 %v1381_v20 }
 0x291   : > { %3744 = vrcp.f32 %v2123_v35 }
 0x299   : > { %v3741_v46 = vpop.eup %3740 }
 0x29a   : > { %v3743_v57 = vpop.eup %3742  ;;  %v2142_v39 = vrot.slane %v3741_v46, %v6682_v3 }
 0x29b   : > { %v2146_v11 = vrot.slane %v3743_v57, %v6682_v3 }
 0x29c   : > { %v2147_v61 = vmul.f32 %v2142_v39, %v6712_v54  ;;  %v2149_v21 = vmul.f32 %v2142_v39, %v6713_v8  ;;  %v2151_v12 = vmul.f32 %v2142_v39, %v6714_v34  ;;  %v2153_v62 = vmul.f32 %v2142_v39, %v6717_v41 }
 0x29d   : > { %v2148_v58 = vmul.f32 %v2146_v11, %v6715_v16  ;;  %v2150_v26 = vmul.f32 %v2146_v11, %v6716_v45  ;;  %v2152_v56 = vmul.f32 %v2146_v11, %v6718_v32  ;;  %v2154_v44 = vmul.f32 %v2146_v11, %v6719_v23 }
 0x29e   : > { %v2155_v14 = vmul.f32 %v2147_v61, %v6060_v2  ;;  %v2157_v60 = vmul.f32 %v2149_v21, %v6063_v7  ;;  %v2181_v4 = vmul.f32 %v2147_v61, %v6054_v40  ;;  %v2183_v24 = vmul.f32 %v2149_v21, %v6057_v47 }
 0x29f   : > { %v2159_v20 = vmul.f32 %v2151_v12, %v6073_v15  ;;  %v2156_v36 = vmul.f32 %v2148_v58, %v6060_v2  ;;  %v2158_v22 = vmul.f32 %v2150_v26, %v6063_v7  ;;  %v2185_v48 = vmul.f32 %v2151_v12, %v6066_v13 }
 0x2a0   : > { %v2163_v18 = vadd.f32 %v2157_v60, %v2155_v14  ;;  %v2189_v46 = vadd.f32 %v2183_v24, %v2181_v4  ;;  %v2182_v57 = vmul.f32 %v2148_v58, %v6054_v40  ;;  %v2184_v39 = vmul.f32 %v2150_v26, %v6057_v47 }
 0x2a1   : > { %v2161_v61 = vmul.f32 %v2153_v62, %v6087_v5  ;;  %v2160_v11 = vmul.f32 %v2152_v56, %v6073_v15  ;;  %v2172_v35 = vadd.f32 %v2158_v22, %v2156_v36  ;;  %v2187_v14 = vmul.f32 %v2153_v62, %v6083_v0  ;;  %v3745_v22 = vpop.eup %3744 }
 0x2a2   : > { %v2164_v21 = vadd.f32 %v2163_v18, %v2159_v20  ;;  %v2186_v60 = vmul.f32 %v2152_v56, %v6066_v13  ;;  %v2198_v7 = vadd.f32 %v2184_v39, %v2182_v57  ;;  %v2190_v2 = vadd.f32 %v2189_v46, %v2185_v48 }
 0x2a3   : > { %v2162_v3 = vmul.f32 %v2154_v44, %v6087_v5  ;;  %v2173_v4 = vadd.f32 %v2172_v35, %v2160_v11  ;;  %v2188_v58 = vmul.f32 %v2154_v44, %v6083_v0  ;;  %v2127_v48 = vsub.f32 0.0, %v6105_v25 }
 0x2a4   : > { %v2165_v12 = vadd.f32 %v2164_v21, %v2161_v61  ;;  %v2191_v24 = vadd.f32 %v2190_v2, %v2187_v14  ;;  %v2199_v26 = vadd.f32 %v2198_v7, %v2186_v60  ;;  %v6148_v7 = vpop.permute.xlu1 %2254  ;;  %v6151_v21 = vmul.f32 %v3745_v22, %v6107_v27 }
 0x2a5   : > { %v2174_v40 = vadd.f32 %v2173_v4, %v2162_v3  ;;  %6722 = vst [vmem:[#allocation92_spill] sm:$0xff] %v6148_v7  ;;  %v6156_v25 = vmul.f32 %v3745_v22, %v6103_v43 }
 0x2a6   : > { %v2166_v47 = vrot.slane %v2165_v12, 4  ;;  %v2192_v36 = vrot.slane %v2191_v24, 4  ;;  %v2200_v20 = vadd.f32 %v2199_v26, %v2188_v58 }
 0x2a7   : > { %v2175_v62 = vrot.slane %v2174_v40, 4 }
 0x2a8   : > { %v2167_v18 = vadd.f32 %v2166_v47, %v2165_v12  ;;  %v2193_v56 = vadd.f32 %v2192_v36, %v2191_v24  ;;  %v2201_v57 = vrot.slane %v2200_v20, 4  ;;  %v6153_v47 = vmul.f32 %v3745_v22, %v2127_v48  ;;  %v6160_v27 = vpop.permute.xlu1 %2259 }
 0x2a9   : > { %v2176_v39 = vadd.f32 %v2175_v62, %v2174_v40  ;;  %6723 = vst [vmem:[#allocation3_spill] sm:$0xff] %v6160_v27 }
 0x2aa   : > { %v2168_v46 = vrot.slane %v2167_v18, 2  ;;  %v2194_v61 = vrot.slane %v2193_v56, 2  ;;  %v2202_v11 = vadd.f32 %v2201_v57, %v2200_v20 }
 0x2ab   : > { %v2177_v2 = vrot.slane %v2176_v39, 2 }
 0x2ac   : > { %v2169_v44 = vadd.f32 %v2168_v46, %v2167_v18  ;;  %v2195_v3 = vadd.f32 %v2194_v61, %v2193_v56  ;;  %v2203_v35 = vrot.slane %v2202_v11, 2 }
 0x2ad   : > { %v2178_v60 = vadd.f32 %v2177_v2, %v2176_v39 }
 0x2ae   : > { %v2170_v14 = vrot.slane %v2169_v44, 1  ;;  %v2196_v12 = vrot.slane %v2195_v3, 1  ;;  %v2204_v4 = vadd.f32 %v2203_v35, %v2202_v11  ;;  %v6168_v11 = vpop.permute.xlu0 %2221 }
 0x2af   : > { %v2179_v58 = vrot.slane %v2178_v60, 1 }
 0x2b0   : > { %v2171_v40 = vadd.f32 %v2170_v14, %v2169_v44  ;;  %v2197_v24 = vadd.f32 %v2196_v12, %v2195_v3  ;;  %v2205_v26 = vrot.slane %v2204_v4, 1 }
 0x2b1   : > { %v2180_v36 = vadd.f32 %v2179_v58, %v2178_v60 }
 0x2b2   : > { %v2207_v20 = vmul.f32 %v2171_v40, %v6151_v21  ;;  %v2213_v18 = vmul.f32 %v2171_v40, %v6153_v47  ;;  %v2206_v62 = vadd.f32 %v2205_v26, %v2204_v4  ;;  %v2209_v56 = vmul.f32 %v2197_v24, %v6153_v47  ;;  %v6176_v40 = vpop.permute.xlu1 %2264 }
 0x2b3   : > { %v2215_v57 = vmul.f32 %v2197_v24, %v6156_v25  ;;  %v2208_v48 = vmul.f32 %v2180_v36, %v6151_v21  ;;  %v2214_v43 = vmul.f32 %v2180_v36, %v6153_v47 }
 0x2b4   : > { %v2210_v22 = vmul.f32 %v2206_v62, %v6153_v47  ;;  %v2211_v46 = vadd.f32 %v2209_v56, %v2207_v20  ;;  %v2216_v39 = vmul.f32 %v2206_v62, %v6156_v25 }
 0x2b5   : > { %v2217_v61 = vadd.f32 %v2215_v57, %v2213_v18 }
 0x2b6   : > { %v2212_v44 = vadd.f32 %v2210_v22, %v2208_v48  ;;  %v2241_v2 = vmul.f32 %v6109_v29, %v2211_v46  ;;  %v2243_v3 = vmul.f32 %v6116_v9, %v2211_v46  ;;  %v2245_v35 = vmul.f32 %v6134_v52, %v2211_v46 }
 0x2b7   : > { %v2218_v14 = vadd.f32 %v2216_v39, %v2214_v43  ;;  %v2267_v60 = vmul.f32 %v6145_v50, %v2217_v61  ;;  %v2269_v12 = vmul.f32 %v6148_v7, %v2217_v61  ;;  %v2271_v4 = vmul.f32 %v6160_v27, %v2217_v61 }
 0x2b8   : > { %v2242_v58 = vmul.f32 %v6109_v29, %v2212_v44  ;;  %v2244_v24 = vmul.f32 %v6116_v9, %v2212_v44  ;;  %v2246_v26 = vmul.f32 %v6134_v52, %v2212_v44  ;;  %v2239_v36 = vmul.f32 %v6168_v11, %v2211_v46 }
 0x2b9   : > { %v2268_v20 = vmul.f32 %v6145_v50, %v2218_v14  ;;  %v2270_v18 = vmul.f32 %v6148_v7, %v2218_v14  ;;  %v2277_v62 = vadd.f32 %v2269_v12, %v2241_v2  ;;  %v2272_v56 = vmul.f32 %v6160_v27, %v2218_v14 }
 0x2ba   : > { %v2279_v57 = vadd.f32 %v2271_v4, %v2243_v3  ;;  %v2240_v48 = vmul.f32 %v6168_v11, %v2212_v44  ;;  %v2275_v43 = vadd.f32 %v2267_v60, %v2239_v36  ;;  %v2273_v22 = vmul.f32 %v6176_v40, %v2217_v61  ;;  %v6741_v36 = vld [vmem:[#allocation107_spill] sm:$0xff] }
 0x2bb   : > { %v2278_v39 = vadd.f32 %v2270_v18, %v2242_v58  ;;  %v2285_v46 = vadd.f32 %v2277_v62, %v6713_v8  ;;  %v2280_v52 = vadd.f32 %v2272_v56, %v2244_v24  ;;  %v2274_v50 = vmul.f32 %v6176_v40, %v2218_v14  ;;  %v6740_v24 = vld [vmem:[#allocation105_spill] sm:$0xff]  ;;  %v6743_v56 = vld [vmem:[#allocation106_spill] sm:$0xff] }
 0x2bc   : > { %v2287_v2 = vadd.f32 %v2279_v57, %v6714_v34  ;;  %v2276_v12 = vadd.f32 %v2268_v20, %v2240_v48  ;;  %v2283_v27 = vadd.f32 %v2275_v43, %v6712_v54  ;;  %v2281_v7 = vadd.f32 %v2273_v22, %v2245_v35  ;;  %v6742_v18 = vld [vmem:[#allocation109_spill] sm:$0xff]  ;;  %v6744_v48 = vld [vmem:[#allocation108_spill] sm:$0xff]  ;;  %v6745_v22 = vld [vmem:[#allocation111_spill] sm:$0xff] }
 0x2bd   : > { %v2286_v9 = vadd.f32 %v2278_v39, %v6716_v45  ;;  %2293 = vst [vmem:[%s451_s24 + $0x10] sm:$0xff] %v2285_v46  ;;  %v2288_v44 = vadd.f32 %v2280_v52, %v6718_v32  ;;  %v2282_v3 = vadd.f32 %v2274_v50, %v2246_v26  ;;  %v1567_v32 = vmax.f32 %v6101_v30, 0.0  ;;  %v6724_v50 = vld [vmem:[#allocation48_spill] sm:$0xff] }
 0x2be   : > { %2295 = vst [vmem:[%s451_s24 + $0x20] sm:$0xff] %v2287_v2  ;;  %v2284_v61 = vadd.f32 %v2276_v12, %v6715_v16  ;;  %2291 = vst [vmem:[%s451_s24] sm:$0xff] %v2283_v27  ;;  %v2289_v8 = vadd.f32 %v2281_v7, %v6717_v41  ;;  %v6726_v30 = vld [vmem:[#allocation52_spill] sm:$0xff]  ;;  %v6737_v41 = vld [vmem:[#allocation74_spill] sm:$0xff] }
 0x2bf   : > { %2294 = vst [vmem:[%s451_s24 + $0x18] sm:$0xff] %v2286_v9  ;;  %2296 = vst [vmem:[%s451_s24 + $0x28] sm:$0xff] %v2288_v44  ;;  %v2290_v34 = vadd.f32 %v2282_v3, %v6719_v23  ;;  %v6735_v9 = vld [vmem:[#allocation70_spill] sm:$0xff]  ;;  %v6736_v16 = vld [vmem:[#allocation72_spill] sm:$0xff] }
 0x2c0   : > { %2292 = vst [vmem:[%s451_s24 + $0x8] sm:$0xff] %v2284_v61  ;;  %2297 = vst [vmem:[%s451_s24 + $0x30] sm:$0xff] %v2289_v8  ;;  %v6738_v23 = vld [vmem:[#allocation84_spill] sm:$0xff]  ;;  %v6747_v12 = vld [vmem:[#allocation82_spill] sm:$0xff] }
 0x2c1   : > { %2298 = vst [vmem:[%s451_s24 + $0x38] sm:$0xff] %v2290_v34  ;;  %v1566_v52 = vmax.f32 %v6738_v23, 0.0  ;;  %v6746_v46 = vld [vmem:[#allocation80_spill] sm:$0xff]  ;;  %v6748_v3 = vld [vmem:[#allocation110_spill] sm:$0xff] }
 0x2c2   : > { %v6749_v8 = vld [vmem:[#allocation76_spill] sm:$0xff] }
 0x2ff   : > { %v1705_v54 = vpop.f32.mrb[4].mxu0 }
 0x300   : > { %v1707_v35 = vpop.f32.mrb[5].mxu0  ;;  %v1710_v14 = vmax.f32 %v1705_v54, 0.0  ;;  %v6750_v54 = vld [vmem:[#allocation78_spill] sm:$0xff] }
 0x301   : > { %v1711_v45 = vmax.f32 %v1707_v35, 0.0 }
 0x303   : > { %1776 = vmatprep.mubr.f32.mxu1 %v1711_v45  ;;  %v6751_v45 = vld [vmem:[#allocation112_spill] sm:$0xff] }
 0x304   : > { %1777 = vmatmul.mubr.f32.vlgmr.msra.gmra.mrb[4].mxu1 %v1710_v14 }
 0x305   : > { %3604 = vmatpush1.bf16.msra.mxu1 %v5577_v42  ;;  %1847 = vmatprep.mubr.f32.mxu1 %v1567_v32  ;;  %v6725_v42 = vld [vmem:[#allocation50_spill] sm:$0xff] }
 0x306   : > { %3606 = vmatprep.subr.bf16.mxu1 %v5581_v6  ;;  %v6727_v6 = vld [vmem:[#allocation54_spill] sm:$0xff] }
 0x309   : > { %3608 = vmatpush1.bf16.msra.mxu1 %v5600_v38  ;;  %v6728_v38 = vld [vmem:[#allocation56_spill] sm:$0xff] }
 0x30a   : > { %3610 = vmatprep.subr.bf16.mxu1 %v5603_v51  ;;  %v6729_v51 = vld [vmem:[#allocation58_spill] sm:$0xff] }
 0x30d   : > { %3612 = vmatpush1.bf16.msra.mxu1 %v5620_v17  ;;  %v6730_v17 = vld [vmem:[#allocation60_spill] sm:$0xff] }
 0x30e   : > { %3614 = vmatprep.subr.bf16.mxu1 %v5623_v63  ;;  %v6731_v63 = vld [vmem:[#allocation62_spill] sm:$0xff] }
 0x311   : > { %3616 = vmatpush1.bf16.msra.mxu1 %v5640_v28  ;;  %v6732_v28 = vld [vmem:[#allocation64_spill] sm:$0xff] }
 0x312   : > { %3618 = vmatprep.subr.bf16.mxu1 %v5643_v37  ;;  %v6733_v37 = vld [vmem:[#allocation66_spill] sm:$0xff] }
 0x315   : > { %3620 = vmatpush1.bf16.msra.mxu1 %v5660_v55  ;;  %v6734_v55 = vld [vmem:[#allocation68_spill] sm:$0xff] }
 0x316   : > { %3622 = vmatprep.subr.bf16.mxu1 %v6724_v50 }
 0x319   : > { %3624 = vmatpush1.bf16.msra.mxu1 %v6725_v42 }
 0x31a   : > { %3626 = vmatprep.subr.bf16.mxu1 %v6726_v30 }
 0x31d   : > { %3628 = vmatpush1.bf16.msra.mxu1 %v6727_v6 }
 0x31e   : > { %3630 = vmatprep.subr.bf16.mxu1 %v6728_v38 }
 0x321   : > { %3632 = vmatpush1.bf16.msra.mxu1 %v6729_v51 }
 0x322   : > { %3634 = vmatprep.subr.bf16.mxu1 %v6730_v17 }
 0x325   : > { %3636 = vmatpush1.bf16.msra.mxu1 %v6731_v63 }
 0x326   : > { %3638 = vmatprep.subr.bf16.mxu1 %v6732_v28 }
 0x329   : > { %3640 = vmatpush1.bf16.msra.mxu1 %v6733_v37 }
 0x32a   : > { %3642 = vmatprep.subr.bf16.mxu1 %v6734_v55 }
 0x32d   : > { %3644 = vmatpush1.bf16.msra.mxu1 %v6735_v9 }
 0x32e   : > { %3646 = vmatprep.subr.bf16.mxu1 %v6736_v16 }
 0x331   : > { %3648 = vmatpush1.bf16.msra.mxu1 %v5800_v31 }
 0x332   : > { %3650 = vmatprep.subr.bf16.mxu1 %v5803_v49 }
 0x335   : > { %3652 = vmatpush1.bf16.msra.mxu1 %v5825_v10 }
 0x336   : > { %3654 = vmatprep.subr.bf16.mxu1 %v6737_v41 }
 0x339   : > { %3656 = vmatpush1.bf16.msra.mxu1 %v5848_v59 }
 0x33a   : > { %3658 = vmatprep.subr.bf16.mxu1 %v5854_v53 }
 0x33d   : > { %3660 = vmatpush1.bf16.msra.mxu1 %v5871_v19 }
 0x33e   : > { %3662 = vmatprep.subr.bf16.mxu1 %v5877_v33  ;;  %v6739_v33 = vld [vmem:[#allocation25_spill] sm:$0xff] }
 0x341   : > { %3664 = vmatpush1.bf16.msra.mxu1 %v5888_v1 }
 0x344   : > { %1848 = vmatmul.mubr.f32.vlgmr.msra.gmra.mrb[4].mxu1 %v1566_v52 }
 0x417   : > { %v1849_v31 = vpop.f32.mrb[4].mxu1 }
 0x418   : > { %v2889_v7 = vmul.f32 -1.442695, %v1849_v31  ;;  %v1851_v49 = vpop.f32.mrb[5].mxu1 }
 0x419   : > { %v2890_v27 = vmul.f32 -1.442695, %v1851_v49 }
 0x41a   : > { %3746 = vpow2.f32 %v2889_v7 }
 0x41b   : > { %3748 = vpow2.f32 %v2890_v27 }
 0x424   : > { %v3747_v10 = vpop.eup %3746 }
 0x425   : > { %v3749_v60 = vpop.eup %3748  ;;  %v1860_v59 = vadd.f32 1.0, %v3747_v10 }
 0x426   : > { %v1861_v4 = vadd.f32 1.0, %v3749_v60 }
 0x427   : > { %3750 = vrcp.f32 %v1860_v59 }
 0x428   : > { %3752 = vrcp.f32 %v1861_v4 }
 0x431   : > { %v3751_v19 = vpop.eup %3750 }
 0x432   : > { %v3753_v53 = vpop.eup %3752  ;;  %v2302_v58 = vrot.slane %v3751_v19, %v6739_v33 }
 0x433   : > { %v2306_v1 = vrot.slane %v3753_v53, %v6739_v33 }
 0x434   : > { %v2307_v26 = vmul.f32 %v2302_v58, %v6740_v24  ;;  %v2309_v20 = vmul.f32 %v2302_v58, %v6741_v36  ;;  %v2311_v62 = vmul.f32 %v2302_v58, %v6742_v18  ;;  %v2313_v39 = vmul.f32 %v2302_v58, %v6745_v22 }
 0x435   : > { %v2308_v57 = vmul.f32 %v2306_v1, %v6743_v56  ;;  %v2310_v43 = vmul.f32 %v2306_v1, %v6744_v48  ;;  %v2312_v61 = vmul.f32 %v2306_v1, %v6748_v3  ;;  %v2314_v14 = vmul.f32 %v2306_v1, %v6751_v45 }
 0x436   : > { %v2315_v2 = vmul.f32 %v2307_v26, %v6746_v46  ;;  %v2317_v44 = vmul.f32 %v2309_v20, %v6747_v12  ;;  %v2341_v34 = vmul.f32 %v2307_v26, %v6749_v8  ;;  %v2343_v35 = vmul.f32 %v2309_v20, %v6750_v54 }
 0x437   : > { %v2319_v32 = vmul.f32 %v2311_v62, %v6073_v15  ;;  %v2316_v42 = vmul.f32 %v2308_v57, %v6746_v46  ;;  %v2318_v30 = vmul.f32 %v2310_v43, %v6747_v12  ;;  %v2345_v6 = vmul.f32 %v2311_v62, %v6066_v13 }
 0x438   : > { %v2323_v50 = vadd.f32 %v2317_v44, %v2315_v2  ;;  %v2349_v38 = vadd.f32 %v2343_v35, %v2341_v34  ;;  %v2342_v51 = vmul.f32 %v2308_v57, %v6749_v8  ;;  %v2344_v17 = vmul.f32 %v2310_v43, %v6750_v54 }
 0x439   : > { %v2321_v63 = vmul.f32 %v2313_v39, %v6087_v5  ;;  %v2320_v37 = vmul.f32 %v2312_v61, %v6073_v15  ;;  %v2332_v55 = vadd.f32 %v2318_v30, %v2316_v42  ;;  %v2347_v9 = vmul.f32 %v2313_v39, %v6083_v0 }
 0x43a   : > { %v2324_v28 = vadd.f32 %v2323_v50, %v2319_v32  ;;  %v2350_v16 = vadd.f32 %v2349_v38, %v2345_v6  ;;  %v2346_v41 = vmul.f32 %v2312_v61, %v6066_v13  ;;  %v2358_v23 = vadd.f32 %v2344_v17, %v2342_v51 }
 0x43b   : > { %v2322_v31 = vmul.f32 %v2314_v14, %v6087_v5  ;;  %v2333_v7 = vadd.f32 %v2332_v55, %v2320_v37  ;;  %v2348_v27 = vmul.f32 %v2314_v14, %v6083_v0  ;;  %v6752_v37 = vld [vmem:[#allocation86_spill] sm:$0xff] }
 0x43c   : > { %v2325_v52 = vadd.f32 %v2324_v28, %v2321_v63  ;;  %v2351_v49 = vadd.f32 %v2350_v16, %v2347_v9  ;;  %v2359_v10 = vadd.f32 %v2358_v23, %v2346_v41  ;;  %v6753_v9 = vld [vmem:[#allocation88_spill] sm:$0xff]  ;;  %v6754_v41 = vld [vmem:[#allocation90_spill] sm:$0xff] }
 0x43d   : > { %v2334_v59 = vadd.f32 %v2333_v7, %v2322_v31  ;;  %v6756_v31 = vld [vmem:[#allocation3_spill] sm:$0xff] }
 0x43e   : > { %v2326_v60 = vrot.slane %v2325_v52, 4  ;;  %v2352_v4 = vrot.slane %v2351_v49, 4  ;;  %v2360_v19 = vadd.f32 %v2359_v10, %v2348_v27 }
 0x43f   : > { %v2335_v53 = vrot.slane %v2334_v59, 4 }
 0x440   : > { %v2327_v15 = vadd.f32 %v2326_v60, %v2325_v52  ;;  %v2353_v33 = vadd.f32 %v2352_v4, %v2351_v49  ;;  %v2361_v58 = vrot.slane %v2360_v19, 4 }
 0x441   : > { %v2336_v26 = vadd.f32 %v2335_v53, %v2334_v59 }
 0x442   : > { %v2328_v1 = vrot.slane %v2327_v15, 2  ;;  %v2354_v13 = vrot.slane %v2353_v33, 2  ;;  %v2362_v20 = vadd.f32 %v2361_v58, %v2360_v19 }
 0x443   : > { %v2337_v57 = vrot.slane %v2336_v26, 2 }
 0x444   : > { %v2329_v62 = vadd.f32 %v2328_v1, %v2327_v15  ;;  %v2355_v5 = vadd.f32 %v2354_v13, %v2353_v33  ;;  %v2363_v43 = vrot.slane %v2362_v20, 2 }
 0x445   : > { %v2338_v46 = vadd.f32 %v2337_v57, %v2336_v26 }
 0x446   : > { %v2330_v39 = vrot.slane %v2329_v62, 1  ;;  %v2356_v0 = vrot.slane %v2355_v5, 1  ;;  %v2364_v2 = vadd.f32 %v2363_v43, %v2362_v20 }
 0x447   : > { %v2339_v44 = vrot.slane %v2338_v46, 1 }
 0x448   : > { %v2331_v12 = vadd.f32 %v2330_v39, %v2329_v62  ;;  %v2357_v61 = vadd.f32 %v2356_v0, %v2355_v5  ;;  %v2365_v8 = vrot.slane %v2364_v2, 1 }
 0x449   : > { %v2340_v35 = vadd.f32 %v2339_v44, %v2338_v46 }
 0x44a   : > { %v2367_v34 = vmul.f32 %v2331_v12, %v6151_v21  ;;  %v2373_v54 = vmul.f32 %v2331_v12, %v6153_v47  ;;  %v2369_v14 = vmul.f32 %v2357_v61, %v6153_v47  ;;  %v2375_v32 = vmul.f32 %v2357_v61, %v6156_v25 }
 0x44b   : > { %v2366_v50 = vadd.f32 %v2365_v8, %v2364_v2  ;;  %v2368_v42 = vmul.f32 %v2340_v35, %v6151_v21  ;;  %v2374_v30 = vmul.f32 %v2340_v35, %v6153_v47  ;;  %v6755_v21 = vld [vmem:[#allocation92_spill] sm:$0xff] }
 0x44c   : > { %v2371_v6 = vadd.f32 %v2369_v14, %v2367_v34  ;;  %v2377_v38 = vadd.f32 %v2375_v32, %v2373_v54 }
 0x44d   : > { %v2370_v51 = vmul.f32 %v2366_v50, %v6153_v47  ;;  %v2376_v17 = vmul.f32 %v2366_v50, %v6156_v25 }
 0x44e   : > { %v2379_v63 = vmul.f32 %v2371_v6, %v6168_v11  ;;  %v2381_v28 = vmul.f32 %v2371_v6, %v6109_v29  ;;  %v2383_v55 = vmul.f32 %v2371_v6, %v6752_v37  ;;  %v2385_v16 = vmul.f32 %v2371_v6, %v6753_v9 }
 0x44f   : > { %v2387_v23 = vmul.f32 %v2377_v38, %v6754_v41  ;;  %v2389_v52 = vmul.f32 %v2377_v38, %v6755_v21  ;;  %v2391_v7 = vmul.f32 %v2377_v38, %v6756_v31  ;;  %v2393_v49 = vmul.f32 %v2377_v38, %v6176_v40 }
 0x450   : > { %v2372_v47 = vadd.f32 %v2370_v51, %v2368_v42  ;;  %v2378_v27 = vadd.f32 %v2376_v17, %v2374_v30 }
 0x451   : > { %v2395_v10 = vadd.f32 %v2387_v23, %v2379_v63  ;;  %v2397_v25 = vadd.f32 %v2389_v52, %v2381_v28  ;;  %v2399_v60 = vadd.f32 %v2391_v7, %v2383_v55  ;;  %v2401_v59 = vadd.f32 %v2393_v49, %v2385_v16 }
 0x452   : > { %v2380_v4 = vmul.f32 %v2372_v47, %v6168_v11  ;;  %v2382_v19 = vmul.f32 %v2372_v47, %v6109_v29  ;;  %v2384_v15 = vmul.f32 %v2372_v47, %v6752_v37  ;;  %v2386_v53 = vmul.f32 %v2372_v47, %v6753_v9 }
 0x453   : > { %v2403_v33 = vadd.f32 %v2395_v10, %v6740_v24  ;;  %v2405_v58 = vadd.f32 %v2397_v25, %v6741_v36  ;;  %v2407_v1 = vadd.f32 %v2399_v60, %v6742_v18  ;;  %v2409_v26 = vadd.f32 %v2401_v59, %v6745_v22 }
 0x454   : > { %v2388_v13 = vmul.f32 %v2378_v27, %v6754_v41  ;;  %v2390_v20 = vmul.f32 %v2378_v27, %v6755_v21  ;;  %v2392_v11 = vmul.f32 %v2378_v27, %v6756_v31  ;;  %v2394_v29 = vmul.f32 %v2378_v27, %v6176_v40 }
 0x455   : > { %2411 = vst [vmem:[%s460_s26] sm:$0xff] %v2403_v33  ;;  %2413 = vst [vmem:[%s460_s26 + $0x10] sm:$0xff] %v2405_v58 }
 0x456   : > { %2415 = vst [vmem:[%s460_s26 + $0x20] sm:$0xff] %v2407_v1  ;;  %2417 = vst [vmem:[%s460_s26 + $0x30] sm:$0xff] %v2409_v26  ;;  %v2396_v62 = vadd.f32 %v2388_v13, %v2380_v4  ;;  %v2398_v24 = vadd.f32 %v2390_v20, %v2382_v19  ;;  %v2400_v57 = vadd.f32 %v2392_v11, %v2384_v15 }
 0x457   : > { %v2402_v36 = vadd.f32 %v2394_v29, %v2386_v53 }
 0x458   : > { %v2404_v18 = vadd.f32 %v2396_v62, %v6743_v56  ;;  %v2406_v22 = vadd.f32 %v2398_v24, %v6744_v48  ;;  %v2408_v5 = vadd.f32 %v2400_v57, %v6748_v3 }
 0x459   : > { %v2410_v43 = vadd.f32 %v2402_v36, %v6751_v45 }
 0x45a   : > { %2412 = vst [vmem:[%s460_s26 + $0x8] sm:$0xff] %v2404_v18  ;;  %2414 = vst [vmem:[%s460_s26 + $0x18] sm:$0xff] %v2406_v22 }
 0x45b   : > { %2416 = vst [vmem:[%s460_s26 + $0x28] sm:$0xff] %v2408_v5  ;;  %2418 = vst [vmem:[%s460_s26 + $0x38] sm:$0xff] %v2410_v43 }
 0x45c PF: > { %s21_s15 = sadd.s32 1, %s3800_s15   ;;  %s6757_s11 = smov %s3792_s13 }
 0x45d   : > { %p18_p7 = scmp.ge.s32.totalorder %s21_s15, 10   ;;  %s6758_s12 = smov %s3796_s14 }
 0x45e   : > { %s6759_s13 = smov %s6762_s7  ;;  %s6760_s14 = smov %s6766_s16 }
 0x45f   :  { %20 = sbr.rel (!%p18_p7) target bundleno = 3 (0x3), region = 108 }

// kernel: restnet_forward.4
= control target key start
LH: loop header
LB: loop body
LE: loop exit
PB: predicated region body
PF: predicated region fallthrough
CT: control target
= control target key end

     0   :  { %s3166_s11 = smov 0   ;;  %s3168_s12 = smov 0   ;;  %s4335_s0 = inlined_call_operand.vmem [shape: f32[6,2,64,64], index: 0, kind: input, shape index: {}]   ;;  %s4336_s1 = inlined_call_operand.vmem [shape: f32[6,2,64,64], index: 1, kind: input, shape index: {}]   ;;  %s4337_s2 = inlined_call_operand.vmem [shape: f32[2,1,64], index: 2, kind: input, shape index: {}]   ;;  %s4338_s3 = inlined_call_operand.vmem [shape: f32[2,1,64], index: 3, kind: input, shape index: {}]   ;;  %s4339_s4 = inlined_call_operand.vmem [shape: f32[2,64,1], index: 4, kind: input, shape index: {}]   ;;  %s4340_s5 = inlined_call_operand.vmem [shape: f32[2,2,64,64], index: 5, kind: input, shape index: {}]   ;;  %s4341_s6 = inlined_call_operand.vmem [shape: f32[2,64,64], index: 6, kind: input, shape index: {}]   ;;  %s4342_s7 = inlined_call_operand.<no memory space> [shape: f32[1], index: 7, kind: input, shape index: {}]   ;;  %s4343_s8 = inlined_call_operand.vmem [shape: f32[6,2,64,64], index: 8, kind: output, shape index: {0}]   ;;  %s4344_s9 = inlined_call_operand.vmem [shape: f32[6,2,64,64], index: 9, kind: output, shape index: {1}]  }
   0x1   :  { %15 = sst [smem:[#allocation2]] %s4342_s7  ;;  %s3170_s13 = smov 0  }
   0x2   :  { %s3172_s14 = smov 0   ;;  %s3174_s15 = smov 0  }
   0x3 LB: > { %s30_s7 = sadd.s32 1, %s3099_s13  ;;  %s33_s16 = sadd.s32 1, %s3103_s14  ;;  %s3107_s15 = sphi %s3174_s15, %s21_s15   ;;  %s3103_s14 = sphi %s3172_s14, %s4405_s14   ;;  %s3099_s13 = sphi %s3170_s13, %s4404_s13   ;;  %s3095_s12 = sphi %s3168_s12, %s4403_s12   ;;  %s3091_s11 = sphi %s3166_s11, %s4402_s11  }
   0x4   : > { %p31_p0 = scmp.ge.s32.totalorder %s30_s7, 2  ;;  %p2436_p1 = scmp.ge.s32.totalorder %s3107_s15, 1 }
   0x5   : > { %p345_p2 = scmp.lt.s32.totalorder %s3107_s15, 13 }
   0x6   : > { %s4407_s7 = smov (%p31_p0, %s30_s7), 0  ;;  %s4409_s16 = smov (!%p31_p0, %s33_s16), %s3103_s14 }
   0x7   : > { %p346_p3 = pnand %p2436_p1, %p345_p2  ;;  %p35_p4 = scmp.ge.s32.totalorder %s4409_s16, 6 }
   0x9   : > { %s4411_s16 = smov (%p35_p4, %s4409_s16), 0  ;;  %349 = sbr.rel (%p346_p3) target bundleno = 849 (0x351), region = 52 }
  0x10   : > { %v2457_v0 = vld [vmem:[%s4340_s5 + $0x80] sm:$0xff]  ;;  %v2458_v1 = vld [vmem:[%s4340_s5 + $0x88] sm:$0xff]  ;;  %v474_v3 = vlaneseq  ;;  %v4345_v4 = vmov 0.0|0.0   ;;  %v2459_v7 = vld [vmem:[%s4340_s5 + $0x90] sm:$0xff]  ;;  %p413_p5 = scmp.lt.s32.totalorder %s3095_s12, 5  ;;  %p415_p6 = scmp.lt.s32.totalorder %s3091_s11, 1 }
  0x11   : > { %v2465_v2 = vld [vmem:[%s4340_s5 + $0xc0] sm:$0xff]  ;;  %2841 = vmatprep.subr.bf16.mxu0 %v4345_v4  ;;  %2865 = vmatprep.subr.bf16.mxu1 %v4345_v4  ;;  %v3211_v5 = vpack.c.bf16 %v2458_v1, %v2457_v0  ;;  %v2466_v6 = vld [vmem:[%s4340_s5 + $0xc8] sm:$0xff]  ;;  %v2460_v8 = vld [vmem:[%s4340_s5 + $0x98] sm:$0xff]  ;;  %vm3110_vm0 = vmmov 0   ;;  %v4347_v12 = vmov 0.0   ;;  %vm1521_vm1 = vcmask 516096  }
  0x12   : > { %v3224_v9 = vpack.c.bf16 %v2466_v6, %v2465_v2  ;;  %v2467_v10 = vld [vmem:[%s4340_s5 + $0xd0] sm:$0xff]  ;;  %v2468_v11 = vld [vmem:[%s4340_s5 + $0xd8] sm:$0xff]  ;;  %2629 = vmatprep.mubr.msk.f32.mxu0 %vm3110_vm0, %v4347_v12  ;;  %2667 = vmatprep.mubr.msk.f32.mxu1 %vm3110_vm0, %v4347_v12  ;;  %v475_v13 = vshrl.u32 %v474_v3, 7  ;;  %v3237_v14 = vpack.c.bf16 %v2460_v8, %v2459_v7  ;;  %s4413_s12 = smov (!%p413_p5, %s3095_s12), 5  ;;  %v2461_v16 = vld [vmem:[%s4340_s5 + $0xa0] sm:$0xff]  ;;  %s4415_s11 = smov (!%p415_p6, %s3091_s11), 1 }
  0x13   : > { %2843 = vmatpush3.bf16.msra.mxu0 %v3211_v5  ;;  %v3242_v15 = vpack.c.bf16 %v2468_v11, %v2467_v10  ;;  %v2462_v17 = vld [vmem:[%s4340_s5 + $0xa8] sm:$0xff]  ;;  %v2469_v19 = vld [vmem:[%s4340_s5 + $0xe0] sm:$0xff]  ;;  %s2438_s26 = sshll.u32 %s4413_s12, 4  ;;  %s2437_s27 = sshll.u32 %s4415_s11, 3  ;;  %v2463_v22 = vld [vmem:[%s4340_s5 + $0xb0] sm:$0xff]  ;;  %vm553_vm2 = vcmask 523264  }
  0x14   : > { %2867 = vmatpush3.bf16.msra.mxu1 %v3224_v9  ;;  %2844 = vmatprep.subr.bf16.mxu0 %v4345_v4  ;;  %v3255_v18 = vsub.s32 0, %v475_v13  ;;  %v2470_v20 = vld [vmem:[%s4340_s5 + $0xe8] sm:$0xff]  ;;  %s433_s30 = scalar_lea.vmem %s4337_s2, %s4415_s11  ;;  %v3270_v21 = vpack.c.bf16 %v2462_v17, %v2461_v16  ;;  %v2464_v23 = vld [vmem:[%s4340_s5 + $0xb8] sm:$0xff]  ;;  %s419_s20 = sadd.s32 %s2438_s26, %s2437_s27  ;;  %v2471_v26 = vld [vmem:[%s4340_s5 + $0xf0] sm:$0xff] }
  0x15   : > { %2868 = vmatprep.subr.bf16.mxu1 %v4345_v4  ;;  %v471_v24 = vld [vmem:[%s433_s30] sm:$0x1]  ;;  %v3280_v25 = vpack.c.bf16 %v2470_v20, %v2469_v19  ;;  %v2472_v27 = vld [vmem:[%s4340_s5 + $0xf8] sm:$0xff]  ;;  %s3288_s24 = sshll.u32 %s419_s20, 3  ;;  %v3297_v30 = vpack.c.bf16 %v2464_v23, %v2463_v22  ;;  %s436_s30 = scalar_lea.vmem %s4338_s3, %s4415_s11 }
  0x16   : > { %v477_v28 = vrot.slane %v471_v24, %v3255_v18  ;;  %v1522_v29 = vsel %vm1521_vm1, %v471_v24, 0.0  ;;  %s421_s27 = scalar_lea.vmem %s4335_s0, %s3288_s24  ;;  %v3306_v34 = vpack.c.bf16 %v2472_v27, %v2471_v26  ;;  %s3374_s17 = scalar_lea.vmem %s4336_s1, %s3288_s24  ;;  %v472_v0 = vld [vmem:[%s436_s30] sm:$0x1] }
  0x17   : > { %2846 = vmatpush3.bf16.msra.mxu0 %v3237_v14  ;;  %1523 = vadd.xlane.f32.xlu0 %v1522_v29  ;;  %v3299_v31 = vld [vmem:[%s421_s27] sm:$0xff]  ;;  %v3301_v32 = vld [vmem:[%s421_s27 + $0x8] sm:$0xff]  ;;  %v3303_v33 = vld [vmem:[%s421_s27 + $0x10] sm:$0xff]  ;;  %v3391_v11 = vrot.slane %v472_v0, %v3255_v18  ;;  %v1526_v13 = vsel %vm1521_vm1, %v472_v0, 0.0  ;;  %s445_s23 = scalar_lea.vmem %s4343_s8, %s3288_s24 }
  0x18   : > { %2870 = vmatpush3.bf16.msra.mxu1 %v3242_v15  ;;  %2847 = vmatprep.subr.bf16.mxu0 %v4345_v4  ;;  %v3308_v35 = vld [vmem:[%s421_s27 + $0x18] sm:$0xff]  ;;  %v3310_v36 = vld [vmem:[%s421_s27 + $0x20] sm:$0xff]  ;;  %v3312_v37 = vld [vmem:[%s421_s27 + $0x28] sm:$0xff]  ;;  %v3315_v38 = vmul.f32 %v477_v28, %v3299_v31  ;;  %v3318_v39 = vmul.f32 %v477_v28, %v3301_v32  ;;  %v3321_v40 = vmul.f32 %v477_v28, %v3303_v33 }
  0x19   : > { %2871 = vmatprep.subr.bf16.mxu1 %v4345_v4  ;;  %v3325_v41 = vld [vmem:[%s421_s27 + $0x30] sm:$0xff]  ;;  %v3327_v42 = vld [vmem:[%s421_s27 + $0x38] sm:$0xff]  ;;  %v3330_v43 = vmul.f32 %v477_v28, %v3308_v35  ;;  %v3333_v44 = vmul.f32 %v477_v28, %v3310_v36  ;;  %v3336_v45 = vmul.f32 %v477_v28, %v3312_v37  ;;  %v463_v6 = vld [vmem:[%s3374_s17] sm:$0xff]  ;;  %s454_s27 = scalar_lea.vmem %s4344_s9, %s3288_s24 }
  0x1a   : > { %v3340_v46 = vmul.f32 %v477_v28, %v3325_v41  ;;  %v3343_v47 = vmul.f32 %v477_v28, %v3327_v42  ;;  %v577_v48 = vsel %vm553_vm2, %v3315_v38, -inf  ;;  %v578_v49 = vsel %vm553_vm2, %v3318_v39, -inf  ;;  %v464_v7 = vld [vmem:[%s3374_s17 + $0x8] sm:$0xff] }
  0x1b   : > { %2849 = vmatpush3.bf16.msra.mxu0 %v3270_v21  ;;  %v579_v50 = vsel %vm553_vm2, %v3321_v40, -inf  ;;  %v580_v51 = vsel %vm553_vm2, %v3330_v43, -inf  ;;  %v581_v52 = vsel %vm553_vm2, %v3333_v44, -inf  ;;  %v583_v53 = vsel %vm553_vm2, %v3336_v45, -inf  ;;  %1527 = vadd.xlane.f32.xlu0 %v1526_v13  ;;  %v504_v13 = vld [vmem:[%s4340_s5 + $0x18] sm:$0xff] }
  0x1c   : > { %2873 = vmatpush3.bf16.msra.mxu1 %v3280_v25  ;;  %2850 = vmatprep.subr.bf16.mxu0 %v4345_v4  ;;  %v582_v54 = vmax.f32 %v577_v48, %v581_v52  ;;  %v584_v55 = vmax.f32 %v578_v49, %v583_v53  ;;  %v585_v56 = vsel %vm553_vm2, %v3340_v46, -inf  ;;  %v587_v57 = vsel %vm553_vm2, %v3343_v47, -inf }
  0x1d   : > { %2874 = vmatprep.subr.bf16.mxu1 %v4345_v4  ;;  %v586_v58 = vmax.f32 %v579_v50, %v585_v56  ;;  %v588_v59 = vmax.f32 %v580_v51, %v587_v57  ;;  %v554_v60 = vsel %vm553_vm2, %v3315_v38, 0.0  ;;  %v555_v62 = vsel %vm553_vm2, %v3318_v39, 0.0 }
  0x1e   : > { %v589_v61 = vmax.f32 %v582_v54, %v584_v55  ;;  %v3381_v63 = vsel %vm553_vm2, %v3321_v40, 0.0  ;;  %1530 = vadd.xlane.f32.xlu1 %v554_v60  ;;  %v556_v2 = vadd.f32 %v555_v62, %v554_v60  ;;  %v3385_v3 = vsel %vm553_vm2, %v3330_v43, 0.0  ;;  %v501_v55 = vld [vmem:[%s4340_s5] sm:$0xff]  ;;  %v2450_v60 = vld [vmem:[%s4340_s5 + $0x48] sm:$0xff] }
  0x1f   : > { %2852 = vmatpush3.bf16.msra.mxu0 %v3297_v30  ;;  %v590_v1 = vmax.f32 %v586_v58, %v588_v59  ;;  %v3396_v16 = vsel %vm553_vm2, %v3333_v44, 0.0  ;;  %v1568_v17 = vsub.f32 %v3299_v31, %v3315_v38  ;;  %v3402_v22 = vmul.f32 %v3391_v11, %v463_v6  ;;  %v502_v58 = vld [vmem:[%s4340_s5 + $0x8] sm:$0xff]  ;;  %v2449_v59 = vld [vmem:[%s4340_s5 + $0x40] sm:$0xff] }
  0x20   : > { %2876 = vmatpush3.bf16.msra.mxu1 %v3306_v34  ;;  %2853 = vmatprep.subr.bf16.mxu0 %v4345_v4  ;;  %v558_v10 = vadd.f32 %v3381_v63, %v556_v2  ;;  %v3405_v23 = vmul.f32 %v3391_v11, %v464_v7  ;;  %v3409_v24 = vsel %vm553_vm2, %v3336_v45, 0.0  ;;  %v1569_v26 = vsub.f32 %v3301_v32, %v3318_v39 }
  0x21   : > { %2877 = vmatprep.subr.bf16.mxu1 %v4345_v4  ;;  %v591_v8 = vmax.f32 %v589_v61, %v590_v1  ;;  %v1038_v29 = vsel %vm553_vm2, %v3402_v22, 0.0  ;;  %v3420_v48 = vsel %vm553_vm2, %v3340_v46, 0.0  ;;  %v1576_v50 = vsel %vm553_vm2, %v1568_v17, 0.0  ;;  %v2451_v17 = vld [vmem:[%s4340_s5 + $0x50] sm:$0xff] }
  0x22   : > { %1532 = vadd.xlane.f32.xlu1 %v555_v62  ;;  %v560_v20 = vadd.f32 %v3385_v3, %v558_v10  ;;  %v1039_v31 = vsel %vm553_vm2, %v3405_v23, 0.0  ;;  %1623 = vadd.xlane.f32.xlu0 %v1038_v29  ;;  %v1579_v32 = vsel %vm553_vm2, %v1569_v26, 0.0  ;;  %v1661_v53 = vsub.f32 %v463_v6, %v3402_v22 }
  0x23   : > { %v592_v19 = vrot.slane %v591_v8, 4  ;;  %v3422_v49 = vadd.f32 %v1039_v31, %v1038_v29  ;;  %v1662_v54 = vsub.f32 %v464_v7, %v3405_v23  ;;  %v3434_v56 = vsel %vm553_vm2, %v3343_v47, 0.0  ;;  %v505_v29 = vld [vmem:[%s4340_s5 + $0x20] sm:$0xff] }
  0x24   : > { %v562_v28 = vadd.f32 %v3396_v16, %v560_v20  ;;  %v1669_v1 = vsel %vm553_vm2, %v1661_v53, 0.0  ;;  %v3449_v6 = vpack.c.bf16 %v502_v58, %v501_v55  ;;  %v3451_v7 = vpack.c.bf16 %v2450_v60, %v2449_v59  ;;  %v507_v55 = vld [vmem:[%s4340_s5 + $0x30] sm:$0xff]  ;;  %v2456_v58 = vld [vmem:[%s4340_s5 + $0x78] sm:$0xff] }
  0x25   : > { %v593_v27 = vmax.f32 %v591_v8, %v592_v19  ;;  %v1672_v2 = vsel %vm553_vm2, %v1662_v54, 0.0  ;;  %v503_v8 = vld [vmem:[%s4340_s5 + $0x10] sm:$0xff]  ;;  %v2452_v19 = vld [vmem:[%s4340_s5 + $0x58] sm:$0xff] }
  0x26   : > { %1625 = vadd.xlane.f32.xlu1 %v1039_v31  ;;  %v564_v52 = vadd.f32 %v3409_v24, %v562_v28  ;;  %1577 = vadd.xlane.f32.xlu0 %v1576_v50  ;;  %v3471_v28 = vpack.c.bf16 %v2452_v19, %v2451_v17  ;;  %v506_v31 = vld [vmem:[%s4340_s5 + $0x28] sm:$0xff]  ;;  %v2453_v50 = vld [vmem:[%s4340_s5 + $0x60] sm:$0xff] }
  0x27   : > { %v594_v51 = vrot.slane %v593_v27, 2  ;;  %v3494_v53 = vpack.c.bf16 %v506_v31, %v505_v29  ;;  %v2477_v19 = vld [vmem:[%s4341_s6 + $0x60] sm:$0xff]  ;;  %v2479_v29 = vld [vmem:[%s4341_s6 + $0x70] sm:$0xff] }
  0x28   : > { %v566_v61 = vadd.f32 %v3420_v48, %v564_v52 }
  0x29   : > { %v595_v57 = vmax.f32 %v593_v27, %v594_v51  ;;  %v3469_v27 = vpack.c.bf16 %v504_v13, %v503_v8  ;;  %v2476_v13 = vld [vmem:[%s4341_s6 + $0x58] sm:$0xff] }
  0x2a   : > { %1580 = vadd.xlane.f32.xlu1 %v1579_v32  ;;  %v568_v0 = vadd.f32 %v3434_v56, %v566_v61  ;;  %1670 = vadd.xlane.f32.xlu0 %v1669_v1  ;;  %v2454_v32 = vld [vmem:[%s4340_s5 + $0x68] sm:$0xff] }
  0x2b   : > { %v596_v62 = vrot.slane %v595_v57, 1  ;;  %v3496_v54 = vpack.c.bf16 %v2454_v32, %v2453_v50  ;;  %v2474_v1 = vld [vmem:[%s4341_s6 + $0x48] sm:$0xff]  ;;  %v465_v50 = vld [vmem:[%s3374_s17 + $0x10] sm:$0xff] }
  0x2c   : > { %v569_v20 = vrot.slane %v568_v0, 4 }
  0x2d   : > { %v597_v10 = vmax.f32 %v595_v57, %v596_v62  ;;  %v2455_v57 = vld [vmem:[%s4340_s5 + $0x70] sm:$0xff] }
  0x2e   : > { %1673 = vadd.xlane.f32.xlu1 %v1672_v2  ;;  %v570_v26 = vadd.f32 %v569_v20, %v568_v0  ;;  %1534 = vadd.xlane.f32.xlu0 %v3381_v63  ;;  %v508_v63 = vld [vmem:[%s4340_s5 + $0x38] sm:$0xff]  ;;  %v3516_v62 = vpack.c.bf16 %v2456_v58, %v2455_v57  ;;  %v2473_v0 = vld [vmem:[%s4341_s6 + $0x40] sm:$0xff]  ;;  %v2478_v20 = vld [vmem:[%s4341_s6 + $0x68] sm:$0xff] }
  0x2f   : > { %2630 = vmatmul.mubr.msk.f32.vlgmr.msra.gmra.mrb[0].mxu0 %vm553_vm2, %v597_v10  ;;  %2668 = vmatmul.mubr.msk.f32.vlgmr.msra.gmra.mrb[0].mxu1 %vm553_vm2, %v597_v10  ;;  %v3514_v61 = vpack.c.bf16 %v508_v63, %v507_v55  ;;  %v3528_v8 = vpack.c.bf16 %v2474_v1, %v2473_v0  ;;  %v2475_v10 = vld [vmem:[%s4341_s6 + $0x50] sm:$0xff]  ;;  %v466_v55 = vld [vmem:[%s3374_s17 + $0x18] sm:$0xff]  ;;  %v467_v58 = vld [vmem:[%s3374_s17 + $0x20] sm:$0xff] }
  0x30   : > { %2855 = vmatpush3.bf16.msra.mxu0 %v3449_v6  ;;  %2879 = vmatpush3.bf16.msra.mxu1 %v3451_v7  ;;  %v571_v51 = vrot.slane %v570_v26, 2  ;;  %v3541_v17 = vpack.c.bf16 %v2476_v13, %v2475_v10  ;;  %v3594_v57 = vmul.f32 %v3391_v11, %v466_v55  ;;  %v468_v0 = vld [vmem:[%s3374_s17 + $0x28] sm:$0xff]  ;;  %v3604_v1 = vld [vmem:[%s3374_s17 + $0x30] sm:$0xff] }
  0x31   : > { %2856 = vmatprep.subr.bf16.mxu0 %v4345_v4  ;;  %2880 = vmatprep.subr.bf16.mxu1 %v4345_v4  ;;  %v3614_v10 = vmul.f32 %v3391_v11, %v3604_v1 }
  0x32   : > { %2648 = vmatprep.mubr.msk.f32.mxu0 %vm3110_vm0, %v4347_v12  ;;  %2686 = vmatprep.mubr.msk.f32.mxu1 %vm3110_vm0, %v4347_v12  ;;  %v572_v52 = vadd.f32 %v571_v51, %v570_v26  ;;  %v3557_v26 = vpack.c.bf16 %v2478_v20, %v2477_v19  ;;  %v1043_v13 = vsel %vm553_vm2, %v3594_v57, 0.0  ;;  %v1060_v20 = vsel %vm553_vm2, %v3402_v22, -inf }
  0x33   : > { %4370 = vst [vmem:[#allocation5_spill] sm:$0xff] %v3614_v10 }
  0x34   : > { %2858 = vmatpush3.bf16.msra.mxu0 %v3469_v27  ;;  %2882 = vmatpush3.bf16.msra.mxu1 %v3471_v28  ;;  %v573_v59 = vrot.slane %v572_v52, 1 }
  0x35   : > { %2859 = vmatprep.subr.bf16.mxu0 %v4345_v4  ;;  %2883 = vmatprep.subr.bf16.mxu1 %v4345_v4 }
  0x36   : > { %v574_v60 = vadd.f32 %v573_v59, %v572_v52  ;;  %v1664_v59 = vsub.f32 %v466_v55, %v3594_v57 }
  0x38   : > { %2861 = vmatpush3.bf16.msra.mxu0 %v3494_v53  ;;  %2885 = vmatpush3.bf16.msra.mxu1 %v3496_v54  ;;  %v576_v2 = vmul.f32 0.015625, %v574_v60  ;;  %v3600_v60 = vmul.f32 %v3391_v11, %v467_v58  ;;  %v1678_v19 = vsel %vm553_vm2, %v1664_v59, 0.0 }
  0x39   : > { %2862 = vmatprep.subr.bf16.mxu0 %v4345_v4  ;;  %2886 = vmatprep.subr.bf16.mxu1 %v4345_v4 }
  0x3a   : > { %4368 = vst [vmem:[#allocation3_spill] sm:$0xff] %v3600_v60 }
  0x3c   : > { %2864 = vmatpush3.bf16.msra.mxu0 %v3514_v61  ;;  %2888 = vmatpush3.bf16.msra.mxu1 %v3516_v62 }
  0x3d   : > { %2889 = vmatprep.subr.bf16.mxu0 %v4345_v4  ;;  %2913 = vmatprep.subr.bf16.mxu1 %v4345_v4 }
  0x3f   : > { %2649 = vmatmul.mubr.msk.f32.vlgmr.msra.gmra.mrb[0].mxu0 %vm553_vm2, %v576_v2  ;;  %2687 = vmatmul.mubr.msk.f32.vlgmr.msra.gmra.mrb[0].mxu1 %vm553_vm2, %v576_v2  ;;  %v3607_v2 = vld [vmem:[%s3374_s17 + $0x38] sm:$0xff]  ;;  %s1716_s17 = sld [smem:[#allocation2]] }
  0x40   : > { %2891 = vmatpush3.bf16.msra.mxu0 %v3528_v8  ;;  %2705 = vmatprep.mubr.msk.f32.mxu0 %vm3110_vm0, %v4347_v12 }
  0x41   : > { %2892 = vmatprep.subr.bf16.mxu0 %v4345_v4  ;;  %2915 = vmatpush3.bf16.msra.mxu1 %v3211_v5  ;;  %v2480_v5 = vld [vmem:[%s4341_s6 + $0x78] sm:$0xff] }
  0x42   : > { %2916 = vmatprep.subr.bf16.mxu1 %v4345_v4  ;;  %2743 = vmatprep.mubr.msk.f32.mxu1 %vm3110_vm0, %v4347_v12  ;;  %v3569_v31 = vpack.c.bf16 %v2480_v5, %v2479_v29  ;;  %v1061_v29 = vsel %vm553_vm2, %v3405_v23, -inf }
  0x44   : > { %2894 = vmatpush3.bf16.msra.mxu0 %v3541_v17 }
  0x45   : > { %2895 = vmatprep.subr.bf16.mxu0 %v4345_v4  ;;  %2918 = vmatpush3.bf16.msra.mxu1 %v3237_v14  ;;  %v1570_v14 = vsub.f32 %v3303_v33, %v3321_v40  ;;  %v1571_v33 = vsub.f32 %v3308_v35, %v3330_v43  ;;  %v3610_v35 = vmul.f32 %v3391_v11, %v468_v0  ;;  %s1726_s12 = ssub.f32 1.0, %s1716_s17 }
  0x46   : > { %2919 = vmatprep.subr.bf16.mxu1 %v4345_v4 }
  0x47   : > { %v1582_v32 = vsel %vm553_vm2, %v1570_v14, 0.0  ;;  %v1585_v63 = vsel %vm553_vm2, %v1571_v33, 0.0  ;;  %4369 = vst [vmem:[#allocation4_spill] sm:$0xff] %v3610_v35 }
  0x48   : > { %2897 = vmatpush3.bf16.msra.mxu0 %v3557_v26  ;;  %1583 = vadd.xlane.f32.xlu1 %v1582_v32  ;;  %v1572_v32 = vsub.f32 %v3310_v36, %v3333_v44 }
  0x49   : > { %2898 = vmatprep.subr.bf16.mxu0 %v4345_v4  ;;  %2921 = vmatpush3.bf16.msra.mxu1 %v3270_v21  ;;  %v3583_v21 = vmul.f32 %v3391_v11, %v465_v50 }
  0x4a   : > { %2922 = vmatprep.subr.bf16.mxu1 %v4345_v4 }
  0x4b   : > { %v1663_v51 = vsub.f32 %v465_v50, %v3583_v21  ;;  %v1062_v14 = vsel %vm553_vm2, %v3583_v21, -inf  ;;  %v1064_v50 = vsel %vm553_vm2, %v3600_v60, -inf }
  0x4c   : > { %2900 = vmatpush3.bf16.msra.mxu0 %v3569_v31 }
  0x4d   : > { %2901 = vmatprep.subr.bf16.mxu0 %v4345_v4  ;;  %2924 = vmatpush3.bf16.msra.mxu1 %v3297_v30  ;;  %v1041_v30 = vsel %vm553_vm2, %v3583_v21, 0.0  ;;  %v1675_v52 = vsel %vm553_vm2, %v1663_v51, 0.0  ;;  %v1065_v51 = vmax.f32 %v1060_v20, %v1064_v50  ;;  %v1665_v20 = vsub.f32 %v467_v58, %v3600_v60 }
  0x4e   : > { %2925 = vmatprep.subr.bf16.mxu1 %v4345_v4  ;;  %1627 = vadd.xlane.f32.xlu0 %v1041_v30  ;;  %v1042_v5 = vadd.f32 %v1041_v30, %v3422_v49  ;;  %v1068_v49 = vsel %vm553_vm2, %v3614_v10, -inf  ;;  %v1045_v4 = vsel %vm553_vm2, %v3600_v60, 0.0  ;;  %v1047_v58 = vsel %vm553_vm2, %v3610_v35, 0.0 }
  0x4f   : > { %1676 = vadd.xlane.f32.xlu1 %v1675_v52  ;;  %v1066_v52 = vsel %vm553_vm2, %v3610_v35, -inf  ;;  %v1069_v33 = vmax.f32 %v1062_v14, %v1068_v49 }
  0x50   : > { %v1067_v30 = vmax.f32 %v1061_v29, %v1066_v52  ;;  %v1044_v36 = vadd.f32 %v1043_v13, %v1042_v5  ;;  %v1681_v29 = vsel %vm553_vm2, %v1665_v20, 0.0  ;;  %v1666_v5 = vsub.f32 %v468_v0, %v3610_v35 }
  0x51   : > { %v1667_v20 = vsub.f32 %v3604_v1, %v3614_v10 }
  0x52   : > { %1536 = vadd.xlane.f32.xlu0 %v3385_v3  ;;  %v3618_v3 = vmul.f32 %v3391_v11, %v3607_v2  ;;  %v1063_v11 = vsel %vm553_vm2, %v3594_v57, -inf  ;;  %v1046_v52 = vadd.f32 %v1045_v4, %v1044_v36 }
  0x53   : > { %1586 = vadd.xlane.f32.xlu1 %v1585_v63  ;;  %v1588_v63 = vsel %vm553_vm2, %v1572_v32, 0.0 }
  0x54   : > { %4371 = vst [vmem:[#allocation6_spill] sm:$0xff] %v3618_v3  ;;  %v1070_v55 = vsel %vm553_vm2, %v3618_v3, -inf }
  0x55   : > { %v1071_v59 = vmax.f32 %v1063_v11, %v1070_v55  ;;  %v1573_v11 = vsub.f32 %v3312_v37, %v3336_v45 }
  0x56   : > { %1629 = vadd.xlane.f32.xlu0 %v1043_v13  ;;  %v1048_v13 = vadd.f32 %v1047_v58, %v1046_v52 }
  0x57   : > { %1679 = vadd.xlane.f32.xlu1 %v1678_v19  ;;  %v1072_v19 = vmax.f32 %v1065_v51, %v1067_v30  ;;  %v1073_v50 = vmax.f32 %v1069_v33, %v1071_v59  ;;  %v1684_v30 = vsel %vm553_vm2, %v1666_v5, 0.0  ;;  %v1923_v5 = vld [vmem:[%s4339_s4 + $0x38] sm:$0xff] }
  0x59   : > { %v1074_v14 = vmax.f32 %v1072_v19, %v1073_v50 }
  0x5a   : > { %1538 = vadd.xlane.f32.xlu0 %v3396_v16  ;;  %v1591_v16 = vsel %vm553_vm2, %v1573_v11, 0.0 }
  0x5b   : > { %1589 = vadd.xlane.f32.xlu1 %v1588_v63  ;;  %v1075_v32 = vrot.slane %v1074_v14, 4  ;;  %v1574_v63 = vsub.f32 %v3325_v41, %v3340_v46  ;;  %v4372_v41 = vmov 0.0|0.0  }
  0x5d   : > { %v1076_v51 = vmax.f32 %v1074_v14, %v1075_v32  ;;  %v1594_v0 = vsel %vm553_vm2, %v1574_v63, 0.0  ;;  %v1668_v32 = vsub.f32 %v3607_v2, %v3618_v3  ;;  %v1921_v2 = vld [vmem:[%s4339_s4 + $0x28] sm:$0xff] }
  0x5e   : > { %1631 = vadd.xlane.f32.xlu0 %v1045_v4  ;;  %v1049_v4 = vsel %vm553_vm2, %v3614_v10, 0.0 }
  0x5f   : > { %1682 = vadd.xlane.f32.xlu1 %v1681_v29  ;;  %v1077_v49 = vrot.slane %v1076_v51, 2  ;;  %v1050_v33 = vadd.f32 %v1049_v4, %v1048_v13  ;;  %v1687_v29 = vsel %vm553_vm2, %v1667_v20, 0.0  ;;  %v2502_v13 = vld [vmem:[%s4339_s4 + $0x78] sm:$0xff] }
  0x61   : > { %v1078_v37 = vmax.f32 %v1076_v51, %v1077_v49  ;;  %v2500_v51 = vld [vmem:[%s4339_s4 + $0x68] sm:$0xff]  ;;  %v2495_v49 = vld [vmem:[%s4339_s4 + $0x40] sm:$0xff] }
  0x62   : > { %1540 = vadd.xlane.f32.xlu0 %v3409_v24  ;;  %v1051_v24 = vsel %vm553_vm2, %v3618_v3, 0.0 }
  0x63   : > { %1592 = vadd.xlane.f32.xlu1 %v1591_v16  ;;  %v1079_v55 = vrot.slane %v1078_v37, 1  ;;  %v1052_v59 = vadd.f32 %v1051_v24, %v1050_v33  ;;  %v3112_v16 = vmov 0   ;;  %v536_v33 = vld [vmem:[%s4341_s6] sm:$0xff] }
  0x64   : > { %3042 = vset.pattern.permute.xlu1 %v3112_v16  ;;  %3041 = vset.pattern.permute.xlu0 %v3112_v16 }
  0x65   : > { %v3662_v19 = vmax.f32 %v1078_v37, %v1079_v55  ;;  %v1053_v36 = vrot.slane %v1052_v59, 4  ;;  %v2501_v37 = vld [vmem:[%s4339_s4 + $0x70] sm:$0xff] }
  0x66   : > { %1633 = vadd.xlane.f32.xlu0 %v1047_v58  ;;  %v1922_v58 = vld [vmem:[%s4339_s4 + $0x30] sm:$0xff] }
  0x67   : > { %1685 = vadd.xlane.f32.xlu1 %v1684_v30  ;;  %2744 = vmatmul.mubr.msk.f32.vlgmr.msra.gmra.mrb[2].mxu1 %vm553_vm2, %v3662_v19  ;;  %v1054_v50 = vadd.f32 %v1053_v36, %v1052_v59  ;;  %v2499_v30 = vld [vmem:[%s4339_s4 + $0x60] sm:$0xff] }
  0x68   : > { %2927 = vmatpush3.bf16.msra.mxu1 %v3449_v6  ;;  %2762 = vmatprep.mubr.msk.f32.mxu1 %vm3110_vm0, %v4347_v12 }
  0x69   : > { %2928 = vmatprep.subr.bf16.mxu1 %v4372_v41  ;;  %v1055_v14 = vrot.slane %v1054_v50, 2 }
  0x6a   : > { %1542 = vadd.xlane.f32.xlu0 %v3420_v48  ;;  %v1575_v48 = vsub.f32 %v3327_v42, %v3343_v47  ;;  %v1690_v42 = vsel %vm553_vm2, %v1668_v32, 0.0 }
  0x6b   : > { %1595 = vadd.xlane.f32.xlu1 %v1594_v0  ;;  %v1056_v52 = vadd.f32 %v1055_v14, %v1054_v50  ;;  %v538_v50 = vld [vmem:[%s4341_s6 + $0x10] sm:$0xff] }
  0x6c   : > { %2930 = vmatpush3.bf16.msra.mxu1 %v3469_v27  ;;  %v1597_v6 = vsel %vm553_vm2, %v1575_v48, 0.0  ;;  %v540_v48 = vld [vmem:[%s4341_s6 + $0x20] sm:$0xff] }
  0x6d   : > { %2931 = vmatprep.subr.bf16.mxu1 %v4372_v41  ;;  %v1057_v1 = vrot.slane %v1056_v52, 1 }
  0x6e   : > { %1635 = vadd.xlane.f32.xlu0 %v1049_v4  ;;  %v2497_v4 = vld [vmem:[%s4339_s4 + $0x50] sm:$0xff] }
  0x6f   : > { %1688 = vadd.xlane.f32.xlu1 %v1687_v29  ;;  %v1058_v11 = vadd.f32 %v1057_v1, %v1056_v52  ;;  %v539_v29 = vld [vmem:[%s4341_s6 + $0x18] sm:$0xff]  ;;  %v541_v52 = vld [vmem:[%s4341_s6 + $0x28] sm:$0xff]  ;;  %v542_v1 = vld [vmem:[%s4341_s6 + $0x30] sm:$0xff] }
  0x70   : > { %2933 = vmatpush3.bf16.msra.mxu1 %v3494_v53  ;;  %v1918_v53 = vld [vmem:[%s4339_s4 + $0x10] sm:$0xff]  ;;  %v3766_v14 = vpack.c.bf16 %v539_v29, %v538_v50 }
  0x71   : > { %2934 = vmatprep.subr.bf16.mxu1 %v4372_v41  ;;  %v3686_v27 = vmul.f32 0.015625, %v1058_v11  ;;  %v543_v11 = vld [vmem:[%s4341_s6 + $0x38] sm:$0xff] }
  0x72   : > { %1544 = vadd.xlane.f32.xlu0 %v3434_v56  ;;  %v1917_v56 = vld [vmem:[%s4339_s4 + $0x8] sm:$0xff]  ;;  %v3788_v32 = vpack.c.bf16 %v543_v11, %v542_v1 }
  0x73   : > { %1598 = vadd.xlane.f32.xlu1 %v1597_v6  ;;  %v3778_v6 = vpack.c.bf16 %v541_v52, %v540_v48 }
  0x74   : > { %2936 = vmatpush3.bf16.msra.mxu1 %v3514_v61  ;;  %v1916_v61 = vld [vmem:[%s4339_s4] sm:$0xff] }
  0x75   : > { %2961 = vmatprep.subr.bf16.mxu1 %v4372_v41 }
  0x76   : > { %1637 = vadd.xlane.f32.xlu0 %v1051_v24  ;;  %v537_v24 = vld [vmem:[%s4341_s6 + $0x8] sm:$0xff] }
  0x77   : > { %1691 = vadd.xlane.f32.xlu1 %v1690_v42  ;;  %2763 = vmatmul.mubr.msk.f32.vlgmr.msra.gmra.mrb[2].mxu1 %vm553_vm2, %v3686_v27  ;;  %v3756_v59 = vpack.c.bf16 %v537_v24, %v536_v33 }
  0x78   : > { %2963 = vmatpush3.bf16.msra.mxu1 %v3528_v8  ;;  %2819 = vmatprep.mubr.msk.f32.mxu1 %vm3110_vm0, %v4347_v12  ;;  %v1919_v8 = vld [vmem:[%s4339_s4 + $0x18] sm:$0xff] }
  0x79   : > { %2964 = vmatprep.subr.bf16.mxu1 %v4372_v41 }
  0x7c   : > { %2966 = vmatpush3.bf16.msra.mxu1 %v3541_v17  ;;  %v2496_v17 = vld [vmem:[%s4339_s4 + $0x48] sm:$0xff] }
  0x7d   : > { %2967 = vmatprep.subr.bf16.mxu1 %v4372_v41 }
  0x80   : > { %2969 = vmatpush3.bf16.msra.mxu1 %v3557_v26  ;;  %v1920_v26 = vld [vmem:[%s4339_s4 + $0x20] sm:$0xff] }
  0x81   : > { %2970 = vmatprep.subr.bf16.mxu1 %v4372_v41 }
  0x84   : > { %2972 = vmatpush3.bf16.msra.mxu1 %v3569_v31  ;;  %v2498_v31 = vld [vmem:[%s4339_s4 + $0x58] sm:$0xff] }
  0x85   : > { %2973 = vmatprep.subr.bf16.mxu1 %v4372_v41 }
  0x88   : > { %2016 = vperm.xlu1 %3042, %v1917_v56  }
  0x8c   : > { %2021 = vperm.xlu1 %3042, %v1918_v53   ;;  %2011 = vperm.xlu0 %3041, %v1916_v61  }
  0x90   : > { %2026 = vperm.xlu1 %3042, %v1919_v8   ;;  %2064 = vperm.xlu0 %3041, %v2496_v17  }
  0x94   : > { %2031 = vperm.xlu1 %3042, %v1920_v26   ;;  %2074 = vperm.xlu0 %3041, %v2498_v31  }
  0x98   : > { %2036 = vperm.xlu1 %3042, %v1921_v2   ;;  %2084 = vperm.xlu0 %3041, %v2500_v51  }
  0x9c   : > { %2041 = vperm.xlu1 %3042, %v1922_v58   ;;  %2094 = vperm.xlu0 %3041, %v2502_v13  }
  0xa0   : > { %2046 = vperm.xlu1 %3042, %v1923_v5  }
  0xa4   : > { %2059 = vperm.xlu1 %3042, %v2495_v49   ;;  %v1524_v42 = vpop.xlane.xlu0 %1523 }
  0xa5   : > { %v1525_v51 = vmul.f32 0.015625, %v1524_v42 }
  0xa7   : > { %v1608_v13 = vsub.f32 1.0, %v1525_v51 }
  0xa8   : > { %2069 = vperm.xlu1 %3042, %v2497_v4   ;;  %v1528_v53 = vpop.xlane.xlu0 %1527  ;;  %v1554_v4 = vadd.f32 1e-06, %v1525_v51 }
  0xaa   : > { %v1558_v33 = vrot.slane %v1554_v4, %v3255_v18 }
  0xab   : > { %v3791_v16 = vpop.xlane.xlu1 %1530 }
  0xac   : > { %2079 = vperm.xlu1 %3042, %v2499_v30   ;;  %v1609_v30 = vadd.f32 1e-06, %v1608_v13  ;;  %3043 = vrcp.f32 %v1558_v33  ;;  %v1546_v1 = vmul.f32 0.015625, %v3791_v16 }
  0xae   : > { %v1613_v24 = vrot.slane %v1609_v30, %v3255_v18  ;;  %v3852_v30 = vstv %s1716_s17 }
  0xaf   : > { %v1533_v61 = vpop.xlane.xlu1 %1532  ;;  %v1624_v8 = vpop.xlane.xlu0 %1623 }
  0xb0   : > { %2089 = vperm.xlu1 %3042, %v2501_v37   ;;  %3045 = vrcp.f32 %v1613_v24  ;;  %v1547_v11 = vmul.f32 0.015625, %v1533_v61  ;;  %v1639_v51 = vmul.f32 0.015625, %v1624_v8 }
  0xb3   : > { %v1626_v17 = vpop.xlane.xlu1 %1625 }
  0xb6   : > { %v3843_v48 = vpop.eup %3043 }
  0xb7   : > { %v1581_v26 = vpop.xlane.xlu1 %1580  ;;  %v1560_v33 = vmul.f32 %v3843_v48, %v1546_v1  ;;  %v1561_v16 = vmul.f32 %v3843_v48, %v1547_v11 }
  0xb9   : > { %v1744_v1 = vmul.f32 %v3852_v30, %v1560_v33  ;;  %v1745_v11 = vmul.f32 %v3852_v30, %v1561_v16 }
  0xba   : > { %v3845_v52 = vpop.eup %3045 }
 0x112   : > { %v740_v55 = vpop.f32.mrb[0].mxu0  ;;  %v881_v63 = vpop.f32.mrb[0].mxu1 }
 0x113   : > { %v885_v0 = vmax.f32 %v881_v63, 0.0  ;;  %v2650_v36 = vpop.f32.mrb[1].mxu0  ;;  %v2688_v20 = vpop.f32.mrb[1].mxu1  ;;  %v744_v56 = vmax.f32 %v740_v55, 0.0 }
 0x115   : > { %2706 = vmatmul.mubr.msk.f32.vlgmr.msra.gmra.mrb[2].mxu0 %vm553_vm2, %v885_v0 }
 0x116   : > { %2903 = vmatpush3.bf16.msra.mxu0 %v3756_v59  ;;  %2724 = vmatprep.mubr.msk.f32.mxu0 %vm3110_vm0, %v4347_v12 }
 0x117   : > { %2904 = vmatprep.subr.bf16.mxu0 %v4372_v41 }
 0x11a   : > { %2906 = vmatpush3.bf16.msra.mxu0 %v3766_v14 }
 0x11b   : > { %2907 = vmatprep.subr.bf16.mxu0 %v4372_v41 }
 0x11e   : > { %2909 = vmatpush3.bf16.msra.mxu0 %v3778_v6 }
 0x11f   : > { %2910 = vmatprep.subr.bf16.mxu0 %v4372_v41 }
 0x122   : > { %2912 = vmatpush3.bf16.msra.mxu0 %v3788_v32 }
 0x123   : > { %2937 = vmatprep.subr.bf16.mxu0 %v4372_v41 }
 0x125   : > { %2725 = vmatmul.mubr.msk.f32.vlgmr.msra.gmra.mrb[2].mxu0 %vm553_vm2, %v744_v56  ;;  %v1601_v56 = vmul.f32 0.015625, %v1581_v26 }
 0x126   : > { %2939 = vmatpush3.bf16.msra.mxu0 %v3224_v9  ;;  %2781 = vmatprep.mubr.msk.f32.mxu0 %vm3110_vm0, %v4347_v12  ;;  %v1578_v9 = vpop.xlane.xlu0 %1577 }
 0x127   : > { %2940 = vmatprep.subr.bf16.mxu0 %v4372_v41  ;;  %v1600_v42 = vmul.f32 0.015625, %v1578_v9  ;;  %v1616_v9 = vmul.f32 %v3845_v52, %v1601_v56 }
 0x129   : > { %v1615_v61 = vmul.f32 %v3845_v52, %v1600_v42  ;;  %v1719_v56 = vmul.f32 %v3852_v30, %v1616_v9 }
 0x12a   : > { %2942 = vmatpush3.bf16.msra.mxu0 %v3242_v15  ;;  %v1671_v15 = vpop.xlane.xlu0 %1670 }
 0x12b   : > { %2943 = vmatprep.subr.bf16.mxu0 %v4372_v41  ;;  %v1693_v13 = vmul.f32 0.015625, %v1671_v15  ;;  %v1718_v42 = vmul.f32 %v3852_v30, %v1615_v61 }
 0x12e   : > { %2945 = vmatpush3.bf16.msra.mxu0 %v3280_v25  ;;  %v1674_v25 = vpop.xlane.xlu1 %1673 }
 0x12f   : > { %2946 = vmatprep.subr.bf16.mxu0 %v4372_v41  ;;  %v1694_v4 = vmul.f32 0.015625, %v1674_v25 }
 0x132   : > { %2948 = vmatpush3.bf16.msra.mxu0 %v3306_v34  ;;  %v1535_v34 = vpop.xlane.xlu0 %1534  ;;  %v1584_v31 = vpop.xlane.xlu1 %1583 }
 0x133   : > { %2949 = vmatprep.subr.bf16.mxu0 %v4372_v41  ;;  %v1548_v25 = vmul.f32 0.015625, %v1535_v34 }
 0x135   : > { %2782 = vmatmul.mubr.msk.f32.vlgmr.msra.gmra.mrb[4].mxu0 %vm553_vm2, %v3662_v19  ;;  %v1562_v34 = vmul.f32 %v3843_v48, %v1548_v25 }
 0x136   : > { %2951 = vmatpush3.bf16.msra.mxu0 %v3451_v7  ;;  %2800 = vmatprep.mubr.msk.f32.mxu0 %vm3110_vm0, %v4347_v12  ;;  %v1628_v7 = vpop.xlane.xlu0 %1627  ;;  %v1677_v19 = vpop.xlane.xlu1 %1676 }
 0x137   : > { %2952 = vmatprep.subr.bf16.mxu0 %v4372_v41  ;;  %v1695_v12 = vmul.f32 0.015625, %v1677_v19 }
 0x13a   : > { %2954 = vmatpush3.bf16.msra.mxu0 %v3471_v28  ;;  %v3819_v2 = vpop.xlane.xlu0 %1536  ;;  %v3821_v58 = vpop.xlane.xlu1 %1586  ;;  %v1529_v28 = vmul.f32 0.015625, %v1528_v53 }
 0x13b   : > { %2955 = vmatprep.subr.bf16.mxu0 %v4372_v41  ;;  %v1549_v61 = vmul.f32 0.015625, %v3819_v2  ;;  %v1603_v9 = vmul.f32 0.015625, %v3821_v58 }
 0x13e   : > { %2957 = vmatpush3.bf16.msra.mxu0 %v3496_v54  ;;  %v3823_v5 = vpop.xlane.xlu0 %1629  ;;  %v1701_v54 = vsub.f32 1.0, %v1529_v28  ;;  %v3825_v49 = vpop.xlane.xlu1 %1679 }
 0x13f   : > { %2958 = vmatprep.subr.bf16.mxu0 %v4372_v41 }
 0x140   : > { %v1702_v37 = vadd.f32 1e-06, %v1701_v54 }
 0x142   : > { %2960 = vmatpush3.bf16.msra.mxu0 %v3516_v62  ;;  %v1647_v62 = vadd.f32 1e-06, %v1529_v28  ;;  %v3831_v55 = vpop.xlane.xlu1 %1589  ;;  %v1706_v0 = vrot.slane %v1702_v37, %v3255_v18  ;;  %v1640_v28 = vmul.f32 0.015625, %v1626_v17 }
 0x144   : > { %v1651_v63 = vrot.slane %v1647_v62, %v3255_v18  ;;  %v3854_v62 = vstv %s1726_s12 }
 0x145   : > { %2801 = vmatmul.mubr.msk.f32.vlgmr.msra.gmra.mrb[4].mxu0 %vm553_vm2, %v3686_v27  ;;  %v3828_v27 = vpop.xlane.xlu0 %1538 }
 0x146   : > { %3047 = vrcp.f32 %v1651_v63  ;;  %v3837_v20 = vpop.xlane.xlu1 %1682  ;;  %v1602_v63 = vmul.f32 0.015625, %v1584_v31 }
 0x147   : > { %3049 = vrcp.f32 %v1706_v0  ;;  %v1641_v0 = vmul.f32 0.015625, %v1628_v7 }
 0x148   : > { %v1617_v7 = vmul.f32 %v3845_v52, %v1602_v63  ;;  %v1746_v63 = vmul.f32 %v3852_v30, %v1562_v34 }
 0x149   : > { %v3835_v36 = vpop.xlane.xlu0 %1631 }
 0x14a   : > { %v3841_v29 = vpop.xlane.xlu1 %1592 }
 0x14d   : > { %v3839_v50 = vpop.xlane.xlu0 %1540 }
 0x14e   : > { %v1686_v8 = vpop.xlane.xlu1 %1685 }
 0x150   : > { %v3848_v53 = vpop.eup %3047 }
 0x151   : > { %v3850_v54 = vpop.eup %3049  ;;  %v3856_v37 = vpop.xlane.xlu0 %1633  ;;  %v1653_v17 = vmul.f32 %v3848_v53, %v1639_v51  ;;  %v1654_v26 = vmul.f32 %v3848_v53, %v1640_v28  ;;  %v1655_v19 = vmul.f32 %v3848_v53, %v1641_v0 }
 0x152   : > { %v1708_v15 = vmul.f32 %v3850_v54, %v1693_v13  ;;  %v1709_v24 = vmul.f32 %v3850_v54, %v1694_v4  ;;  %v1710_v33 = vmul.f32 %v3850_v54, %v1695_v12  ;;  %v1596_v16 = vpop.xlane.xlu1 %1595  ;;  %v1720_v12 = vmul.f32 %v3852_v30, %v1617_v7 }
 0x153   : > { %v1752_v51 = vmul.f32 %v3854_v62, %v1653_v17  ;;  %v1753_v28 = vmul.f32 %v3854_v62, %v1654_v26  ;;  %v1642_v17 = vmul.f32 0.015625, %v3823_v5  ;;  %v1696_v26 = vmul.f32 0.015625, %v3825_v49 }
 0x154   : > { %v1728_v13 = vmul.f32 %v3854_v62, %v1708_v15  ;;  %v1729_v31 = vmul.f32 %v3854_v62, %v1709_v24  ;;  %v1754_v2 = vmul.f32 %v3854_v62, %v1655_v19  ;;  %v1730_v58 = vmul.f32 %v3854_v62, %v1710_v33 }
 0x155   : > { %v1543_v4 = vpop.xlane.xlu0 %1542  ;;  %v3882_v15 = vadd.f32 %v1752_v51, %v1744_v1  ;;  %v3884_v25 = vadd.f32 %v1753_v28, %v1745_v11  ;;  %v1563_v5 = vmul.f32 %v3843_v48, %v1549_v61  ;;  %v1618_v49 = vmul.f32 %v3845_v52, %v1603_v9 }
 0x156   : > { %v3886_v24 = vadd.f32 %v1728_v13, %v1718_v42  ;;  %v3889_v0 = vadd.f32 %v1729_v31, %v1719_v56  ;;  %v1656_v1 = vmul.f32 %v3848_v53, %v1642_v17  ;;  %v1711_v11 = vmul.f32 %v3850_v54, %v1696_v26  ;;  %v1689_v34 = vpop.xlane.xlu1 %1688 }
 0x157   : > { %v1550_v51 = vmul.f32 0.015625, %v3828_v27  ;;  %v1604_v56 = vmul.f32 0.015625, %v3831_v55  ;;  %v1643_v28 = vmul.f32 0.015625, %v3835_v36  ;;  %v1697_v13 = vmul.f32 0.015625, %v3837_v20 }
 0x158   : > { %v1806_v31 = vmul.f32 %v3882_v15, %v3882_v15  ;;  %v1807_v7 = vmul.f32 %v3884_v25, %v3884_v25  ;;  %v1768_v19 = vmul.f32 %v3886_v24, %v3886_v24  ;;  %v1769_v33 = vmul.f32 %v3889_v0, %v3889_v0 }
 0x159   : > { %v1636_v42 = vpop.xlane.xlu0 %1635  ;;  %v3910_v27 = vadd.f32 %v1754_v2, %v1746_v63  ;;  %v3912_v55 = vadd.f32 %v1730_v58, %v1720_v12  ;;  %v1747_v36 = vmul.f32 %v3852_v30, %v1563_v5  ;;  %v1721_v20 = vmul.f32 %v3852_v30, %v1618_v49 }
 0x15a   : > { %v1755_v61 = vmul.f32 %v3854_v62, %v1656_v1  ;;  %v1731_v9 = vmul.f32 %v3854_v62, %v1711_v11  ;;  %v1564_v17 = vmul.f32 %v3843_v48, %v1550_v51  ;;  %v1619_v26 = vmul.f32 %v3845_v52, %v1604_v56  ;;  %v1599_v35 = vpop.xlane.xlu1 %1598 }
 0x15b   : > { %v1657_v3 = vmul.f32 %v3848_v53, %v1643_v28  ;;  %v1712_v10 = vmul.f32 %v3850_v54, %v1697_v13  ;;  %v1551_v63 = vmul.f32 0.015625, %v3839_v50  ;;  %v1605_v12 = vmul.f32 0.015625, %v3841_v29 }
 0x15c   : > { %v1644_v2 = vmul.f32 0.015625, %v3856_v37  ;;  %v1698_v58 = vmul.f32 0.015625, %v1686_v8  ;;  %v1814_v49 = vadd.f32 %v1807_v7, %v1806_v31  ;;  %v1776_v1 = vadd.f32 %v1769_v33, %v1768_v19 }
 0x15d   : > { %v1545_v5 = vpop.xlane.xlu0 %1544  ;;  %v1808_v11 = vmul.f32 %v3910_v27, %v3910_v27  ;;  %v1770_v51 = vmul.f32 %v3912_v55, %v3912_v55  ;;  %v3929_v56 = vadd.f32 %v1755_v61, %v1747_v36  ;;  %v3931_v28 = vadd.f32 %v1731_v9, %v1721_v20 }
 0x15e   : > { %v1748_v50 = vmul.f32 %v3852_v30, %v1564_v17  ;;  %v1722_v29 = vmul.f32 %v3852_v30, %v1619_v26  ;;  %v1756_v37 = vmul.f32 %v3854_v62, %v1657_v3  ;;  %v1732_v8 = vmul.f32 %v3854_v62, %v1712_v10 }
 0x15f   : > { %v1565_v13 = vmul.f32 %v3843_v48, %v1551_v63  ;;  %v1620_v31 = vmul.f32 %v3845_v52, %v1605_v12  ;;  %v1658_v7 = vmul.f32 %v3848_v53, %v1644_v2  ;;  %v1713_v19 = vmul.f32 %v3850_v54, %v1698_v58  ;;  %v1692_v12 = vpop.xlane.xlu1 %1691 }
 0x160   : > { %v1552_v33 = vmul.f32 0.015625, %v1543_v4  ;;  %v1645_v36 = vmul.f32 0.015625, %v1636_v42  ;;  %v1815_v20 = vadd.f32 %v1814_v49, %v1808_v11  ;;  %v1777_v61 = vadd.f32 %v1776_v1, %v1770_v51 }
 0x161   : > { %v1606_v9 = vmul.f32 0.015625, %v1596_v16  ;;  %v1699_v17 = vmul.f32 0.015625, %v1689_v34  ;;  %v1638_v60 = vpop.xlane.xlu0 %1637  ;;  %v1809_v3 = vmul.f32 %v3929_v56, %v3929_v56  ;;  %v1771_v10 = vmul.f32 %v3931_v28, %v3931_v28 }
 0x162   : > { %v3945_v26 = vadd.f32 %v1756_v37, %v1748_v50  ;;  %v3947_v63 = vadd.f32 %v1732_v8, %v1722_v29  ;;  %v1749_v2 = vmul.f32 %v3852_v30, %v1565_v13  ;;  %v1723_v4 = vmul.f32 %v3852_v30, %v1620_v31 }
 0x163   : > { %v1757_v42 = vmul.f32 %v3854_v62, %v1658_v7  ;;  %v1733_v16 = vmul.f32 %v3854_v62, %v1713_v19  ;;  %v1566_v34 = vmul.f32 %v3843_v48, %v1552_v33  ;;  %v1659_v58 = vmul.f32 %v3848_v53, %v1645_v36 }
 0x164   : > { %v1553_v49 = vmul.f32 0.015625, %v1545_v5  ;;  %v1646_v1 = vmul.f32 0.015625, %v1638_v60  ;;  %v1621_v11 = vmul.f32 %v3845_v52, %v1606_v9  ;;  %v1714_v51 = vmul.f32 %v3850_v54, %v1699_v17 }
 0x165   : > { %v1607_v50 = vmul.f32 0.015625, %v1599_v35  ;;  %v1700_v29 = vmul.f32 0.015625, %v1692_v12  ;;  %v1816_v37 = vadd.f32 %v1815_v20, %v1809_v3  ;;  %v1778_v8 = vadd.f32 %v1777_v61, %v1771_v10 }
 0x166   : > { %v1810_v13 = vmul.f32 %v3945_v26, %v3945_v26  ;;  %v1772_v31 = vmul.f32 %v3947_v63, %v3947_v63  ;;  %v3961_v7 = vadd.f32 %v1757_v42, %v1749_v2  ;;  %v3963_v19 = vadd.f32 %v1733_v16, %v1723_v4 }
 0x167   : > { %v1750_v60 = vmul.f32 %v3852_v30, %v1566_v34  ;;  %v1758_v5 = vmul.f32 %v3854_v62, %v1659_v58  ;;  %v1567_v33 = vmul.f32 %v3843_v48, %v1553_v49  ;;  %v1660_v35 = vmul.f32 %v3848_v53, %v1646_v1 }
 0x168   : > { %v1724_v36 = vmul.f32 %v3852_v30, %v1621_v11  ;;  %v1734_v20 = vmul.f32 %v3854_v62, %v1714_v51  ;;  %v1622_v61 = vmul.f32 %v3845_v52, %v1607_v50  ;;  %v1715_v9 = vmul.f32 %v3850_v54, %v1700_v29 }
 0x169   : > { %v1817_v17 = vadd.f32 %v1816_v37, %v1810_v13  ;;  %v1779_v3 = vadd.f32 %v1778_v8, %v1772_v31  ;;  %v1811_v10 = vmul.f32 %v3961_v7, %v3961_v7  ;;  %v3975_v12 = vadd.f32 %v1758_v5, %v1750_v60  ;;  %v3997_v13 = vpop.f32.mrb[2].mxu1 }
 0x16a   : > { %v1751_v2 = vmul.f32 %v3852_v30, %v1567_v33  ;;  %v1759_v48 = vmul.f32 %v3854_v62, %v1660_v35  ;;  %v1773_v53 = vmul.f32 %v3963_v19, %v3963_v19  ;;  %v3981_v4 = vadd.f32 %v1734_v20, %v1724_v36  ;;  %v2764_v60 = vpop.f32.mrb[3].mxu1 }
 0x16b   : > { %v1725_v52 = vmul.f32 %v3852_v30, %v1622_v61  ;;  %v1735_v54 = vmul.f32 %v3854_v62, %v1715_v9  ;;  %v1818_v42 = vadd.f32 %v1817_v17, %v1811_v10  ;;  %v1812_v16 = vmul.f32 %v3975_v12, %v3975_v12 }
 0x16c   : > { %v3987_v34 = vadd.f32 %v1759_v48, %v1751_v2  ;;  %v1780_v58 = vadd.f32 %v1779_v3, %v1773_v53  ;;  %v1774_v49 = vmul.f32 %v3981_v4, %v3981_v4 }
 0x16d   : > { %v3991_v1 = vadd.f32 %v1735_v54, %v1725_v52  ;;  %v1819_v11 = vadd.f32 %v1818_v42, %v1812_v16 }
 0x16e   : > { %v1813_v51 = vmul.f32 %v3987_v34, %v3987_v34  ;;  %v1781_v50 = vadd.f32 %v1780_v58, %v1774_v49 }
 0x16f   : > { %v1775_v30 = vmul.f32 %v3991_v1, %v3991_v1 }
 0x170   : > { %v1820_v62 = vadd.f32 %v1819_v11, %v1813_v51 }
 0x171   : > { %v1782_v29 = vadd.f32 %v1781_v50, %v1775_v30 }
 0x172   : > { %v1821_v37 = vrot.slane %v1820_v62, 4 }
 0x173   : > { %v1783_v8 = vrot.slane %v1782_v29, 4 }
 0x174   : > { %v1822_v31 = vadd.f32 %v1821_v37, %v1820_v62 }
 0x175   : > { %v1784_v5 = vadd.f32 %v1783_v8, %v1782_v29 }
 0x176   : > { %v1823_v33 = vrot.slane %v1822_v31, 2 }
 0x177   : > { %v1785_v35 = vrot.slane %v1784_v5, 2 }
 0x178   : > { %v1824_v36 = vadd.f32 %v1823_v33, %v1822_v31 }
 0x179   : > { %v1786_v20 = vadd.f32 %v1785_v35, %v1784_v5 }
 0x17a   : > { %v1825_v61 = vrot.slane %v1824_v36, 1 }
 0x17b   : > { %v1787_v9 = vrot.slane %v1786_v20, 1 }
 0x17c   : > { %v1826_v17 = vadd.f32 %v1825_v61, %v1824_v36 }
 0x17d   : > { %v1788_v3 = vadd.f32 %v1787_v9, %v1786_v20 }
 0x17e   : > { %3051 = vrsqrt.f32 %v1826_v17  ;;  %vm1829_vm3 = vcmp.eq.f32.partialorder %v1826_v17, inf  ;;  %v1832_v52 = vand.u32 2147483648, %v1826_v17  ;;  %vm1831_vm5 = vcmp.eq.f32.partialorder %v1826_v17, 0.0 }
 0x17f   : > { %3053 = vrsqrt.f32 %v1788_v3  ;;  %vm1791_vm4 = vcmp.eq.f32.partialorder %v1788_v3, inf  ;;  %v1794_v42 = vand.u32 2147483648, %v1788_v3  ;;  %vm1793_vm6 = vcmp.eq.f32.partialorder %v1788_v3, 0.0 }
 0x188   : > { %v3052_v10 = vpop.eup %3051 }
 0x189   : > { %v3054_v2 = vpop.eup %3053  ;;  %v1828_v48 = vmul.f32 %v3052_v10, %v1826_v17 }
 0x18a   : > { %v1790_v53 = vmul.f32 %v3054_v2, %v1788_v3 }
 0x18b   : > { %v1830_v54 = vsel %vm1829_vm3, %v1826_v17, %v1828_v48 }
 0x18c   : > { %v1792_v16 = vsel %vm1791_vm4, %v1788_v3, %v1790_v53  ;;  %v1833_v58 = vsel %vm1831_vm5, %v1832_v52, %v1830_v54 }
 0x18d   : > { %v1795_v49 = vsel %vm1793_vm6, %v1794_v42, %v1792_v16  ;;  %v1834_v11 = vadd.f32 1e-06, %v1833_v58 }
 0x18e   : > { %v1796_v51 = vadd.f32 1e-06, %v1795_v49 }
 0x18f   : > { %3055 = vrcp.f32 %v1834_v11 }
 0x190   : > { %3057 = vrcp.f32 %v1796_v51 }
 0x199   : > { %v3056_v50 = vpop.eup %3055 }
 0x19a   : > { %v3058_v30 = vpop.eup %3057  ;;  %v4000_v62 = vmul.f32 %v3056_v50, %v3882_v15  ;;  %v4003_v29 = vmul.f32 %v3056_v50, %v3884_v25  ;;  %v4012_v31 = vmul.f32 %v3056_v50, %v3910_v27  ;;  %v4030_v33 = vmul.f32 %v3056_v50, %v3929_v56 }
 0x19b   : > { %v4006_v37 = vmul.f32 %v3058_v30, %v3886_v24  ;;  %v4009_v8 = vmul.f32 %v3058_v30, %v3889_v0  ;;  %v4019_v15 = vmul.f32 %v3058_v30, %v3912_v55  ;;  %v4035_v36 = vmul.f32 %v3058_v30, %v3931_v28 }
 0x19c   : > { %4373 = vst [vmem:[#allocation7_spill] sm:$0xff] %v4000_v62  ;;  %4374 = vst [vmem:[#allocation8_spill] sm:$0xff] %v4003_v29  ;;  %v1886_v60 = vmul.f32 %v4000_v62, %v4000_v62  ;;  %v1887_v5 = vmul.f32 %v4003_v29, %v4003_v29  ;;  %v1888_v35 = vmul.f32 %v4012_v31, %v4012_v31 }
 0x19d   : > { %4375 = vst [vmem:[#allocation9_spill] sm:$0xff] %v4006_v37  ;;  %4376 = vst [vmem:[#allocation10_spill] sm:$0xff] %v4009_v8  ;;  %v1844_v25 = vmul.f32 %v4006_v37, %v4006_v37  ;;  %v1845_v24 = vmul.f32 %v4009_v8, %v4009_v8  ;;  %v1865_v0 = vmul.f32 %v4000_v62, %v4006_v37 }
 0x19e   : > { %4377 = vst [vmem:[#allocation11_spill] sm:$0xff] %v4019_v15  ;;  %v1866_v27 = vmul.f32 %v4003_v29, %v4009_v8  ;;  %4378 = vst [vmem:[#allocation12_spill] sm:$0xff] %v4030_v33  ;;  %v1894_v55 = vadd.f32 %v1887_v5, %v1886_v60  ;;  %v1846_v20 = vmul.f32 %v4019_v15, %v4019_v15 }
 0x19f   : > { %4379 = vst [vmem:[#allocation13_spill] sm:$0xff] %v4035_v36  ;;  %v1852_v61 = vadd.f32 %v1845_v24, %v1844_v25  ;;  %v1867_v9 = vmul.f32 %v4012_v31, %v4019_v15  ;;  %v4042_v3 = vmul.f32 %v3056_v50, %v3945_v26  ;;  %v1889_v56 = vmul.f32 %v4030_v33, %v4030_v33 }
 0x1a0   : > { %v1873_v17 = vadd.f32 %v1866_v27, %v1865_v0  ;;  %v1895_v10 = vadd.f32 %v1894_v55, %v1888_v35  ;;  %v4047_v2 = vmul.f32 %v3058_v30, %v3947_v63  ;;  %v1847_v28 = vmul.f32 %v4035_v36, %v4035_v36 }
 0x1a1   : > { %v1853_v48 = vadd.f32 %v1852_v61, %v1846_v20  ;;  %v1868_v53 = vmul.f32 %v4030_v33, %v4035_v36  ;;  %v4054_v54 = vmul.f32 %v3056_v50, %v3961_v7  ;;  %v1890_v26 = vmul.f32 %v4042_v3, %v4042_v3 }
 0x1a2   : > { %v1874_v52 = vadd.f32 %v1873_v17, %v1867_v9  ;;  %v4059_v42 = vmul.f32 %v3058_v30, %v3963_v19  ;;  %v1848_v63 = vmul.f32 %v4047_v2, %v4047_v2  ;;  %v1896_v16 = vadd.f32 %v1895_v10, %v1889_v56 }
 0x1a3   : > { %v1854_v58 = vadd.f32 %v1853_v48, %v1847_v28  ;;  %v1869_v49 = vmul.f32 %v4042_v3, %v4047_v2  ;;  %v4066_v51 = vmul.f32 %v3056_v50, %v3975_v12  ;;  %v1891_v7 = vmul.f32 %v4054_v54, %v4054_v54 }
 0x1a4   : > { %v1875_v11 = vadd.f32 %v1874_v52, %v1868_v53  ;;  %v4071_v60 = vmul.f32 %v3058_v30, %v3981_v4  ;;  %v1849_v19 = vmul.f32 %v4059_v42, %v4059_v42  ;;  %v1897_v5 = vadd.f32 %v1896_v16, %v1890_v26 }
 0x1a5   : > { %v1855_v25 = vadd.f32 %v1854_v58, %v1848_v63  ;;  %v1870_v24 = vmul.f32 %v4054_v54, %v4059_v42  ;;  %v4078_v27 = vmul.f32 %v3056_v50, %v3987_v34  ;;  %v1892_v12 = vmul.f32 %v4066_v51, %v4066_v51  ;;  %v4095_v63 = vpop.permute.xlu1 %2016 }
 0x1a6   : > { %v1876_v0 = vadd.f32 %v1875_v11, %v1869_v49  ;;  %v4083_v35 = vmul.f32 %v3058_v30, %v3991_v1  ;;  %v1850_v4 = vmul.f32 %v4071_v60, %v4071_v60  ;;  %v1898_v55 = vadd.f32 %v1897_v5, %v1891_v7 }
 0x1a7   : > { %v1856_v20 = vadd.f32 %v1855_v25, %v1849_v19  ;;  %v1871_v61 = vmul.f32 %v4066_v51, %v4071_v60  ;;  %v1893_v17 = vmul.f32 %v4078_v27, %v4078_v27 }
 0x1a8   : > { %v1877_v9 = vadd.f32 %v1876_v0, %v1870_v24  ;;  %v1851_v34 = vmul.f32 %v4083_v35, %v4083_v35  ;;  %v1899_v50 = vadd.f32 %v1898_v55, %v1892_v12  ;;  %v1872_v1 = vmul.f32 %v4078_v27, %v4083_v35 }
 0x1a9   : > { %v1857_v56 = vadd.f32 %v1856_v20, %v1850_v4  ;;  %v4097_v5 = vpop.permute.xlu1 %2021 }
 0x1aa   : > { %v1878_v30 = vadd.f32 %v1877_v9, %v1871_v61  ;;  %v1900_v53 = vadd.f32 %v1899_v50, %v1893_v17 }
 0x1ab   : > { %v1858_v52 = vadd.f32 %v1857_v56, %v1851_v34 }
 0x1ac   : > { %v1879_v26 = vadd.f32 %v1878_v30, %v1872_v1  ;;  %v1901_v16 = vrot.slane %v1900_v53, 4 }
 0x1ad   : > { %v1859_v58 = vrot.slane %v1858_v52, 4  ;;  %v4099_v55 = vpop.permute.xlu1 %2026 }
 0x1ae   : > { %v1880_v49 = vrot.slane %v1879_v26, 4  ;;  %v1902_v11 = vadd.f32 %v1901_v16, %v1900_v53 }
 0x1af   : > { %v1860_v7 = vadd.f32 %v1859_v58, %v1858_v52 }
 0x1b0   : > { %v1881_v19 = vadd.f32 %v1880_v49, %v1879_v26  ;;  %v1903_v0 = vrot.slane %v1902_v11, 2 }
 0x1b1   : > { %v1861_v12 = vrot.slane %v1860_v7, 2  ;;  %v4101_v56 = vpop.permute.xlu1 %2031 }
 0x1b2   : > { %v1882_v4 = vrot.slane %v1881_v19, 2  ;;  %v1904_v20 = vadd.f32 %v1903_v0, %v1902_v11 }
 0x1b3   : > { %v1862_v61 = vadd.f32 %v1861_v12, %v1860_v7 }
 0x1b4   : > { %v1883_v9 = vadd.f32 %v1882_v4, %v1881_v19  ;;  %v1905_v17 = vrot.slane %v1904_v20, 1 }
 0x1b5   : > { %v1863_v34 = vrot.slane %v1862_v61, 1  ;;  %v4115_v49 = vpop.permute.xlu1 %2036 }
 0x1b6   : > { %v1884_v50 = vrot.slane %v1883_v9, 1 }
 0x1f8   : > { %v1028_v10 = vpop.f32.mrb[2].mxu0 }
 0x1f9   : > { %v2487_v28 = vmul.f32 -1.442695, %v1028_v10  ;;  %v2726_v48 = vpop.f32.mrb[3].mxu0  ;;  %v4104_v10 = vadd.f32 %v1905_v17, %v1904_v20 }
 0x1fa   : > { %v4108_v48 = vadd.f32 %v1884_v50, %v1883_v9 }
 0x1fb   : > { %3059 = vpow2.f32 %v2487_v28  ;;  %v4106_v28 = vadd.f32 %v1863_v34, %v1862_v61 }
 0x205   : > { %v3060_v25 = vpop.eup %3059 }
 0x206   : > { %v1035_v24 = vadd.f32 1.0, %v3060_v25  ;;  %v1907_v25 = vmul.f32 %v4104_v10, %v4106_v28 }
 0x208   : > { %3061 = vrcp.f32 %v1035_v24  ;;  %v1908_v24 = vmul.f32 %v4108_v48, %v4108_v48 }
 0x212   : > { %v3062_v1 = vpop.eup %3061 }
 0x213   : > { %v1936_v30 = vrot.slane %v3062_v1, %v3255_v18 }
 0x215   : > { %v1937_v53 = vmul.f32 %v1936_v30, %v3315_v38  ;;  %v1938_v52 = vmul.f32 %v1936_v30, %v3318_v39  ;;  %v1939_v26 = vmul.f32 %v1936_v30, %v3321_v40  ;;  %v1940_v16 = vmul.f32 %v1936_v30, %v3330_v43 }
 0x216   : > { %v1941_v58 = vmul.f32 %v1936_v30, %v3333_v44  ;;  %v1942_v20 = vmul.f32 %v1936_v30, %v3336_v45  ;;  %v1943_v50 = vmul.f32 %v1936_v30, %v3340_v46 }
 0x217   : > { %v1945_v11 = vmul.f32 %v1937_v53, %v4006_v37  ;;  %v1946_v7 = vmul.f32 %v1938_v52, %v4009_v8  ;;  %v1947_v19 = vmul.f32 %v1939_v26, %v4019_v15  ;;  %v1974_v0 = vmul.f32 %v1937_v53, %v4000_v62 }
 0x218   : > { %v1975_v12 = vmul.f32 %v1938_v52, %v4003_v29  ;;  %v1364_v4 = vpop.f32.mrb[4].mxu0  ;;  %v1948_v61 = vmul.f32 %v1940_v16, %v4035_v36  ;;  %v1949_v1 = vmul.f32 %v1941_v58, %v4047_v2  ;;  %v1976_v8 = vmul.f32 %v1939_v26, %v4012_v31 }
 0x219   : > { %v1953_v9 = vsel %vm553_vm2, %v1945_v11, 0.0  ;;  %v1954_v17 = vsel %vm553_vm2, %v1946_v7, 0.0  ;;  %v2802_v34 = vpop.f32.mrb[5].mxu0  ;;  %v1956_v53 = vsel %vm553_vm2, %v1947_v19, 0.0  ;;  %v1977_v52 = vmul.f32 %v1940_v16, %v4030_v33 }
 0x21a   : > { %v1955_v15 = vadd.f32 %v1954_v17, %v1953_v9  ;;  %v1982_v29 = vsel %vm553_vm2, %v1974_v0, 0.0  ;;  %v1983_v62 = vsel %vm553_vm2, %v1975_v12, 0.0  ;;  %v1944_v11 = vmul.f32 %v1936_v30, %v3343_v47  ;;  %v4138_v34 = vpop.permute.xlu1 %2041 }
 0x21b   : > { %v1984_v7 = vadd.f32 %v1983_v62, %v1982_v29  ;;  %v1950_v37 = vmul.f32 %v1942_v20, %v4059_v42  ;;  %v1958_v9 = vsel %vm553_vm2, %v1948_v61, 0.0  ;;  %v1978_v26 = vmul.f32 %v1941_v58, %v4042_v3 }
 0x21c   : > { %v1957_v36 = vadd.f32 %v1956_v53, %v1955_v15  ;;  %v1985_v19 = vsel %vm553_vm2, %v1976_v8, 0.0  ;;  %v1909_v17 = vsub.f32 %v1907_v25, %v1908_v24  ;;  %v1979_v16 = vmul.f32 %v1942_v20, %v4054_v54  ;;  %v4154_v20 = vpop.permute.xlu0 %2011 }
 0x21d   : > { %v1986_v0 = vadd.f32 %v1985_v19, %v1984_v7  ;;  %v1987_v12 = vsel %vm553_vm2, %v1977_v52, 0.0  ;;  %v1951_v15 = vmul.f32 %v1943_v50, %v4071_v60  ;;  %v1960_v62 = vsel %vm553_vm2, %v1949_v1, 0.0 }
 0x21e   : > { %v1959_v33 = vadd.f32 %v1958_v9, %v1957_v36  ;;  %v1368_v29 = vmax.f32 %v1364_v4, 0.0  ;;  %v1952_v61 = vmul.f32 %v1944_v11, %v4083_v35  ;;  %v1962_v58 = vsel %vm553_vm2, %v1950_v37, 0.0  ;;  %v4156_v1 = vpop.permute.xlu1 %2046 }
 0x21f   : > { %v1988_v53 = vadd.f32 %v1987_v12, %v1986_v0  ;;  %v1980_v8 = vmul.f32 %v1943_v50, %v4066_v51  ;;  %v1989_v25 = vsel %vm553_vm2, %v1978_v26, 0.0  ;;  %3063 = vrcp.f32 %v1909_v17 }
 0x220   : > { %v1961_v30 = vadd.f32 %v1960_v62, %v1959_v33  ;;  %2820 = vmatmul.mubr.msk.f32.vlgmr.msra.gmra.mrb[4].mxu1 %vm553_vm2, %v1368_v29  ;;  %v4380_v33 = vmov 0.0   ;;  %v1964_v37 = vsel %vm553_vm2, %v1951_v15, 0.0  ;;  %v1981_v4 = vmul.f32 %v1944_v11, %v4078_v27  ;;  %v4169_v12 = vpop.permute.xlu0 %2064 }
 0x221   : > { %v1990_v24 = vadd.f32 %v1989_v25, %v1988_v53  ;;  %2975 = vmatpush3.bf16.msra.mxu1 %v3756_v59  ;;  %2838 = vmatprep.mubr.msk.f32.mxu1 %vm3110_vm0, %v4380_v33  ;;  %v1991_v50 = vsel %vm553_vm2, %v1979_v16, 0.0  ;;  %v1966_v59 = vsel %vm553_vm2, %v1952_v61, 0.0  ;;  %v1993_v9 = vsel %vm553_vm2, %v1980_v8, 0.0 }
 0x222   : > { %v1963_v36 = vadd.f32 %v1962_v58, %v1961_v30  ;;  %2976 = vmatprep.subr.bf16.mxu1 %v4372_v41  ;;  %v1995_v17 = vsel %vm553_vm2, %v1981_v4, 0.0  ;;  %v4171_v16 = vpop.permute.xlu1 %2059  ;;  %v1913_v29 = vsub.f32 0.0, %v4108_v48 }
 0x223   : > { %v1992_v7 = vadd.f32 %v1991_v50, %v1990_v24 }
 0x224   : > { %v1965_v52 = vadd.f32 %v1964_v37, %v1963_v36  ;;  %v4177_v8 = vpop.permute.xlu0 %2074  ;;  %v1227_v36 = vmax.f32 %v3997_v13, 0.0 }
 0x225   : > { %v1994_v19 = vadd.f32 %v1993_v9, %v1992_v7  ;;  %2978 = vmatpush3.bf16.msra.mxu1 %v3766_v14  ;;  %4381 = vst [vmem:[#allocation14_spill] sm:$0xff] %v4177_v8 }
 0x226   : > { %v1967_v26 = vadd.f32 %v1966_v59, %v1965_v52  ;;  %2979 = vmatprep.subr.bf16.mxu1 %v4372_v41  ;;  %v4179_v25 = vpop.permute.xlu1 %2069 }
 0x227   : > { %v1996_v11 = vadd.f32 %v1995_v17, %v1994_v19  ;;  %4382 = vst [vmem:[#allocation15_spill] sm:$0xff] %v4179_v25 }
 0x228   : > { %v1968_v0 = vrot.slane %v1967_v26, 4  ;;  %v4193_v13 = vpop.permute.xlu0 %2084 }
 0x229   : > { %v1997_v62 = vrot.slane %v1996_v11, 4  ;;  %2981 = vmatpush3.bf16.msra.mxu1 %v3778_v6  ;;  %v3064_v53 = vpop.eup %3063  ;;  %4383 = vst [vmem:[#allocation16_spill] sm:$0xff] %v4193_v13 }
 0x22a   : > { %v1969_v15 = vadd.f32 %v1968_v0, %v1967_v26  ;;  %2982 = vmatprep.subr.bf16.mxu1 %v4372_v41  ;;  %v4182_v24 = vmul.f32 %v3064_v53, %v1913_v29  ;;  %v4185_v6 = vmul.f32 %v3064_v53, %v4104_v10  ;;  %v4189_v33 = vmul.f32 %v3064_v53, %v4106_v28  ;;  %v4195_v7 = vpop.permute.xlu1 %2079 }
 0x22b   : > { %v1998_v14 = vadd.f32 %v1997_v62, %v1996_v11  ;;  %4384 = vst [vmem:[#allocation17_spill] sm:$0xff] %v4195_v7 }
 0x22c   : > { %v1970_v30 = vrot.slane %v1969_v15, 2  ;;  %v4203_v11 = vpop.permute.xlu0 %2094 }
 0x22d   : > { %v1999_v58 = vrot.slane %v1998_v14, 2  ;;  %2984 = vmatpush3.bf16.msra.mxu1 %v3788_v32  ;;  %4385 = vst [vmem:[#allocation18_spill] sm:$0xff] %v4203_v11 }
 0x22e   : > { %v1971_v61 = vadd.f32 %v1970_v30, %v1969_v15  ;;  %v4205_v15 = vpop.permute.xlu1 %2089 }
 0x22f   : > { %v2000_v48 = vadd.f32 %v1999_v58, %v1998_v14 }
 0x230   : > { %v1972_v41 = vrot.slane %v1971_v61, 1  ;;  %2839 = vmatmul.mubr.msk.f32.vlgmr.msra.gmra.mrb[4].mxu1 %vm553_vm2, %v1227_v36 }
 0x231   : > { %v2001_v32 = vrot.slane %v2000_v48, 1 }
 0x232   : > { %v1973_v37 = vadd.f32 %v1972_v41, %v1971_v61 }
 0x233   : > { %v2002_v4 = vadd.f32 %v2001_v32, %v2000_v48 }
 0x234   : > { %v2003_v50 = vmul.f32 %v1973_v37, %v4185_v6  ;;  %v2006_v52 = vmul.f32 %v1973_v37, %v4182_v24 }
 0x235   : > { %v2004_v10 = vmul.f32 %v2002_v4, %v4182_v24  ;;  %v2007_v59 = vmul.f32 %v2002_v4, %v4189_v33 }
 0x237   : > { %v2005_v9 = vadd.f32 %v2004_v10, %v2003_v50  ;;  %v2008_v26 = vadd.f32 %v2007_v59, %v2006_v52 }
 0x239   : > { %v2050_v28 = vmul.f32 %v4095_v63, %v2005_v9  ;;  %v2051_v19 = vmul.f32 %v4097_v5, %v2005_v9  ;;  %v2052_v17 = vmul.f32 %v4099_v55, %v2005_v9  ;;  %v2053_v0 = vmul.f32 %v4101_v56, %v2005_v9 }
 0x23a   : > { %v2054_v62 = vmul.f32 %v4115_v49, %v2005_v9  ;;  %v2055_v29 = vmul.f32 %v4138_v34, %v2005_v9  ;;  %v2049_v30 = vmul.f32 %v4154_v20, %v2005_v9  ;;  %v2056_v14 = vmul.f32 %v4156_v1, %v2005_v9 }
 0x23b   : > { %v2098_v53 = vmul.f32 %v4169_v12, %v2008_v26  ;;  %v2097_v61 = vmul.f32 %v4171_v16, %v2008_v26  ;;  %v2100_v58 = vmul.f32 %v4177_v8, %v2008_v26  ;;  %v2099_v36 = vmul.f32 %v4179_v25, %v2008_v26 }
 0x23c   : > { %v2102_v41 = vmul.f32 %v4193_v13, %v2008_v26  ;;  %v2101_v48 = vmul.f32 %v4195_v7, %v2008_v26  ;;  %v2104_v37 = vmul.f32 %v4203_v11, %v2008_v26  ;;  %v2103_v32 = vmul.f32 %v4205_v15, %v2008_v26 }
 0x23d   : > { %v2106_v4 = vadd.f32 %v2098_v53, %v2050_v28  ;;  %v2105_v50 = vadd.f32 %v2097_v61, %v2049_v30  ;;  %v2108_v52 = vadd.f32 %v2100_v58, %v2052_v17  ;;  %v2107_v10 = vadd.f32 %v2099_v36, %v2051_v19  ;;  %v4389_v53 = vld [vmem:[#allocation11_spill] sm:$0xff]  ;;  %v4390_v58 = vld [vmem:[#allocation4_spill] sm:$0xff] }
 0x23e   : > { %v2110_v59 = vadd.f32 %v2102_v41, %v2054_v62  ;;  %v2109_v9 = vadd.f32 %v2101_v48, %v2053_v0  ;;  %v2112_v8 = vadd.f32 %v2104_v37, %v2056_v14  ;;  %v2111_v25 = vadd.f32 %v2103_v32, %v2055_v29  ;;  %v4388_v29 = vld [vmem:[#allocation10_spill] sm:$0xff]  ;;  %v4391_v41 = vld [vmem:[#allocation13_spill] sm:$0xff] }
 0x23f   : > { %v2114_v13 = vadd.f32 %v2106_v4, %v3318_v39  ;;  %v2113_v7 = vadd.f32 %v2105_v50, %v3315_v38  ;;  %v2116_v11 = vadd.f32 %v2108_v52, %v3330_v43  ;;  %v2115_v26 = vadd.f32 %v2107_v10, %v3321_v40  ;;  %v4392_v32 = vld [vmem:[#allocation5_spill] sm:$0xff] }
 0x240   : > { %v2118_v28 = vadd.f32 %v2110_v59, %v3336_v45  ;;  %v2117_v19 = vadd.f32 %v2109_v9, %v3333_v44  ;;  %v2120_v17 = vadd.f32 %v2112_v8, %v3343_v47  ;;  %v2119_v30 = vadd.f32 %v2111_v25, %v3340_v46  ;;  %v4393_v59 = vld [vmem:[#allocation7_spill] sm:$0xff] }
 0x241   : > { %2122 = vst.msk [vmem:[%s445_s23 + $0x8] sm:$0xff] %vm553_vm2, %v2114_v13  ;;  %2121 = vst.msk [vmem:[%s445_s23] sm:$0xff] %vm553_vm2, %v2113_v7  ;;  %v4386_v7 = vld [vmem:[#allocation3_spill] sm:$0xff] }
 0x242   : > { %2124 = vst.msk [vmem:[%s445_s23 + $0x18] sm:$0xff] %vm553_vm2, %v2116_v11  ;;  %2123 = vst.msk [vmem:[%s445_s23 + $0x10] sm:$0xff] %vm553_vm2, %v2115_v26  ;;  %v4387_v11 = vld [vmem:[#allocation9_spill] sm:$0xff]  ;;  %v4394_v26 = vld [vmem:[#allocation8_spill] sm:$0xff] }
 0x243   : > { %2126 = vst.msk [vmem:[%s445_s23 + $0x28] sm:$0xff] %vm553_vm2, %v2118_v28  ;;  %2125 = vst.msk [vmem:[%s445_s23 + $0x20] sm:$0xff] %vm553_vm2, %v2117_v19 }
 0x244   : > { %2128 = vst.msk [vmem:[%s445_s23 + $0x38] sm:$0xff] %vm553_vm2, %v2120_v17  ;;  %2127 = vst.msk [vmem:[%s445_s23 + $0x30] sm:$0xff] %vm553_vm2, %v2119_v30  ;;  %v4395_v17 = vld [vmem:[#allocation6_spill] sm:$0xff] }
 0x303   : > { %v1511_v38 = vpop.f32.mrb[4].mxu1 }
 0x304   : > { %v2494_v39 = vmul.f32 -1.442695, %v1511_v38  ;;  %v2840_v40 = vpop.f32.mrb[5].mxu1 }
 0x306   : > { %3065 = vpow2.f32 %v2494_v39 }
 0x310   : > { %v3066_v43 = vpop.eup %3065 }
 0x311   : > { %v1518_v44 = vadd.f32 1.0, %v3066_v43  ;;  %v4396_v43 = vld [vmem:[#allocation12_spill] sm:$0xff] }
 0x313   : > { %3067 = vrcp.f32 %v1518_v44 }
 0x31d   : > { %v3068_v45 = vpop.eup %3067 }
 0x31e   : > { %v2132_v46 = vrot.slane %v3068_v45, %v3255_v18 }
 0x320   : > { %v2133_v47 = vmul.f32 %v2132_v46, %v3402_v22  ;;  %v2134_v8 = vmul.f32 %v2132_v46, %v3405_v23  ;;  %v2135_v25 = vmul.f32 %v2132_v46, %v3583_v21  ;;  %v2136_v13 = vmul.f32 %v2132_v46, %v3594_v57 }
 0x321   : > { %v2137_v0 = vmul.f32 %v2132_v46, %v4386_v7  ;;  %v2138_v36 = vmul.f32 %v2132_v46, %v4390_v58  ;;  %v2139_v4 = vmul.f32 %v2132_v46, %v4392_v32  ;;  %v2140_v30 = vmul.f32 %v2132_v46, %v4395_v17 }
 0x322   : > { %v2141_v62 = vmul.f32 %v2133_v47, %v4387_v11  ;;  %v2142_v14 = vmul.f32 %v2134_v8, %v4388_v29  ;;  %v2143_v61 = vmul.f32 %v2135_v25, %v4389_v53  ;;  %v2144_v18 = vmul.f32 %v2136_v13, %v4391_v41 }
 0x323   : > { %v2145_v50 = vmul.f32 %v2137_v0, %v4047_v2  ;;  %v2170_v9 = vmul.f32 %v2133_v47, %v4393_v59  ;;  %v2171_v28 = vmul.f32 %v2134_v8, %v4394_v26  ;;  %v2172_v19 = vmul.f32 %v2135_v25, %v4012_v31 }
 0x324   : > { %v2149_v48 = vsel %vm553_vm2, %v2141_v62, 0.0  ;;  %v2150_v37 = vsel %vm553_vm2, %v2142_v14, 0.0  ;;  %v2152_v10 = vsel %vm553_vm2, %v2143_v61, 0.0  ;;  %v2146_v38 = vmul.f32 %v2138_v36, %v4059_v42 }
 0x325   : > { %v2151_v52 = vadd.f32 %v2150_v37, %v2149_v48  ;;  %v2154_v40 = vsel %vm553_vm2, %v2144_v18, 0.0  ;;  %v2173_v44 = vmul.f32 %v2136_v13, %v4396_v43  ;;  %v2178_v2 = vsel %vm553_vm2, %v2170_v9, 0.0 }
 0x326   : > { %v2179_v45 = vsel %vm553_vm2, %v2171_v28, 0.0  ;;  %v2147_v47 = vmul.f32 %v2139_v4, %v4071_v60  ;;  %v2156_v8 = vsel %vm553_vm2, %v2145_v50, 0.0  ;;  %v2174_v31 = vmul.f32 %v2137_v0, %v4042_v3 }
 0x327   : > { %v2153_v39 = vadd.f32 %v2152_v10, %v2151_v52  ;;  %v2180_v62 = vadd.f32 %v2179_v45, %v2178_v2  ;;  %v2181_v46 = vsel %vm553_vm2, %v2172_v19, 0.0  ;;  %v2148_v29 = vmul.f32 %v2140_v30, %v4083_v35 }
 0x328   : > { %v2158_v13 = vsel %vm553_vm2, %v2146_v38, 0.0  ;;  %v2175_v14 = vmul.f32 %v2138_v36, %v4054_v54  ;;  %v2183_v53 = vsel %vm553_vm2, %v2173_v44, 0.0  ;;  %v2160_v60 = vsel %vm553_vm2, %v2147_v47, 0.0 }
 0x329   : > { %v2155_v11 = vadd.f32 %v2154_v40, %v2153_v39  ;;  %v2182_v25 = vadd.f32 %v2181_v46, %v2180_v62  ;;  %v2176_v18 = vmul.f32 %v2139_v4, %v4066_v51  ;;  %v2185_v3 = vsel %vm553_vm2, %v2174_v31, 0.0 }
 0x32a   : > { %v2162_v37 = vsel %vm553_vm2, %v2148_v29, 0.0  ;;  %v2177_v35 = vmul.f32 %v2140_v30, %v4078_v27  ;;  %v2187_v50 = vsel %vm553_vm2, %v2175_v14, 0.0 }
 0x32b   : > { %v2157_v42 = vadd.f32 %v2156_v8, %v2155_v11  ;;  %v2184_v41 = vadd.f32 %v2183_v53, %v2182_v25  ;;  %v2189_v36 = vsel %vm553_vm2, %v2176_v18, 0.0  ;;  %v4401_v18 = vld [vmem:[#allocation18_spill] sm:$0xff] }
 0x32c   : > { %v2191_v9 = vsel %vm553_vm2, %v2177_v35, 0.0 }
 0x32d   : > { %v2159_v61 = vadd.f32 %v2158_v13, %v2157_v42  ;;  %v2186_v48 = vadd.f32 %v2185_v3, %v2184_v41 }
 0x32f   : > { %v2161_v0 = vadd.f32 %v2160_v60, %v2159_v61  ;;  %v2188_v54 = vadd.f32 %v2187_v50, %v2186_v48 }
 0x331   : > { %v2163_v52 = vadd.f32 %v2162_v37, %v2161_v0  ;;  %v2190_v59 = vadd.f32 %v2189_v36, %v2188_v54 }
 0x333   : > { %v2164_v10 = vrot.slane %v2163_v52, 4  ;;  %v2192_v51 = vadd.f32 %v2191_v9, %v2190_v59 }
 0x335   : > { %v2165_v26 = vadd.f32 %v2164_v10, %v2163_v52  ;;  %v2193_v28 = vrot.slane %v2192_v51, 4 }
 0x337   : > { %v2166_v4 = vrot.slane %v2165_v26, 2  ;;  %v2194_v38 = vadd.f32 %v2193_v28, %v2192_v51 }
 0x339   : > { %v2167_v19 = vadd.f32 %v2166_v4, %v2165_v26  ;;  %v2195_v40 = vrot.slane %v2194_v38, 2 }
 0x33b   : > { %v2168_v39 = vrot.slane %v2167_v19, 1  ;;  %v2196_v27 = vadd.f32 %v2195_v40, %v2194_v38 }
 0x33d   : > { %v2169_v43 = vadd.f32 %v2168_v39, %v2167_v19  ;;  %v2197_v30 = vrot.slane %v2196_v27, 1 }
 0x33f   : > { %v2198_v44 = vadd.f32 %v2197_v30, %v2196_v27  ;;  %v2199_v2 = vmul.f32 %v2169_v43, %v4185_v6  ;;  %v2202_v45 = vmul.f32 %v2169_v43, %v4182_v24 }
 0x341   : > { %v2200_v11 = vmul.f32 %v2198_v44, %v4182_v24  ;;  %v2203_v62 = vmul.f32 %v2198_v44, %v4189_v33 }
 0x343   : > { %v2201_v47 = vadd.f32 %v2200_v11, %v2199_v2  ;;  %v2204_v8 = vadd.f32 %v2203_v62, %v2202_v45 }
 0x345   : > { %v2205_v31 = vmul.f32 %v2201_v47, %v4154_v20  ;;  %v2206_v46 = vmul.f32 %v2201_v47, %v4095_v63  ;;  %v2207_v42 = vmul.f32 %v2201_v47, %v4097_v5  ;;  %v2208_v25 = vmul.f32 %v2201_v47, %v4099_v55  ;;  %v4397_v20 = vld [vmem:[#allocation15_spill] sm:$0xff]  ;;  %v4398_v63 = vld [vmem:[#allocation14_spill] sm:$0xff]  ;;  %v4399_v5 = vld [vmem:[#allocation17_spill] sm:$0xff] }
 0x346   : > { %v2209_v29 = vmul.f32 %v2201_v47, %v4101_v56  ;;  %v2210_v6 = vmul.f32 %v2201_v47, %v4115_v49  ;;  %v2211_v13 = vmul.f32 %v2201_v47, %v4138_v34  ;;  %v2212_v24 = vmul.f32 %v2201_v47, %v4156_v1  ;;  %v4400_v55 = vld [vmem:[#allocation16_spill] sm:$0xff] }
 0x347   : > { %v2213_v33 = vmul.f32 %v2204_v8, %v4171_v16  ;;  %v2214_v14 = vmul.f32 %v2204_v8, %v4169_v12  ;;  %v2215_v53 = vmul.f32 %v2204_v8, %v4397_v20  ;;  %v2216_v61 = vmul.f32 %v2204_v8, %v4398_v63 }
 0x348   : > { %v2217_v41 = vmul.f32 %v2204_v8, %v4399_v5  ;;  %v2218_v60 = vmul.f32 %v2204_v8, %v4400_v55  ;;  %v2219_v56 = vmul.f32 %v2204_v8, %v4205_v15  ;;  %v2220_v49 = vmul.f32 %v2204_v8, %v4401_v18 }
 0x349   : > { %v2221_v3 = vadd.f32 %v2213_v33, %v2205_v31  ;;  %v2222_v34 = vadd.f32 %v2214_v14, %v2206_v46  ;;  %v2223_v0 = vadd.f32 %v2215_v53, %v2207_v42  ;;  %v2224_v1 = vadd.f32 %v2216_v61, %v2208_v25 }
 0x34a   : > { %v2225_v12 = vadd.f32 %v2217_v41, %v2209_v29  ;;  %v2226_v16 = vadd.f32 %v2218_v60, %v2210_v6  ;;  %v2227_v48 = vadd.f32 %v2219_v56, %v2211_v13  ;;  %v2228_v37 = vadd.f32 %v2220_v49, %v2212_v24 }
 0x34b   : > { %v2229_v35 = vadd.f32 %v2221_v3, %v3402_v22  ;;  %v2230_v50 = vadd.f32 %v2222_v34, %v3405_v23  ;;  %v2231_v15 = vadd.f32 %v2223_v0, %v3583_v21  ;;  %v2232_v52 = vadd.f32 %v2224_v1, %v3594_v57 }
 0x34c   : > { %v2233_v54 = vadd.f32 %v2225_v12, %v4386_v7  ;;  %v2234_v36 = vadd.f32 %v2226_v16, %v4390_v58  ;;  %v2235_v10 = vadd.f32 %v2227_v48, %v4392_v32  ;;  %v2236_v59 = vadd.f32 %v2228_v37, %v4395_v17 }
 0x34d   : > { %2237 = vst.msk [vmem:[%s454_s27] sm:$0xff] %vm553_vm2, %v2229_v35  ;;  %2238 = vst.msk [vmem:[%s454_s27 + $0x8] sm:$0xff] %vm553_vm2, %v2230_v50 }
 0x34e   : > { %2239 = vst.msk [vmem:[%s454_s27 + $0x10] sm:$0xff] %vm553_vm2, %v2231_v15  ;;  %2240 = vst.msk [vmem:[%s454_s27 + $0x18] sm:$0xff] %vm553_vm2, %v2232_v52 }
 0x34f   : > { %2241 = vst.msk [vmem:[%s454_s27 + $0x20] sm:$0xff] %vm553_vm2, %v2233_v54  ;;  %2242 = vst.msk [vmem:[%s454_s27 + $0x28] sm:$0xff] %vm553_vm2, %v2234_v36 }
 0x350   : > { %2243 = vst.msk [vmem:[%s454_s27 + $0x30] sm:$0xff] %vm553_vm2, %v2235_v10  ;;  %2244 = vst.msk [vmem:[%s454_s27 + $0x38] sm:$0xff] %vm553_vm2, %v2236_v59 }
 0x351 PF: > { %s21_s15 = sadd.s32 1, %s3107_s15   ;;  %s4402_s11 = smov %s3099_s13 }
 0x352   : > { %p18_p7 = scmp.ge.s32.totalorder %s21_s15, 14   ;;  %s4403_s12 = smov %s3103_s14 }
 0x353   : > { %s4404_s13 = smov %s4407_s7  ;;  %s4405_s14 = smov %s4411_s16 }
 0x354   :  { %20 = sbr.rel (!%p18_p7) target bundleno = 3 (0x3), region = 108 }

// kernel: restnet_forward.5
= control target key start
LH: loop header
LB: loop body
LE: loop exit
PB: predicated region body
PF: predicated region fallthrough
CT: control target
= control target key end

     0   :  { %s3479_s11 = smov 0   ;;  %s3481_s12 = smov 0   ;;  %s5199_s0 = inlined_call_operand.vmem [shape: f32[3,2,128,16], index: 0, kind: input, shape index: {}]   ;;  %s5200_s1 = inlined_call_operand.vmem [shape: f32[3,2,128,16], index: 1, kind: input, shape index: {}]   ;;  %s5201_s2 = inlined_call_operand.vmem [shape: f32[2,1,16], index: 2, kind: input, shape index: {}]   ;;  %s5202_s3 = inlined_call_operand.vmem [shape: f32[2,1,16], index: 3, kind: input, shape index: {}]   ;;  %s5203_s4 = inlined_call_operand.vmem [shape: f32[2,128,1], index: 4, kind: input, shape index: {}]   ;;  %s5204_s5 = inlined_call_operand.vmem [shape: f32[2,2,16,16], index: 5, kind: input, shape index: {}]   ;;  %s5205_s6 = inlined_call_operand.vmem [shape: f32[2,16,16], index: 6, kind: input, shape index: {}]   ;;  %s5206_s7 = inlined_call_operand.<no memory space> [shape: f32[1], index: 7, kind: input, shape index: {}]   ;;  %s5207_s8 = inlined_call_operand.vmem [shape: f32[3,2,128,16], index: 8, kind: output, shape index: {0}]   ;;  %s5208_s9 = inlined_call_operand.vmem [shape: f32[3,2,128,16], index: 9, kind: output, shape index: {1}]  }
   0x1   :  { %15 = sst [smem:[#allocation2]] %s5206_s7  ;;  %s3483_s13 = smov 0  }
   0x2   :  { %s3485_s14 = smov 0   ;;  %s3487_s15 = smov 0  }
   0x3 LB: > { %s30_s7 = sadd.s32 1, %s3412_s13  ;;  %s33_s16 = sadd.s32 1, %s3416_s14  ;;  %s3420_s15 = sphi %s3487_s15, %s21_s15   ;;  %s3416_s14 = sphi %s3485_s14, %s5491_s14   ;;  %s3412_s13 = sphi %s3483_s13, %s5490_s13   ;;  %s3408_s12 = sphi %s3481_s12, %s5489_s12   ;;  %s3404_s11 = sphi %s3479_s11, %s5488_s11  }
   0x4   : > { %p31_p0 = scmp.ge.s32.totalorder %s30_s7, 2  ;;  %p3089_p1 = scmp.ge.s32.totalorder %s3420_s15, 1 }
   0x5   : > { %p345_p2 = scmp.lt.s32.totalorder %s3420_s15, 7 }
   0x6   : > { %s5493_s7 = smov (%p31_p0, %s30_s7), 0  ;;  %s5495_s16 = smov (!%p31_p0, %s33_s16), %s3416_s14 }
   0x7   : > { %p346_p3 = pnand %p3089_p1, %p345_p2  ;;  %p35_p4 = scmp.ge.s32.totalorder %s5495_s16, 3 }
   0x9   : > { %s5497_s16 = smov (%p35_p4, %s5495_s16), 0  ;;  %349 = sbr.rel (%p346_p3) target bundleno = 856 (0x358), region = 52 }
  0x10   : > { %v3106_v0 = vld [vmem:[%s5204_s5 + $0x30] sm:$0xff]  ;;  %v3107_v1 = vld [vmem:[%s5204_s5 + $0x38] sm:$0xff]  ;;  %v3104_v2 = vld [vmem:[%s5204_s5 + $0x20] sm:$0xff]  ;;  %v490_v3 = vlaneseq  ;;  %v5209_v4 = vmov 0.0|0.0   ;;  %p413_p5 = scmp.lt.s32.totalorder %s3408_s12, 2  ;;  %p415_p6 = scmp.lt.s32.totalorder %s3404_s11, 1 }
  0x11   : > { %3268 = vmatprep.subr.bf16.mxu1 %v5209_v4  ;;  %3262 = vmatprep.subr.bf16.mxu0 %v5209_v4  ;;  %v3524_v5 = vpack.c.bf16 %v3107_v1, %v3106_v0  ;;  %v3105_v6 = vld [vmem:[%s5204_s5 + $0x28] sm:$0xff]  ;;  %vm3423_vm0 = vmmov 0   ;;  %v5211_v8 = vmov 0.0   ;;  %vm1581_vm1 = vcmask 122880  }
  0x12   : > { %v3531_v7 = vpack.c.bf16 %v3105_v6, %v3104_v2  ;;  %3182 = vmatprep.mubr.msk.f32.mxu0 %vm3423_vm0, %v5211_v8  ;;  %3196 = vmatprep.mubr.msk.f32.mxu1 %vm3423_vm0, %v5211_v8  ;;  %v491_v9 = vshrl.u32 %v490_v3, 7  ;;  %s5499_s12 = smov (!%p413_p5, %s3408_s12), 2  ;;  %s5501_s11 = smov (!%p415_p6, %s3404_s11), 1  ;;  %vm549_vm2 = vcmask 130048  }
  0x13   : > { %3270 = vmatpush3.bf16.msra.mxu1 %v3524_v5  ;;  %s3091_s25 = sshll.u32 %s5499_s12, 5  ;;  %s3090_s26 = sshll.u32 %s5501_s11, 4 }
  0x14   : > { %3264 = vmatpush3.bf16.msra.mxu0 %v3531_v7  ;;  %3271 = vmatprep.subr.bf16.mxu1 %v5209_v4  ;;  %v3542_v10 = vsub.s32 0, %v491_v9  ;;  %s433_s29 = scalar_lea.vmem %s5201_s2, %s5501_s11  ;;  %s419_s30 = sadd.s32 %s3091_s25, %s3090_s26 }
  0x15   : > { %3265 = vmatprep.subr.bf16.mxu0 %v5209_v4  ;;  %v487_v11 = vld [vmem:[%s433_s29] sm:$0x1]  ;;  %s436_s18 = scalar_lea.vmem %s5202_s3, %s5501_s11  ;;  %s3551_s19 = sshll.u32 %s419_s30, 3 }
  0x16   : > { %5320 = vst [vmem:[#allocation3_spill] sm:$0xff] %v3542_v10  ;;  %v493_v12 = vrot.slane %v487_v11, %v3542_v10  ;;  %v1582_v13 = vsel %vm1581_vm1, %v487_v11, 0.0  ;;  %v3554_v14 = vld [vmem:[%s436_s18] sm:$0x1]  ;;  %s3560_s21 = scalar_lea.vmem %s5199_s0, %s3551_s19  ;;  %s3778_s20 = scalar_lea.vmem %s5200_s1, %s3551_s19 }
  0x17   : > { %1583 = vadd.xlane.f32.xlu0 %v1582_v13  ;;  %v3563_v15 = vld [vmem:[%s3560_s21] sm:$0xff]  ;;  %v3566_v16 = vld [vmem:[%s3560_s21 + $0x8] sm:$0xff]  ;;  %v3569_v17 = vld [vmem:[%s3560_s21 + $0x10] sm:$0xff]  ;;  %v1587_v18 = vsel %vm1581_vm1, %v3554_v14, 0.0  ;;  %s4112_s30 = sld [smem:[#allocation2]]  ;;  %s4933_s28 = scalar_lea.vmem %s5207_s8, %s3551_s19 }
  0x18   : > { %v3573_v19 = vld [vmem:[%s3560_s21 + $0x18] sm:$0xff]  ;;  %v3576_v20 = vld [vmem:[%s3560_s21 + $0x20] sm:$0xff]  ;;  %v3579_v21 = vld [vmem:[%s3560_s21 + $0x28] sm:$0xff]  ;;  %v3582_v22 = vmul.f32 %v493_v12, %v3563_v15  ;;  %v3585_v23 = vmul.f32 %v493_v12, %v3566_v16  ;;  %v3597_v27 = vmul.f32 %v493_v12, %v3569_v17  ;;  %s5134_s10 = scalar_lea.vmem %s5208_s9, %s3551_s19 }
  0x19   : > { %v3588_v24 = vld [vmem:[%s3560_s21 + $0x30] sm:$0xff]  ;;  %v3591_v25 = vld [vmem:[%s3560_s21 + $0x38] sm:$0xff]  ;;  %v3594_v26 = vld [vmem:[%s3560_s21 + $0x40] sm:$0xff]  ;;  %v3600_v28 = vmul.f32 %v493_v12, %v3573_v19  ;;  %v3603_v29 = vmul.f32 %v493_v12, %v3576_v20  ;;  %v3606_v30 = vmul.f32 %v493_v12, %v3579_v21 }
  0x1a   : > { %5321 = vst [vmem:[#allocation4_spill] sm:$0xff] %v3582_v22  ;;  %5322 = vst [vmem:[#allocation5_spill] sm:$0xff] %v3585_v23  ;;  %v3609_v31 = vld [vmem:[%s3560_s21 + $0x48] sm:$0xff]  ;;  %v3612_v32 = vld [vmem:[%s3560_s21 + $0x50] sm:$0xff]  ;;  %v3618_v34 = vmul.f32 %v493_v12, %v3588_v24  ;;  %v3621_v35 = vmul.f32 %v493_v12, %v3591_v25  ;;  %v3624_v36 = vmul.f32 %v493_v12, %v3594_v26  ;;  %v589_v37 = vsel %vm549_vm2, %v3582_v22, -inf }
  0x1b   : > { %5323 = vst [vmem:[#allocation6_spill] sm:$0xff] %v3597_v27  ;;  %5324 = vst [vmem:[#allocation7_spill] sm:$0xff] %v3600_v28  ;;  %v3615_v33 = vld [vmem:[%s3560_s21 + $0x58] sm:$0xff]  ;;  %1588 = vadd.xlane.f32.xlu0 %v1587_v18  ;;  %v3629_v38 = vld [vmem:[%s3560_s21 + $0x60] sm:$0xff]  ;;  %v3638_v41 = vmul.f32 %v493_v12, %v3609_v31  ;;  %v3641_v42 = vmul.f32 %v493_v12, %v3612_v32  ;;  %v590_v44 = vsel %vm549_vm2, %v3585_v23, -inf  ;;  %v591_v49 = vsel %vm549_vm2, %v3597_v27, -inf }
  0x1c   : > { %5325 = vst [vmem:[#allocation8_spill] sm:$0xff] %v3603_v29  ;;  %5326 = vst [vmem:[#allocation9_spill] sm:$0xff] %v3606_v30  ;;  %v3632_v39 = vld [vmem:[%s3560_s21 + $0x68] sm:$0xff]  ;;  %v3635_v40 = vld [vmem:[%s3560_s21 + $0x70] sm:$0xff]  ;;  %v3644_v43 = vmul.f32 %v493_v12, %v3615_v33  ;;  %v3652_v46 = vmul.f32 %v493_v12, %v3629_v38  ;;  %v592_v51 = vsel %vm549_vm2, %v3600_v28, -inf  ;;  %v593_v52 = vsel %vm549_vm2, %v3603_v29, -inf }
  0x1d   : > { %5327 = vst [vmem:[#allocation10_spill] sm:$0xff] %v3618_v34  ;;  %5328 = vst [vmem:[#allocation11_spill] sm:$0xff] %v3621_v35  ;;  %v3649_v45 = vld [vmem:[%s3560_s21 + $0x78] sm:$0xff]  ;;  %v3655_v47 = vmul.f32 %v493_v12, %v3632_v39  ;;  %v3658_v48 = vmul.f32 %v493_v12, %v3635_v40  ;;  %v595_v53 = vsel %vm549_vm2, %v3606_v30, -inf  ;;  %v594_v54 = vmax.f32 %v589_v37, %v593_v52  ;;  %s1955_s23 = ssub.f32 1.0, %s4112_s30 }
  0x1e   : > { %5329 = vst [vmem:[#allocation12_spill] sm:$0xff] %v3624_v36  ;;  %5330 = vst [vmem:[#allocation13_spill] sm:$0xff] %v3638_v41  ;;  %v3663_v50 = vmul.f32 %v493_v12, %v3649_v45  ;;  %v596_v55 = vmax.f32 %v590_v44, %v595_v53  ;;  %v597_v56 = vsel %vm549_vm2, %v3618_v34, -inf  ;;  %v599_v57 = vsel %vm549_vm2, %v3621_v35, -inf }
  0x1f   : > { %5331 = vst [vmem:[#allocation14_spill] sm:$0xff] %v3641_v42  ;;  %5332 = vst [vmem:[#allocation15_spill] sm:$0xff] %v3644_v43  ;;  %v598_v58 = vmax.f32 %v591_v49, %v597_v56  ;;  %v600_v59 = vmax.f32 %v592_v51, %v599_v57  ;;  %v601_v60 = vsel %vm549_vm2, %v3624_v36, -inf  ;;  %v603_v61 = vsel %vm549_vm2, %v3638_v41, -inf }
  0x20   : > { %5333 = vst [vmem:[#allocation16_spill] sm:$0xff] %v3652_v46  ;;  %5334 = vst [vmem:[#allocation17_spill] sm:$0xff] %v3655_v47  ;;  %v602_v62 = vmax.f32 %v594_v54, %v601_v60  ;;  %v604_v63 = vmax.f32 %v596_v55, %v603_v61  ;;  %v605_v0 = vsel %vm549_vm2, %v3641_v42, -inf  ;;  %v607_v1 = vsel %vm549_vm2, %v3644_v43, -inf }
  0x21   : > { %5335 = vst [vmem:[#allocation18_spill] sm:$0xff] %v3658_v48  ;;  %5336 = vst [vmem:[#allocation19_spill] sm:$0xff] %v3663_v50  ;;  %v606_v2 = vmax.f32 %v598_v58, %v605_v0  ;;  %v608_v3 = vmax.f32 %v600_v59, %v607_v1  ;;  %v609_v6 = vsel %vm549_vm2, %v3652_v46, -inf  ;;  %v611_v9 = vsel %vm549_vm2, %v3655_v47, -inf }
  0x22   : > { %v610_v11 = vmax.f32 %v602_v62, %v609_v6  ;;  %v612_v12 = vmax.f32 %v604_v63, %v611_v9  ;;  %v613_v13 = vsel %vm549_vm2, %v3658_v48, -inf  ;;  %v615_v18 = vsel %vm549_vm2, %v3663_v50, -inf  ;;  %v3102_v9 = vld [vmem:[%s5204_s5 + $0x10] sm:$0xff] }
  0x23   : > { %v614_v37 = vmax.f32 %v606_v2, %v613_v13  ;;  %v616_v44 = vmax.f32 %v608_v3, %v615_v18  ;;  %v550_v49 = vsel %vm549_vm2, %v3582_v22, 0.0  ;;  %v551_v51 = vsel %vm549_vm2, %v3585_v23, 0.0  ;;  %v3103_v13 = vld [vmem:[%s5204_s5 + $0x18] sm:$0xff]  ;;  %v533_v18 = vld [vmem:[%s5204_s5] sm:$0xff] }
  0x24   : > { %v617_v52 = vmax.f32 %v610_v11, %v612_v12  ;;  %v552_v53 = vadd.f32 %v551_v51, %v550_v49  ;;  %v553_v54 = vsel %vm549_vm2, %v3597_v27, 0.0  ;;  %1591 = vadd.xlane.f32.xlu1 %v550_v49  ;;  %v555_v56 = vsel %vm549_vm2, %v3600_v28, 0.0 }
  0x25   : > { %v618_v55 = vmax.f32 %v614_v37, %v616_v44  ;;  %1595 = vadd.xlane.f32.xlu0 %v553_v54  ;;  %v557_v59 = vsel %vm549_vm2, %v3603_v29, 0.0  ;;  %v559_v62 = vsel %vm549_vm2, %v3606_v30, 0.0  ;;  %v561_v1 = vsel %vm549_vm2, %v3618_v34, 0.0  ;;  %v534_v37 = vld [vmem:[%s5204_s5 + $0x8] sm:$0xff] }
  0x26   : > { %v554_v57 = vadd.f32 %v553_v54, %v552_v53  ;;  %v563_v6 = vsel %vm549_vm2, %v3621_v35, 0.0  ;;  %v565_v44 = vsel %vm549_vm2, %v3624_v36, 0.0  ;;  %v3723_v53 = vpack.c.bf16 %v3103_v13, %v3102_v9 }
  0x27   : > { %v619_v58 = vmax.f32 %v617_v52, %v618_v55  ;;  %v567_v52 = vsel %vm549_vm2, %v3638_v41, 0.0  ;;  %v3725_v54 = vpack.c.bf16 %v534_v37, %v533_v18  ;;  %v1662_v13 = vsub.f32 %v3566_v16, %v3585_v23 }
  0x28   : > { %v556_v60 = vadd.f32 %v555_v56, %v554_v57  ;;  %1593 = vadd.xlane.f32.xlu1 %v551_v51  ;;  %v569_v57 = vsel %vm549_vm2, %v3641_v42, 0.0  ;;  %v1663_v18 = vsub.f32 %v3569_v17, %v3597_v27 }
  0x29   : > { %v620_v61 = vrot.slane %v619_v58, 4  ;;  %1599 = vadd.xlane.f32.xlu0 %v557_v59 }
  0x2a   : > { %v558_v63 = vadd.f32 %v557_v59, %v556_v60  ;;  %v571_v59 = vsel %vm549_vm2, %v3644_v43, 0.0 }
  0x2b   : > { %v621_v0 = vmax.f32 %v619_v58, %v620_v61  ;;  %v573_v61 = vsel %vm549_vm2, %v3652_v46, 0.0 }
  0x2c   : > { %v560_v2 = vadd.f32 %v559_v62, %v558_v63  ;;  %1597 = vadd.xlane.f32.xlu1 %v555_v56  ;;  %v575_v63 = vsel %vm549_vm2, %v3655_v47, 0.0 }
  0x2d   : > { %v622_v3 = vrot.slane %v621_v0, 2  ;;  %1603 = vadd.xlane.f32.xlu0 %v561_v1 }
  0x2e   : > { %v562_v11 = vadd.f32 %v561_v1, %v560_v2  ;;  %v577_v1 = vsel %vm549_vm2, %v3658_v48, 0.0 }
  0x2f   : > { %v623_v12 = vmax.f32 %v621_v0, %v622_v3  ;;  %v579_v3 = vsel %vm549_vm2, %v3663_v50, 0.0 }
  0x30   : > { %v564_v49 = vadd.f32 %v563_v6, %v562_v11  ;;  %1601 = vadd.xlane.f32.xlu1 %v559_v62 }
  0x31   : > { %v624_v51 = vrot.slane %v623_v12, 1  ;;  %1607 = vadd.xlane.f32.xlu0 %v565_v44 }
  0x32   : > { %v566_v55 = vadd.f32 %v565_v44, %v564_v49  ;;  %v1680_v49 = vsel %vm549_vm2, %v1662_v13, 0.0 }
  0x33   : > { %v625_v56 = vmax.f32 %v623_v12, %v624_v51  ;;  %v1664_v51 = vsub.f32 %v3573_v19, %v3600_v28  ;;  %v3108_v19 = vld [vmem:[%s5205_s6 + $0x10] sm:$0xff] }
  0x34   : > { %v568_v58 = vadd.f32 %v567_v52, %v566_v55  ;;  %1605 = vadd.xlane.f32.xlu1 %v563_v6  ;;  %v1661_v6 = vsub.f32 %v3563_v15, %v3582_v22  ;;  %v1683_v15 = vsel %vm549_vm2, %v1663_v18, 0.0 }
  0x35   : > { %3183 = vmatmul.mubr.msk.f32.vlgmr.msra.gmra.mrb[0].mxu0 %vm549_vm2, %v625_v56  ;;  %3197 = vmatmul.mubr.msk.f32.vlgmr.msra.gmra.mrb[0].mxu1 %vm549_vm2, %v625_v56  ;;  %v1686_v17 = vsel %vm549_vm2, %v1664_v51, 0.0 }
  0x36   : > { %3273 = vmatpush3.bf16.msra.mxu1 %v3723_v53  ;;  %3267 = vmatpush3.bf16.msra.mxu0 %v3725_v54  ;;  %v570_v60 = vadd.f32 %v569_v57, %v568_v58  ;;  %v1677_v12 = vsel %vm549_vm2, %v1661_v6, 0.0 }
  0x37   : > { %3189 = vmatprep.mubr.msk.f32.mxu0 %vm3423_vm0, %v5211_v8  ;;  %3203 = vmatprep.mubr.msk.f32.mxu1 %vm3423_vm0, %v5211_v8 }
  0x38   : > { %v572_v62 = vadd.f32 %v571_v59, %v570_v60  ;;  %1609 = vadd.xlane.f32.xlu1 %v567_v52  ;;  %1611 = vadd.xlane.f32.xlu0 %v569_v57  ;;  %v1665_v52 = vsub.f32 %v3576_v20, %v3603_v29  ;;  %v1666_v57 = vsub.f32 %v3579_v21, %v3606_v30  ;;  %v3109_v20 = vld [vmem:[%s5205_s6 + $0x18] sm:$0xff] }
  0x39   : > { %3274 = vmatprep.subr.bf16.mxu0 %v5209_v4  ;;  %3280 = vmatprep.subr.bf16.mxu1 %v5209_v4  ;;  %v3782_v21 = vrot.slane %v3554_v14, %v3542_v10 }
  0x3a   : > { %v574_v0 = vadd.f32 %v573_v61, %v572_v62  ;;  %v1689_v56 = vsel %vm549_vm2, %v1665_v52, 0.0  ;;  %v475_v52 = vld [vmem:[%s3778_s20 + $0x20] sm:$0xff] }
  0x3c   : > { %v576_v2 = vadd.f32 %v575_v63, %v574_v0  ;;  %1613 = vadd.xlane.f32.xlu1 %v571_v59  ;;  %1615 = vadd.xlane.f32.xlu0 %v573_v61  ;;  %v1667_v59 = vsub.f32 %v3588_v24, %v3618_v34  ;;  %v1692_v24 = vsel %vm549_vm2, %v1666_v57, 0.0  ;;  %v3785_v61 = vpack.c.bf16 %v3109_v20, %v3108_v19  ;;  %v476_v57 = vld [vmem:[%s3778_s20 + $0x28] sm:$0xff] }
  0x3d   : > { %v1668_v0 = vsub.f32 %v3591_v25, %v3621_v35  ;;  %v3843_v20 = vmul.f32 %v3782_v21, %v476_v57 }
  0x3e   : > { %v578_v9 = vadd.f32 %v577_v1, %v576_v2  ;;  %v471_v2 = vld [vmem:[%s3778_s20] sm:$0xff] }
  0x3f   : > { %v1698_v14 = vsel %vm549_vm2, %v1668_v0, 0.0  ;;  %5342 = vst [vmem:[#allocation25_spill] sm:$0xff] %v3843_v20 }
  0x40   : > { %v580_v11 = vadd.f32 %v579_v3, %v578_v9  ;;  %1617 = vadd.xlane.f32.xlu1 %v575_v63  ;;  %1619 = vadd.xlane.f32.xlu0 %v577_v1  ;;  %v1695_v63 = vsel %vm549_vm2, %v1667_v59, 0.0  ;;  %v1669_v1 = vsub.f32 %v3594_v26, %v3624_v36  ;;  %v3799_v9 = vmul.f32 %v3782_v21, %v471_v2  ;;  %v473_v26 = vld [vmem:[%s3778_s20 + $0x10] sm:$0xff] }
  0x42   : > { %v581_v37 = vrot.slane %v580_v11, 4  ;;  %v1701_v6 = vsel %vm549_vm2, %v1669_v1, 0.0  ;;  %5337 = vst [vmem:[#allocation20_spill] sm:$0xff] %v3799_v9  ;;  %v1834_v13 = vsub.f32 %v471_v2, %v3799_v9  ;;  %v478_v1 = vld [vmem:[%s3778_s20 + $0x38] sm:$0xff]  ;;  %v1075_v2 = vsel %vm549_vm2, %v3843_v20, 0.0 }
  0x44   : > { %v582_v44 = vadd.f32 %v581_v37, %v580_v11  ;;  %1621 = vadd.xlane.f32.xlu1 %v579_v3  ;;  %1678 = vadd.xlane.f32.xlu0 %v1677_v12  ;;  %v472_v3 = vld [vmem:[%s3778_s20 + $0x8] sm:$0xff]  ;;  %v1066_v11 = vsel %vm549_vm2, %v3799_v9, 0.0  ;;  %v474_v37 = vld [vmem:[%s3778_s20 + $0x18] sm:$0xff] }
  0x45   : > { %v3802_v25 = vmul.f32 %v3782_v21, %v472_v3  ;;  %v3827_v51 = vmul.f32 %v3782_v21, %v474_v37 }
  0x46   : > { %v583_v55 = vrot.slane %v582_v44, 2 }
  0x47   : > { %5338 = vst [vmem:[#allocation21_spill] sm:$0xff] %v3802_v25  ;;  %v1067_v12 = vsel %vm549_vm2, %v3802_v25, 0.0  ;;  %v1835_v18 = vsub.f32 %v472_v3, %v3802_v25  ;;  %5340 = vst [vmem:[#allocation23_spill] sm:$0xff] %v3827_v51 }
  0x48   : > { %v584_v16 = vadd.f32 %v583_v55, %v582_v44  ;;  %1681 = vadd.xlane.f32.xlu1 %v1680_v49  ;;  %1684 = vadd.xlane.f32.xlu0 %v1683_v15  ;;  %v1850_v44 = vsel %vm549_vm2, %v1834_v13, 0.0 }
  0x49   : > { %v1853_v49 = vsel %vm549_vm2, %v1835_v18, 0.0 }
  0x4a   : > { %v585_v58 = vrot.slane %v584_v16, 1 }
  0x4c   : > { %v586_v60 = vadd.f32 %v585_v58, %v584_v16  ;;  %1687 = vadd.xlane.f32.xlu1 %v1686_v17  ;;  %1690 = vadd.xlane.f32.xlu0 %v1689_v56  ;;  %v1837_v17 = vsub.f32 %v474_v37, %v3827_v51  ;;  %v3835_v56 = vmul.f32 %v3782_v21, %v475_v52  ;;  %v1071_v58 = vsel %vm549_vm2, %v3827_v51, 0.0  ;;  %v3866_v37 = vld [vmem:[%s3778_s20 + $0x40] sm:$0xff] }
  0x4e   : > { %v588_v62 = vmul.f32 0.0078125, %v586_v60  ;;  %5341 = vst [vmem:[#allocation24_spill] sm:$0xff] %v3835_v56  ;;  %v1859_v59 = vsel %vm549_vm2, %v1837_v17, 0.0  ;;  %v1838_v19 = vsub.f32 %v475_v52, %v3835_v56  ;;  %v477_v60 = vld [vmem:[%s3778_s20 + $0x30] sm:$0xff] }
  0x4f   : > { %v3851_v0 = vmul.f32 %v3782_v21, %v477_v60 }
  0x50   : > { %3190 = vmatmul.mubr.msk.f32.vlgmr.msra.gmra.mrb[0].mxu0 %vm549_vm2, %v588_v62  ;;  %3204 = vmatmul.mubr.msk.f32.vlgmr.msra.gmra.mrb[0].mxu1 %vm549_vm2, %v588_v62  ;;  %v1862_v62 = vsel %vm549_vm2, %v1838_v19, 0.0 }
  0x51   : > { %1693 = vadd.xlane.f32.xlu1 %v1692_v24  ;;  %1696 = vadd.xlane.f32.xlu0 %v1695_v63  ;;  %v1073_v24 = vsel %vm549_vm2, %v3835_v56, 0.0  ;;  %v1839_v63 = vsub.f32 %v476_v57, %v3843_v20  ;;  %5343 = vst [vmem:[#allocation26_spill] sm:$0xff] %v3851_v0 }
  0x52   : > { %3276 = vmatpush3.bf16.msra.mxu0 %v3785_v61  ;;  %3210 = vmatprep.mubr.msk.f32.mxu0 %vm3423_vm0, %v5211_v8 }
  0x53   : > { %3277 = vmatprep.subr.bf16.mxu0 %v5209_v4  ;;  %3282 = vmatpush3.bf16.msra.mxu1 %v3531_v7  ;;  %v3820_v7 = vmul.f32 %v3782_v21, %v473_v26  ;;  %v1865_v3 = vsel %vm549_vm2, %v1839_v63, 0.0  ;;  %v1104_v63 = vsel %vm549_vm2, %v3799_v9, -inf }
  0x54   : > { %3224 = vmatprep.mubr.msk.f32.mxu1 %vm3423_vm0, %v5211_v8  ;;  %3283 = vmatprep.subr.bf16.mxu1 %v5209_v4  ;;  %v3923_v4 = vld [vmem:[%s3778_s20 + $0x78] sm:$0xff] }
  0x55   : > { %1699 = vadd.xlane.f32.xlu1 %v1698_v14  ;;  %1702 = vadd.xlane.f32.xlu0 %v1701_v6  ;;  %5339 = vst [vmem:[#allocation22_spill] sm:$0xff] %v3820_v7  ;;  %v1836_v15 = vsub.f32 %v473_v26, %v3820_v7  ;;  %v1069_v55 = vsel %vm549_vm2, %v3820_v7, 0.0  ;;  %v1840_v14 = vsub.f32 %v477_v60, %v3851_v0  ;;  %v1077_v26 = vsel %vm549_vm2, %v3851_v0, 0.0 }
  0x56   : > { %v3859_v6 = vmul.f32 %v3782_v21, %v478_v1 }
  0x57   : > { %v1856_v16 = vsel %vm549_vm2, %v1836_v15, 0.0  ;;  %v1868_v13 = vsel %vm549_vm2, %v1840_v14, 0.0  ;;  %v3873_v15 = vmul.f32 %v3782_v21, %v3866_v37  ;;  %v480_v14 = vld [vmem:[%s3778_s20 + $0x48] sm:$0xff] }
  0x58   : > { %5344 = vst [vmem:[#allocation27_spill] sm:$0xff] %v3859_v6  ;;  %v1841_v18 = vsub.f32 %v478_v1, %v3859_v6  ;;  %v1105_v1 = vsel %vm549_vm2, %v3802_v25, -inf }
  0x59   : > { %1764 = vadd.xlane.f32.xlu1 %v1066_v11  ;;  %1766 = vadd.xlane.f32.xlu0 %v1067_v12  ;;  %5345 = vst [vmem:[#allocation28_spill] sm:$0xff] %v3873_v15  ;;  %v1081_v52 = vsel %vm549_vm2, %v3873_v15, 0.0 }
  0x5d   : > { %1851 = vadd.xlane.f32.xlu1 %v1850_v44  ;;  %1854 = vadd.xlane.f32.xlu0 %v1853_v49  ;;  %v1871_v44 = vsel %vm549_vm2, %v1841_v18, 0.0  ;;  %v1079_v49 = vsel %vm549_vm2, %v3859_v6, 0.0  ;;  %v3901_v18 = vmul.f32 %v3782_v21, %v480_v14 }
  0x5f   : > { %5346 = vst [vmem:[#allocation29_spill] sm:$0xff] %v3901_v18 }
  0x61   : > { %1768 = vadd.xlane.f32.xlu1 %v1069_v55  ;;  %1857 = vadd.xlane.f32.xlu0 %v1856_v16  ;;  %v1068_v16 = vadd.f32 %v1067_v12, %v1066_v11  ;;  %v1106_v11 = vsel %vm549_vm2, %v3820_v7, -inf  ;;  %v1107_v12 = vsel %vm549_vm2, %v3827_v51, -inf }
  0x63   : > { %v1070_v17 = vadd.f32 %v1069_v55, %v1068_v16  ;;  %v1108_v55 = vsel %vm549_vm2, %v3835_v56, -inf  ;;  %v3912_v16 = vld [vmem:[%s3778_s20 + $0x60] sm:$0xff] }
  0x64   : > { %v3927_v8 = vmul.f32 %v3782_v21, %v3912_v16 }
  0x65   : > { %1770 = vadd.xlane.f32.xlu1 %v1071_v58  ;;  %1860 = vadd.xlane.f32.xlu0 %v1859_v59  ;;  %v1072_v57 = vadd.f32 %v1071_v58, %v1070_v17  ;;  %v1110_v58 = vsel %vm549_vm2, %v3843_v20, -inf  ;;  %v3915_v17 = vld [vmem:[%s3778_s20 + $0x68] sm:$0xff] }
  0x66   : > { %5349 = vst [vmem:[#allocation32_spill] sm:$0xff] %v3927_v8  ;;  %v1124_v56 = vsel %vm549_vm2, %v3927_v8, -inf }
  0x67   : > { %v1074_v59 = vadd.f32 %v1073_v24, %v1072_v57  ;;  %v1109_v57 = vmax.f32 %v1104_v63, %v1108_v55 }
  0x69   : > { %1772 = vadd.xlane.f32.xlu1 %v1073_v24  ;;  %1863 = vadd.xlane.f32.xlu0 %v1862_v62  ;;  %v1076_v19 = vadd.f32 %v1075_v2, %v1074_v59  ;;  %v1112_v24 = vsel %vm549_vm2, %v3851_v0, -inf  ;;  %v1111_v59 = vmax.f32 %v1105_v1, %v1110_v58  ;;  %v3939_v1 = vmul.f32 %v3782_v21, %v3923_v4 }
  0x6b   : > { %v1078_v60 = vadd.f32 %v1077_v26, %v1076_v19  ;;  %v1113_v19 = vmax.f32 %v1106_v11, %v1112_v24  ;;  %5352 = vst [vmem:[#allocation35_spill] sm:$0xff] %v3939_v1  ;;  %v1116_v11 = vsel %vm549_vm2, %v3873_v15, -inf }
  0x6c   : > { %v1117_v58 = vmax.f32 %v1109_v57, %v1116_v11 }
  0x6d   : > { %1774 = vadd.xlane.f32.xlu1 %v1075_v2  ;;  %1866 = vadd.xlane.f32.xlu0 %v1865_v3  ;;  %v1080_v62 = vadd.f32 %v1079_v49, %v1078_v60  ;;  %v1114_v2 = vsel %vm549_vm2, %v3859_v6, -inf  ;;  %v3931_v6 = vmul.f32 %v3782_v21, %v3915_v17 }
  0x6e   : > { %v1115_v60 = vmax.f32 %v1107_v12, %v1114_v2  ;;  %v1118_v12 = vsel %vm549_vm2, %v3901_v18, -inf  ;;  %v1125_v7 = vmax.f32 %v1117_v58, %v1124_v56 }
  0x6f   : > { %v1082_v3 = vadd.f32 %v1081_v52, %v1080_v62  ;;  %v1083_v62 = vsel %vm549_vm2, %v3901_v18, 0.0  ;;  %5350 = vst [vmem:[#allocation33_spill] sm:$0xff] %v3931_v6  ;;  %v1119_v24 = vmax.f32 %v1111_v59, %v1118_v12  ;;  %v1126_v25 = vsel %vm549_vm2, %v3931_v6, -inf }
  0x70   : > { %v1842_v59 = vsub.f32 %v3866_v37, %v3873_v15  ;;  %v1130_v12 = vsel %vm549_vm2, %v3939_v1, -inf }
  0x71   : > { %1776 = vadd.xlane.f32.xlu1 %v1077_v26  ;;  %1869 = vadd.xlane.f32.xlu0 %v1868_v13  ;;  %v3895_v26 = vld [vmem:[%s3778_s20 + $0x50] sm:$0xff]  ;;  %v3898_v13 = vld [vmem:[%s3778_s20 + $0x58] sm:$0xff]  ;;  %v1084_v63 = vadd.f32 %v1083_v62, %v1082_v3 }
  0x72   : > { %v1874_v58 = vsel %vm549_vm2, %v1842_v59, 0.0  ;;  %v1671_v59 = vsub.f32 %v3612_v32, %v3641_v42 }
  0x75   : > { %1778 = vadd.xlane.f32.xlu1 %v1079_v49  ;;  %1872 = vadd.xlane.f32.xlu0 %v1871_v44  ;;  %v3905_v44 = vmul.f32 %v3782_v21, %v3895_v26  ;;  %v3909_v49 = vmul.f32 %v3782_v21, %v3898_v13 }
  0x77   : > { %5347 = vst [vmem:[#allocation30_spill] sm:$0xff] %v3905_v44  ;;  %5348 = vst [vmem:[#allocation31_spill] sm:$0xff] %v3909_v49  ;;  %v1085_v55 = vsel %vm549_vm2, %v3905_v44, 0.0  ;;  %v1120_v2 = vsel %vm549_vm2, %v3905_v44, -inf  ;;  %v1087_v56 = vsel %vm549_vm2, %v3909_v49, 0.0 }
  0x78   : > { %v1086_v20 = vadd.f32 %v1085_v55, %v1084_v63  ;;  %v1121_v3 = vmax.f32 %v1113_v19, %v1120_v2  ;;  %v1670_v19 = vsub.f32 %v3609_v31, %v3638_v41  ;;  %v1127_v63 = vmax.f32 %v1119_v24, %v1126_v25 }
  0x79   : > { %1780 = vadd.xlane.f32.xlu1 %v1081_v52  ;;  %v3918_v52 = vld [vmem:[%s3778_s20 + $0x70] sm:$0xff]  ;;  %1875 = vadd.xlane.f32.xlu0 %v1874_v58  ;;  %v1843_v25 = vsub.f32 %v480_v14, %v3901_v18 }
  0x7a   : > { %v3935_v0 = vmul.f32 %v3782_v21, %v3918_v52  ;;  %v1122_v21 = vsel %vm549_vm2, %v3909_v49, -inf  ;;  %v1704_v2 = vsel %vm549_vm2, %v1670_v19, 0.0  ;;  %v1132_v37 = vmax.f32 %v1125_v7, %v1127_v63 }
  0x7b   : > { %v1123_v51 = vmax.f32 %v1115_v60, %v1122_v21  ;;  %v1089_v60 = vsel %vm549_vm2, %v3927_v8, 0.0  ;;  %v1088_v31 = vadd.f32 %v1087_v56, %v1086_v20  ;;  %v1877_v15 = vsel %vm549_vm2, %v1843_v25, 0.0 }
  0x7c   : > { %5351 = vst [vmem:[#allocation34_spill] sm:$0xff] %v3935_v0  ;;  %v1128_v57 = vsel %vm549_vm2, %v3935_v0, -inf  ;;  %v3979_v7 = vsel %vm549_vm2, %v3935_v0, 0.0  ;;  %v1707_v20 = vsel %vm549_vm2, %v1671_v59, 0.0  ;;  %v3985_v19 = vsel %vm549_vm2, %v3939_v1, 0.0 }
  0x7d   : > { %v1129_v11 = vmax.f32 %v1121_v3, %v1128_v57  ;;  %v1131_v21 = vmax.f32 %v1123_v51, %v1130_v12  ;;  %1705 = vadd.xlane.f32.xlu1 %v1704_v2  ;;  %v3972_v3 = vsel %vm549_vm2, %v3931_v6, 0.0  ;;  %v1090_v57 = vadd.f32 %v1089_v60, %v1088_v31  ;;  %1782 = vadd.xlane.f32.xlu0 %v1083_v62 }
  0x7e   : > { %v1844_v62 = vsub.f32 %v3895_v26, %v3905_v44 }
  0x7f   : > { %v1133_v24 = vmax.f32 %v1129_v11, %v1131_v21  ;;  %v1092_v51 = vadd.f32 %v3972_v3, %v1090_v57 }
  0x80   : > { %v1880_v2 = vsel %vm549_vm2, %v1844_v62, 0.0 }
  0x81   : > { %v1134_v9 = vmax.f32 %v1132_v37, %v1133_v24  ;;  %1878 = vadd.xlane.f32.xlu1 %v1877_v15  ;;  %v1094_v63 = vadd.f32 %v3979_v7, %v1092_v51  ;;  %1708 = vadd.xlane.f32.xlu0 %v1707_v20  ;;  %v1672_v15 = vsub.f32 %v3615_v33, %v3644_v43  ;;  %v5354_v20 = vmov 0.0|0.0  }
  0x82   : > { %v1673_v33 = vsub.f32 %v3629_v38, %v3652_v46  ;;  %v1846_v38 = vsub.f32 %v3912_v16, %v3927_v8  ;;  %v1675_v16 = vsub.f32 %v3635_v40, %v3658_v48  ;;  %v1848_v40 = vsub.f32 %v3918_v52, %v3935_v0 }
  0x83   : > { %v1135_v14 = vrot.slane %v1134_v9, 4  ;;  %v1096_v32 = vadd.f32 %v3985_v19, %v1094_v63  ;;  %v1710_v21 = vsel %vm549_vm2, %v1672_v15, 0.0 }
  0x84   : > { %v1713_v59 = vsel %vm549_vm2, %v1673_v33, 0.0  ;;  %v1886_v62 = vsel %vm549_vm2, %v1846_v38, 0.0 }
  0x85   : > { %v1136_v11 = vmax.f32 %v1134_v9, %v1135_v14  ;;  %1784 = vadd.xlane.f32.xlu1 %v1085_v55  ;;  %v1097_v58 = vrot.slane %v1096_v32, 4  ;;  %1881 = vadd.xlane.f32.xlu0 %v1880_v2  ;;  %v1845_v55 = vsub.f32 %v3898_v13, %v3909_v49  ;;  %v5353_v13 = vmov 0.0  }
  0x86   : > { %v3425_v2 = vmov 0  }
  0x87   : > { %v1137_v12 = vrot.slane %v1136_v11, 2  ;;  %v1098_v9 = vadd.f32 %v1097_v58, %v1096_v32  ;;  %v1883_v26 = vsel %vm549_vm2, %v1845_v55, 0.0  ;;  %3355 = vset.pattern.permute.xlu1 %v3425_v2  ;;  %3354 = vset.pattern.permute.xlu0 %v3425_v2 }
  0x89   : > { %v1138_v37 = vmax.f32 %v1136_v11, %v1137_v12  ;;  %1711 = vadd.xlane.f32.xlu1 %v1710_v21  ;;  %v1099_v25 = vrot.slane %v1098_v9, 2  ;;  %1786 = vadd.xlane.f32.xlu0 %v1087_v56  ;;  %v1674_v56 = vsub.f32 %v3632_v39, %v3655_v47 }
  0x8b   : > { %v1139_v31 = vrot.slane %v1138_v37, 1  ;;  %v1100_v57 = vadd.f32 %v1099_v25, %v1098_v9  ;;  %v1716_v15 = vsel %vm549_vm2, %v1674_v56, 0.0  ;;  %v1676_v9 = vsub.f32 %v3649_v45, %v3663_v50 }
  0x8c   : > { %v1849_v25 = vsub.f32 %v3923_v4, %v3939_v1  ;;  %v4147_v1 = vstv %s4112_s30 }
  0x8d   : > { %v3997_v24 = vmax.f32 %v1138_v37, %v1139_v31  ;;  %1884 = vadd.xlane.f32.xlu1 %v1883_v26  ;;  %v1101_v51 = vrot.slane %v1100_v57, 1  ;;  %1714 = vadd.xlane.f32.xlu0 %v1713_v59  ;;  %v1719_v37 = vsel %vm549_vm2, %v1675_v16, 0.0  ;;  %v1722_v55 = vsel %vm549_vm2, %v1676_v9, 0.0 }
  0x8e   : > { %v1895_v33 = vsel %vm549_vm2, %v1849_v25, 0.0 }
  0x8f   : > { %3225 = vmatmul.mubr.msk.f32.vlgmr.msra.gmra.mrb[2].mxu1 %vm549_vm2, %v3997_v24  ;;  %v1102_v14 = vadd.f32 %v1101_v51, %v1100_v57 }
  0x90   : > { %3285 = vmatpush3.bf16.msra.mxu1 %v3725_v54  ;;  %3231 = vmatprep.mubr.msk.f32.mxu1 %vm3423_vm0, %v5353_v13  ;;  %v1847_v54 = vsub.f32 %v3915_v17, %v3931_v6 }
  0x91   : > { %3292 = vmatprep.subr.bf16.mxu1 %v5354_v20  ;;  %1788 = vadd.xlane.f32.xlu1 %v1089_v60  ;;  %v4013_v63 = vmul.f32 0.0078125, %v1102_v14 }
  0x92   : > { %1887 = vadd.xlane.f32.xlu0 %v1886_v62  ;;  %v1889_v39 = vsel %vm549_vm2, %v1847_v54, 0.0 }
  0x95   : > { %1717 = vadd.xlane.f32.xlu1 %v1716_v15 }
  0x96   : > { %1790 = vadd.xlane.f32.xlu0 %v3972_v3  ;;  %v1892_v3 = vsel %vm549_vm2, %v1848_v40, 0.0 }
  0x97   : > { %3232 = vmatmul.mubr.msk.f32.vlgmr.msra.gmra.mrb[2].mxu1 %vm549_vm2, %v4013_v63 }
  0x98   : > { %3294 = vmatpush3.bf16.msra.mxu1 %v3785_v61  ;;  %3252 = vmatprep.mubr.msk.f32.mxu1 %vm3423_vm0, %v5353_v13 }
  0x99   : > { %1890 = vadd.xlane.f32.xlu1 %v1889_v39  ;;  %3295 = vmatprep.subr.bf16.mxu1 %v5354_v20 }
  0x9a   : > { %1720 = vadd.xlane.f32.xlu0 %v1719_v37 }
  0x9d   : > { %1792 = vadd.xlane.f32.xlu1 %v3979_v7 }
  0x9e   : > { %1893 = vadd.xlane.f32.xlu0 %v1892_v3 }
  0xa1   : > { %1723 = vadd.xlane.f32.xlu1 %v1722_v55 }
  0xa2   : > { %1794 = vadd.xlane.f32.xlu0 %v3985_v19 }
  0xa4   : > { %v1584_v11 = vpop.xlane.xlu0 %1583 }
  0xa5   : > { %v1586_v60 = vmul.f32 0.0625, %v1584_v11  ;;  %1896 = vadd.xlane.f32.xlu1 %v1895_v33 }
  0xa7   : > { %v1639_v12 = vadd.f32 1e-06, %v1586_v60  ;;  %v1741_v45 = vsub.f32 1.0, %v1586_v60 }
  0xa8   : > { %v1589_v17 = vpop.xlane.xlu0 %1588 }
  0xa9   : > { %v1643_v21 = vrot.slane %v1639_v12, %v3542_v10  ;;  %v1742_v4 = vadd.f32 1e-06, %v1741_v45 }
  0xab   : > { %3356 = vrcp.f32 %v1643_v21  ;;  %v1746_v19 = vrot.slane %v1742_v4, %v3542_v10 }
  0xad   : > { %3358 = vrcp.f32 %v1746_v19 }
  0xb1   : > { %v4017_v32 = vpop.xlane.xlu1 %1591 }
  0xb2   : > { %v1596_v61 = vpop.xlane.xlu0 %1595 }
  0xb3   : > { %v1625_v57 = vmul.f32 0.0625, %v1596_v61 }
  0xb5   : > { %v4026_v58 = vpop.xlane.xlu1 %1593  ;;  %v4047_v54 = vpop.eup %3356 }
  0xb6   : > { %v1600_v52 = vpop.xlane.xlu0 %1599  ;;  %v4051_v11 = vmul.f32 %v4047_v54, %v1625_v57 }
  0xb7   : > { %v1627_v59 = vmul.f32 0.0625, %v1600_v52 }
  0xb9   : > { %v4039_v31 = vpop.xlane.xlu1 %1597  ;;  %v4054_v62 = vmul.f32 %v4047_v54, %v1627_v59  ;;  %v1590_v59 = vmul.f32 0.0625, %v1589_v17 }
  0xba   : > { %v1604_v14 = vpop.xlane.xlu0 %1603 }
  0xbb   : > { %v1629_v7 = vmul.f32 0.0625, %v1604_v14  ;;  %v1914_v19 = vsub.f32 1.0, %v1590_v59 }
  0xbd   : > { %v1602_v26 = vpop.xlane.xlu1 %1601  ;;  %v4060_v60 = vmul.f32 %v4047_v54, %v1629_v7 }
  0xbe   : > { %v1628_v51 = vmul.f32 0.0625, %v1602_v26  ;;  %v1608_v16 = vpop.xlane.xlu0 %1607 }
  0xbf   : > { %v1631_v2 = vmul.f32 0.0625, %v1608_v16 }
  0xc0   : > { %v4057_v15 = vmul.f32 %v4047_v54, %v1628_v51 }
  0xc1   : > { %v1606_v38 = vpop.xlane.xlu1 %1605  ;;  %v4067_v9 = vmul.f32 %v4047_v54, %v1631_v2 }
  0xc2   : > { %v1630_v56 = vmul.f32 0.0625, %v1606_v38 }
  0xc4   : > { %v4063_v39 = vmul.f32 %v4047_v54, %v1630_v56  ;;  %v2282_v56 = vld [vmem:[%s5203_s4 + $0x8] sm:$0xff] }
  0xc5   : > { %v1610_v12 = vpop.xlane.xlu1 %1609  ;;  %v1612_v37 = vpop.xlane.xlu0 %1611  ;;  %2453 = vperm.xlu1 %3355, %v2282_v56  }
  0xc6   : > { %v1632_v21 = vmul.f32 0.0625, %v1610_v12  ;;  %v1633_v3 = vmul.f32 0.0625, %v1612_v37  ;;  %v1812_v12 = vadd.f32 1e-06, %v1590_v59 }
  0xc8   : > { %v4070_v61 = vmul.f32 %v4047_v54, %v1632_v21  ;;  %v4073_v25 = vmul.f32 %v4047_v54, %v1633_v3  ;;  %v4093_v21 = vpop.eup %3358  ;;  %v2283_v3 = vld [vmem:[%s5203_s4 + $0x10] sm:$0xff] }
  0xc9   : > { %v1614_v40 = vpop.xlane.xlu1 %1613  ;;  %v1616_v26 = vpop.xlane.xlu0 %1615  ;;  %2458 = vperm.xlu1 %3355, %v2283_v3  }
  0xca   : > { %v1634_v55 = vmul.f32 0.0625, %v1614_v40  ;;  %v1635_v33 = vmul.f32 0.0625, %v1616_v26 }
  0xcc   : > { %v4076_v52 = vmul.f32 %v4047_v54, %v1634_v55  ;;  %v4079_v51 = vmul.f32 %v4047_v54, %v1635_v33  ;;  %v1816_v33 = vrot.slane %v1812_v12, %v3542_v10 }
  0xcd   : > { %v1618_v45 = vpop.xlane.xlu1 %1617  ;;  %v1620_v38 = vpop.xlane.xlu0 %1619 }
  0xce   : > { %v1636_v57 = vmul.f32 0.0625, %v1618_v45  ;;  %v1637_v4 = vmul.f32 0.0625, %v1620_v38  ;;  %v2281_v45 = vld [vmem:[%s5203_s4] sm:$0xff]  ;;  %3360 = vrcp.f32 %v1816_v33  ;;  %v1623_v33 = vmul.f32 0.0625, %v4017_v32 }
  0xcf   : > { %2448 = vperm.xlu0 %3354, %v2281_v45   ;;  %v2292_v45 = vld [vmem:[%s5203_s4 + $0x58] sm:$0xff] }
  0xd0   : > { %v4082_v14 = vmul.f32 %v4047_v54, %v1636_v57  ;;  %v4088_v2 = vmul.f32 %v4047_v54, %v1637_v4  ;;  %v1915_v57 = vadd.f32 1e-06, %v1914_v19  ;;  %v2284_v4 = vld [vmem:[%s5203_s4 + $0x18] sm:$0xff]  ;;  %v1645_v32 = vmul.f32 %v4047_v54, %v1623_v33 }
  0xd1   : > { %v1622_v7 = vpop.xlane.xlu1 %1621  ;;  %v1679_v37 = vpop.xlane.xlu0 %1678  ;;  %2463 = vperm.xlu1 %3355, %v2284_v4   ;;  %v2296_v33 = vld [vmem:[%s5203_s4 + $0x78] sm:$0xff] }
  0xd2   : > { %v1638_v16 = vmul.f32 0.0625, %v1622_v7  ;;  %v1725_v55 = vmul.f32 0.0625, %v1679_v37  ;;  %v2290_v37 = vld [vmem:[%s5203_s4 + $0x48] sm:$0xff]  ;;  %v1919_v12 = vrot.slane %v1915_v57, %v3542_v10  ;;  %v1989_v6 = vmul.f32 %v4147_v1, %v1645_v32 }
  0xd3   : > { %2493 = vperm.xlu0 %3354, %v2290_v37   ;;  %v3125_v32 = vld [vmem:[%s5203_s4 + $0x88] sm:$0xff] }
  0xd4   : > { %v4091_v17 = vmul.f32 %v4047_v54, %v1638_v16  ;;  %v1748_v59 = vmul.f32 %v4093_v21, %v1725_v55  ;;  %v2285_v55 = vld [vmem:[%s5203_s4 + $0x20] sm:$0xff]  ;;  %3362 = vrcp.f32 %v1919_v12  ;;  %v2294_v12 = vld [vmem:[%s5203_s4 + $0x68] sm:$0xff] }
  0xd5   : > { %v1682_v40 = vpop.xlane.xlu1 %1681  ;;  %v1685_v7 = vpop.xlane.xlu0 %1684  ;;  %2468 = vperm.xlu1 %3355, %v2285_v55  }
  0xd6   : > { %v1726_v26 = vmul.f32 0.0625, %v1682_v40  ;;  %v1727_v48 = vmul.f32 0.0625, %v1685_v7 }
  0xd7   : > { %2503 = vperm.xlu0 %3354, %v2292_v45  }
  0xd8   : > { %v4104_v38 = vmul.f32 %v4093_v21, %v1726_v26 }
  0xd9   : > { %v1688_v56 = vpop.xlane.xlu1 %1687  ;;  %v4118_v40 = vpop.xlane.xlu0 %1690 }
  0xda   : > { %v1728_v16 = vmul.f32 0.0625, %v1688_v56  ;;  %v1940_v7 = vmul.f32 %v4147_v1, %v4104_v38 }
  0xdb   : > { %2513 = vperm.xlu0 %3354, %v2294_v12   ;;  %v2288_v12 = vld [vmem:[%s5203_s4 + $0x38] sm:$0xff] }
  0xdc   : > { %v4116_v19 = vmul.f32 %v4093_v21, %v1728_v16  ;;  %v2286_v16 = vld [vmem:[%s5203_s4 + $0x28] sm:$0xff] }
  0xdd   : > { %2473 = vperm.xlu1 %3355, %v2286_v16   ;;  %v4158_v16 = vstv %s1955_s23 }
  0xde   : > { %v1694_v3 = vpop.xlane.xlu1 %1693  ;;  %v4130_v56 = vpop.xlane.xlu0 %1696 }
  0xdf   : > { %v1730_v26 = vmul.f32 0.0625, %v1694_v3  ;;  %v1624_v3 = vmul.f32 0.0625, %v4026_v58  ;;  %2523 = vperm.xlu0 %3354, %v2296_v33   ;;  %v2289_v33 = vld [vmem:[%s5203_s4 + $0x40] sm:$0xff] }
  0xe1   : > { %v4128_v57 = vmul.f32 %v4093_v21, %v1730_v26  ;;  %v4144_v26 = vpop.eup %3360 }
  0xe2   : > { %v1700_v4 = vpop.xlane.xlu1 %1699  ;;  %v4149_v0 = vpop.xlane.xlu0 %1702 }
  0xe3   : > { %v1732_v37 = vmul.f32 0.0625, %v1700_v4  ;;  %v2287_v4 = vld [vmem:[%s5203_s4 + $0x30] sm:$0xff]  ;;  %v4162_v49 = vpop.eup %3362  ;;  %2549 = vperm.xlu0 %3354, %v3125_v32  }
  0xe4   : > { %2478 = vperm.xlu1 %3355, %v2287_v4   ;;  %v1939_v4 = vmul.f32 %v4147_v1, %v1748_v59 }
  0xe5   : > { %v4142_v55 = vmul.f32 %v4093_v21, %v1732_v37  ;;  %v1646_v37 = vmul.f32 %v4047_v54, %v1624_v3 }
  0xe6   : > { %v1765_v45 = vpop.xlane.xlu1 %1764  ;;  %v1767_v44 = vpop.xlane.xlu0 %1766 }
  0xe7   : > { %v1796_v58 = vmul.f32 0.0625, %v1765_v45  ;;  %v1797_v50 = vmul.f32 0.0625, %v1767_v44 }
  0xe8   : > { %2483 = vperm.xlu1 %3355, %v2288_v12   ;;  %v1750_v12 = vmul.f32 %v4093_v21, %v1727_v48  ;;  %v2291_v48 = vld [vmem:[%s5203_s4 + $0x50] sm:$0xff] }
  0xe9   : > { %v1818_v8 = vmul.f32 %v4144_v26, %v1796_v58  ;;  %v1990_v58 = vmul.f32 %v4147_v1, %v1646_v37  ;;  %v1819_v46 = vmul.f32 %v4144_v26, %v1797_v50  ;;  %v3127_v50 = vld [vmem:[%s5203_s4 + $0x98] sm:$0xff] }
  0xea   : > { %v1852_v18 = vpop.xlane.xlu1 %1851  ;;  %v1855_v44 = vpop.xlane.xlu0 %1854  ;;  %2559 = vperm.xlu0 %3354, %v3127_v50  }
  0xeb   : > { %v2005_v45 = vmul.f32 %v4158_v16, %v1818_v8  ;;  %v1898_v3 = vmul.f32 0.0625, %v1852_v18  ;;  %v1626_v8 = vmul.f32 0.0625, %v4039_v31  ;;  %v2006_v37 = vmul.f32 %v4158_v16, %v1819_v46 }
  0xec   : > { %2488 = vperm.xlu1 %3355, %v2289_v33  }
  0xed   : > { %v4173_v47 = vadd.f32 %v2005_v45, %v1989_v6  ;;  %v1921_v43 = vmul.f32 %v4162_v49, %v1898_v3  ;;  %v1899_v6 = vmul.f32 0.0625, %v1855_v44  ;;  %v4189_v45 = vadd.f32 %v2006_v37, %v1990_v58 }
  0xee   : > { %v1769_v18 = vpop.xlane.xlu1 %1768  ;;  %v1648_v46 = vmul.f32 %v4047_v54, %v1626_v8  ;;  %v1858_v42 = vpop.xlane.xlu0 %1857 }
  0xef   : > { %v1957_v59 = vmul.f32 %v4158_v16, %v1921_v43  ;;  %v1798_v31 = vmul.f32 0.0625, %v1769_v18  ;;  %v1922_v32 = vmul.f32 %v4162_v49, %v1899_v6  ;;  %v1991_v43 = vmul.f32 %v4147_v1, %v4051_v11 }
  0xf0   : > { %v1900_v58 = vmul.f32 0.0625, %v1858_v42  ;;  %v1729_v11 = vmul.f32 0.0625, %v4118_v40  ;;  %v1941_v18 = vmul.f32 %v4147_v1, %v1750_v12  ;;  %2498 = vperm.xlu1 %3355, %v2291_v48   ;;  %v2293_v40 = vld [vmem:[%s5203_s4 + $0x60] sm:$0xff]  ;;  %v1942_v48 = vmul.f32 %v4147_v1, %v4116_v19 }
  0xf1   : > { %v4191_v3 = vadd.f32 %v1957_v59, %v1939_v4  ;;  %v1820_v44 = vmul.f32 %v4144_v26, %v1798_v31  ;;  %v1958_v38 = vmul.f32 %v4158_v16, %v1922_v32  ;;  %v3129_v4 = vld [vmem:[%s5203_s4 + $0xa8] sm:$0xff]  ;;  %v1992_v59 = vmul.f32 %v4147_v1, %v1648_v46  ;;  %v3131_v32 = vld [vmem:[%s5203_s4 + $0xb8] sm:$0xff] }
  0xf2   : > { %v1771_v41 = vpop.xlane.xlu1 %1770  ;;  %v1923_v37 = vmul.f32 %v4162_v49, %v1900_v58  ;;  %v1861_v50 = vpop.xlane.xlu0 %1860  ;;  %2569 = vperm.xlu0 %3354, %v3129_v4   ;;  %v1752_v46 = vmul.f32 %v4093_v21, %v1729_v11 }
  0xf3   : > { %v2007_v54 = vmul.f32 %v4158_v16, %v1820_v44  ;;  %v1799_v8 = vmul.f32 0.0625, %v1771_v41  ;;  %v4208_v33 = vadd.f32 %v1958_v38, %v1940_v7  ;;  %v1901_v7 = vmul.f32 0.0625, %v1861_v50 }
  0xf4   : > { %v1959_v41 = vmul.f32 %v4158_v16, %v1923_v37  ;;  %2508 = vperm.xlu1 %3355, %v2293_v40   ;;  %v1943_v50 = vmul.f32 %v4147_v1, %v1752_v46  ;;  %v3124_v46 = vld [vmem:[%s5203_s4 + $0x80] sm:$0xff] }
  0xf5   : > { %v4212_v6 = vadd.f32 %v2007_v54, %v1991_v43  ;;  %v1821_v42 = vmul.f32 %v4144_v26, %v1799_v8  ;;  %v1993_v43 = vmul.f32 %v4147_v1, %v4054_v62  ;;  %v1924_v58 = vmul.f32 %v4162_v49, %v1901_v7  ;;  %v2295_v62 = vld [vmem:[%s5203_s4 + $0x70] sm:$0xff] }
  0xf6   : > { %v1773_v31 = vpop.xlane.xlu1 %1772  ;;  %v4228_v38 = vadd.f32 %v1959_v41, %v1941_v18  ;;  %v1864_v8 = vpop.xlane.xlu0 %1863  ;;  %2579 = vperm.xlu0 %3354, %v3131_v32  }
  0xf7   : > { %v1800_v12 = vmul.f32 0.0625, %v1773_v31  ;;  %v2008_v44 = vmul.f32 %v4158_v16, %v1821_v42  ;;  %v1960_v11 = vmul.f32 %v4158_v16, %v1924_v58  ;;  %v1902_v18 = vmul.f32 0.0625, %v1864_v8  ;;  %v3133_v42 = vld [vmem:[%s5203_s4 + $0xc8] sm:$0xff] }
  0xf8   : > { %v1731_v31 = vmul.f32 0.0625, %v4130_v56  ;;  %2518 = vperm.xlu1 %3355, %v2295_v62  }
  0xf9   : > { %v1822_v4 = vmul.f32 %v4144_v26, %v1800_v12  ;;  %v4232_v54 = vadd.f32 %v2008_v44, %v1992_v59  ;;  %v4244_v40 = vadd.f32 %v1960_v11, %v1942_v48  ;;  %v1925_v7 = vmul.f32 %v4162_v49, %v1902_v18 }
  0xfa   : > { %v1775_v37 = vpop.xlane.xlu1 %1774  ;;  %v1994_v12 = vmul.f32 %v4147_v1, %v4057_v15  ;;  %v1867_v44 = vpop.xlane.xlu0 %1866  ;;  %2589 = vperm.xlu0 %3354, %v3133_v42   ;;  %v1944_v15 = vmul.f32 %v4147_v1, %v4128_v57  ;;  %v3126_v57 = vld [vmem:[%s5203_s4 + $0x90] sm:$0xff] }
  0xfb   : > { %v2009_v19 = vmul.f32 %v4158_v16, %v1822_v4  ;;  %v1801_v59 = vmul.f32 0.0625, %v1775_v37  ;;  %v1961_v56 = vmul.f32 %v4158_v16, %v1925_v7  ;;  %v1903_v48 = vmul.f32 0.0625, %v1867_v44  ;;  %v3137_v44 = vld [vmem:[%s5203_s4 + $0xe8] sm:$0xff] }
  0xfc   : > { %v1754_v37 = vmul.f32 %v4093_v21, %v1731_v31  ;;  %2544 = vperm.xlu1 %3355, %v3124_v46  }
  0xfd   : > { %v4246_v41 = vadd.f32 %v2009_v19, %v1993_v43  ;;  %v1823_v32 = vmul.f32 %v4144_v26, %v1801_v59  ;;  %v3135_v43 = vld [vmem:[%s5203_s4 + $0xd8] sm:$0xff]  ;;  %v4263_v62 = vadd.f32 %v1961_v56, %v1943_v50  ;;  %v1926_v11 = vmul.f32 %v4162_v49, %v1903_v48 }
  0xfe   : > { %v1777_v58 = vpop.xlane.xlu1 %1776  ;;  %v1995_v19 = vmul.f32 %v4147_v1, %v4060_v60  ;;  %v1870_v59 = vpop.xlane.xlu0 %1869  ;;  %2599 = vperm.xlu0 %3354, %v3135_v43   ;;  %v1996_v60 = vmul.f32 %v4147_v1, %v4063_v39 }
  0xff   : > { %v2010_v4 = vmul.f32 %v4158_v16, %v1823_v32  ;;  %v1802_v8 = vmul.f32 0.0625, %v1777_v58  ;;  %v1962_v50 = vmul.f32 %v4158_v16, %v1926_v11  ;;  %v1904_v31 = vmul.f32 0.0625, %v1870_v59 }
 0x100   : > { %v1945_v58 = vmul.f32 %v4147_v1, %v1754_v37  ;;  %2554 = vperm.xlu1 %3355, %v3126_v57  }
 0x101   : > { %v4268_v18 = vadd.f32 %v2010_v4, %v1994_v12  ;;  %v1824_v42 = vmul.f32 %v4144_v26, %v1802_v8  ;;  %v4282_v46 = vadd.f32 %v1962_v50, %v1944_v15  ;;  %v1927_v56 = vmul.f32 %v4162_v49, %v1904_v31  ;;  %v3128_v8 = vld [vmem:[%s5203_s4 + $0xa0] sm:$0xff] }
 0x102   : > { %v1779_v7 = vpop.xlane.xlu1 %1778  ;;  %v1873_v4 = vpop.xlane.xlu0 %1872  ;;  %2609 = vperm.xlu0 %3354, %v3137_v44   ;;  %v1997_v31 = vmul.f32 %v4147_v1, %v4067_v9  ;;  %v3130_v44 = vld [vmem:[%s5203_s4 + $0xb0] sm:$0xff]  ;;  %v3132_v9 = vld [vmem:[%s5203_s4 + $0xc0] sm:$0xff] }
 0x103   : > { %v1803_v32 = vmul.f32 0.0625, %v1779_v7  ;;  %v2011_v12 = vmul.f32 %v4158_v16, %v1824_v42  ;;  %v1963_v39 = vmul.f32 %v4158_v16, %v1927_v56  ;;  %v1905_v37 = vmul.f32 0.0625, %v1873_v4  ;;  %v3139_v42 = vld [vmem:[%s5203_s4 + $0xf8] sm:$0xff]  ;;  %v3134_v56 = vld [vmem:[%s5203_s4 + $0xd0] sm:$0xff]  ;;  %v544_v4 = vld [vmem:[%s5205_s6] sm:$0xff] }
 0x104   : > { %2564 = vperm.xlu1 %3355, %v3128_v8   ;;  %v545_v8 = vld [vmem:[%s5205_s6 + $0x8] sm:$0xff] }
 0x105   : > { %v1825_v48 = vmul.f32 %v4144_v26, %v1803_v32  ;;  %v4286_v43 = vadd.f32 %v2011_v12, %v1995_v19  ;;  %v1946_v19 = vmul.f32 %v4147_v1, %v4142_v55  ;;  %v4298_v7 = vadd.f32 %v1963_v39, %v1945_v58  ;;  %v3138_v39 = vld [vmem:[%s5203_s4 + $0xf0] sm:$0xff] }
 0x106   : > { %v1781_v15 = vpop.xlane.xlu1 %1780  ;;  %v1928_v50 = vmul.f32 %v4162_v49, %v1905_v37  ;;  %2619 = vperm.xlu0 %3354, %v3139_v42  }
 0x107   : > { %v2012_v11 = vmul.f32 %v4158_v16, %v1825_v48  ;;  %v1804_v59 = vmul.f32 0.0625, %v1781_v15  ;;  %v3136_v48 = vld [vmem:[%s5203_s4 + $0xe0] sm:$0xff]  ;;  %v4333_v15 = vpack.c.bf16 %v545_v8, %v544_v4  ;;  %v1733_v4 = vmul.f32 0.0625, %v4149_v0 }
 0x108   : > { %v1964_v12 = vmul.f32 %v4158_v16, %v1928_v50  ;;  %2574 = vperm.xlu1 %3355, %v3130_v44   ;;  %v2099_v50 = vmul.f32 %v4173_v47, %v4173_v47  ;;  %v2038_v44 = vmul.f32 %v4208_v33, %v4208_v33 }
 0x109   : > { %v4300_v57 = vadd.f32 %v2012_v11, %v1996_v60  ;;  %v1826_v32 = vmul.f32 %v4144_v26, %v1804_v59 }
 0x10a   : > { %v4311_v58 = vadd.f32 %v1964_v12, %v1946_v19 }
 0x10b   : > { %v2013_v55 = vmul.f32 %v4158_v16, %v1826_v32  ;;  %v2037_v32 = vmul.f32 %v4191_v3, %v4191_v3 }
 0x10c   : > { %2584 = vperm.xlu1 %3355, %v3132_v9  }
 0x10d   : > { %v4313_v60 = vadd.f32 %v2013_v55, %v1997_v31  ;;  %v2100_v31 = vmul.f32 %v4189_v45, %v4189_v45  ;;  %v2101_v55 = vmul.f32 %v4212_v6, %v4212_v6  ;;  %v2053_v9 = vadd.f32 %v2038_v44, %v2037_v32 }
 0x10f   : > { %v2115_v12 = vadd.f32 %v2100_v31, %v2099_v50  ;;  %v1706_v50 = vpop.xlane.xlu1 %1705 }
 0x110   : > { %2594 = vperm.xlu1 %3355, %v3134_v56   ;;  %v2039_v56 = vmul.f32 %v4228_v38, %v4228_v38  ;;  %v1734_v31 = vmul.f32 0.0625, %v1706_v50 }
 0x111   : > { %v2116_v8 = vadd.f32 %v2115_v12, %v2101_v55 }
 0x112   : > { %v1757_v55 = vmul.f32 %v4093_v21, %v1734_v31 }
 0x114   : > { %2604 = vperm.xlu1 %3355, %v3136_v48  }
 0x118   : > { %2614 = vperm.xlu1 %3355, %v3138_v39   ;;  %v2102_v39 = vmul.f32 %v4232_v54, %v4232_v54 }
 0x11a   : > { %v2117_v0 = vadd.f32 %v2116_v8, %v2102_v39  ;;  %v1998_v39 = vmul.f32 %v4147_v1, %v4070_v61 }
 0x123   : > { %v768_v11 = vpop.f32.mrb[0].mxu0  ;;  %v909_v37 = vpop.f32.mrb[0].mxu1 }
 0x124   : > { %v913_v42 = vmax.f32 %v909_v37, 0.0  ;;  %v3191_v59 = vpop.f32.mrb[1].mxu0  ;;  %v3205_v19 = vpop.f32.mrb[1].mxu1  ;;  %v772_v48 = vmax.f32 %v768_v11, 0.0  ;;  %v2054_v37 = vadd.f32 %v2053_v9, %v2039_v56  ;;  %v1756_v11 = vmul.f32 %v4093_v21, %v1733_v4 }
 0x125   : > { %v2103_v59 = vmul.f32 %v4246_v41, %v4246_v41  ;;  %v1876_v19 = vpop.xlane.xlu0 %1875 }
 0x126   : > { %3211 = vmatmul.mubr.msk.f32.vlgmr.msra.gmra.mrb[2].mxu0 %vm549_vm2, %v913_v42  ;;  %v2040_v42 = vmul.f32 %v4244_v40, %v4244_v40  ;;  %v1947_v44 = vmul.f32 %v4147_v1, %v1756_v11 }
 0x127   : > { %3279 = vmatpush3.bf16.msra.mxu0 %v4333_v15  ;;  %3217 = vmatprep.mubr.msk.f32.mxu0 %vm3423_vm0, %v5353_v13  ;;  %v2118_v9 = vadd.f32 %v2117_v0, %v2103_v59  ;;  %v1948_v0 = vmul.f32 %v4147_v1, %v1757_v55  ;;  %v2043_v55 = vmul.f32 %v4298_v7, %v4298_v7 }
 0x128   : > { %3286 = vmatprep.subr.bf16.mxu0 %v5354_v20  ;;  %v2055_v32 = vadd.f32 %v2054_v37, %v2040_v42  ;;  %v2042_v42 = vmul.f32 %v4282_v46, %v4282_v46 }
 0x129   : > { %v1783_v56 = vpop.xlane.xlu0 %1782 }
 0x12a   : > { %v1805_v4 = vmul.f32 0.0625, %v1783_v56 }
 0x12c   : > { %v1827_v59 = vmul.f32 %v4144_v26, %v1805_v4  ;;  %v2106_v4 = vmul.f32 %v4300_v57, %v4300_v57 }
 0x12d   : > { %v1709_v31 = vpop.xlane.xlu0 %1708 }
 0x12e   : > { %3218 = vmatmul.mubr.msk.f32.vlgmr.msra.gmra.mrb[2].mxu0 %vm549_vm2, %v772_v48  ;;  %v1879_v48 = vpop.xlane.xlu1 %1878  ;;  %v2014_v61 = vmul.f32 %v4158_v16, %v1827_v59 }
 0x12f   : > { %3288 = vmatpush3.bf16.msra.mxu0 %v3524_v5  ;;  %3238 = vmatprep.mubr.msk.f32.mxu0 %vm3423_vm0, %v5353_v13  ;;  %v1906_v5 = vmul.f32 0.0625, %v1876_v19  ;;  %v1907_v8 = vmul.f32 0.0625, %v1879_v48 }
 0x130   : > { %3289 = vmatprep.subr.bf16.mxu0 %v5354_v20  ;;  %v2041_v20 = vmul.f32 %v4263_v62, %v4263_v62  ;;  %v4395_v48 = vadd.f32 %v2014_v61, %v1998_v39  ;;  %v2044_v39 = vmul.f32 %v4311_v58, %v4311_v58 }
 0x131   : > { %v1929_v12 = vmul.f32 %v4162_v49, %v1906_v5  ;;  %v1930_v19 = vmul.f32 %v4162_v49, %v1907_v8  ;;  %v2105_v5 = vmul.f32 %v4286_v43, %v4286_v43 }
 0x132   : > { %3239 = vmatmul.mubr.msk.f32.vlgmr.msra.gmra.mrb[4].mxu0 %vm549_vm2, %v3997_v24  ;;  %v2104_v24 = vmul.f32 %v4268_v18, %v4268_v18  ;;  %v2056_v37 = vadd.f32 %v2055_v32, %v2041_v20  ;;  %v1735_v20 = vmul.f32 0.0625, %v1709_v31 }
 0x133   : > { %3291 = vmatpush3.bf16.msra.mxu0 %v3723_v53  ;;  %3245 = vmatprep.mubr.msk.f32.mxu0 %vm3423_vm0, %v5353_v13  ;;  %v1965_v53 = vmul.f32 %v4158_v16, %v1929_v12  ;;  %v1785_v12 = vpop.xlane.xlu1 %1784  ;;  %v1966_v32 = vmul.f32 %v4158_v16, %v1930_v19 }
 0x134   : > { %v2119_v50 = vadd.f32 %v2118_v9, %v2104_v24  ;;  %v1806_v56 = vmul.f32 0.0625, %v1785_v12  ;;  %v1758_v24 = vmul.f32 %v4093_v21, %v1735_v20 }
 0x135   : > { %v4382_v11 = vadd.f32 %v1965_v53, %v1947_v44  ;;  %v2057_v44 = vadd.f32 %v2056_v37, %v2042_v42  ;;  %v4397_v9 = vadd.f32 %v1966_v32, %v1948_v0  ;;  %v1999_v53 = vmul.f32 %v4147_v1, %v4073_v25  ;;  %v1882_v37 = vpop.xlane.xlu0 %1881 }
 0x136   : > { %v1828_v8 = vmul.f32 %v4144_v26, %v1806_v56  ;;  %v1908_v59 = vmul.f32 0.0625, %v1882_v37  ;;  %v1949_v12 = vmul.f32 %v4147_v1, %v1758_v24 }
 0x137   : > { %v1712_v42 = vpop.xlane.xlu1 %1711  ;;  %v2058_v19 = vadd.f32 %v2057_v44, %v2043_v55 }
 0x138   : > { %v2015_v0 = vmul.f32 %v4158_v16, %v1828_v8  ;;  %v1736_v31 = vmul.f32 0.0625, %v1712_v42  ;;  %v1931_v25 = vmul.f32 %v4162_v49, %v1908_v59  ;;  %v2000_v8 = vmul.f32 %v4147_v1, %v4076_v52 }
 0x139   : > { %v1787_v20 = vpop.xlane.xlu0 %1786  ;;  %v2059_v24 = vadd.f32 %v2058_v19, %v2044_v39 }
 0x13a   : > { %3246 = vmatmul.mubr.msk.f32.vlgmr.msra.gmra.mrb[4].mxu0 %vm549_vm2, %v4013_v63  ;;  %v2120_v63 = vadd.f32 %v2119_v50, %v2105_v5  ;;  %v2107_v5 = vmul.f32 %v4313_v60, %v4313_v60  ;;  %v4412_v61 = vadd.f32 %v2015_v0, %v1999_v53  ;;  %v1759_v32 = vmul.f32 %v4093_v21, %v1736_v31 }
 0x13b   : > { %v1885_v44 = vpop.xlane.xlu1 %1884  ;;  %v1967_v55 = vmul.f32 %v4158_v16, %v1931_v25  ;;  %v1807_v56 = vmul.f32 0.0625, %v1787_v20  ;;  %v2108_v31 = vmul.f32 %v4395_v48, %v4395_v48 }
 0x13c   : > { %v2121_v50 = vadd.f32 %v2120_v63, %v2106_v4  ;;  %v1909_v37 = vmul.f32 0.0625, %v1885_v44  ;;  %v2045_v63 = vmul.f32 %v4382_v11, %v4382_v11  ;;  %v1950_v53 = vmul.f32 %v4147_v1, %v1759_v32 }
 0x13d   : > { %v4420_v4 = vadd.f32 %v1967_v55, %v1949_v12  ;;  %v1829_v42 = vmul.f32 %v4144_v26, %v1807_v56  ;;  %v1715_v25 = vpop.xlane.xlu0 %1714  ;;  %v2046_v12 = vmul.f32 %v4397_v9, %v4397_v9 }
 0x13e   : > { %v1932_v59 = vmul.f32 %v4162_v49, %v1909_v37  ;;  %v2122_v0 = vadd.f32 %v2121_v50, %v2107_v5  ;;  %v1737_v39 = vmul.f32 0.0625, %v1715_v25  ;;  %v2060_v44 = vadd.f32 %v2059_v24, %v2045_v63 }
 0x13f   : > { %v1789_v20 = vpop.xlane.xlu1 %1788  ;;  %v2016_v52 = vmul.f32 %v4158_v16, %v1829_v42  ;;  %v2001_v5 = vmul.f32 %v4147_v1, %v4079_v51  ;;  %v2109_v42 = vmul.f32 %v4412_v61, %v4412_v61 }
 0x140   : > { %v1968_v19 = vmul.f32 %v4158_v16, %v1932_v59  ;;  %v1808_v32 = vmul.f32 0.0625, %v1789_v20  ;;  %v1760_v50 = vmul.f32 %v4093_v21, %v1737_v39  ;;  %v2123_v37 = vadd.f32 %v2122_v0, %v2108_v31 }
 0x141   : > { %v4431_v55 = vadd.f32 %v2016_v52, %v2000_v8  ;;  %v1888_v24 = vpop.xlane.xlu0 %1887  ;;  %v2061_v36 = vadd.f32 %v2060_v44, %v2046_v12  ;;  %v2047_v8 = vmul.f32 %v4420_v4, %v4420_v4 }
 0x142   : > { %v4433_v56 = vadd.f32 %v1968_v19, %v1950_v53  ;;  %v1830_v59 = vmul.f32 %v4144_v26, %v1808_v32  ;;  %v1910_v25 = vmul.f32 0.0625, %v1888_v24  ;;  %v1951_v52 = vmul.f32 %v4147_v1, %v1760_v50 }
 0x143   : > { %v1718_v63 = vpop.xlane.xlu1 %1717  ;;  %v2124_v0 = vadd.f32 %v2123_v37, %v2109_v42  ;;  %v2110_v31 = vmul.f32 %v4431_v55, %v4431_v55  ;;  %v2062_v50 = vadd.f32 %v2061_v36, %v2047_v8 }
 0x144   : > { %v2017_v53 = vmul.f32 %v4158_v16, %v1830_v59  ;;  %v1738_v20 = vmul.f32 0.0625, %v1718_v63  ;;  %v1933_v51 = vmul.f32 %v4162_v49, %v1910_v25  ;;  %v2002_v59 = vmul.f32 %v4147_v1, %v4082_v14 }
 0x145   : > { %v1791_v32 = vpop.xlane.xlu0 %1790  ;;  %v2048_v37 = vmul.f32 %v4433_v56, %v4433_v56 }
 0x146   : > { %v4448_v19 = vadd.f32 %v2017_v53, %v2001_v5  ;;  %v1761_v39 = vmul.f32 %v4093_v21, %v1738_v20  ;;  %v1969_v12 = vmul.f32 %v4158_v16, %v1933_v51  ;;  %v1809_v24 = vmul.f32 0.0625, %v1791_v32 }
 0x147   : > { %v1891_v44 = vpop.xlane.xlu1 %1890  ;;  %v2125_v53 = vadd.f32 %v2124_v0, %v2110_v31  ;;  %v2003_v0 = vmul.f32 %v4147_v1, %v4088_v2 }
 0x148   : > { %v1911_v35 = vmul.f32 0.0625, %v1891_v44  ;;  %v4456_v42 = vadd.f32 %v1969_v12, %v1951_v52  ;;  %v1952_v5 = vmul.f32 %v4147_v1, %v1761_v39  ;;  %v1831_v63 = vmul.f32 %v4144_v26, %v1809_v24 }
 0x149   : > { %v2111_v20 = vmul.f32 %v4448_v19, %v4448_v19  ;;  %v1721_v51 = vpop.xlane.xlu0 %1720  ;;  %v2063_v44 = vadd.f32 %v2062_v50, %v2048_v37 }
 0x14a   : > { %v1934_v25 = vmul.f32 %v4162_v49, %v1911_v35  ;;  %v2018_v14 = vmul.f32 %v4158_v16, %v1831_v63  ;;  %v1739_v8 = vmul.f32 0.0625, %v1721_v51  ;;  %v2049_v52 = vmul.f32 %v4456_v42, %v4456_v42 }
 0x14b   : > { %v1793_v32 = vpop.xlane.xlu1 %1792  ;;  %v2126_v31 = vadd.f32 %v2125_v53, %v2111_v20 }
 0x14c   : > { %v1970_v36 = vmul.f32 %v4158_v16, %v1934_v25  ;;  %v1810_v39 = vmul.f32 0.0625, %v1793_v32  ;;  %v4467_v12 = vadd.f32 %v2018_v14, %v2002_v59  ;;  %v1762_v35 = vmul.f32 %v4093_v21, %v1739_v8 }
 0x14d   : > { %v1894_v34 = vpop.xlane.xlu0 %1893  ;;  %v2064_v51 = vadd.f32 %v2063_v44, %v2049_v52  ;;  %v2004_v52 = vmul.f32 %v4147_v1, %v4091_v17 }
 0x14e   : > { %v4469_v24 = vadd.f32 %v1970_v36, %v1952_v5  ;;  %v1832_v63 = vmul.f32 %v4144_v26, %v1810_v39  ;;  %v2112_v50 = vmul.f32 %v4467_v12, %v4467_v12  ;;  %v1912_v37 = vmul.f32 0.0625, %v1894_v34 }
 0x14f   : > { %v1724_v25 = vpop.xlane.xlu1 %1723  ;;  %v1953_v14 = vmul.f32 %v4147_v1, %v1762_v35 }
 0x150   : > { %v2050_v59 = vmul.f32 %v4469_v24, %v4469_v24  ;;  %v2019_v5 = vmul.f32 %v4158_v16, %v1832_v63  ;;  %v1740_v32 = vmul.f32 0.0625, %v1724_v25  ;;  %v1935_v2 = vmul.f32 %v4162_v49, %v1912_v37 }
 0x151   : > { %v2127_v53 = vadd.f32 %v2126_v31, %v2112_v50  ;;  %v1795_v8 = vpop.xlane.xlu0 %1794 }
 0x152   : > { %v2035_v20 = vadd.f32 %v2019_v5, %v2003_v0  ;;  %v1763_v36 = vmul.f32 %v4093_v21, %v1740_v32  ;;  %v1971_v30 = vmul.f32 %v4158_v16, %v1935_v2  ;;  %v1811_v34 = vmul.f32 0.0625, %v1795_v8 }
 0x153   : > { %v1897_v39 = vpop.xlane.xlu1 %1896  ;;  %v2065_v29 = vadd.f32 %v2064_v51, %v2050_v59 }
 0x154   : > { %v1913_v44 = vmul.f32 0.0625, %v1897_v39  ;;  %v2113_v63 = vmul.f32 %v2035_v20, %v2035_v20  ;;  %v1987_v25 = vadd.f32 %v1971_v30, %v1953_v14  ;;  %v1954_v35 = vmul.f32 %v4147_v1, %v1763_v36 }
 0x155   : > { %v1833_v37 = vmul.f32 %v4144_v26, %v1811_v34 }
 0x156   : > { %v1936_v0 = vmul.f32 %v4162_v49, %v1913_v44  ;;  %v2128_v31 = vadd.f32 %v2127_v53, %v2113_v63  ;;  %v2051_v21 = vmul.f32 %v1987_v25, %v1987_v25 }
 0x157   : > { %v2020_v50 = vmul.f32 %v4158_v16, %v1833_v37 }
 0x158   : > { %v1972_v5 = vmul.f32 %v4158_v16, %v1936_v0  ;;  %v2066_v32 = vadd.f32 %v2065_v29, %v2051_v21 }
 0x159   : > { %v2036_v2 = vadd.f32 %v2020_v50, %v2004_v52 }
 0x15a   : > { %v1988_v8 = vadd.f32 %v1972_v5, %v1954_v35 }
 0x15b   : > { %v2114_v39 = vmul.f32 %v2036_v2, %v2036_v2 }
 0x15c   : > { %v2052_v17 = vmul.f32 %v1988_v8, %v1988_v8 }
 0x15d   : > { %v2129_v51 = vadd.f32 %v2128_v31, %v2114_v39 }
 0x15e   : > { %v2067_v59 = vadd.f32 %v2066_v32, %v2052_v17 }
 0x15f   : > { %v2130_v30 = vrot.slane %v2129_v51, 4 }
 0x160   : > { %v2068_v14 = vrot.slane %v2067_v59, 4 }
 0x161   : > { %v2131_v1 = vadd.f32 %v2130_v30, %v2129_v51 }
 0x162   : > { %v2069_v36 = vadd.f32 %v2068_v14, %v2067_v59 }
 0x163   : > { %v2132_v26 = vrot.slane %v2131_v1, 2 }
 0x164   : > { %v2070_v34 = vrot.slane %v2069_v36, 2 }
 0x165   : > { %v2133_v49 = vadd.f32 %v2132_v26, %v2131_v1 }
 0x166   : > { %v2071_v53 = vadd.f32 %v2070_v34, %v2069_v36 }
 0x167   : > { %v2134_v44 = vrot.slane %v2133_v49, 1 }
 0x168   : > { %v2072_v63 = vrot.slane %v2071_v53, 1 }
 0x169   : > { %v2135_v37 = vadd.f32 %v2134_v44, %v2133_v49 }
 0x16a   : > { %v2073_v28 = vadd.f32 %v2072_v63, %v2071_v53  ;;  %v4511_v26 = vpop.f32.mrb[2].mxu1 }
 0x16b   : > { %3364 = vrsqrt.f32 %v2135_v37  ;;  %vm2138_vm3 = vcmp.eq.f32.partialorder %v2135_v37, inf  ;;  %v2141_v16 = vand.u32 2147483648, %v2135_v37  ;;  %vm2140_vm4 = vcmp.eq.f32.partialorder %v2135_v37, 0.0  ;;  %v3233_v34 = vpop.f32.mrb[3].mxu1 }
 0x16c   : > { %3366 = vrsqrt.f32 %v2073_v28  ;;  %vm2076_vm5 = vcmp.eq.f32.partialorder %v2073_v28, inf  ;;  %v2079_v5 = vand.u32 2147483648, %v2073_v28  ;;  %vm2078_vm6 = vcmp.eq.f32.partialorder %v2073_v28, 0.0 }
 0x175   : > { %v3365_v29 = vpop.eup %3364 }
 0x176   : > { %v2137_v52 = vmul.f32 %v3365_v29, %v2135_v37  ;;  %v3367_v35 = vpop.eup %3366 }
 0x177   : > { %v2075_v21 = vmul.f32 %v3367_v35, %v2073_v28 }
 0x178   : > { %v2139_v0 = vsel %vm2138_vm3, %v2135_v37, %v2137_v52 }
 0x179   : > { %v2142_v31 = vsel %vm2140_vm4, %v2141_v16, %v2139_v0  ;;  %v2077_v32 = vsel %vm2076_vm5, %v2073_v28, %v2075_v21 }
 0x17a   : > { %v2143_v50 = vadd.f32 1e-06, %v2142_v31  ;;  %v2080_v39 = vsel %vm2078_vm6, %v2079_v5, %v2077_v32 }
 0x17b   : > { %v2081_v17 = vadd.f32 1e-06, %v2080_v39 }
 0x17c   : > { %3368 = vrcp.f32 %v2143_v50 }
 0x17d   : > { %3370 = vrcp.f32 %v2081_v17 }
 0x186   : > { %v4491_v51 = vpop.eup %3368 }
 0x187   : > { %v4495_v59 = vmul.f32 %v4491_v51, %v4467_v12  ;;  %v4498_v30 = vmul.f32 %v4491_v51, %v2035_v20  ;;  %v4501_v14 = vmul.f32 %v4491_v51, %v2036_v2  ;;  %v4503_v1 = vpop.eup %3370  ;;  %v4515_v12 = vmul.f32 %v4491_v51, %v4173_v47 }
 0x188   : > { %v4506_v28 = vmul.f32 %v4503_v1, %v1987_v25  ;;  %v4509_v36 = vmul.f32 %v4503_v1, %v1988_v8  ;;  %v4519_v20 = vmul.f32 %v4491_v51, %v4189_v45  ;;  %v4523_v2 = vmul.f32 %v4491_v51, %v4212_v6 }
 0x189   : > { %5356 = vst [vmem:[#allocation37_spill] sm:$0xff] %v4515_v12  ;;  %v2235_v25 = vmul.f32 %v4515_v12, %v4515_v12  ;;  %v4531_v49 = vmul.f32 %v4491_v51, %v4232_v54  ;;  %v4537_v45 = vmul.f32 %v4491_v51, %v4246_v41  ;;  %v4543_v63 = vmul.f32 %v4503_v1, %v4191_v3 }
 0x18a   : > { %5355 = vst [vmem:[#allocation36_spill] sm:$0xff] %v4506_v28  ;;  %5357 = vst [vmem:[#allocation38_spill] sm:$0xff] %v4519_v20  ;;  %v2236_v8 = vmul.f32 %v4519_v20, %v4519_v20  ;;  %v2237_v47 = vmul.f32 %v4523_v2, %v4523_v2  ;;  %v4547_v54 = vmul.f32 %v4503_v1, %v4208_v33 }
 0x18b   : > { %5358 = vst [vmem:[#allocation39_spill] sm:$0xff] %v4523_v2  ;;  %5359 = vst [vmem:[#allocation40_spill] sm:$0xff] %v4531_v49  ;;  %v2238_v6 = vmul.f32 %v4531_v49, %v4531_v49  ;;  %v4551_v37 = vmul.f32 %v4491_v51, %v4268_v18  ;;  %v2239_v41 = vmul.f32 %v4537_v45, %v4537_v45 }
 0x18c   : > { %v2251_v53 = vadd.f32 %v2236_v8, %v2235_v25  ;;  %5360 = vst [vmem:[#allocation41_spill] sm:$0xff] %v4537_v45  ;;  %5361 = vst [vmem:[#allocation42_spill] sm:$0xff] %v4543_v63  ;;  %v4557_v16 = vmul.f32 %v4503_v1, %v4228_v38  ;;  %v2161_v3 = vmul.f32 %v4543_v63, %v4543_v63 }
 0x18d   : > { %5362 = vst [vmem:[#allocation43_spill] sm:$0xff] %v4547_v54  ;;  %5363 = vst [vmem:[#allocation44_spill] sm:$0xff] %v4551_v37  ;;  %v2162_v52 = vmul.f32 %v4547_v54, %v4547_v54  ;;  %v2198_v33 = vmul.f32 %v4515_v12, %v4543_v63  ;;  %v2199_v18 = vmul.f32 %v4519_v20, %v4547_v54 }
 0x18e   : > { %v2252_v44 = vadd.f32 %v2251_v53, %v2237_v47  ;;  %5364 = vst [vmem:[#allocation45_spill] sm:$0xff] %v4557_v16  ;;  %v4569_v35 = vmul.f32 %v4491_v51, %v4286_v43  ;;  %v2240_v38 = vmul.f32 %v4551_v37, %v4551_v37  ;;  %v4575_v31 = vmul.f32 %v4503_v1, %v4244_v40 }
 0x18f   : > { %v2163_v21 = vmul.f32 %v4557_v16, %v4557_v16  ;;  %v2177_v50 = vadd.f32 %v2162_v52, %v2161_v3  ;;  %v2200_v5 = vmul.f32 %v4523_v2, %v4557_v16  ;;  %v2214_v32 = vadd.f32 %v2199_v18, %v2198_v33 }
 0x190   : > { %v2253_v29 = vadd.f32 %v2252_v44, %v2238_v6  ;;  %5365 = vst [vmem:[#allocation46_spill] sm:$0xff] %v4569_v35  ;;  %5366 = vst [vmem:[#allocation47_spill] sm:$0xff] %v4575_v31  ;;  %v4583_v43 = vmul.f32 %v4491_v51, %v4300_v57  ;;  %v2241_v39 = vmul.f32 %v4569_v35, %v4569_v35 }
 0x191   : > { %v4589_v40 = vmul.f32 %v4503_v1, %v4263_v62  ;;  %v2164_v34 = vmul.f32 %v4575_v31, %v4575_v31  ;;  %v2178_v25 = vadd.f32 %v2177_v50, %v2163_v21  ;;  %v2201_v8 = vmul.f32 %v4531_v49, %v4575_v31 }
 0x192   : > { %v2254_v0 = vadd.f32 %v2253_v29, %v2239_v41  ;;  %5367 = vst [vmem:[#allocation48_spill] sm:$0xff] %v4583_v43  ;;  %v2215_v47 = vadd.f32 %v2214_v32, %v2200_v5  ;;  %v4597_v57 = vmul.f32 %v4491_v51, %v4313_v60  ;;  %v2242_v53 = vmul.f32 %v4583_v43, %v4583_v43 }
 0x193   : > { %5368 = vst [vmem:[#allocation49_spill] sm:$0xff] %v4589_v40  ;;  %v4603_v62 = vmul.f32 %v4503_v1, %v4282_v46  ;;  %v2165_v44 = vmul.f32 %v4589_v40, %v4589_v40  ;;  %v2179_v41 = vadd.f32 %v2178_v25, %v2164_v34  ;;  %v2202_v29 = vmul.f32 %v4537_v45, %v4589_v40  ;;  %v4637_v25 = vpop.permute.xlu1 %2453 }
 0x194   : > { %v2255_v17 = vadd.f32 %v2254_v0, %v2240_v38  ;;  %v2216_v3 = vadd.f32 %v2215_v47, %v2201_v8  ;;  %v4611_v60 = vmul.f32 %v4491_v51, %v4395_v48  ;;  %v2243_v52 = vmul.f32 %v4597_v57, %v4597_v57  ;;  %5372 = vst [vmem:[#allocation53_spill] sm:$0xff] %v4637_v25 }
 0x195   : > { %5369 = vst [vmem:[#allocation50_spill] sm:$0xff] %v4603_v62  ;;  %v4617_v46 = vmul.f32 %v4503_v1, %v4298_v7  ;;  %v2166_v18 = vmul.f32 %v4603_v62, %v4603_v62  ;;  %v2180_v38 = vadd.f32 %v2179_v41, %v2165_v44  ;;  %v2203_v0 = vmul.f32 %v4551_v37, %v4603_v62 }
 0x196   : > { %v2256_v6 = vadd.f32 %v2255_v17, %v2241_v39  ;;  %v2217_v21 = vadd.f32 %v2216_v3, %v2202_v29  ;;  %v2244_v48 = vmul.f32 %v4611_v60, %v4611_v60  ;;  %v4627_v5 = vmul.f32 %v4503_v1, %v4311_v58 }
 0x197   : > { %5370 = vst [vmem:[#allocation51_spill] sm:$0xff] %v4617_v46  ;;  %v2167_v7 = vmul.f32 %v4617_v46, %v4617_v46  ;;  %v2181_v32 = vadd.f32 %v2180_v38, %v2166_v18  ;;  %v4633_v39 = vmul.f32 %v4491_v51, %v4412_v61  ;;  %v2204_v17 = vmul.f32 %v4569_v35, %v4617_v46  ;;  %v4661_v18 = vpop.permute.xlu1 %2458 }
 0x198   : > { %v2257_v33 = vadd.f32 %v2256_v6, %v2242_v53  ;;  %v2218_v34 = vadd.f32 %v2217_v21, %v2203_v0  ;;  %v4643_v58 = vmul.f32 %v4503_v1, %v4382_v11  ;;  %v2168_v53 = vmul.f32 %v4627_v5, %v4627_v5  ;;  %5375 = vst [vmem:[#allocation56_spill] sm:$0xff] %v4661_v18 }
 0x199   : > { %5371 = vst [vmem:[#allocation52_spill] sm:$0xff] %v4633_v39  ;;  %v2245_v8 = vmul.f32 %v4633_v39, %v4633_v39  ;;  %v2182_v6 = vadd.f32 %v2181_v32, %v2167_v7  ;;  %v4649_v61 = vmul.f32 %v4491_v51, %v4431_v55  ;;  %v2205_v44 = vmul.f32 %v4583_v43, %v4627_v5 }
 0x19a   : > { %v2258_v50 = vadd.f32 %v2257_v33, %v2243_v52  ;;  %5373 = vst [vmem:[#allocation54_spill] sm:$0xff] %v4643_v58  ;;  %v2219_v41 = vadd.f32 %v2218_v34, %v2204_v17  ;;  %v4657_v11 = vmul.f32 %v4503_v1, %v4397_v9  ;;  %v2169_v52 = vmul.f32 %v4643_v58, %v4643_v58 }
 0x19b   : > { %v2246_v29 = vmul.f32 %v4649_v61, %v4649_v61  ;;  %v2183_v33 = vadd.f32 %v2182_v6, %v2168_v53  ;;  %v4665_v55 = vmul.f32 %v4491_v51, %v4448_v19  ;;  %v2206_v38 = vmul.f32 %v4597_v57, %v4643_v58 }
 0x19c   : > { %v2259_v47 = vadd.f32 %v2258_v50, %v2244_v48  ;;  %5374 = vst [vmem:[#allocation55_spill] sm:$0xff] %v4657_v11  ;;  %v2220_v0 = vadd.f32 %v2219_v41, %v2205_v44  ;;  %v2170_v50 = vmul.f32 %v4657_v11, %v4657_v11  ;;  %v4675_v34 = vmul.f32 %v4503_v1, %v4420_v4 }
 0x19d   : > { %v2247_v21 = vmul.f32 %v4665_v55, %v4665_v55  ;;  %v2184_v7 = vadd.f32 %v2183_v33, %v2169_v52  ;;  %v2207_v19 = vmul.f32 %v4611_v60, %v4657_v11  ;;  %v4687_v41 = vmul.f32 %v4503_v1, %v4433_v56 }
 0x19e   : > { %v2260_v3 = vadd.f32 %v2259_v47, %v2245_v8  ;;  %v2221_v51 = vadd.f32 %v2220_v0, %v2206_v38  ;;  %v4679_v8 = vpop.permute.xlu1 %2463  ;;  %v2248_v47 = vmul.f32 %v4495_v59, %v4495_v59  ;;  %v2171_v6 = vmul.f32 %v4675_v34, %v4675_v34 }
 0x19f   : > { %5376 = vst [vmem:[#allocation57_spill] sm:$0xff] %v4679_v8  ;;  %v2185_v44 = vadd.f32 %v2184_v7, %v2170_v50  ;;  %5377 = vst [vmem:[#allocation58_spill] sm:$0xff] %v4687_v41  ;;  %v2208_v4 = vmul.f32 %v4633_v39, %v4675_v34  ;;  %v2172_v33 = vmul.f32 %v4687_v41, %v4687_v41 }
 0x1a0   : > { %v2261_v9 = vadd.f32 %v2260_v3, %v2246_v29  ;;  %v2222_v29 = vadd.f32 %v2221_v51, %v2207_v19  ;;  %v2249_v3 = vmul.f32 %v4498_v30, %v4498_v30  ;;  %v2209_v56 = vmul.f32 %v4649_v61, %v4687_v41 }
 0x1a1   : > { %v2186_v38 = vadd.f32 %v2185_v44, %v2171_v6 }
 0x1a2   : > { %v2262_v53 = vadd.f32 %v2261_v9, %v2247_v21  ;;  %v4695_v0 = vpop.permute.xlu1 %2468  ;;  %v4699_v21 = vmul.f32 %v4503_v1, %v4456_v42  ;;  %v2250_v9 = vmul.f32 %v4501_v14, %v4501_v14  ;;  %v4709_v42 = vmul.f32 %v4503_v1, %v4469_v24 }
 0x1a3   : > { %5378 = vst [vmem:[#allocation59_spill] sm:$0xff] %v4695_v0  ;;  %v2187_v19 = vadd.f32 %v2186_v38, %v2172_v33  ;;  %v2175_v38 = vmul.f32 %v4506_v28, %v4506_v28 }
 0x1a4   : > { %v2263_v52 = vadd.f32 %v2262_v53, %v2248_v47  ;;  %v2210_v6 = vmul.f32 %v4665_v55, %v4699_v21  ;;  %v2211_v1 = vmul.f32 %v4495_v59, %v4709_v42 }
 0x201   : > { %v1056_v48 = vpop.f32.mrb[2].mxu0 }
 0x202   : > { %v3116_v32 = vmul.f32 -1.442695, %v1056_v48  ;;  %v3219_v17 = vpop.f32.mrb[3].mxu0  ;;  %v2223_v48 = vadd.f32 %v2222_v29, %v2208_v4  ;;  %v4714_v4 = vpop.permute.xlu1 %2473 }
 0x203   : > { %v2173_v17 = vmul.f32 %v4699_v21, %v4699_v21  ;;  %5379 = vst [vmem:[#allocation60_spill] sm:$0xff] %v4714_v4 }
 0x204   : > { %3372 = vpow2.f32 %v3116_v32  ;;  %v2264_v32 = vadd.f32 %v2263_v52, %v2249_v3  ;;  %v2224_v44 = vadd.f32 %v2223_v48, %v2209_v56  ;;  %v2174_v3 = vmul.f32 %v4709_v42, %v4709_v42 }
 0x205   : > { %v2188_v24 = vadd.f32 %v2187_v19, %v2173_v17  ;;  %v1287_v48 = vmax.f32 %v4511_v26, 0.0  ;;  %v2213_v19 = vmul.f32 %v4501_v14, %v4509_v36 }
 0x206   : > { %v2265_v29 = vadd.f32 %v2264_v32, %v2250_v9  ;;  %v2225_v52 = vadd.f32 %v2224_v44, %v2210_v6 }
 0x207   : > { %v2189_v56 = vadd.f32 %v2188_v24, %v2174_v3 }
 0x208   : > { %v2266_v33 = vrot.slane %v2265_v29, 4  ;;  %v2226_v9 = vadd.f32 %v2225_v52, %v2211_v1  ;;  %v5383_v52 = vld [vmem:[#allocation7_spill] sm:$0xff] }
 0x209   : > { %v2190_v32 = vadd.f32 %v2189_v56, %v2175_v38 }
 0x20d   : > { %v1424_v50 = vpop.f32.mrb[4].mxu0 }
 0x20e   : > { %v3373_v7 = vpop.eup %3372  ;;  %v1428_v51 = vmax.f32 %v1424_v50, 0.0  ;;  %v3247_v47 = vpop.f32.mrb[5].mxu0  ;;  %v2267_v50 = vadd.f32 %v2266_v33, %v2265_v29 }
 0x20f   : > { %v1063_v53 = vadd.f32 1.0, %v3373_v7  ;;  %v2176_v7 = vmul.f32 %v4509_v36, %v4509_v36  ;;  %v4738_v47 = vpop.permute.xlu0 %2448 }
 0x210   : > { %3253 = vmatmul.mubr.msk.f32.vlgmr.msra.gmra.mrb[4].mxu1 %vm549_vm2, %v1428_v51  ;;  %5381 = vst [vmem:[#allocation62_spill] sm:$0xff] %v4738_v47  ;;  %v2268_v6 = vrot.slane %v2267_v50, 2 }
 0x211   : > { %3374 = vrcp.f32 %v1063_v53  ;;  %3297 = vmatpush3.bf16.msra.mxu1 %v4333_v15  ;;  %3259 = vmatprep.mubr.msk.f32.mxu1 %vm3423_vm0, %v5353_v13  ;;  %v4726_v15 = vpop.permute.xlu1 %2478  ;;  %v2212_v13 = vmul.f32 %v4498_v30, %v4506_v28  ;;  %v2191_v44 = vadd.f32 %v2190_v32, %v2176_v7  ;;  %v5386_v32 = vld [vmem:[#allocation8_spill] sm:$0xff] }
 0x212   : > { %5380 = vst [vmem:[#allocation61_spill] sm:$0xff] %v4726_v15  ;;  %v2269_v38 = vadd.f32 %v2268_v6, %v2267_v50 }
 0x213   : > { %v2227_v51 = vadd.f32 %v2226_v9, %v2212_v13  ;;  %v2192_v56 = vrot.slane %v2191_v44, 4  ;;  %v4752_v9 = vpop.permute.xlu0 %2493 }
 0x214   : > { %5384 = vst [vmem:[#allocation64_spill] sm:$0xff] %v4752_v9 }
 0x215   : > { %v4740_v53 = vpop.permute.xlu1 %2483  ;;  %v2228_v1 = vadd.f32 %v2227_v51, %v2213_v19  ;;  %v5387_v19 = vld [vmem:[#allocation9_spill] sm:$0xff] }
 0x216   : > { %5382 = vst [vmem:[#allocation63_spill] sm:$0xff] %v4740_v53  ;;  %v5389_v53 = vld [vmem:[#allocation11_spill] sm:$0xff] }
 0x218   : > { %3260 = vmatmul.mubr.msk.f32.vlgmr.msra.gmra.mrb[4].mxu1 %vm549_vm2, %v1287_v48 }
 0x219   : > { %v4754_v7 = vpop.permute.xlu1 %2488 }
 0x21a   : > { %5385 = vst [vmem:[#allocation65_spill] sm:$0xff] %v4754_v7 }
 0x21b   : > { %v3375_v17 = vpop.eup %3374 }
 0x21c   : > { %v4736_v26 = vrot.slane %v3375_v17, %v3542_v10 }
 0x21e   : > { %v2318_v29 = vmul.f32 %v4736_v26, %v3582_v22  ;;  %v2319_v3 = vmul.f32 %v4736_v26, %v3585_v23  ;;  %v2320_v24 = vmul.f32 %v4736_v26, %v3597_v27  ;;  %v2321_v33 = vmul.f32 %v4736_v26, %v5383_v52  ;;  %v5388_v23 = vld [vmem:[#allocation10_spill] sm:$0xff] }
 0x21f   : > { %v2322_v17 = vmul.f32 %v4736_v26, %v5386_v32  ;;  %v2229_v27 = vrot.slane %v2228_v1, 4  ;;  %v2323_v51 = vmul.f32 %v4736_v26, %v5387_v19  ;;  %v2193_v52 = vadd.f32 %v2192_v56, %v2191_v44 }
 0x220   : > { %v2334_v48 = vmul.f32 %v2318_v29, %v4543_v63  ;;  %v2335_v13 = vmul.f32 %v2319_v3, %v4547_v54  ;;  %v2336_v10 = vmul.f32 %v2320_v24, %v4557_v16  ;;  %v2337_v50 = vmul.f32 %v2321_v33, %v4575_v31  ;;  %v4770_v31 = vpop.permute.xlu0 %2503 }
 0x221   : > { %v2270_v54 = vrot.slane %v2269_v38, 1  ;;  %v2324_v7 = vmul.f32 %v4736_v26, %v5388_v23  ;;  %v2338_v32 = vmul.f32 %v2322_v17, %v4589_v40  ;;  %v2230_v9 = vadd.f32 %v2229_v27, %v2228_v1  ;;  %5390 = vst [vmem:[#allocation66_spill] sm:$0xff] %v4770_v31  ;;  %v5392_v1 = vld [vmem:[#allocation12_spill] sm:$0xff] }
 0x222   : > { %v2350_v6 = vsel %vm549_vm2, %v2334_v48, 0.0  ;;  %v2351_v63 = vsel %vm549_vm2, %v2335_v13, 0.0  ;;  %v2353_v16 = vsel %vm549_vm2, %v2336_v10, 0.0  ;;  %v2325_v19 = vmul.f32 %v4736_v26, %v5389_v53  ;;  %v4772_v48 = vpop.permute.xlu1 %2498  ;;  %v5393_v53 = vld [vmem:[#allocation13_spill] sm:$0xff] }
 0x223   : > { %v2352_v22 = vadd.f32 %v2351_v63, %v2350_v6  ;;  %5391 = vst [vmem:[#allocation67_spill] sm:$0xff] %v4772_v48  ;;  %v2339_v13 = vmul.f32 %v2323_v51, %v4603_v62  ;;  %v2355_v63 = vsel %vm549_vm2, %v2337_v50, 0.0  ;;  %v2387_v44 = vmul.f32 %v2318_v29, %v4515_v12 }
 0x224   : > { %v2388_v56 = vmul.f32 %v2319_v3, %v4519_v20  ;;  %v4778_v6 = vadd.f32 %v2270_v54, %v2269_v38  ;;  %v2194_v10 = vrot.slane %v2193_v52, 2  ;;  %v2326_v40 = vmul.f32 %v4736_v26, %v5392_v1  ;;  %v5394_v20 = vld [vmem:[#allocation14_spill] sm:$0xff]  ;;  %v4794_v12 = vpop.permute.xlu0 %2513 }
 0x225   : > { %v2354_v47 = vadd.f32 %v2353_v16, %v2352_v22  ;;  %v2340_v22 = vmul.f32 %v2324_v7, %v4617_v46  ;;  %v2357_v16 = vsel %vm549_vm2, %v2338_v32, 0.0  ;;  %v2389_v23 = vmul.f32 %v2320_v24, %v4523_v2  ;;  %5395 = vst [vmem:[#allocation13_spill] sm:$0xff] %v4794_v12 }
 0x226   : > { %v2231_v62 = vrot.slane %v2230_v9, 2  ;;  %v2327_v50 = vmul.f32 %v4736_v26, %v5393_v53  ;;  %v2341_v29 = vmul.f32 %v2325_v19, %v4627_v5  ;;  %v2359_v54 = vsel %vm549_vm2, %v2339_v13, 0.0  ;;  %v4796_v1 = vpop.permute.xlu1 %2508 }
 0x227   : > { %v2356_v27 = vadd.f32 %v2355_v63, %v2354_v47  ;;  %v2390_v47 = vmul.f32 %v2321_v33, %v4531_v49  ;;  %v2403_v38 = vsel %vm549_vm2, %v2387_v44, 0.0  ;;  %v2404_v63 = vsel %vm549_vm2, %v2388_v56, 0.0  ;;  %5396 = vst [vmem:[#allocation14_spill] sm:$0xff] %v4796_v1  ;;  %v5397_v56 = vld [vmem:[#allocation15_spill] sm:$0xff] }
 0x228   : > { %v2195_v46 = vadd.f32 %v2194_v10, %v2193_v52  ;;  %v2328_v32 = vmul.f32 %v4736_v26, %v5394_v20  ;;  %v2405_v2 = vadd.f32 %v2404_v63, %v2403_v38  ;;  %v2361_v13 = vsel %vm549_vm2, %v2340_v22, 0.0  ;;  %v5398_v22 = vld [vmem:[#allocation16_spill] sm:$0xff] }
 0x229   : > { %v2358_v3 = vadd.f32 %v2357_v16, %v2356_v27  ;;  %v2342_v27 = vmul.f32 %v2326_v40, %v4643_v58  ;;  %v2391_v33 = vmul.f32 %v2322_v17, %v4537_v45  ;;  %v2406_v44 = vsel %vm549_vm2, %v2389_v23, 0.0 }
 0x22a   : > { %v2232_v16 = vadd.f32 %v2231_v62, %v2230_v9  ;;  %v2329_v52 = vmul.f32 %v4736_v26, %v5397_v56  ;;  %v2407_v49 = vadd.f32 %v2406_v44, %v2405_v2  ;;  %v2392_v38 = vmul.f32 %v2323_v51, %v4551_v37  ;;  %v4816_v37 = vpop.permute.xlu0 %2523 }
 0x22b   : > { %v2360_v24 = vadd.f32 %v2359_v54, %v2358_v3  ;;  %v2343_v3 = vmul.f32 %v2327_v50, %v4657_v11  ;;  %v2363_v54 = vsel %vm549_vm2, %v2341_v29, 0.0  ;;  %v2408_v63 = vsel %vm549_vm2, %v2390_v47, 0.0  ;;  %v5399_v29 = vld [vmem:[#allocation17_spill] sm:$0xff]  ;;  %5400 = vst [vmem:[#allocation15_spill] sm:$0xff] %v4816_v37  ;;  %v4818_v11 = vpop.permute.xlu1 %2518 }
 0x22c   : > { %v2196_v58 = vrot.slane %v2195_v46, 1  ;;  %v2330_v17 = vmul.f32 %v4736_v26, %v5398_v22  ;;  %v2409_v23 = vadd.f32 %v2408_v63, %v2407_v49  ;;  %v2344_v62 = vmul.f32 %v2328_v32, %v4675_v34 }
 0x22d   : > { %v2362_v10 = vadd.f32 %v2361_v13, %v2360_v24  ;;  %v2365_v9 = vsel %vm549_vm2, %v2342_v27, 0.0  ;;  %v2393_v2 = vmul.f32 %v2324_v7, %v4569_v35  ;;  %v2410_v24 = vsel %vm549_vm2, %v2391_v33, 0.0  ;;  %v5401_v33 = vld [vmem:[#allocation18_spill] sm:$0xff] }
 0x22e   : > { %v2233_v13 = vrot.slane %v2232_v16, 1  ;;  %v2331_v51 = vmul.f32 %v4736_v26, %v5399_v29  ;;  %v2411_v47 = vadd.f32 %v2410_v24, %v2409_v23  ;;  %v2345_v49 = vmul.f32 %v2329_v52, %v4687_v41 }
 0x22f   : > { %v2364_v45 = vadd.f32 %v2363_v54, %v2362_v10  ;;  %v2367_v10 = vsel %vm549_vm2, %v2343_v3, 0.0  ;;  %v2394_v27 = vmul.f32 %v2325_v19, %v4583_v43  ;;  %v2412_v7 = vsel %vm549_vm2, %v2392_v38, 0.0  ;;  %v5402_v19 = vld [vmem:[#allocation19_spill] sm:$0xff] }
 0x230   : > { %v4824_v54 = vadd.f32 %v2196_v58, %v2195_v46  ;;  %v2332_v63 = vmul.f32 %v4736_v26, %v5401_v33  ;;  %v2346_v23 = vmul.f32 %v2330_v17, %v4699_v21  ;;  %v2395_v24 = vmul.f32 %v2326_v40, %v4597_v57  ;;  %v4840_v40 = vpop.permute.xlu0 %2549 }
 0x231   : > { %v2366_v44 = vadd.f32 %v2365_v9, %v2364_v45  ;;  %v2413_v45 = vadd.f32 %v2412_v7, %v2411_v47  ;;  %v2369_v9 = vsel %vm549_vm2, %v2344_v62, 0.0  ;;  %v2414_v41 = vsel %vm549_vm2, %v2393_v2, 0.0  ;;  %5403 = vst [vmem:[#allocation16_spill] sm:$0xff] %v4840_v40  ;;  %v4842_v2 = vpop.permute.xlu1 %2544 }
 0x232   : > { %v4832_v3 = vadd.f32 %v2233_v13, %v2232_v16  ;;  %v2333_v38 = vmul.f32 %v4736_v26, %v5402_v19  ;;  %v2347_v43 = vmul.f32 %v2331_v51, %v4709_v42  ;;  %v2396_v47 = vmul.f32 %v2327_v50, %v4611_v60 }
 0x233   : > { %v2368_v35 = vadd.f32 %v2367_v10, %v2366_v44  ;;  %v2415_v58 = vadd.f32 %v2414_v41, %v2413_v45  ;;  %v2371_v44 = vsel %vm549_vm2, %v2345_v49, 0.0  ;;  %v2416_v10 = vsel %vm549_vm2, %v2394_v27, 0.0 }
 0x234   : > { %v2397_v16 = vmul.f32 %v2328_v32, %v4633_v39  ;;  %v2418_v26 = vsel %vm549_vm2, %v2395_v24, 0.0  ;;  %v2373_v41 = vsel %vm549_vm2, %v2346_v23, 0.0  ;;  %v2272_v13 = vmul.f32 %v4778_v6, %v4824_v54 }
 0x235   : > { %v2370_v46 = vadd.f32 %v2369_v9, %v2368_v35  ;;  %v2417_v62 = vadd.f32 %v2416_v10, %v2415_v58  ;;  %v2348_v35 = vmul.f32 %v2332_v63, %v4506_v28  ;;  %v2273_v50 = vmul.f32 %v4832_v3, %v4832_v3 }
 0x236   : > { %v2398_v45 = vmul.f32 %v2329_v52, %v4649_v61  ;;  %v2420_v9 = vsel %vm549_vm2, %v2396_v47, 0.0  ;;  %v2349_v32 = vmul.f32 %v2333_v38, %v4509_v36  ;;  %v2375_v24 = vsel %vm549_vm2, %v2347_v43, 0.0 }
 0x237   : > { %v2372_v7 = vadd.f32 %v2371_v44, %v2370_v46  ;;  %v2419_v49 = vadd.f32 %v2418_v26, %v2417_v62  ;;  %v2399_v23 = vmul.f32 %v2330_v17, %v4665_v55  ;;  %v2422_v44 = vsel %vm549_vm2, %v2397_v16, 0.0  ;;  %v4859_v62 = vpop.permute.xlu0 %2559 }
 0x238   : > { %v2377_v10 = vsel %vm549_vm2, %v2348_v35, 0.0  ;;  %5404 = vst [vmem:[#allocation17_spill] sm:$0xff] %v4859_v62  ;;  %v2274_v52 = vsub.f32 %v2272_v13, %v2273_v50  ;;  %v2400_v47 = vmul.f32 %v2331_v51, %v4495_v59  ;;  %v2424_v26 = vsel %vm549_vm2, %v2398_v45, 0.0 }
 0x239   : > { %v2374_v27 = vadd.f32 %v2373_v41, %v2372_v7  ;;  %v2421_v46 = vadd.f32 %v2420_v9, %v2419_v49  ;;  %v4861_v7 = vpop.permute.xlu1 %2554  ;;  %v2379_v43 = vsel %vm549_vm2, %v2349_v32, 0.0  ;;  %v2401_v17 = vmul.f32 %v2332_v63, %v4498_v30 }
 0x23a   : > { %5405 = vst [vmem:[#allocation18_spill] sm:$0xff] %v4861_v7  ;;  %v2426_v16 = vsel %vm549_vm2, %v2399_v23, 0.0  ;;  %3376 = vrcp.f32 %v2274_v52  ;;  %v2402_v9 = vmul.f32 %v2333_v38, %v4501_v14 }
 0x23b   : > { %v2376_v58 = vadd.f32 %v2375_v24, %v2374_v27  ;;  %v2423_v39 = vadd.f32 %v2422_v44, %v2421_v46  ;;  %v2428_v24 = vsel %vm549_vm2, %v2400_v47, 0.0  ;;  %v4870_v51 = vpop.permute.xlu0 %2569 }
 0x23c   : > { %5406 = vst [vmem:[#allocation19_spill] sm:$0xff] %v4870_v51  ;;  %v2432_v63 = vsel %vm549_vm2, %v2402_v9, 0.0 }
 0x23d   : > { %v2378_v28 = vadd.f32 %v2377_v10, %v2376_v58  ;;  %v2425_v49 = vadd.f32 %v2424_v26, %v2423_v39  ;;  %v4872_v45 = vpop.permute.xlu1 %2564  ;;  %v2278_v26 = vsub.f32 0.0, %v4832_v3 }
 0x23e   : > { %5407 = vst [vmem:[#allocation68_spill] sm:$0xff] %v4872_v45 }
 0x23f   : > { %v2380_v41 = vadd.f32 %v2379_v43, %v2378_v28  ;;  %v2427_v27 = vadd.f32 %v2426_v16, %v2425_v49  ;;  %v2430_v28 = vsel %vm549_vm2, %v2401_v17, 0.0  ;;  %v4876_v44 = vpop.permute.xlu0 %2579 }
 0x240   : > { %5408 = vst [vmem:[#allocation69_spill] sm:$0xff] %v4876_v44 }
 0x241   : > { %v2381_v35 = vrot.slane %v2380_v41, 4  ;;  %v2429_v50 = vadd.f32 %v2428_v24, %v2427_v27  ;;  %v4878_v38 = vpop.permute.xlu1 %2574 }
 0x242   : > { %5409 = vst [vmem:[#allocation70_spill] sm:$0xff] %v4878_v38 }
 0x243   : > { %v2382_v13 = vadd.f32 %v2381_v35, %v2380_v41  ;;  %v2431_v32 = vadd.f32 %v2430_v28, %v2429_v50  ;;  %v4884_v16 = vpop.permute.xlu0 %2589 }
 0x244   : > { %v3377_v47 = vpop.eup %3376 }
 0x245   : > { %v2383_v39 = vrot.slane %v2382_v13, 2  ;;  %v2433_v58 = vadd.f32 %v2432_v63, %v2431_v32  ;;  %v4882_v41 = vmul.f32 %v3377_v47, %v4778_v6  ;;  %v4886_v35 = vpop.permute.xlu1 %2584  ;;  %v4888_v27 = vmul.f32 %v3377_v47, %v2278_v26  ;;  %v5412_v26 = vld [vmem:[#allocation62_spill] sm:$0xff] }
 0x246   : > { %v4891_v9 = vmul.f32 %v3377_v47, %v4824_v54 }
 0x247   : > { %v2384_v46 = vadd.f32 %v2383_v39, %v2382_v13  ;;  %v2434_v23 = vrot.slane %v2433_v58, 4  ;;  %5410 = vst [vmem:[#allocation71_spill] sm:$0xff] %v4888_v27  ;;  %v4897_v39 = vpop.permute.xlu0 %2599 }
 0x248   : > { %5411 = vst [vmem:[#allocation72_spill] sm:$0xff] %v4891_v9 }
 0x249   : > { %v2385_v10 = vrot.slane %v2384_v46, 1  ;;  %v2435_v52 = vadd.f32 %v2434_v23, %v2433_v58  ;;  %v4899_v32 = vpop.permute.xlu1 %2594 }
 0x24b   : > { %v2436_v43 = vrot.slane %v2435_v52, 2  ;;  %v2386_v49 = vadd.f32 %v2385_v10, %v2384_v46 }
 0x24d   : > { %v2437_v17 = vadd.f32 %v2436_v43, %v2435_v52  ;;  %v2440_v50 = vmul.f32 %v2386_v49, %v4882_v41  ;;  %v2443_v3 = vmul.f32 %v2386_v49, %v4888_v27  ;;  %v5413_v49 = vld [vmem:[#allocation63_spill] sm:$0xff] }
 0x24f   : > { %v2438_v24 = vrot.slane %v2437_v17, 1 }
 0x251   : > { %v2439_v13 = vadd.f32 %v2438_v24, %v2437_v17  ;;  %v5414_v24 = vld [vmem:[#allocation64_spill] sm:$0xff] }
 0x253   : > { %v2441_v6 = vmul.f32 %v2439_v13, %v4888_v27  ;;  %v2444_v28 = vmul.f32 %v2439_v13, %v4891_v9 }
 0x255   : > { %v2442_v63 = vadd.f32 %v2441_v6, %v2440_v50  ;;  %v2445_v46 = vadd.f32 %v2444_v28, %v2443_v3  ;;  %v5415_v50 = vld [vmem:[#allocation65_spill] sm:$0xff] }
 0x257   : > { %v2527_v58 = vmul.f32 %v4637_v25, %v2442_v63  ;;  %v2528_v54 = vmul.f32 %v4661_v18, %v2442_v63  ;;  %v2529_v23 = vmul.f32 %v4679_v8, %v2442_v63  ;;  %v2530_v10 = vmul.f32 %v4695_v0, %v2442_v63  ;;  %v4913_v18 = vpop.permute.xlu0 %2609  ;;  %v4915_v8 = vpop.permute.xlu1 %2604 }
 0x258   : > { %v2531_v52 = vmul.f32 %v4714_v4, %v2442_v63  ;;  %v2532_v47 = vmul.f32 %v4726_v15, %v2442_v63  ;;  %v2526_v43 = vmul.f32 %v5412_v26, %v2442_v63  ;;  %v2533_v17 = vmul.f32 %v5413_v49, %v2442_v63 }
 0x259   : > { %v2535_v13 = vmul.f32 %v5414_v24, %v2442_v63  ;;  %v2534_v3 = vmul.f32 %v5415_v50, %v2442_v63  ;;  %v2537_v6 = vmul.f32 %v4770_v31, %v2442_v63  ;;  %v2536_v28 = vmul.f32 %v4772_v48, %v2442_v63 }
 0x25a   : > { %v2539_v4 = vmul.f32 %v4794_v12, %v2442_v63  ;;  %v2538_v15 = vmul.f32 %v4796_v1, %v2442_v63  ;;  %v2541_v0 = vmul.f32 %v4816_v37, %v2442_v63  ;;  %v2540_v49 = vmul.f32 %v4818_v11, %v2442_v63 }
 0x25b   : > { %v2623_v24 = vmul.f32 %v4840_v40, %v2445_v46  ;;  %v2622_v50 = vmul.f32 %v4842_v2, %v2445_v46  ;;  %v2625_v31 = vmul.f32 %v4859_v62, %v2445_v46  ;;  %v2624_v48 = vmul.f32 %v4861_v7, %v2445_v46 }
 0x25c   : > { %v2627_v25 = vmul.f32 %v4870_v51, %v2445_v46  ;;  %v2626_v26 = vmul.f32 %v4872_v45, %v2445_v46  ;;  %v2629_v12 = vmul.f32 %v4876_v44, %v2445_v46  ;;  %v2628_v1 = vmul.f32 %v4878_v38, %v2445_v46  ;;  %v5416_v44 = vld [vmem:[#allocation5_spill] sm:$0xff]  ;;  %v5417_v38 = vld [vmem:[#allocation4_spill] sm:$0xff] }
 0x25d   : > { %v2639_v9 = vadd.f32 %v2623_v24, %v2527_v58  ;;  %v2638_v37 = vadd.f32 %v2622_v50, %v2526_v43  ;;  %v2641_v27 = vadd.f32 %v2625_v31, %v2529_v23  ;;  %v2640_v63 = vadd.f32 %v2624_v48, %v2528_v54  ;;  %v5418_v43 = vld [vmem:[#allocation7_spill] sm:$0xff]  ;;  %v5419_v48 = vld [vmem:[#allocation6_spill] sm:$0xff]  ;;  %v4939_v23 = vpop.permute.xlu0 %2619  ;;  %v4941_v24 = vpop.permute.xlu1 %2614 }
 0x25e   : > { %v2643_v62 = vadd.f32 %v2627_v25, %v2531_v52  ;;  %v2642_v51 = vadd.f32 %v2626_v26, %v2530_v10  ;;  %v2645_v45 = vadd.f32 %v2629_v12, %v2533_v17  ;;  %v2644_v7 = vadd.f32 %v2628_v1, %v2532_v47  ;;  %v5420_v25 = vld [vmem:[#allocation9_spill] sm:$0xff]  ;;  %v5421_v12 = vld [vmem:[#allocation8_spill] sm:$0xff]  ;;  %v5422_v52 = vld [vmem:[#allocation11_spill] sm:$0xff] }
 0x25f   : > { %v2655_v40 = vadd.f32 %v2639_v9, %v5416_v44  ;;  %v2654_v58 = vadd.f32 %v2638_v37, %v5417_v38  ;;  %v2657_v31 = vadd.f32 %v2641_v27, %v5418_v43  ;;  %v2656_v54 = vadd.f32 %v2640_v63, %v5419_v48  ;;  %v5423_v9 = vld [vmem:[#allocation10_spill] sm:$0xff] }
 0x260   : > { %v2659_v10 = vadd.f32 %v2643_v62, %v5420_v25  ;;  %v2658_v1 = vadd.f32 %v2642_v51, %v5421_v12  ;;  %v2661_v44 = vadd.f32 %v2645_v45, %v5422_v52  ;;  %v2660_v37 = vadd.f32 %v2644_v7, %v5423_v9  ;;  %v5424_v25 = vld [vmem:[#allocation12_spill] sm:$0xff]  ;;  %v5427_v12 = vld [vmem:[#allocation21_spill] sm:$0xff]  ;;  %v5428_v52 = vld [vmem:[#allocation22_spill] sm:$0xff] }
 0x261   : > { %2671 = vst.msk [vmem:[%s4933_s28 + $0x8] sm:$0xff] %vm549_vm2, %v2655_v40  ;;  %2670 = vst.msk [vmem:[%s4933_s28] sm:$0xff] %vm549_vm2, %v2654_v58  ;;  %v2631_v38 = vmul.f32 %v4884_v16, %v2445_v46  ;;  %v2630_v27 = vmul.f32 %v4886_v35, %v2445_v46  ;;  %v2633_v62 = vmul.f32 %v4897_v39, %v2445_v46  ;;  %v5429_v9 = vld [vmem:[#allocation23_spill] sm:$0xff] }
 0x262   : > { %2673 = vst.msk [vmem:[%s4933_s28 + $0x18] sm:$0xff] %vm549_vm2, %v2657_v31  ;;  %2672 = vst.msk [vmem:[%s4933_s28 + $0x10] sm:$0xff] %vm549_vm2, %v2656_v54  ;;  %v2632_v51 = vmul.f32 %v4899_v32, %v2445_v46  ;;  %v2635_v40 = vmul.f32 %v4913_v18, %v2445_v46  ;;  %v2634_v7 = vmul.f32 %v4915_v8, %v2445_v46 }
 0x263   : > { %2675 = vst.msk [vmem:[%s4933_s28 + $0x28] sm:$0xff] %vm549_vm2, %v2659_v10  ;;  %2674 = vst.msk [vmem:[%s4933_s28 + $0x20] sm:$0xff] %vm549_vm2, %v2658_v1  ;;  %v2637_v45 = vmul.f32 %v4939_v23, %v2445_v46  ;;  %v2636_v47 = vmul.f32 %v4941_v24, %v2445_v46  ;;  %v2647_v26 = vadd.f32 %v2631_v38, %v2535_v13  ;;  %v5430_v38 = vld [vmem:[#allocation42_spill] sm:$0xff] }
 0x264   : > { %2677 = vst.msk [vmem:[%s4933_s28 + $0x38] sm:$0xff] %vm549_vm2, %v2661_v44  ;;  %2676 = vst.msk [vmem:[%s4933_s28 + $0x30] sm:$0xff] %vm549_vm2, %v2660_v37  ;;  %v2646_v17 = vadd.f32 %v2630_v27, %v2534_v3  ;;  %v2649_v50 = vadd.f32 %v2633_v62, %v2537_v6  ;;  %v2648_v63 = vadd.f32 %v2632_v51, %v2536_v28  ;;  %v5431_v62 = vld [vmem:[#allocation43_spill] sm:$0xff] }
 0x265   : > { %v2651_v58 = vadd.f32 %v2635_v40, %v2539_v4  ;;  %v2650_v43 = vadd.f32 %v2634_v7, %v2538_v15  ;;  %v2653_v31 = vadd.f32 %v2637_v45, %v2541_v0  ;;  %v2652_v48 = vadd.f32 %v2636_v47, %v2540_v49  ;;  %v5426_v49 = vld [vmem:[#allocation20_spill] sm:$0xff]  ;;  %v5433_v45 = vld [vmem:[#allocation45_spill] sm:$0xff] }
 0x266   : > { %v2663_v54 = vadd.f32 %v2647_v26, %v5393_v53  ;;  %v2662_v46 = vadd.f32 %v2646_v17, %v5424_v25  ;;  %v2665_v13 = vadd.f32 %v2649_v50, %v5397_v56  ;;  %v2664_v3 = vadd.f32 %v2648_v63, %v5394_v20  ;;  %v5432_v40 = vld [vmem:[#allocation24_spill] sm:$0xff]  ;;  %v5434_v26 = vld [vmem:[#allocation25_spill] sm:$0xff]  ;;  %v5435_v50 = vld [vmem:[#allocation47_spill] sm:$0xff] }
 0x267   : > { %v2667_v6 = vadd.f32 %v2651_v58, %v5399_v29  ;;  %v2666_v28 = vadd.f32 %v2650_v43, %v5398_v22  ;;  %v2669_v4 = vadd.f32 %v2653_v31, %v5402_v19  ;;  %v2668_v15 = vadd.f32 %v2652_v48, %v5401_v33  ;;  %v5425_v33 = vld [vmem:[#allocation3_spill] sm:$0xff]  ;;  %v5436_v48 = vld [vmem:[#allocation26_spill] sm:$0xff]  ;;  %v5437_v25 = vld [vmem:[#allocation49_spill] sm:$0xff] }
 0x268   : > { %2679 = vst.msk [vmem:[%s4933_s28 + $0x48] sm:$0xff] %vm549_vm2, %v2663_v54  ;;  %2678 = vst.msk [vmem:[%s4933_s28 + $0x40] sm:$0xff] %vm549_vm2, %v2662_v46 }
 0x269   : > { %2681 = vst.msk [vmem:[%s4933_s28 + $0x58] sm:$0xff] %vm549_vm2, %v2665_v13  ;;  %2680 = vst.msk [vmem:[%s4933_s28 + $0x50] sm:$0xff] %vm549_vm2, %v2664_v3 }
 0x26a   : > { %2683 = vst.msk [vmem:[%s4933_s28 + $0x68] sm:$0xff] %vm549_vm2, %v2667_v6  ;;  %2682 = vst.msk [vmem:[%s4933_s28 + $0x60] sm:$0xff] %vm549_vm2, %v2666_v28  ;;  %v5438_v6 = vld [vmem:[#allocation27_spill] sm:$0xff] }
 0x26b   : > { %2685 = vst.msk [vmem:[%s4933_s28 + $0x78] sm:$0xff] %vm549_vm2, %v2669_v4  ;;  %2684 = vst.msk [vmem:[%s4933_s28 + $0x70] sm:$0xff] %vm549_vm2, %v2668_v15  ;;  %v5439_v4 = vld [vmem:[#allocation50_spill] sm:$0xff] }
 0x2eb   : > { %v1571_v20 = vpop.f32.mrb[4].mxu1 }
 0x2ec   : > { %v3123_v0 = vmul.f32 -1.442695, %v1571_v20  ;;  %v3261_v53 = vpop.f32.mrb[5].mxu1 }
 0x2ed   : > { %v5440_v53 = vld [vmem:[#allocation37_spill] sm:$0xff] }
 0x2ee   : > { %3378 = vpow2.f32 %v3123_v0 }
 0x2f8   : > { %v3379_v56 = vpop.eup %3378 }
 0x2f9   : > { %v1578_v22 = vadd.f32 1.0, %v3379_v56 }
 0x2fb   : > { %3380 = vrcp.f32 %v1578_v22  ;;  %v5441_v22 = vld [vmem:[#allocation38_spill] sm:$0xff] }
 0x305   : > { %v3381_v29 = vpop.eup %3380 }
 0x306   : > { %v4996_v19 = vrot.slane %v3381_v29, %v5425_v33  ;;  %v5442_v33 = vld [vmem:[#allocation28_spill] sm:$0xff] }
 0x308   : > { %v2690_v10 = vmul.f32 %v4996_v19, %v5426_v49  ;;  %v2691_v1 = vmul.f32 %v4996_v19, %v5427_v12  ;;  %v2692_v44 = vmul.f32 %v4996_v19, %v5428_v52  ;;  %v2693_v37 = vmul.f32 %v4996_v19, %v5429_v9 }
 0x309   : > { %v2694_v7 = vmul.f32 %v4996_v19, %v5432_v40  ;;  %v2695_v17 = vmul.f32 %v4996_v19, %v5434_v26  ;;  %v2696_v54 = vmul.f32 %v4996_v19, %v5436_v48  ;;  %v2697_v28 = vmul.f32 %v4996_v19, %v5438_v6 }
 0x30a   : > { %v2706_v27 = vmul.f32 %v2690_v10, %v5430_v38  ;;  %v2707_v51 = vmul.f32 %v2691_v1, %v5431_v62  ;;  %v2708_v47 = vmul.f32 %v2692_v44, %v5433_v45  ;;  %v2709_v63 = vmul.f32 %v2693_v37, %v5435_v50 }
 0x30b   : > { %v2710_v46 = vmul.f32 %v2694_v7, %v5437_v25  ;;  %v2711_v15 = vmul.f32 %v2695_v17, %v5439_v4  ;;  %v2759_v56 = vmul.f32 %v2690_v10, %v5440_v53  ;;  %v2760_v29 = vmul.f32 %v2691_v1, %v5441_v22  ;;  %v5446_v25 = vld [vmem:[#allocation40_spill] sm:$0xff]  ;;  %v5447_v4 = vld [vmem:[#allocation30_spill] sm:$0xff] }
 0x30c   : > { %v2722_v58 = vsel %vm549_vm2, %v2706_v27, 0.0  ;;  %v2723_v43 = vsel %vm549_vm2, %v2707_v51, 0.0  ;;  %v2725_v13 = vsel %vm549_vm2, %v2708_v47, 0.0  ;;  %v2727_v20 = vsel %vm549_vm2, %v2709_v63, 0.0  ;;  %v5443_v27 = vld [vmem:[#allocation51_spill] sm:$0xff] }
 0x30d   : > { %v2724_v31 = vadd.f32 %v2723_v43, %v2722_v58  ;;  %v2698_v38 = vmul.f32 %v4996_v19, %v5442_v33  ;;  %v2712_v62 = vmul.f32 %v2696_v54, %v5443_v27  ;;  %v2729_v51 = vsel %vm549_vm2, %v2710_v46, 0.0  ;;  %v5444_v47 = vld [vmem:[#allocation39_spill] sm:$0xff]  ;;  %v5445_v58 = vld [vmem:[#allocation29_spill] sm:$0xff] }
 0x30e   : > { %v2761_v50 = vmul.f32 %v2692_v44, %v5444_v47  ;;  %v2699_v43 = vmul.f32 %v4996_v19, %v5445_v58  ;;  %v2713_v63 = vmul.f32 %v2697_v28, %v4627_v5  ;;  %v2762_v1 = vmul.f32 %v2693_v37, %v5446_v25  ;;  %v5449_v27 = vld [vmem:[#allocation41_spill] sm:$0xff]  ;;  %v5452_v25 = vld [vmem:[#allocation44_spill] sm:$0xff] }
 0x30f   : > { %v2726_v3 = vadd.f32 %v2725_v13, %v2724_v31  ;;  %v2731_v31 = vsel %vm549_vm2, %v2711_v15, 0.0  ;;  %v2775_v13 = vsel %vm549_vm2, %v2759_v56, 0.0  ;;  %v2700_v46 = vmul.f32 %v4996_v19, %v5447_v4 }
 0x310   : > { %v2733_v44 = vsel %vm549_vm2, %v2712_v62, 0.0  ;;  %v2763_v5 = vmul.f32 %v2694_v7, %v5449_v27  ;;  %v2778_v15 = vsel %vm549_vm2, %v2761_v50, 0.0  ;;  %v2764_v4 = vmul.f32 %v2695_v17, %v5452_v25  ;;  %v5453_v62 = vld [vmem:[#allocation32_spill] sm:$0xff] }
 0x311   : > { %v2728_v0 = vadd.f32 %v2727_v20, %v2726_v3  ;;  %v2776_v3 = vsel %vm549_vm2, %v2760_v29, 0.0  ;;  %v5448_v20 = vld [vmem:[#allocation54_spill] sm:$0xff]  ;;  %v2735_v29 = vsel %vm549_vm2, %v2713_v63, 0.0  ;;  %v2716_v7 = vmul.f32 %v2700_v46, %v4675_v34  ;;  %v5455_v63 = vld [vmem:[#allocation33_spill] sm:$0xff]  ;;  %v5457_v25 = vld [vmem:[#allocation48_spill] sm:$0xff] }
 0x312   : > { %v2777_v53 = vadd.f32 %v2776_v3, %v2775_v13  ;;  %v2784_v34 = vsel %vm549_vm2, %v2764_v4, 0.0 }
 0x313   : > { %v2730_v45 = vadd.f32 %v2729_v51, %v2728_v0  ;;  %v2714_v0 = vmul.f32 %v2698_v38, %v5448_v20  ;;  %v5450_v51 = vld [vmem:[#allocation31_spill] sm:$0xff]  ;;  %v2780_v20 = vsel %vm549_vm2, %v2762_v1, 0.0 }
 0x314   : > { %v2701_v37 = vmul.f32 %v4996_v19, %v5450_v51  ;;  %v2779_v47 = vadd.f32 %v2778_v15, %v2777_v53  ;;  %v2703_v53 = vmul.f32 %v4996_v19, %v5455_v63 }
 0x315   : > { %v2732_v10 = vadd.f32 %v2731_v31, %v2730_v45  ;;  %v5451_v45 = vld [vmem:[#allocation55_spill] sm:$0xff]  ;;  %v2737_v50 = vsel %vm549_vm2, %v2714_v0, 0.0  ;;  %v5458_v0 = vld [vmem:[#allocation34_spill] sm:$0xff] }
 0x316   : > { %v2715_v56 = vmul.f32 %v2699_v43, %v5451_v45  ;;  %v2781_v13 = vadd.f32 %v2780_v20, %v2779_v47  ;;  %v2782_v45 = vsel %vm549_vm2, %v2763_v5, 0.0  ;;  %v2704_v47 = vmul.f32 %v4996_v19, %v5458_v0 }
 0x317   : > { %v2734_v22 = vadd.f32 %v2733_v44, %v2732_v10  ;;  %v2702_v10 = vmul.f32 %v4996_v19, %v5453_v62  ;;  %v5454_v44 = vld [vmem:[#allocation46_spill] sm:$0xff]  ;;  %v2766_v62 = vmul.f32 %v2697_v28, %v5457_v25  ;;  %v2741_v5 = vsel %vm549_vm2, %v2716_v7, 0.0  ;;  %v5460_v7 = vld [vmem:[#allocation36_spill] sm:$0xff] }
 0x318   : > { %v2765_v27 = vmul.f32 %v2696_v54, %v5454_v44  ;;  %v2739_v1 = vsel %vm549_vm2, %v2715_v56, 0.0  ;;  %v2783_v15 = vadd.f32 %v2782_v45, %v2781_v13  ;;  %v5459_v56 = vld [vmem:[#allocation35_spill] sm:$0xff]  ;;  %v2719_v28 = vmul.f32 %v2703_v53, %v4709_v42 }
 0x319   : > { %v2736_v31 = vadd.f32 %v2735_v29, %v2734_v22  ;;  %v5456_v22 = vld [vmem:[#allocation58_spill] sm:$0xff]  ;;  %v2718_v54 = vmul.f32 %v2702_v10, %v4699_v21  ;;  %v2705_v13 = vmul.f32 %v4996_v19, %v5459_v56  ;;  %v2788_v21 = vsel %vm549_vm2, %v2766_v62, 0.0 }
 0x31a   : > { %v2717_v17 = vmul.f32 %v2701_v37, %v5456_v22  ;;  %v2786_v44 = vsel %vm549_vm2, %v2765_v27, 0.0  ;;  %v2768_v22 = vmul.f32 %v2699_v43, %v4611_v60  ;;  %v5461_v27 = vld [vmem:[#allocation52_spill] sm:$0xff]  ;;  %v2770_v60 = vmul.f32 %v2701_v37, %v4649_v61 }
 0x31b   : > { %v2738_v3 = vadd.f32 %v2737_v50, %v2736_v31  ;;  %v2785_v31 = vadd.f32 %v2784_v34, %v2783_v15  ;;  %v2767_v50 = vmul.f32 %v2698_v38, %v4597_v57  ;;  %v2745_v15 = vsel %vm549_vm2, %v2718_v54, 0.0 }
 0x31c   : > { %v2743_v4 = vsel %vm549_vm2, %v2717_v17, 0.0  ;;  %v2721_v42 = vmul.f32 %v2705_v13, %v4509_v36  ;;  %v2747_v17 = vsel %vm549_vm2, %v2719_v28, 0.0  ;;  %v2792_v43 = vsel %vm549_vm2, %v2768_v22, 0.0 }
 0x31d   : > { %v2740_v29 = vadd.f32 %v2739_v1, %v2738_v3  ;;  %v2787_v3 = vadd.f32 %v2786_v44, %v2785_v31  ;;  %v2720_v1 = vmul.f32 %v2704_v47, %v5460_v7  ;;  %v2790_v19 = vsel %vm549_vm2, %v2767_v50, 0.0 }
 0x31e   : > { %v2771_v31 = vmul.f32 %v2702_v10, %v4665_v55  ;;  %v2772_v44 = vmul.f32 %v2703_v53, %v4495_v59  ;;  %v2796_v28 = vsel %vm549_vm2, %v2770_v60, 0.0  ;;  %v2773_v37 = vmul.f32 %v2704_v47, %v4498_v30  ;;  %v5463_v60 = vld [vmem:[#allocation72_spill] sm:$0xff] }
 0x31f   : > { %v2742_v20 = vadd.f32 %v2741_v5, %v2740_v29  ;;  %v2789_v57 = vadd.f32 %v2788_v21, %v2787_v3  ;;  %v2769_v29 = vmul.f32 %v2700_v46, %v5461_v27  ;;  %v2749_v62 = vsel %vm549_vm2, %v2720_v1, 0.0 }
 0x320   : > { %v2798_v3 = vsel %vm549_vm2, %v2771_v31, 0.0  ;;  %v2774_v55 = vmul.f32 %v2705_v13, %v4501_v14  ;;  %v2800_v10 = vsel %vm549_vm2, %v2772_v44, 0.0  ;;  %v2802_v1 = vsel %vm549_vm2, %v2773_v37, 0.0  ;;  %v5462_v13 = vld [vmem:[#allocation71_spill] sm:$0xff]  ;;  %v5467_v44 = vld [vmem:[#allocation57_spill] sm:$0xff]  ;;  %v5469_v37 = vld [vmem:[#allocation60_spill] sm:$0xff] }
 0x321   : > { %v2744_v45 = vadd.f32 %v2743_v4, %v2742_v20  ;;  %v2791_v25 = vadd.f32 %v2790_v19, %v2789_v57  ;;  %v2794_v46 = vsel %vm549_vm2, %v2769_v29, 0.0  ;;  %v2751_v20 = vsel %vm549_vm2, %v2721_v42, 0.0 }
 0x322   : > { %v2804_v59 = vsel %vm549_vm2, %v2774_v55, 0.0 }
 0x323   : > { %v2746_v38 = vadd.f32 %v2745_v15, %v2744_v45  ;;  %v2793_v5 = vadd.f32 %v2792_v43, %v2791_v25 }
 0x325   : > { %v2748_v34 = vadd.f32 %v2747_v17, %v2746_v38  ;;  %v2795_v50 = vadd.f32 %v2794_v46, %v2793_v5  ;;  %v5465_v46 = vld [vmem:[#allocation53_spill] sm:$0xff] }
 0x327   : > { %v2750_v54 = vadd.f32 %v2749_v62, %v2748_v34  ;;  %v2797_v4 = vadd.f32 %v2796_v28, %v2795_v50  ;;  %v5466_v50 = vld [vmem:[#allocation56_spill] sm:$0xff] }
 0x329   : > { %v2752_v36 = vadd.f32 %v2751_v20, %v2750_v54  ;;  %v2799_v45 = vadd.f32 %v2798_v3, %v2797_v4  ;;  %v5464_v54 = vld [vmem:[#allocation62_spill] sm:$0xff]  ;;  %v5468_v4 = vld [vmem:[#allocation59_spill] sm:$0xff]  ;;  %v5470_v3 = vld [vmem:[#allocation61_spill] sm:$0xff] }
 0x32b   : > { %v2753_v61 = vrot.slane %v2752_v36, 4  ;;  %v2801_v21 = vadd.f32 %v2800_v10, %v2799_v45  ;;  %v5472_v10 = vld [vmem:[#allocation65_spill] sm:$0xff] }
 0x32d   : > { %v2754_v22 = vadd.f32 %v2753_v61, %v2752_v36  ;;  %v2803_v15 = vadd.f32 %v2802_v1, %v2801_v21 }
 0x32f   : > { %v2755_v7 = vrot.slane %v2754_v22, 2  ;;  %v2805_v57 = vadd.f32 %v2804_v59, %v2803_v15  ;;  %v5474_v15 = vld [vmem:[#allocation67_spill] sm:$0xff] }
 0x331   : > { %v2756_v53 = vadd.f32 %v2755_v7, %v2754_v22  ;;  %v2806_v38 = vrot.slane %v2805_v57, 4  ;;  %v5471_v22 = vld [vmem:[#allocation63_spill] sm:$0xff]  ;;  %v5473_v7 = vld [vmem:[#allocation64_spill] sm:$0xff] }
 0x333   : > { %v2757_v27 = vrot.slane %v2756_v53, 1  ;;  %v2807_v30 = vadd.f32 %v2806_v38, %v2805_v57  ;;  %v5476_v38 = vld [vmem:[#allocation14_spill] sm:$0xff] }
 0x335   : > { %v2808_v47 = vrot.slane %v2807_v30, 2  ;;  %v2758_v29 = vadd.f32 %v2757_v27, %v2756_v53  ;;  %v5475_v53 = vld [vmem:[#allocation66_spill] sm:$0xff] }
 0x337   : > { %v2809_v19 = vadd.f32 %v2808_v47, %v2807_v30  ;;  %v2812_v14 = vmul.f32 %v2758_v29, %v4882_v41  ;;  %v2815_v25 = vmul.f32 %v2758_v29, %v5462_v13  ;;  %v5477_v30 = vld [vmem:[#allocation13_spill] sm:$0xff] }
 0x339   : > { %v2810_v42 = vrot.slane %v2809_v19, 1 }
 0x33b   : > { %v2811_v17 = vadd.f32 %v2810_v42, %v2809_v19  ;;  %v5478_v19 = vld [vmem:[#allocation15_spill] sm:$0xff] }
 0x33d   : > { %v2813_v34 = vmul.f32 %v2811_v17, %v5462_v13  ;;  %v2816_v43 = vmul.f32 %v2811_v17, %v5463_v60  ;;  %v5481_v60 = vld [vmem:[#allocation17_spill] sm:$0xff] }
 0x33f   : > { %v2814_v62 = vadd.f32 %v2813_v34, %v2812_v14  ;;  %v2817_v5 = vadd.f32 %v2816_v43, %v2815_v25  ;;  %v5479_v14 = vld [vmem:[#allocation16_spill] sm:$0xff]  ;;  %v5480_v25 = vld [vmem:[#allocation18_spill] sm:$0xff] }
 0x341   : > { %v2818_v31 = vmul.f32 %v2814_v62, %v5464_v54  ;;  %v2819_v20 = vmul.f32 %v2814_v62, %v5465_v46  ;;  %v2820_v36 = vmul.f32 %v2814_v62, %v5466_v50  ;;  %v2821_v28 = vmul.f32 %v2814_v62, %v5467_v44  ;;  %v5482_v54 = vld [vmem:[#allocation68_spill] sm:$0xff]  ;;  %v5483_v50 = vld [vmem:[#allocation19_spill] sm:$0xff] }
 0x342   : > { %v2822_v61 = vmul.f32 %v2814_v62, %v5468_v4  ;;  %v2823_v41 = vmul.f32 %v2814_v62, %v5469_v37  ;;  %v2824_v45 = vmul.f32 %v2814_v62, %v5470_v3  ;;  %v2825_v55 = vmul.f32 %v2814_v62, %v5471_v22  ;;  %v5484_v4 = vld [vmem:[#allocation70_spill] sm:$0xff]  ;;  %v5485_v3 = vld [vmem:[#allocation69_spill] sm:$0xff] }
 0x343   : > { %v2826_v21 = vmul.f32 %v2814_v62, %v5472_v10  ;;  %v2827_v1 = vmul.f32 %v2814_v62, %v5473_v7  ;;  %v2828_v59 = vmul.f32 %v2814_v62, %v5474_v15  ;;  %v2829_v57 = vmul.f32 %v2814_v62, %v5475_v53 }
 0x344   : > { %v2830_v27 = vmul.f32 %v2814_v62, %v5476_v38  ;;  %v2831_v47 = vmul.f32 %v2814_v62, %v5477_v30  ;;  %v2832_v29 = vmul.f32 %v2814_v62, %v4818_v11  ;;  %v2833_v42 = vmul.f32 %v2814_v62, %v5478_v19 }
 0x345   : > { %v2834_v17 = vmul.f32 %v2817_v5, %v4842_v2  ;;  %v2835_v13 = vmul.f32 %v2817_v5, %v5479_v14  ;;  %v2836_v34 = vmul.f32 %v2817_v5, %v5480_v25  ;;  %v2837_v43 = vmul.f32 %v2817_v5, %v5481_v60 }
 0x346   : > { %v2838_v46 = vmul.f32 %v2817_v5, %v5482_v54  ;;  %v2839_v44 = vmul.f32 %v2817_v5, %v5483_v50  ;;  %v2840_v37 = vmul.f32 %v2817_v5, %v5484_v4  ;;  %v2841_v22 = vmul.f32 %v2817_v5, %v5485_v3 }
 0x347   : > { %v2842_v11 = vmul.f32 %v2817_v5, %v4886_v35  ;;  %v2843_v62 = vmul.f32 %v2817_v5, %v4884_v16  ;;  %v2844_v2 = vmul.f32 %v2817_v5, %v4899_v32  ;;  %v2845_v10 = vmul.f32 %v2817_v5, %v4897_v39 }
 0x348   : > { %v2846_v7 = vmul.f32 %v2817_v5, %v4915_v8  ;;  %v2847_v15 = vmul.f32 %v2817_v5, %v4913_v18  ;;  %v2848_v53 = vmul.f32 %v2817_v5, %v4941_v24  ;;  %v2849_v38 = vmul.f32 %v2817_v5, %v4939_v23 }
 0x349   : > { %v2850_v30 = vadd.f32 %v2834_v17, %v2818_v31  ;;  %v2851_v19 = vadd.f32 %v2835_v13, %v2819_v20  ;;  %v2852_v14 = vadd.f32 %v2836_v34, %v2820_v36  ;;  %v2853_v25 = vadd.f32 %v2837_v43, %v2821_v28 }
 0x34a   : > { %v2854_v35 = vadd.f32 %v2838_v46, %v2822_v61  ;;  %v2855_v60 = vadd.f32 %v2839_v44, %v2823_v41  ;;  %v2856_v16 = vadd.f32 %v2840_v37, %v2824_v45  ;;  %v2857_v54 = vadd.f32 %v2841_v22, %v2825_v55 }
 0x34b   : > { %v2858_v32 = vadd.f32 %v2842_v11, %v2826_v21  ;;  %v2859_v50 = vadd.f32 %v2843_v62, %v2827_v1  ;;  %v2860_v39 = vadd.f32 %v2844_v2, %v2828_v59  ;;  %v2861_v4 = vadd.f32 %v2845_v10, %v2829_v57 }
 0x34c   : > { %v2862_v18 = vadd.f32 %v2846_v7, %v2830_v27  ;;  %v2863_v8 = vadd.f32 %v2847_v15, %v2831_v47  ;;  %v2864_v23 = vadd.f32 %v2848_v53, %v2832_v29  ;;  %v2865_v24 = vadd.f32 %v2849_v38, %v2833_v42 }
 0x34d   : > { %v2866_v5 = vadd.f32 %v2850_v30, %v5426_v49  ;;  %v2867_v31 = vadd.f32 %v2851_v19, %v5427_v12  ;;  %v2868_v20 = vadd.f32 %v2852_v14, %v5428_v52  ;;  %v2869_v36 = vadd.f32 %v2853_v25, %v5429_v9  ;;  %v5486_v52 = vld [vmem:[#allocation30_spill] sm:$0xff] }
 0x34e   : > { %v2870_v28 = vadd.f32 %v2854_v35, %v5432_v40  ;;  %v2871_v61 = vadd.f32 %v2855_v60, %v5434_v26  ;;  %v2872_v41 = vadd.f32 %v2856_v16, %v5436_v48  ;;  %v2873_v45 = vadd.f32 %v2857_v54, %v5438_v6  ;;  %v5487_v26 = vld [vmem:[#allocation32_spill] sm:$0xff] }
 0x34f   : > { %v2874_v49 = vadd.f32 %v2858_v32, %v5442_v33  ;;  %v2875_v12 = vadd.f32 %v2859_v50, %v5445_v58  ;;  %v2876_v9 = vadd.f32 %v2860_v39, %v5486_v52  ;;  %v2877_v40 = vadd.f32 %v2861_v4, %v5450_v51  ;;  %2882 = vst.msk [vmem:[%s5134_s10] sm:$0xff] %vm549_vm2, %v2866_v5 }
 0x350   : > { %2883 = vst.msk [vmem:[%s5134_s10 + $0x8] sm:$0xff] %vm549_vm2, %v2867_v31  ;;  %2884 = vst.msk [vmem:[%s5134_s10 + $0x10] sm:$0xff] %vm549_vm2, %v2868_v20  ;;  %v2878_v48 = vadd.f32 %v2862_v18, %v5487_v26  ;;  %v2879_v6 = vadd.f32 %v2863_v8, %v5455_v63  ;;  %v2880_v33 = vadd.f32 %v2864_v23, %v5458_v0 }
 0x351   : > { %2885 = vst.msk [vmem:[%s5134_s10 + $0x18] sm:$0xff] %vm549_vm2, %v2869_v36  ;;  %v2881_v58 = vadd.f32 %v2865_v24, %v5459_v56  ;;  %2886 = vst.msk [vmem:[%s5134_s10 + $0x20] sm:$0xff] %vm549_vm2, %v2870_v28 }
 0x352   : > { %2887 = vst.msk [vmem:[%s5134_s10 + $0x28] sm:$0xff] %vm549_vm2, %v2871_v61  ;;  %2888 = vst.msk [vmem:[%s5134_s10 + $0x30] sm:$0xff] %vm549_vm2, %v2872_v41 }
 0x353   : > { %2889 = vst.msk [vmem:[%s5134_s10 + $0x38] sm:$0xff] %vm549_vm2, %v2873_v45  ;;  %2890 = vst.msk [vmem:[%s5134_s10 + $0x40] sm:$0xff] %vm549_vm2, %v2874_v49 }
 0x354   : > { %2891 = vst.msk [vmem:[%s5134_s10 + $0x48] sm:$0xff] %vm549_vm2, %v2875_v12  ;;  %2892 = vst.msk [vmem:[%s5134_s10 + $0x50] sm:$0xff] %vm549_vm2, %v2876_v9 }
 0x355   : > { %2893 = vst.msk [vmem:[%s5134_s10 + $0x58] sm:$0xff] %vm549_vm2, %v2877_v40  ;;  %2894 = vst.msk [vmem:[%s5134_s10 + $0x60] sm:$0xff] %vm549_vm2, %v2878_v48 }
 0x356   : > { %2895 = vst.msk [vmem:[%s5134_s10 + $0x68] sm:$0xff] %vm549_vm2, %v2879_v6  ;;  %2896 = vst.msk [vmem:[%s5134_s10 + $0x70] sm:$0xff] %vm549_vm2, %v2880_v33 }
 0x357   : > { %2897 = vst.msk [vmem:[%s5134_s10 + $0x78] sm:$0xff] %vm549_vm2, %v2881_v58 }
 0x358 PF: > { %s21_s15 = sadd.s32 1, %s3420_s15   ;;  %s5488_s11 = smov %s3412_s13 }
 0x359   : > { %p18_p7 = scmp.ge.s32.totalorder %s21_s15, 8   ;;  %s5489_s12 = smov %s3416_s14 }
 0x35a   : > { %s5490_s13 = smov %s5493_s7  ;;  %s5491_s14 = smov %s5497_s16 }
 0x35b   :  { %20 = sbr.rel (!%p18_p7) target bundleno = 3 (0x3), region = 108 }

</bundles_post_ra>
